<compile_context>
chip_gen: v6e
topology: v6e:2x2x1
jax: 0.10.0
libtpu: 0.0.40
codegen_flags: <defaults>
</compile_context>

<pallas_src>
import jax
import jax.numpy as jnp
from jax.experimental import pallas as pl
from jax.experimental.pallas import tpu as pltpu


# ---------------------------------------------------------------------------
# Fused whole-network kernel (runs once per sample; grid=(batch,))
# ---------------------------------------------------------------------------
def _alexnet_kernel(
    p1_ref,                       # [256, 32]  bf16  conv1 im2col patches (this sample)
    w1_ref, b1_ref,               # [32, 64]   bf16 / [1, 64]  f32
    w2_ref, b2_ref,               # [576, 192] bf16 / [1, 192] f32
    w3_ref, b3_ref,               # [1728, 384]
    w4_ref, b4_ref,               # [3456, 256]
    w5_ref, b5_ref,               # [2304, 256]
    wf1_ref, bf1_ref,             # [1024, 256] (rows pre-permuted to NHWC order)
    wf2_ref, bf2_ref,             # [256, 64]
    wf3_ref, bf3_ref,             # [64, 128]  (output padded to 128 lanes)
    out_ref,                      # [1, 8, 128] f32 (row 0 holds the logits)
    xp2_ref, xp3_ref, xp4_ref, xp5_ref, fc1in_ref,   # VMEM scratch (f32)
):
    f32 = jnp.float32
    bf16 = jnp.bfloat16

    def conv3x3_relu(xp_ref, w_ref, b_ref, wp, cin, mrows):
        """3x3 / stride-1 conv as 9 shifted-slice matmuls over a flattened
        zero-padded [wp*wp (+zero tail), cin] frame.  Only the first `mrows`
        flattened positions are computed -- they cover every row that is read
        downstream; rows h >= wp-2 or w >= wp-2 within that range hold
        harmless garbage that is never consumed."""
        acc = None
        for t in range(9):
            d = (t // 3) * wp + (t % 3)
            xs = xp_ref[d:d + mrows, :].astype(bf16)
            wt = w_ref[t * cin:(t + 1) * cin, :]
            part = jnp.dot(xs, wt, preferred_element_type=f32)
            acc = part if acc is None else acc + part
        return jnp.maximum(acc + b_ref[...], 0.0)

    def maxpool2x2_into(a, fw, h, w, dst_ref, dst_wp):
        """2x2 / stride-2 max-pool of the valid h x w region of the flattened
        frame `a` (row pitch fw); pooled rows are written straight into the
        interior of the next conv's zero-padded frame `dst_ref`."""
        for ho in range(h // 2):
            hmax = jnp.maximum(a[(2 * ho) * fw:(2 * ho) * fw + w, :],
                               a[(2 * ho + 1) * fw:(2 * ho + 1) * fw + w, :])
            for wo in range(w // 2):
                row = jnp.maximum(hmax[2 * wo:2 * wo + 1, :],
                                  hmax[2 * wo + 1:2 * wo + 2, :])
                dst = (ho + 1) * dst_wp + (wo + 1)
                dst_ref[dst:dst + 1, :] = row

    # Zero the padded frames (pad ring + shifted-read tail must be 0).
    xp2_ref[...] = jnp.zeros(xp2_ref.shape, f32)
    xp3_ref[...] = jnp.zeros(xp3_ref.shape, f32)
    xp4_ref[...] = jnp.zeros(xp4_ref.shape, f32)
    xp5_ref[...] = jnp.zeros(xp5_ref.shape, f32)

    # TODO(synk): nn.Dropout(p=0.5) is the identity here (inference semantics).

    # conv1 (im2col matmul) + ReLU : [256, 64], rows = (ho, wo) on a 16x16 grid.
    a1 = jnp.maximum(
        jnp.dot(p1_ref[...], w1_ref[...], preferred_element_type=f32)
        + b1_ref[...], 0.0)
    maxpool2x2_into(a1, 16, 16, 16, xp2_ref, 10)              # 16x16 -> 8x8 in 10x10 frame

    # Downstream only reads rows < 78 of conv2's flattened output -> mrows=80.
    a2 = conv3x3_relu(xp2_ref, w2_ref, b2_ref, 10, 64, 80)    # [80, 192]
    maxpool2x2_into(a2, 10, 8, 8, xp3_ref, 6)                 # 8x8 -> 4x4 in 6x6 frame

    # Downstream only reads rows < 22 of conv3/4/5 outputs -> mrows=24.
    a3 = conv3x3_relu(xp3_ref, w3_ref, b3_ref, 6, 192, 24)    # [24, 384]
    for ho in range(4):                                       # re-pad valid 4x4 for conv4
        xp4_ref[(ho + 1) * 6 + 1:(ho + 1) * 6 + 5, :] = a3[ho * 6:ho * 6 + 4, :]

    a4 = conv3x3_relu(xp4_ref, w4_ref, b4_ref, 6, 384, 24)    # [24, 256]
    for ho in range(4):                                       # re-pad valid 4x4 for conv5
        xp5_ref[(ho + 1) * 6 + 1:(ho + 1) * 6 + 5, :] = a4[ho * 6:ho * 6 + 4, :]

    a5 = conv3x3_relu(xp5_ref, w5_ref, b5_ref, 6, 256, 24)    # [24, 256]

    # Final 2x2 max-pool, flattened in NHWC order straight into fc1's input
    # row.  fc1's weight rows were permuted in the wrapper so this matches
    # PyTorch's x.view(-1, 1024) on the NCHW tensor exactly.
    for ho in range(2):
        hmax = jnp.maximum(a5[(2 * ho) * 6:(2 * ho) * 6 + 4, :],
                           a5[(2 * ho + 1) * 6:(2 * ho + 1) * 6 + 4, :])
        for wo in range(2):
            row = jnp.maximum(hmax[2 * wo:2 * wo + 1, :],
                              hmax[2 * wo + 1:2 * wo + 2, :])
            pos = ho * 2 + wo
            fc1in_ref[0:1, pos * 256:(pos + 1) * 256] = row

    # Fused FC chain; intermediates never leave VMEM.
    h = jnp.maximum(
        jnp.dot(fc1in_ref[...].astype(bf16), wf1_ref[...],
                preferred_element_type=f32) + bf1_ref[...], 0.0)       # [1, 256]
    h = jnp.maximum(
        jnp.dot(h.astype(bf16), wf2_ref[...],
                preferred_element_type=f32) + bf2_ref[...], 0.0)       # [1, 64]
    logits = (jnp.dot(h.astype(bf16), wf3_ref[...],
                      preferred_element_type=f32) + bf3_ref[...])      # [1, 128]
    out_ref[0] = jnp.broadcast_to(logits, (8, 128))


# ---------------------------------------------------------------------------
# Wrapper-side (one-time) weight reshaping and conv1 patch extraction
# ---------------------------------------------------------------------------
def _conv_w_mat(w_oihw):
    """[Cout, Cin, 3, 3] -> [9*Cin, Cout], rows ordered (kh, kw, cin) so tap
    t = i*3+j occupies rows [t*Cin, (t+1)*Cin)."""
    cout, cin, kh, kw = w_oihw.shape
    return jnp.transpose(w_oihw, (2, 3, 1, 0)).reshape(kh * kw * cin, cout)


def _conv1_patches(x_nchw):
    """im2col for conv1 only (3x3, stride 2, pad 1) on the tiny network input."""
    x = jnp.transpose(x_nchw, (0, 2, 3, 1)).astype(jnp.float32)     # NHWC [N, 32, 32, 3]
    x = jnp.pad(x, ((0, 0), (1, 1), (1, 1), (0, 0)))                # [N, 34, 34, 3]
    cols = []
    for i in range(3):
        for j in range(3):
            cols.append(x[:, i:i + 31:2, j:j + 31:2, :])            # stride-2 taps
    p = jnp.concatenate(cols, axis=-1).reshape(-1, 27)              # [N*256, 27]
    return jnp.pad(p, ((0, 0), (0, 5))).astype(jnp.bfloat16)        # pad K 27 -> 32


def alexnet_cifar10_forward(params, x_nchw):
    N = x_nchw.shape[0]
    bf16, f32 = jnp.bfloat16, jnp.float32

    p1 = _conv1_patches(x_nchw)

    w1, b1 = params["conv1"]
    w2, b2 = params["conv2"]
    w3, b3 = params["conv3"]
    w4, b4 = params["conv4"]
    w5, b5 = params["conv5"]
    wf1, bf1 = params["fc1"]
    wf2, bf2 = params["fc2"]
    wf3, bf3 = params["fc3"]

    w1m = jnp.pad(_conv_w_mat(w1), ((0, 5), (0, 0))).astype(bf16)   # [32, 64]
    w2m = _conv_w_mat(w2).astype(bf16)                              # [576, 192]
    w3m = _conv_w_mat(w3).astype(bf16)                              # [1728, 384]
    w4m = _conv_w_mat(w4).astype(bf16)                              # [3456, 256]
    w5m = _conv_w_mat(w5).astype(bf16)                              # [2304, 256]

    # Fold PyTorch's NCHW flatten (x.view(-1, 1024)) into fc1's weight rows:
    # kernel flatten order is (h, w, c); PyTorch order is (c, h, w).
    # perm[new] = old with new = (h*2+w)*256 + c, old = c*4 + (h*2+w).
    perm = (jnp.arange(256)[None, :] * 4 + jnp.arange(4)[:, None]).reshape(-1)
    wf1m = wf1[perm, :].astype(bf16)                                # [1024, 256]
    wf2m = wf2.astype(bf16)                                         # [256, 64]
    wf3m = jnp.pad(wf3, ((0, 0), (0, 118))).astype(bf16)            # [64, 128]

    b1r = b1.reshape(1, -1).astype(f32)
    b2r = b2.reshape(1, -1).astype(f32)
    b3r = b3.reshape(1, -1).astype(f32)
    b4r = b4.reshape(1, -1).astype(f32)
    b5r = b5.reshape(1, -1).astype(f32)
    bf1r = bf1.reshape(1, -1).astype(f32)
    bf2r = bf2.reshape(1, -1).astype(f32)
    bf3r = jnp.pad(bf3, (0, 118)).reshape(1, -1).astype(f32)        # [1, 128]

    def full(arr):
        return pl.BlockSpec(arr.shape, lambda i: (0, 0))

    # Advisory cost estimate (per pallas_call, i.e. over the whole batch).
    flops_per_sample = (
        2 * 256 * 32 * 64                 # conv1
        + 2 * 9 * 80 * 64 * 192           # conv2 (valid rows only)
        + 2 * 9 * 24 * 192 * 384          # conv3
        + 2 * 9 * 24 * 384 * 256          # conv4
        + 2 * 9 * 24 * 256 * 256          # conv5
        + 2 * (1024 * 256 + 256 * 64 + 64 * 128))   # fc1..fc3
    weight_bytes = sum(int(a.size) * a.dtype.itemsize for a in
                       (w1m, w2m, w3m, w4m, w5m, wf1m, wf2m, wf3m,
                        b1r, b2r, b3r, b4r, b5r, bf1r, bf2r, bf3r))
    bytes_accessed = int(p1.size) * 2 + weight_bytes + N * 8 * 128 * 4

    out = pl.pallas_call(
        _alexnet_kernel,
        out_shape=jax.ShapeDtypeStruct((N, 8, 128), f32),
        grid_spec=pltpu.PrefetchScalarGridSpec(
            num_scalar_prefetch=0,
            grid=(N,),
            in_specs=[
                pl.BlockSpec((256, 32), lambda i: (i, 0)),   # conv1 patches, per sample
                full(w1m), full(b1r),
                full(w2m), full(b2r),
                full(w3m), full(b3r),
                full(w4m), full(b4r),
                full(w5m), full(b5r),
                full(wf1m), full(bf1r),
                full(wf2m), full(bf2r),
                full(wf3m), full(bf3r),
            ],
            out_specs=pl.BlockSpec((1, 8, 128), lambda i: (i, 0, 0)),
            scratch_shapes=[
                pltpu.VMEM((128, 64), f32),    # conv2 input: 10x10 frame + zero tail
                pltpu.VMEM((56, 192), f32),    # conv3 input: 6x6 frame + zero tail
                pltpu.VMEM((56, 384), f32),    # conv4 input
                pltpu.VMEM((56, 256), f32),    # conv5 input
                pltpu.VMEM((1, 1024), f32),    # flattened fc1 input row
            ],
        ),
        compiler_params=pltpu.CompilerParams(
            dimension_semantics=("parallel",),           # v7x: one batch slice per TC
            vmem_limit_bytes=32 * 1024 * 1024,
        ),
        cost_estimate=pl.CostEstimate(
            flops=N * flops_per_sample,
            transcendentals=0,
            bytes_accessed=bytes_accessed,
        ),
    )(p1, w1m, b1r, w2m, b2r, w3m, b3r, w4m, b4r, w5m, b5r,
      wf1m, bf1r, wf2m, bf2r, wf3m, bf3r)

    return out[:, 0, :10]                                           # [N, 10] f32


# ---------------------------------------------------------------------------
# Parameters (deterministic synthetic init matching the PyTorch module shapes)
# ---------------------------------------------------------------------------
def init_params(key):
    def conv_p(k, cout, cin, ksz):
        k1, k2 = jax.random.split(k)
        fan_in = cin * ksz * ksz
        w = jax.random.normal(k1, (cout, cin, ksz, ksz), jnp.float32) / jnp.sqrt(fan_in)
        b = 0.01 * jax.random.normal(k2, (cout,), jnp.float32)
        return w, b

    def fc_p(k, fin, fout):
        k1, k2 = jax.random.split(k)
        w = jax.random.normal(k1, (fin, fout), jnp.float32) / jnp.sqrt(fin)
        b = 0.01 * jax.random.normal(k2, (fout,), jnp.float32)
        return w, b

    keys = jax.random.split(key, 8)
    return {
        "conv1": conv_p(keys[0], 64, 3, 3),
        "conv2": conv_p(keys[1], 192, 64, 3),
        "conv3": conv_p(keys[2], 384, 192, 3),
        "conv4": conv_p(keys[3], 256, 384, 3),
        "conv5": conv_p(keys[4], 256, 256, 3),
        "fc1": fc_p(keys[5], 1024, 256),
        "fc2": fc_p(keys[6], 256, 64),
        "fc3": fc_p(keys[7], 64, 10),
    }


if __name__ == "__main__":
    key = jax.random.PRNGKey(0)
    pkey, xkey = jax.random.split(key)
    params = init_params(pkey)
    # CIFAR-10 shape is forced by fc1 (256 * 2 * 2 = 1024): [batch=2, 3, 32, 32].
    x = jax.random.normal(xkey, (2, 3, 32, 32), jnp.float32)

    out = jax.jit(alexnet_cifar10_forward)(params, x)
    out = jax.block_until_ready(out)
    assert out.shape == (2, 10) and out.dtype == jnp.float32
    print("KERNEL_OK")
</pallas_src>

<mosaic_0001>
module attributes {stable_mosaic.version = 11 : i64} {
  func.func @_alexnet_kernel(%arg0: i32, %arg1: memref<256x32xbf16, #tpu.memory_space<vmem>>, %arg2: memref<32x64xbf16, #tpu.memory_space<vmem>>, %arg3: memref<1x64xf32, #tpu.memory_space<vmem>>, %arg4: memref<576x192xbf16, #tpu.memory_space<vmem>>, %arg5: memref<1x192xf32, #tpu.memory_space<vmem>>, %arg6: memref<1728x384xbf16, #tpu.memory_space<vmem>>, %arg7: memref<1x384xf32, #tpu.memory_space<vmem>>, %arg8: memref<3456x256xbf16, #tpu.memory_space<vmem>>, %arg9: memref<1x256xf32, #tpu.memory_space<vmem>>, %arg10: memref<2304x256xbf16, #tpu.memory_space<vmem>>, %arg11: memref<1x256xf32, #tpu.memory_space<vmem>>, %arg12: memref<1024x256xbf16, #tpu.memory_space<vmem>>, %arg13: memref<1x256xf32, #tpu.memory_space<vmem>>, %arg14: memref<256x64xbf16, #tpu.memory_space<vmem>>, %arg15: memref<1x64xf32, #tpu.memory_space<vmem>>, %arg16: memref<64x128xbf16, #tpu.memory_space<vmem>>, %arg17: memref<1x128xf32, #tpu.memory_space<vmem>>, %arg18: memref<1x8x128xf32, #tpu.memory_space<vmem>>, %arg19: memref<128x64xf32, #tpu.memory_space<vmem>>, %arg20: memref<56x192xf32, #tpu.memory_space<vmem>>, %arg21: memref<56x384xf32, #tpu.memory_space<vmem>>, %arg22: memref<56x256xf32, #tpu.memory_space<vmem>>, %arg23: memref<1x1024xf32, #tpu.memory_space<vmem>>) attributes {dimension_semantics = [#tpu.dimension_semantics<parallel>], iteration_bounds = array<i64: 2>, scalar_prefetch = 0 : i64, scratch_operands = 5 : i64, tpu.core_type = #tpu.core_type<tc>, window_params = [{transform_indices = @transform_0, window_bounds = array<i64: 256, 32>}, {pipeline_mode = #tpu.pipeline_mode<synchronous>, transform_indices = @transform_1, window_bounds = array<i64: 32, 64>}, {pipeline_mode = #tpu.pipeline_mode<synchronous>, transform_indices = @transform_2, window_bounds = array<i64: 1, 64>}, {pipeline_mode = #tpu.pipeline_mode<synchronous>, transform_indices = @transform_3, window_bounds = array<i64: 576, 192>}, {pipeline_mode = #tpu.pipeline_mode<synchronous>, transform_indices = @transform_4, window_bounds = array<i64: 1, 192>}, {pipeline_mode = #tpu.pipeline_mode<synchronous>, transform_indices = @transform_5, window_bounds = array<i64: 1728, 384>}, {pipeline_mode = #tpu.pipeline_mode<synchronous>, transform_indices = @transform_6, window_bounds = array<i64: 1, 384>}, {pipeline_mode = #tpu.pipeline_mode<synchronous>, transform_indices = @transform_7, window_bounds = array<i64: 3456, 256>}, {pipeline_mode = #tpu.pipeline_mode<synchronous>, transform_indices = @transform_8, window_bounds = array<i64: 1, 256>}, {pipeline_mode = #tpu.pipeline_mode<synchronous>, transform_indices = @transform_9, window_bounds = array<i64: 2304, 256>}, {pipeline_mode = #tpu.pipeline_mode<synchronous>, transform_indices = @transform_10, window_bounds = array<i64: 1, 256>}, {pipeline_mode = #tpu.pipeline_mode<synchronous>, transform_indices = @transform_11, window_bounds = array<i64: 1024, 256>}, {pipeline_mode = #tpu.pipeline_mode<synchronous>, transform_indices = @transform_12, window_bounds = array<i64: 1, 256>}, {pipeline_mode = #tpu.pipeline_mode<synchronous>, transform_indices = @transform_13, window_bounds = array<i64: 256, 64>}, {pipeline_mode = #tpu.pipeline_mode<synchronous>, transform_indices = @transform_14, window_bounds = array<i64: 1, 64>}, {pipeline_mode = #tpu.pipeline_mode<synchronous>, transform_indices = @transform_15, window_bounds = array<i64: 64, 128>}, {pipeline_mode = #tpu.pipeline_mode<synchronous>, transform_indices = @transform_16, window_bounds = array<i64: 1, 128>}, {transform_indices = @transform_17, window_bounds = array<i64: 1, 8, 128>}]} {
    %cst = arith.constant 0.000000e+00 : f32
    %0 = vector.broadcast %cst : f32 to vector<128x64xf32>
    %c0 = arith.constant 0 : index
    %c0_0 = arith.constant 0 : index
    %1 = vector.load %arg19[%c0, %c0_0] : memref<128x64xf32, #tpu.memory_space<vmem>>, vector<128x64xf32>
    tpu.vector_store %arg19[%c0, %c0_0], %0 {strides = array<i32>} : memref<128x64xf32, #tpu.memory_space<vmem>>, vector<128x64xf32>,
    %cst_1 = arith.constant 0.000000e+00 : f32
    %2 = vector.broadcast %cst_1 : f32 to vector<56x192xf32>
    %c0_2 = arith.constant 0 : index
    %c0_3 = arith.constant 0 : index
    %3 = vector.load %arg20[%c0_2, %c0_3] : memref<56x192xf32, #tpu.memory_space<vmem>>, vector<56x192xf32>
    tpu.vector_store %arg20[%c0_2, %c0_3], %2 {strides = array<i32>} : memref<56x192xf32, #tpu.memory_space<vmem>>, vector<56x192xf32>,
    %cst_4 = arith.constant 0.000000e+00 : f32
    %4 = vector.broadcast %cst_4 : f32 to vector<56x384xf32>
    %c0_5 = arith.constant 0 : index
    %c0_6 = arith.constant 0 : index
    %5 = vector.load %arg21[%c0_5, %c0_6] : memref<56x384xf32, #tpu.memory_space<vmem>>, vector<56x384xf32>
    tpu.vector_store %arg21[%c0_5, %c0_6], %4 {strides = array<i32>} : memref<56x384xf32, #tpu.memory_space<vmem>>, vector<56x384xf32>,
    %cst_7 = arith.constant 0.000000e+00 : f32
    %6 = vector.broadcast %cst_7 : f32 to vector<56x256xf32>
    %c0_8 = arith.constant 0 : index
    %c0_9 = arith.constant 0 : index
    %7 = vector.load %arg22[%c0_8, %c0_9] : memref<56x256xf32, #tpu.memory_space<vmem>>, vector<56x256xf32>
    tpu.vector_store %arg22[%c0_8, %c0_9], %6 {strides = array<i32>} : memref<56x256xf32, #tpu.memory_space<vmem>>, vector<56x256xf32>,
    %c0_10 = arith.constant 0 : index
    %c0_11 = arith.constant 0 : index
    %8 = vector.load %arg1[%c0_10, %c0_11] : memref<256x32xbf16, #tpu.memory_space<vmem>>, vector<256x32xbf16>
    %c0_12 = arith.constant 0 : index
    %c0_13 = arith.constant 0 : index
    %9 = vector.load %arg2[%c0_12, %c0_13] : memref<32x64xbf16, #tpu.memory_space<vmem>>, vector<32x64xbf16>
    %cst_14 = arith.constant dense<0.000000e+00> : vector<256x64xf32>
    %10 = tpu.matmul %8, %9, %cst_14 {dimension_numbers = #tpu.dot_dimension_numbers<[1], [0], [0], [1], [0, 0, 1, 1], [], []>} : vector<256x32xbf16>, vector<32x64xbf16>, vector<256x64xf32> -> vector<256x64xf32>
    %c0_15 = arith.constant 0 : index
    %c0_16 = arith.constant 0 : index
    %11 = vector.load %arg3[%c0_15, %c0_16] : memref<1x64xf32, #tpu.memory_space<vmem>>, vector<1x64xf32>
    %12 = vector.broadcast %11 : vector<1x64xf32> to vector<256x64xf32>
    %13 = arith.addf %10, %12 : vector<256x64xf32>
    %cst_17 = arith.constant 0.000000e+00 : f32
    %14 = vector.broadcast %cst_17 : f32 to vector<256x64xf32>
    %15 = arith.maximumf %13, %14 : vector<256x64xf32>
    %16 = vector.extract_strided_slice %15 {offsets = [0, 0], sizes = [16, 64], strides = [1, 1]} : vector<256x64xf32> to vector<16x64xf32>
    %17 = vector.extract_strided_slice %15 {offsets = [16, 0], sizes = [16, 64], strides = [1, 1]} : vector<256x64xf32> to vector<16x64xf32>
    %18 = arith.maximumf %16, %17 : vector<16x64xf32>
    %19 = vector.extract_strided_slice %18 {offsets = [0, 0], sizes = [1, 64], strides = [1, 1]} : vector<16x64xf32> to vector<1x64xf32>
    %20 = vector.extract_strided_slice %18 {offsets = [1, 0], sizes = [1, 64], strides = [1, 1]} : vector<16x64xf32> to vector<1x64xf32>
    %21 = arith.maximumf %19, %20 : vector<1x64xf32>
    %c11 = arith.constant 11 : index
    %c0_18 = arith.constant 0 : index
    %22 = vector.load %arg19[%c11, %c0_18] : memref<128x64xf32, #tpu.memory_space<vmem>>, vector<1x64xf32>
    tpu.vector_store %arg19[%c11, %c0_18], %21 {strides = array<i32>} : memref<128x64xf32, #tpu.memory_space<vmem>>, vector<1x64xf32>,
    %23 = vector.extract_strided_slice %18 {offsets = [2, 0], sizes = [1, 64], strides = [1, 1]} : vector<16x64xf32> to vector<1x64xf32>
    %24 = vector.extract_strided_slice %18 {offsets = [3, 0], sizes = [1, 64], strides = [1, 1]} : vector<16x64xf32> to vector<1x64xf32>
    %25 = arith.maximumf %23, %24 : vector<1x64xf32>
    %c12 = arith.constant 12 : index
    %c0_19 = arith.constant 0 : index
    %26 = vector.load %arg19[%c12, %c0_19] : memref<128x64xf32, #tpu.memory_space<vmem>>, vector<1x64xf32>
    tpu.vector_store %arg19[%c12, %c0_19], %25 {strides = array<i32>} : memref<128x64xf32, #tpu.memory_space<vmem>>, vector<1x64xf32>,
    %27 = vector.extract_strided_slice %18 {offsets = [4, 0], sizes = [1, 64], strides = [1, 1]} : vector<16x64xf32> to vector<1x64xf32>
    %28 = vector.extract_strided_slice %18 {offsets = [5, 0], sizes = [1, 64], strides = [1, 1]} : vector<16x64xf32> to vector<1x64xf32>
    %29 = arith.maximumf %27, %28 : vector<1x64xf32>
    %c13 = arith.constant 13 : index
    %c0_20 = arith.constant 0 : index
    %30 = vector.load %arg19[%c13, %c0_20] : memref<128x64xf32, #tpu.memory_space<vmem>>, vector<1x64xf32>
    tpu.vector_store %arg19[%c13, %c0_20], %29 {strides = array<i32>} : memref<128x64xf32, #tpu.memory_space<vmem>>, vector<1x64xf32>,
    %31 = vector.extract_strided_slice %18 {offsets = [6, 0], sizes = [1, 64], strides = [1, 1]} : vector<16x64xf32> to vector<1x64xf32>
    %32 = vector.extract_strided_slice %18 {offsets = [7, 0], sizes = [1, 64], strides = [1, 1]} : vector<16x64xf32> to vector<1x64xf32>
    %33 = arith.maximumf %31, %32 : vector<1x64xf32>
    %c14 = arith.constant 14 : index
    %c0_21 = arith.constant 0 : index
    %34 = vector.load %arg19[%c14, %c0_21] : memref<128x64xf32, #tpu.memory_space<vmem>>, vector<1x64xf32>
    tpu.vector_store %arg19[%c14, %c0_21], %33 {strides = array<i32>} : memref<128x64xf32, #tpu.memory_space<vmem>>, vector<1x64xf32>,
    %35 = vector.extract_strided_slice %18 {offsets = [8, 0], sizes = [1, 64], strides = [1, 1]} : vector<16x64xf32> to vector<1x64xf32>
    %36 = vector.extract_strided_slice %18 {offsets = [9, 0], sizes = [1, 64], strides = [1, 1]} : vector<16x64xf32> to vector<1x64xf32>
    %37 = arith.maximumf %35, %36 : vector<1x64xf32>
    %c15 = arith.constant 15 : index
    %c0_22 = arith.constant 0 : index
    %38 = vector.load %arg19[%c15, %c0_22] : memref<128x64xf32, #tpu.memory_space<vmem>>, vector<1x64xf32>
    tpu.vector_store %arg19[%c15, %c0_22], %37 {strides = array<i32>} : memref<128x64xf32, #tpu.memory_space<vmem>>, vector<1x64xf32>,
    %39 = vector.extract_strided_slice %18 {offsets = [10, 0], sizes = [1, 64], strides = [1, 1]} : vector<16x64xf32> to vector<1x64xf32>
    %40 = vector.extract_strided_slice %18 {offsets = [11, 0], sizes = [1, 64], strides = [1, 1]} : vector<16x64xf32> to vector<1x64xf32>
    %41 = arith.maximumf %39, %40 : vector<1x64xf32>
    %c16 = arith.constant 16 : index
    %c0_23 = arith.constant 0 : index
    %42 = vector.load %arg19[%c16, %c0_23] : memref<128x64xf32, #tpu.memory_space<vmem>>, vector<1x64xf32>
    tpu.vector_store %arg19[%c16, %c0_23], %41 {strides = array<i32>} : memref<128x64xf32, #tpu.memory_space<vmem>>, vector<1x64xf32>,
    %43 = vector.extract_strided_slice %18 {offsets = [12, 0], sizes = [1, 64], strides = [1, 1]} : vector<16x64xf32> to vector<1x64xf32>
    %44 = vector.extract_strided_slice %18 {offsets = [13, 0], sizes = [1, 64], strides = [1, 1]} : vector<16x64xf32> to vector<1x64xf32>
    %45 = arith.maximumf %43, %44 : vector<1x64xf32>
    %c17 = arith.constant 17 : index
    %c0_24 = arith.constant 0 : index
    %46 = vector.load %arg19[%c17, %c0_24] : memref<128x64xf32, #tpu.memory_space<vmem>>, vector<1x64xf32>
    tpu.vector_store %arg19[%c17, %c0_24], %45 {strides = array<i32>} : memref<128x64xf32, #tpu.memory_space<vmem>>, vector<1x64xf32>,
    %47 = vector.extract_strided_slice %18 {offsets = [14, 0], sizes = [1, 64], strides = [1, 1]} : vector<16x64xf32> to vector<1x64xf32>
    %48 = vector.extract_strided_slice %18 {offsets = [15, 0], sizes = [1, 64], strides = [1, 1]} : vector<16x64xf32> to vector<1x64xf32>
    %49 = arith.maximumf %47, %48 : vector<1x64xf32>
    %c18 = arith.constant 18 : index
    %c0_25 = arith.constant 0 : index
    %50 = vector.load %arg19[%c18, %c0_25] : memref<128x64xf32, #tpu.memory_space<vmem>>, vector<1x64xf32>
    tpu.vector_store %arg19[%c18, %c0_25], %49 {strides = array<i32>} : memref<128x64xf32, #tpu.memory_space<vmem>>, vector<1x64xf32>,
    %51 = vector.extract_strided_slice %15 {offsets = [32, 0], sizes = [16, 64], strides = [1, 1]} : vector<256x64xf32> to vector<16x64xf32>
    %52 = vector.extract_strided_slice %15 {offsets = [48, 0], sizes = [16, 64], strides = [1, 1]} : vector<256x64xf32> to vector<16x64xf32>
    %53 = arith.maximumf %51, %52 : vector<16x64xf32>
    %54 = vector.extract_strided_slice %53 {offsets = [0, 0], sizes = [1, 64], strides = [1, 1]} : vector<16x64xf32> to vector<1x64xf32>
    %55 = vector.extract_strided_slice %53 {offsets = [1, 0], sizes = [1, 64], strides = [1, 1]} : vector<16x64xf32> to vector<1x64xf32>
    %56 = arith.maximumf %54, %55 : vector<1x64xf32>
    %c21 = arith.constant 21 : index
    %c0_26 = arith.constant 0 : index
    %57 = vector.load %arg19[%c21, %c0_26] : memref<128x64xf32, #tpu.memory_space<vmem>>, vector<1x64xf32>
    tpu.vector_store %arg19[%c21, %c0_26], %56 {strides = array<i32>} : memref<128x64xf32, #tpu.memory_space<vmem>>, vector<1x64xf32>,
    %58 = vector.extract_strided_slice %53 {offsets = [2, 0], sizes = [1, 64], strides = [1, 1]} : vector<16x64xf32> to vector<1x64xf32>
    %59 = vector.extract_strided_slice %53 {offsets = [3, 0], sizes = [1, 64], strides = [1, 1]} : vector<16x64xf32> to vector<1x64xf32>
    %60 = arith.maximumf %58, %59 : vector<1x64xf32>
    %c22 = arith.constant 22 : index
    %c0_27 = arith.constant 0 : index
    %61 = vector.load %arg19[%c22, %c0_27] : memref<128x64xf32, #tpu.memory_space<vmem>>, vector<1x64xf32>
    tpu.vector_store %arg19[%c22, %c0_27], %60 {strides = array<i32>} : memref<128x64xf32, #tpu.memory_space<vmem>>, vector<1x64xf32>,
    %62 = vector.extract_strided_slice %53 {offsets = [4, 0], sizes = [1, 64], strides = [1, 1]} : vector<16x64xf32> to vector<1x64xf32>
    %63 = vector.extract_strided_slice %53 {offsets = [5, 0], sizes = [1, 64], strides = [1, 1]} : vector<16x64xf32> to vector<1x64xf32>
    %64 = arith.maximumf %62, %63 : vector<1x64xf32>
    %c23 = arith.constant 23 : index
    %c0_28 = arith.constant 0 : index
    %65 = vector.load %arg19[%c23, %c0_28] : memref<128x64xf32, #tpu.memory_space<vmem>>, vector<1x64xf32>
    tpu.vector_store %arg19[%c23, %c0_28], %64 {strides = array<i32>} : memref<128x64xf32, #tpu.memory_space<vmem>>, vector<1x64xf32>,
    %66 = vector.extract_strided_slice %53 {offsets = [6, 0], sizes = [1, 64], strides = [1, 1]} : vector<16x64xf32> to vector<1x64xf32>
    %67 = vector.extract_strided_slice %53 {offsets = [7, 0], sizes = [1, 64], strides = [1, 1]} : vector<16x64xf32> to vector<1x64xf32>
    %68 = arith.maximumf %66, %67 : vector<1x64xf32>
    %c24 = arith.constant 24 : index
    %c0_29 = arith.constant 0 : index
    %69 = vector.load %arg19[%c24, %c0_29] : memref<128x64xf32, #tpu.memory_space<vmem>>, vector<1x64xf32>
    tpu.vector_store %arg19[%c24, %c0_29], %68 {strides = array<i32>} : memref<128x64xf32, #tpu.memory_space<vmem>>, vector<1x64xf32>,
    %70 = vector.extract_strided_slice %53 {offsets = [8, 0], sizes = [1, 64], strides = [1, 1]} : vector<16x64xf32> to vector<1x64xf32>
    %71 = vector.extract_strided_slice %53 {offsets = [9, 0], sizes = [1, 64], strides = [1, 1]} : vector<16x64xf32> to vector<1x64xf32>
    %72 = arith.maximumf %70, %71 : vector<1x64xf32>
    %c25 = arith.constant 25 : index
    %c0_30 = arith.constant 0 : index
    %73 = vector.load %arg19[%c25, %c0_30] : memref<128x64xf32, #tpu.memory_space<vmem>>, vector<1x64xf32>
    tpu.vector_store %arg19[%c25, %c0_30], %72 {strides = array<i32>} : memref<128x64xf32, #tpu.memory_space<vmem>>, vector<1x64xf32>,
    %74 = vector.extract_strided_slice %53 {offsets = [10, 0], sizes = [1, 64], strides = [1, 1]} : vector<16x64xf32> to vector<1x64xf32>
    %75 = vector.extract_strided_slice %53 {offsets = [11, 0], sizes = [1, 64], strides = [1, 1]} : vector<16x64xf32> to vector<1x64xf32>
    %76 = arith.maximumf %74, %75 : vector<1x64xf32>
    %c26 = arith.constant 26 : index
    %c0_31 = arith.constant 0 : index
    %77 = vector.load %arg19[%c26, %c0_31] : memref<128x64xf32, #tpu.memory_space<vmem>>, vector<1x64xf32>
    tpu.vector_store %arg19[%c26, %c0_31], %76 {strides = array<i32>} : memref<128x64xf32, #tpu.memory_space<vmem>>, vector<1x64xf32>,
    %78 = vector.extract_strided_slice %53 {offsets = [12, 0], sizes = [1, 64], strides = [1, 1]} : vector<16x64xf32> to vector<1x64xf32>
    %79 = vector.extract_strided_slice %53 {offsets = [13, 0], sizes = [1, 64], strides = [1, 1]} : vector<16x64xf32> to vector<1x64xf32>
    %80 = arith.maximumf %78, %79 : vector<1x64xf32>
    %c27 = arith.constant 27 : index
    %c0_32 = arith.constant 0 : index
    %81 = vector.load %arg19[%c27, %c0_32] : memref<128x64xf32, #tpu.memory_space<vmem>>, vector<1x64xf32>
    tpu.vector_store %arg19[%c27, %c0_32], %80 {strides = array<i32>} : memref<128x64xf32, #tpu.memory_space<vmem>>, vector<1x64xf32>,
    %82 = vector.extract_strided_slice %53 {offsets = [14, 0], sizes = [1, 64], strides = [1, 1]} : vector<16x64xf32> to vector<1x64xf32>
    %83 = vector.extract_strided_slice %53 {offsets = [15, 0], sizes = [1, 64], strides = [1, 1]} : vector<16x64xf32> to vector<1x64xf32>
    %84 = arith.maximumf %82, %83 : vector<1x64xf32>
    %c28 = arith.constant 28 : index
    %c0_33 = arith.constant 0 : index
    %85 = vector.load %arg19[%c28, %c0_33] : memref<128x64xf32, #tpu.memory_space<vmem>>, vector<1x64xf32>
    tpu.vector_store %arg19[%c28, %c0_33], %84 {strides = array<i32>} : memref<128x64xf32, #tpu.memory_space<vmem>>, vector<1x64xf32>,
    %86 = vector.extract_strided_slice %15 {offsets = [64, 0], sizes = [16, 64], strides = [1, 1]} : vector<256x64xf32> to vector<16x64xf32>
    %87 = vector.extract_strided_slice %15 {offsets = [80, 0], sizes = [16, 64], strides = [1, 1]} : vector<256x64xf32> to vector<16x64xf32>
    %88 = arith.maximumf %86, %87 : vector<16x64xf32>
    %89 = vector.extract_strided_slice %88 {offsets = [0, 0], sizes = [1, 64], strides = [1, 1]} : vector<16x64xf32> to vector<1x64xf32>
    %90 = vector.extract_strided_slice %88 {offsets = [1, 0], sizes = [1, 64], strides = [1, 1]} : vector<16x64xf32> to vector<1x64xf32>
    %91 = arith.maximumf %89, %90 : vector<1x64xf32>
    %c31 = arith.constant 31 : index
    %c0_34 = arith.constant 0 : index
    %92 = vector.load %arg19[%c31, %c0_34] : memref<128x64xf32, #tpu.memory_space<vmem>>, vector<1x64xf32>
    tpu.vector_store %arg19[%c31, %c0_34], %91 {strides = array<i32>} : memref<128x64xf32, #tpu.memory_space<vmem>>, vector<1x64xf32>,
    %93 = vector.extract_strided_slice %88 {offsets = [2, 0], sizes = [1, 64], strides = [1, 1]} : vector<16x64xf32> to vector<1x64xf32>
    %94 = vector.extract_strided_slice %88 {offsets = [3, 0], sizes = [1, 64], strides = [1, 1]} : vector<16x64xf32> to vector<1x64xf32>
    %95 = arith.maximumf %93, %94 : vector<1x64xf32>
    %c32 = arith.constant 32 : index
    %c0_35 = arith.constant 0 : index
    %96 = vector.load %arg19[%c32, %c0_35] : memref<128x64xf32, #tpu.memory_space<vmem>>, vector<1x64xf32>
    tpu.vector_store %arg19[%c32, %c0_35], %95 {strides = array<i32>} : memref<128x64xf32, #tpu.memory_space<vmem>>, vector<1x64xf32>,
    %97 = vector.extract_strided_slice %88 {offsets = [4, 0], sizes = [1, 64], strides = [1, 1]} : vector<16x64xf32> to vector<1x64xf32>
    %98 = vector.extract_strided_slice %88 {offsets = [5, 0], sizes = [1, 64], strides = [1, 1]} : vector<16x64xf32> to vector<1x64xf32>
    %99 = arith.maximumf %97, %98 : vector<1x64xf32>
    %c33 = arith.constant 33 : index
    %c0_36 = arith.constant 0 : index
    %100 = vector.load %arg19[%c33, %c0_36] : memref<128x64xf32, #tpu.memory_space<vmem>>, vector<1x64xf32>
    tpu.vector_store %arg19[%c33, %c0_36], %99 {strides = array<i32>} : memref<128x64xf32, #tpu.memory_space<vmem>>, vector<1x64xf32>,
    %101 = vector.extract_strided_slice %88 {offsets = [6, 0], sizes = [1, 64], strides = [1, 1]} : vector<16x64xf32> to vector<1x64xf32>
    %102 = vector.extract_strided_slice %88 {offsets = [7, 0], sizes = [1, 64], strides = [1, 1]} : vector<16x64xf32> to vector<1x64xf32>
    %103 = arith.maximumf %101, %102 : vector<1x64xf32>
    %c34 = arith.constant 34 : index
    %c0_37 = arith.constant 0 : index
    %104 = vector.load %arg19[%c34, %c0_37] : memref<128x64xf32, #tpu.memory_space<vmem>>, vector<1x64xf32>
    tpu.vector_store %arg19[%c34, %c0_37], %103 {strides = array<i32>} : memref<128x64xf32, #tpu.memory_space<vmem>>, vector<1x64xf32>,
    %105 = vector.extract_strided_slice %88 {offsets = [8, 0], sizes = [1, 64], strides = [1, 1]} : vector<16x64xf32> to vector<1x64xf32>
    %106 = vector.extract_strided_slice %88 {offsets = [9, 0], sizes = [1, 64], strides = [1, 1]} : vector<16x64xf32> to vector<1x64xf32>
    %107 = arith.maximumf %105, %106 : vector<1x64xf32>
    %c35 = arith.constant 35 : index
    %c0_38 = arith.constant 0 : index
    %108 = vector.load %arg19[%c35, %c0_38] : memref<128x64xf32, #tpu.memory_space<vmem>>, vector<1x64xf32>
    tpu.vector_store %arg19[%c35, %c0_38], %107 {strides = array<i32>} : memref<128x64xf32, #tpu.memory_space<vmem>>, vector<1x64xf32>,
    %109 = vector.extract_strided_slice %88 {offsets = [10, 0], sizes = [1, 64], strides = [1, 1]} : vector<16x64xf32> to vector<1x64xf32>
    %110 = vector.extract_strided_slice %88 {offsets = [11, 0], sizes = [1, 64], strides = [1, 1]} : vector<16x64xf32> to vector<1x64xf32>
    %111 = arith.maximumf %109, %110 : vector<1x64xf32>
    %c36 = arith.constant 36 : index
    %c0_39 = arith.constant 0 : index
    %112 = vector.load %arg19[%c36, %c0_39] : memref<128x64xf32, #tpu.memory_space<vmem>>, vector<1x64xf32>
    tpu.vector_store %arg19[%c36, %c0_39], %111 {strides = array<i32>} : memref<128x64xf32, #tpu.memory_space<vmem>>, vector<1x64xf32>,
    %113 = vector.extract_strided_slice %88 {offsets = [12, 0], sizes = [1, 64], strides = [1, 1]} : vector<16x64xf32> to vector<1x64xf32>
    %114 = vector.extract_strided_slice %88 {offsets = [13, 0], sizes = [1, 64], strides = [1, 1]} : vector<16x64xf32> to vector<1x64xf32>
    %115 = arith.maximumf %113, %114 : vector<1x64xf32>
    %c37 = arith.constant 37 : index
    %c0_40 = arith.constant 0 : index
    %116 = vector.load %arg19[%c37, %c0_40] : memref<128x64xf32, #tpu.memory_space<vmem>>, vector<1x64xf32>
    tpu.vector_store %arg19[%c37, %c0_40], %115 {strides = array<i32>} : memref<128x64xf32, #tpu.memory_space<vmem>>, vector<1x64xf32>,
    %117 = vector.extract_strided_slice %88 {offsets = [14, 0], sizes = [1, 64], strides = [1, 1]} : vector<16x64xf32> to vector<1x64xf32>
    %118 = vector.extract_strided_slice %88 {offsets = [15, 0], sizes = [1, 64], strides = [1, 1]} : vector<16x64xf32> to vector<1x64xf32>
    %119 = arith.maximumf %117, %118 : vector<1x64xf32>
    %c38 = arith.constant 38 : index
    %c0_41 = arith.constant 0 : index
    %120 = vector.load %arg19[%c38, %c0_41] : memref<128x64xf32, #tpu.memory_space<vmem>>, vector<1x64xf32>
    tpu.vector_store %arg19[%c38, %c0_41], %119 {strides = array<i32>} : memref<128x64xf32, #tpu.memory_space<vmem>>, vector<1x64xf32>,
    %121 = vector.extract_strided_slice %15 {offsets = [96, 0], sizes = [16, 64], strides = [1, 1]} : vector<256x64xf32> to vector<16x64xf32>
    %122 = vector.extract_strided_slice %15 {offsets = [112, 0], sizes = [16, 64], strides = [1, 1]} : vector<256x64xf32> to vector<16x64xf32>
    %123 = arith.maximumf %121, %122 : vector<16x64xf32>
    %124 = vector.extract_strided_slice %123 {offsets = [0, 0], sizes = [1, 64], strides = [1, 1]} : vector<16x64xf32> to vector<1x64xf32>
    %125 = vector.extract_strided_slice %123 {offsets = [1, 0], sizes = [1, 64], strides = [1, 1]} : vector<16x64xf32> to vector<1x64xf32>
    %126 = arith.maximumf %124, %125 : vector<1x64xf32>
    %c41 = arith.constant 41 : index
    %c0_42 = arith.constant 0 : index
    %127 = vector.load %arg19[%c41, %c0_42] : memref<128x64xf32, #tpu.memory_space<vmem>>, vector<1x64xf32>
    tpu.vector_store %arg19[%c41, %c0_42], %126 {strides = array<i32>} : memref<128x64xf32, #tpu.memory_space<vmem>>, vector<1x64xf32>,
    %128 = vector.extract_strided_slice %123 {offsets = [2, 0], sizes = [1, 64], strides = [1, 1]} : vector<16x64xf32> to vector<1x64xf32>
    %129 = vector.extract_strided_slice %123 {offsets = [3, 0], sizes = [1, 64], strides = [1, 1]} : vector<16x64xf32> to vector<1x64xf32>
    %130 = arith.maximumf %128, %129 : vector<1x64xf32>
    %c42 = arith.constant 42 : index
    %c0_43 = arith.constant 0 : index
    %131 = vector.load %arg19[%c42, %c0_43] : memref<128x64xf32, #tpu.memory_space<vmem>>, vector<1x64xf32>
    tpu.vector_store %arg19[%c42, %c0_43], %130 {strides = array<i32>} : memref<128x64xf32, #tpu.memory_space<vmem>>, vector<1x64xf32>,
    %132 = vector.extract_strided_slice %123 {offsets = [4, 0], sizes = [1, 64], strides = [1, 1]} : vector<16x64xf32> to vector<1x64xf32>
    %133 = vector.extract_strided_slice %123 {offsets = [5, 0], sizes = [1, 64], strides = [1, 1]} : vector<16x64xf32> to vector<1x64xf32>
    %134 = arith.maximumf %132, %133 : vector<1x64xf32>
    %c43 = arith.constant 43 : index
    %c0_44 = arith.constant 0 : index
    %135 = vector.load %arg19[%c43, %c0_44] : memref<128x64xf32, #tpu.memory_space<vmem>>, vector<1x64xf32>
    tpu.vector_store %arg19[%c43, %c0_44], %134 {strides = array<i32>} : memref<128x64xf32, #tpu.memory_space<vmem>>, vector<1x64xf32>,
    %136 = vector.extract_strided_slice %123 {offsets = [6, 0], sizes = [1, 64], strides = [1, 1]} : vector<16x64xf32> to vector<1x64xf32>
    %137 = vector.extract_strided_slice %123 {offsets = [7, 0], sizes = [1, 64], strides = [1, 1]} : vector<16x64xf32> to vector<1x64xf32>
    %138 = arith.maximumf %136, %137 : vector<1x64xf32>
    %c44 = arith.constant 44 : index
    %c0_45 = arith.constant 0 : index
    %139 = vector.load %arg19[%c44, %c0_45] : memref<128x64xf32, #tpu.memory_space<vmem>>, vector<1x64xf32>
    tpu.vector_store %arg19[%c44, %c0_45], %138 {strides = array<i32>} : memref<128x64xf32, #tpu.memory_space<vmem>>, vector<1x64xf32>,
    %140 = vector.extract_strided_slice %123 {offsets = [8, 0], sizes = [1, 64], strides = [1, 1]} : vector<16x64xf32> to vector<1x64xf32>
    %141 = vector.extract_strided_slice %123 {offsets = [9, 0], sizes = [1, 64], strides = [1, 1]} : vector<16x64xf32> to vector<1x64xf32>
    %142 = arith.maximumf %140, %141 : vector<1x64xf32>
    %c45 = arith.constant 45 : index
    %c0_46 = arith.constant 0 : index
    %143 = vector.load %arg19[%c45, %c0_46] : memref<128x64xf32, #tpu.memory_space<vmem>>, vector<1x64xf32>
    tpu.vector_store %arg19[%c45, %c0_46], %142 {strides = array<i32>} : memref<128x64xf32, #tpu.memory_space<vmem>>, vector<1x64xf32>,
    %144 = vector.extract_strided_slice %123 {offsets = [10, 0], sizes = [1, 64], strides = [1, 1]} : vector<16x64xf32> to vector<1x64xf32>
    %145 = vector.extract_strided_slice %123 {offsets = [11, 0], sizes = [1, 64], strides = [1, 1]} : vector<16x64xf32> to vector<1x64xf32>
    %146 = arith.maximumf %144, %145 : vector<1x64xf32>
    %c46 = arith.constant 46 : index
    %c0_47 = arith.constant 0 : index
    %147 = vector.load %arg19[%c46, %c0_47] : memref<128x64xf32, #tpu.memory_space<vmem>>, vector<1x64xf32>
    tpu.vector_store %arg19[%c46, %c0_47], %146 {strides = array<i32>} : memref<128x64xf32, #tpu.memory_space<vmem>>, vector<1x64xf32>,
    %148 = vector.extract_strided_slice %123 {offsets = [12, 0], sizes = [1, 64], strides = [1, 1]} : vector<16x64xf32> to vector<1x64xf32>
    %149 = vector.extract_strided_slice %123 {offsets = [13, 0], sizes = [1, 64], strides = [1, 1]} : vector<16x64xf32> to vector<1x64xf32>
    %150 = arith.maximumf %148, %149 : vector<1x64xf32>
    %c47 = arith.constant 47 : index
    %c0_48 = arith.constant 0 : index
    %151 = vector.load %arg19[%c47, %c0_48] : memref<128x64xf32, #tpu.memory_space<vmem>>, vector<1x64xf32>
    tpu.vector_store %arg19[%c47, %c0_48], %150 {strides = array<i32>} : memref<128x64xf32, #tpu.memory_space<vmem>>, vector<1x64xf32>,
    %152 = vector.extract_strided_slice %123 {offsets = [14, 0], sizes = [1, 64], strides = [1, 1]} : vector<16x64xf32> to vector<1x64xf32>
    %153 = vector.extract_strided_slice %123 {offsets = [15, 0], sizes = [1, 64], strides = [1, 1]} : vector<16x64xf32> to vector<1x64xf32>
    %154 = arith.maximumf %152, %153 : vector<1x64xf32>
    %c48 = arith.constant 48 : index
    %c0_49 = arith.constant 0 : index
    %155 = vector.load %arg19[%c48, %c0_49] : memref<128x64xf32, #tpu.memory_space<vmem>>, vector<1x64xf32>
    tpu.vector_store %arg19[%c48, %c0_49], %154 {strides = array<i32>} : memref<128x64xf32, #tpu.memory_space<vmem>>, vector<1x64xf32>,
    %156 = vector.extract_strided_slice %15 {offsets = [128, 0], sizes = [16, 64], strides = [1, 1]} : vector<256x64xf32> to vector<16x64xf32>
    %157 = vector.extract_strided_slice %15 {offsets = [144, 0], sizes = [16, 64], strides = [1, 1]} : vector<256x64xf32> to vector<16x64xf32>
    %158 = arith.maximumf %156, %157 : vector<16x64xf32>
    %159 = vector.extract_strided_slice %158 {offsets = [0, 0], sizes = [1, 64], strides = [1, 1]} : vector<16x64xf32> to vector<1x64xf32>
    %160 = vector.extract_strided_slice %158 {offsets = [1, 0], sizes = [1, 64], strides = [1, 1]} : vector<16x64xf32> to vector<1x64xf32>
    %161 = arith.maximumf %159, %160 : vector<1x64xf32>
    %c51 = arith.constant 51 : index
    %c0_50 = arith.constant 0 : index
    %162 = vector.load %arg19[%c51, %c0_50] : memref<128x64xf32, #tpu.memory_space<vmem>>, vector<1x64xf32>
    tpu.vector_store %arg19[%c51, %c0_50], %161 {strides = array<i32>} : memref<128x64xf32, #tpu.memory_space<vmem>>, vector<1x64xf32>,
    %163 = vector.extract_strided_slice %158 {offsets = [2, 0], sizes = [1, 64], strides = [1, 1]} : vector<16x64xf32> to vector<1x64xf32>
    %164 = vector.extract_strided_slice %158 {offsets = [3, 0], sizes = [1, 64], strides = [1, 1]} : vector<16x64xf32> to vector<1x64xf32>
    %165 = arith.maximumf %163, %164 : vector<1x64xf32>
    %c52 = arith.constant 52 : index
    %c0_51 = arith.constant 0 : index
    %166 = vector.load %arg19[%c52, %c0_51] : memref<128x64xf32, #tpu.memory_space<vmem>>, vector<1x64xf32>
    tpu.vector_store %arg19[%c52, %c0_51], %165 {strides = array<i32>} : memref<128x64xf32, #tpu.memory_space<vmem>>, vector<1x64xf32>,
    %167 = vector.extract_strided_slice %158 {offsets = [4, 0], sizes = [1, 64], strides = [1, 1]} : vector<16x64xf32> to vector<1x64xf32>
    %168 = vector.extract_strided_slice %158 {offsets = [5, 0], sizes = [1, 64], strides = [1, 1]} : vector<16x64xf32> to vector<1x64xf32>
    %169 = arith.maximumf %167, %168 : vector<1x64xf32>
    %c53 = arith.constant 53 : index
    %c0_52 = arith.constant 0 : index
    %170 = vector.load %arg19[%c53, %c0_52] : memref<128x64xf32, #tpu.memory_space<vmem>>, vector<1x64xf32>
    tpu.vector_store %arg19[%c53, %c0_52], %169 {strides = array<i32>} : memref<128x64xf32, #tpu.memory_space<vmem>>, vector<1x64xf32>,
    %171 = vector.extract_strided_slice %158 {offsets = [6, 0], sizes = [1, 64], strides = [1, 1]} : vector<16x64xf32> to vector<1x64xf32>
    %172 = vector.extract_strided_slice %158 {offsets = [7, 0], sizes = [1, 64], strides = [1, 1]} : vector<16x64xf32> to vector<1x64xf32>
    %173 = arith.maximumf %171, %172 : vector<1x64xf32>
    %c54 = arith.constant 54 : index
    %c0_53 = arith.constant 0 : index
    %174 = vector.load %arg19[%c54, %c0_53] : memref<128x64xf32, #tpu.memory_space<vmem>>, vector<1x64xf32>
    tpu.vector_store %arg19[%c54, %c0_53], %173 {strides = array<i32>} : memref<128x64xf32, #tpu.memory_space<vmem>>, vector<1x64xf32>,
    %175 = vector.extract_strided_slice %158 {offsets = [8, 0], sizes = [1, 64], strides = [1, 1]} : vector<16x64xf32> to vector<1x64xf32>
    %176 = vector.extract_strided_slice %158 {offsets = [9, 0], sizes = [1, 64], strides = [1, 1]} : vector<16x64xf32> to vector<1x64xf32>
    %177 = arith.maximumf %175, %176 : vector<1x64xf32>
    %c55 = arith.constant 55 : index
    %c0_54 = arith.constant 0 : index
    %178 = vector.load %arg19[%c55, %c0_54] : memref<128x64xf32, #tpu.memory_space<vmem>>, vector<1x64xf32>
    tpu.vector_store %arg19[%c55, %c0_54], %177 {strides = array<i32>} : memref<128x64xf32, #tpu.memory_space<vmem>>, vector<1x64xf32>,
    %179 = vector.extract_strided_slice %158 {offsets = [10, 0], sizes = [1, 64], strides = [1, 1]} : vector<16x64xf32> to vector<1x64xf32>
    %180 = vector.extract_strided_slice %158 {offsets = [11, 0], sizes = [1, 64], strides = [1, 1]} : vector<16x64xf32> to vector<1x64xf32>
    %181 = arith.maximumf %179, %180 : vector<1x64xf32>
    %c56 = arith.constant 56 : index
    %c0_55 = arith.constant 0 : index
    %182 = vector.load %arg19[%c56, %c0_55] : memref<128x64xf32, #tpu.memory_space<vmem>>, vector<1x64xf32>
    tpu.vector_store %arg19[%c56, %c0_55], %181 {strides = array<i32>} : memref<128x64xf32, #tpu.memory_space<vmem>>, vector<1x64xf32>,
    %183 = vector.extract_strided_slice %158 {offsets = [12, 0], sizes = [1, 64], strides = [1, 1]} : vector<16x64xf32> to vector<1x64xf32>
    %184 = vector.extract_strided_slice %158 {offsets = [13, 0], sizes = [1, 64], strides = [1, 1]} : vector<16x64xf32> to vector<1x64xf32>
    %185 = arith.maximumf %183, %184 : vector<1x64xf32>
    %c57 = arith.constant 57 : index
    %c0_56 = arith.constant 0 : index
    %186 = vector.load %arg19[%c57, %c0_56] : memref<128x64xf32, #tpu.memory_space<vmem>>, vector<1x64xf32>
    tpu.vector_store %arg19[%c57, %c0_56], %185 {strides = array<i32>} : memref<128x64xf32, #tpu.memory_space<vmem>>, vector<1x64xf32>,
    %187 = vector.extract_strided_slice %158 {offsets = [14, 0], sizes = [1, 64], strides = [1, 1]} : vector<16x64xf32> to vector<1x64xf32>
    %188 = vector.extract_strided_slice %158 {offsets = [15, 0], sizes = [1, 64], strides = [1, 1]} : vector<16x64xf32> to vector<1x64xf32>
    %189 = arith.maximumf %187, %188 : vector<1x64xf32>
    %c58 = arith.constant 58 : index
    %c0_57 = arith.constant 0 : index
    %190 = vector.load %arg19[%c58, %c0_57] : memref<128x64xf32, #tpu.memory_space<vmem>>, vector<1x64xf32>
    tpu.vector_store %arg19[%c58, %c0_57], %189 {strides = array<i32>} : memref<128x64xf32, #tpu.memory_space<vmem>>, vector<1x64xf32>,
    %191 = vector.extract_strided_slice %15 {offsets = [160, 0], sizes = [16, 64], strides = [1, 1]} : vector<256x64xf32> to vector<16x64xf32>
    %192 = vector.extract_strided_slice %15 {offsets = [176, 0], sizes = [16, 64], strides = [1, 1]} : vector<256x64xf32> to vector<16x64xf32>
    %193 = arith.maximumf %191, %192 : vector<16x64xf32>
    %194 = vector.extract_strided_slice %193 {offsets = [0, 0], sizes = [1, 64], strides = [1, 1]} : vector<16x64xf32> to vector<1x64xf32>
    %195 = vector.extract_strided_slice %193 {offsets = [1, 0], sizes = [1, 64], strides = [1, 1]} : vector<16x64xf32> to vector<1x64xf32>
    %196 = arith.maximumf %194, %195 : vector<1x64xf32>
    %c61 = arith.constant 61 : index
    %c0_58 = arith.constant 0 : index
    %197 = vector.load %arg19[%c61, %c0_58] : memref<128x64xf32, #tpu.memory_space<vmem>>, vector<1x64xf32>
    tpu.vector_store %arg19[%c61, %c0_58], %196 {strides = array<i32>} : memref<128x64xf32, #tpu.memory_space<vmem>>, vector<1x64xf32>,
    %198 = vector.extract_strided_slice %193 {offsets = [2, 0], sizes = [1, 64], strides = [1, 1]} : vector<16x64xf32> to vector<1x64xf32>
    %199 = vector.extract_strided_slice %193 {offsets = [3, 0], sizes = [1, 64], strides = [1, 1]} : vector<16x64xf32> to vector<1x64xf32>
    %200 = arith.maximumf %198, %199 : vector<1x64xf32>
    %c62 = arith.constant 62 : index
    %c0_59 = arith.constant 0 : index
    %201 = vector.load %arg19[%c62, %c0_59] : memref<128x64xf32, #tpu.memory_space<vmem>>, vector<1x64xf32>
    tpu.vector_store %arg19[%c62, %c0_59], %200 {strides = array<i32>} : memref<128x64xf32, #tpu.memory_space<vmem>>, vector<1x64xf32>,
    %202 = vector.extract_strided_slice %193 {offsets = [4, 0], sizes = [1, 64], strides = [1, 1]} : vector<16x64xf32> to vector<1x64xf32>
    %203 = vector.extract_strided_slice %193 {offsets = [5, 0], sizes = [1, 64], strides = [1, 1]} : vector<16x64xf32> to vector<1x64xf32>
    %204 = arith.maximumf %202, %203 : vector<1x64xf32>
    %c63 = arith.constant 63 : index
    %c0_60 = arith.constant 0 : index
    %205 = vector.load %arg19[%c63, %c0_60] : memref<128x64xf32, #tpu.memory_space<vmem>>, vector<1x64xf32>
    tpu.vector_store %arg19[%c63, %c0_60], %204 {strides = array<i32>} : memref<128x64xf32, #tpu.memory_space<vmem>>, vector<1x64xf32>,
    %206 = vector.extract_strided_slice %193 {offsets = [6, 0], sizes = [1, 64], strides = [1, 1]} : vector<16x64xf32> to vector<1x64xf32>
    %207 = vector.extract_strided_slice %193 {offsets = [7, 0], sizes = [1, 64], strides = [1, 1]} : vector<16x64xf32> to vector<1x64xf32>
    %208 = arith.maximumf %206, %207 : vector<1x64xf32>
    %c64 = arith.constant 64 : index
    %c0_61 = arith.constant 0 : index
    %209 = vector.load %arg19[%c64, %c0_61] : memref<128x64xf32, #tpu.memory_space<vmem>>, vector<1x64xf32>
    tpu.vector_store %arg19[%c64, %c0_61], %208 {strides = array<i32>} : memref<128x64xf32, #tpu.memory_space<vmem>>, vector<1x64xf32>,
    %210 = vector.extract_strided_slice %193 {offsets = [8, 0], sizes = [1, 64], strides = [1, 1]} : vector<16x64xf32> to vector<1x64xf32>
    %211 = vector.extract_strided_slice %193 {offsets = [9, 0], sizes = [1, 64], strides = [1, 1]} : vector<16x64xf32> to vector<1x64xf32>
    %212 = arith.maximumf %210, %211 : vector<1x64xf32>
    %c65 = arith.constant 65 : index
    %c0_62 = arith.constant 0 : index
    %213 = vector.load %arg19[%c65, %c0_62] : memref<128x64xf32, #tpu.memory_space<vmem>>, vector<1x64xf32>
    tpu.vector_store %arg19[%c65, %c0_62], %212 {strides = array<i32>} : memref<128x64xf32, #tpu.memory_space<vmem>>, vector<1x64xf32>,
    %214 = vector.extract_strided_slice %193 {offsets = [10, 0], sizes = [1, 64], strides = [1, 1]} : vector<16x64xf32> to vector<1x64xf32>
    %215 = vector.extract_strided_slice %193 {offsets = [11, 0], sizes = [1, 64], strides = [1, 1]} : vector<16x64xf32> to vector<1x64xf32>
    %216 = arith.maximumf %214, %215 : vector<1x64xf32>
    %c66 = arith.constant 66 : index
    %c0_63 = arith.constant 0 : index
    %217 = vector.load %arg19[%c66, %c0_63] : memref<128x64xf32, #tpu.memory_space<vmem>>, vector<1x64xf32>
    tpu.vector_store %arg19[%c66, %c0_63], %216 {strides = array<i32>} : memref<128x64xf32, #tpu.memory_space<vmem>>, vector<1x64xf32>,
    %218 = vector.extract_strided_slice %193 {offsets = [12, 0], sizes = [1, 64], strides = [1, 1]} : vector<16x64xf32> to vector<1x64xf32>
    %219 = vector.extract_strided_slice %193 {offsets = [13, 0], sizes = [1, 64], strides = [1, 1]} : vector<16x64xf32> to vector<1x64xf32>
    %220 = arith.maximumf %218, %219 : vector<1x64xf32>
    %c67 = arith.constant 67 : index
    %c0_64 = arith.constant 0 : index
    %221 = vector.load %arg19[%c67, %c0_64] : memref<128x64xf32, #tpu.memory_space<vmem>>, vector<1x64xf32>
    tpu.vector_store %arg19[%c67, %c0_64], %220 {strides = array<i32>} : memref<128x64xf32, #tpu.memory_space<vmem>>, vector<1x64xf32>,
    %222 = vector.extract_strided_slice %193 {offsets = [14, 0], sizes = [1, 64], strides = [1, 1]} : vector<16x64xf32> to vector<1x64xf32>
    %223 = vector.extract_strided_slice %193 {offsets = [15, 0], sizes = [1, 64], strides = [1, 1]} : vector<16x64xf32> to vector<1x64xf32>
    %224 = arith.maximumf %222, %223 : vector<1x64xf32>
    %c68 = arith.constant 68 : index
    %c0_65 = arith.constant 0 : index
    %225 = vector.load %arg19[%c68, %c0_65] : memref<128x64xf32, #tpu.memory_space<vmem>>, vector<1x64xf32>
    tpu.vector_store %arg19[%c68, %c0_65], %224 {strides = array<i32>} : memref<128x64xf32, #tpu.memory_space<vmem>>, vector<1x64xf32>,
    %226 = vector.extract_strided_slice %15 {offsets = [192, 0], sizes = [16, 64], strides = [1, 1]} : vector<256x64xf32> to vector<16x64xf32>
    %227 = vector.extract_strided_slice %15 {offsets = [208, 0], sizes = [16, 64], strides = [1, 1]} : vector<256x64xf32> to vector<16x64xf32>
    %228 = arith.maximumf %226, %227 : vector<16x64xf32>
    %229 = vector.extract_strided_slice %228 {offsets = [0, 0], sizes = [1, 64], strides = [1, 1]} : vector<16x64xf32> to vector<1x64xf32>
    %230 = vector.extract_strided_slice %228 {offsets = [1, 0], sizes = [1, 64], strides = [1, 1]} : vector<16x64xf32> to vector<1x64xf32>
    %231 = arith.maximumf %229, %230 : vector<1x64xf32>
    %c71 = arith.constant 71 : index
    %c0_66 = arith.constant 0 : index
    %232 = vector.load %arg19[%c71, %c0_66] : memref<128x64xf32, #tpu.memory_space<vmem>>, vector<1x64xf32>
    tpu.vector_store %arg19[%c71, %c0_66], %231 {strides = array<i32>} : memref<128x64xf32, #tpu.memory_space<vmem>>, vector<1x64xf32>,
    %233 = vector.extract_strided_slice %228 {offsets = [2, 0], sizes = [1, 64], strides = [1, 1]} : vector<16x64xf32> to vector<1x64xf32>
    %234 = vector.extract_strided_slice %228 {offsets = [3, 0], sizes = [1, 64], strides = [1, 1]} : vector<16x64xf32> to vector<1x64xf32>
    %235 = arith.maximumf %233, %234 : vector<1x64xf32>
    %c72 = arith.constant 72 : index
    %c0_67 = arith.constant 0 : index
    %236 = vector.load %arg19[%c72, %c0_67] : memref<128x64xf32, #tpu.memory_space<vmem>>, vector<1x64xf32>
    tpu.vector_store %arg19[%c72, %c0_67], %235 {strides = array<i32>} : memref<128x64xf32, #tpu.memory_space<vmem>>, vector<1x64xf32>,
    %237 = vector.extract_strided_slice %228 {offsets = [4, 0], sizes = [1, 64], strides = [1, 1]} : vector<16x64xf32> to vector<1x64xf32>
    %238 = vector.extract_strided_slice %228 {offsets = [5, 0], sizes = [1, 64], strides = [1, 1]} : vector<16x64xf32> to vector<1x64xf32>
    %239 = arith.maximumf %237, %238 : vector<1x64xf32>
    %c73 = arith.constant 73 : index
    %c0_68 = arith.constant 0 : index
    %240 = vector.load %arg19[%c73, %c0_68] : memref<128x64xf32, #tpu.memory_space<vmem>>, vector<1x64xf32>
    tpu.vector_store %arg19[%c73, %c0_68], %239 {strides = array<i32>} : memref<128x64xf32, #tpu.memory_space<vmem>>, vector<1x64xf32>,
    %241 = vector.extract_strided_slice %228 {offsets = [6, 0], sizes = [1, 64], strides = [1, 1]} : vector<16x64xf32> to vector<1x64xf32>
    %242 = vector.extract_strided_slice %228 {offsets = [7, 0], sizes = [1, 64], strides = [1, 1]} : vector<16x64xf32> to vector<1x64xf32>
    %243 = arith.maximumf %241, %242 : vector<1x64xf32>
    %c74 = arith.constant 74 : index
    %c0_69 = arith.constant 0 : index
    %244 = vector.load %arg19[%c74, %c0_69] : memref<128x64xf32, #tpu.memory_space<vmem>>, vector<1x64xf32>
    tpu.vector_store %arg19[%c74, %c0_69], %243 {strides = array<i32>} : memref<128x64xf32, #tpu.memory_space<vmem>>, vector<1x64xf32>,
    %245 = vector.extract_strided_slice %228 {offsets = [8, 0], sizes = [1, 64], strides = [1, 1]} : vector<16x64xf32> to vector<1x64xf32>
    %246 = vector.extract_strided_slice %228 {offsets = [9, 0], sizes = [1, 64], strides = [1, 1]} : vector<16x64xf32> to vector<1x64xf32>
    %247 = arith.maximumf %245, %246 : vector<1x64xf32>
    %c75 = arith.constant 75 : index
    %c0_70 = arith.constant 0 : index
    %248 = vector.load %arg19[%c75, %c0_70] : memref<128x64xf32, #tpu.memory_space<vmem>>, vector<1x64xf32>
    tpu.vector_store %arg19[%c75, %c0_70], %247 {strides = array<i32>} : memref<128x64xf32, #tpu.memory_space<vmem>>, vector<1x64xf32>,
    %249 = vector.extract_strided_slice %228 {offsets = [10, 0], sizes = [1, 64], strides = [1, 1]} : vector<16x64xf32> to vector<1x64xf32>
    %250 = vector.extract_strided_slice %228 {offsets = [11, 0], sizes = [1, 64], strides = [1, 1]} : vector<16x64xf32> to vector<1x64xf32>
    %251 = arith.maximumf %249, %250 : vector<1x64xf32>
    %c76 = arith.constant 76 : index
    %c0_71 = arith.constant 0 : index
    %252 = vector.load %arg19[%c76, %c0_71] : memref<128x64xf32, #tpu.memory_space<vmem>>, vector<1x64xf32>
    tpu.vector_store %arg19[%c76, %c0_71], %251 {strides = array<i32>} : memref<128x64xf32, #tpu.memory_space<vmem>>, vector<1x64xf32>,
    %253 = vector.extract_strided_slice %228 {offsets = [12, 0], sizes = [1, 64], strides = [1, 1]} : vector<16x64xf32> to vector<1x64xf32>
    %254 = vector.extract_strided_slice %228 {offsets = [13, 0], sizes = [1, 64], strides = [1, 1]} : vector<16x64xf32> to vector<1x64xf32>
    %255 = arith.maximumf %253, %254 : vector<1x64xf32>
    %c77 = arith.constant 77 : index
    %c0_72 = arith.constant 0 : index
    %256 = vector.load %arg19[%c77, %c0_72] : memref<128x64xf32, #tpu.memory_space<vmem>>, vector<1x64xf32>
    tpu.vector_store %arg19[%c77, %c0_72], %255 {strides = array<i32>} : memref<128x64xf32, #tpu.memory_space<vmem>>, vector<1x64xf32>,
    %257 = vector.extract_strided_slice %228 {offsets = [14, 0], sizes = [1, 64], strides = [1, 1]} : vector<16x64xf32> to vector<1x64xf32>
    %258 = vector.extract_strided_slice %228 {offsets = [15, 0], sizes = [1, 64], strides = [1, 1]} : vector<16x64xf32> to vector<1x64xf32>
    %259 = arith.maximumf %257, %258 : vector<1x64xf32>
    %c78 = arith.constant 78 : index
    %c0_73 = arith.constant 0 : index
    %260 = vector.load %arg19[%c78, %c0_73] : memref<128x64xf32, #tpu.memory_space<vmem>>, vector<1x64xf32>
    tpu.vector_store %arg19[%c78, %c0_73], %259 {strides = array<i32>} : memref<128x64xf32, #tpu.memory_space<vmem>>, vector<1x64xf32>,
    %261 = vector.extract_strided_slice %15 {offsets = [224, 0], sizes = [16, 64], strides = [1, 1]} : vector<256x64xf32> to vector<16x64xf32>
    %262 = vector.extract_strided_slice %15 {offsets = [240, 0], sizes = [16, 64], strides = [1, 1]} : vector<256x64xf32> to vector<16x64xf32>
    %263 = arith.maximumf %261, %262 : vector<16x64xf32>
    %264 = vector.extract_strided_slice %263 {offsets = [0, 0], sizes = [1, 64], strides = [1, 1]} : vector<16x64xf32> to vector<1x64xf32>
    %265 = vector.extract_strided_slice %263 {offsets = [1, 0], sizes = [1, 64], strides = [1, 1]} : vector<16x64xf32> to vector<1x64xf32>
    %266 = arith.maximumf %264, %265 : vector<1x64xf32>
    %c81 = arith.constant 81 : index
    %c0_74 = arith.constant 0 : index
    %267 = vector.load %arg19[%c81, %c0_74] : memref<128x64xf32, #tpu.memory_space<vmem>>, vector<1x64xf32>
    tpu.vector_store %arg19[%c81, %c0_74], %266 {strides = array<i32>} : memref<128x64xf32, #tpu.memory_space<vmem>>, vector<1x64xf32>,
    %268 = vector.extract_strided_slice %263 {offsets = [2, 0], sizes = [1, 64], strides = [1, 1]} : vector<16x64xf32> to vector<1x64xf32>
    %269 = vector.extract_strided_slice %263 {offsets = [3, 0], sizes = [1, 64], strides = [1, 1]} : vector<16x64xf32> to vector<1x64xf32>
    %270 = arith.maximumf %268, %269 : vector<1x64xf32>
    %c82 = arith.constant 82 : index
    %c0_75 = arith.constant 0 : index
    %271 = vector.load %arg19[%c82, %c0_75] : memref<128x64xf32, #tpu.memory_space<vmem>>, vector<1x64xf32>
    tpu.vector_store %arg19[%c82, %c0_75], %270 {strides = array<i32>} : memref<128x64xf32, #tpu.memory_space<vmem>>, vector<1x64xf32>,
    %272 = vector.extract_strided_slice %263 {offsets = [4, 0], sizes = [1, 64], strides = [1, 1]} : vector<16x64xf32> to vector<1x64xf32>
    %273 = vector.extract_strided_slice %263 {offsets = [5, 0], sizes = [1, 64], strides = [1, 1]} : vector<16x64xf32> to vector<1x64xf32>
    %274 = arith.maximumf %272, %273 : vector<1x64xf32>
    %c83 = arith.constant 83 : index
    %c0_76 = arith.constant 0 : index
    %275 = vector.load %arg19[%c83, %c0_76] : memref<128x64xf32, #tpu.memory_space<vmem>>, vector<1x64xf32>
    tpu.vector_store %arg19[%c83, %c0_76], %274 {strides = array<i32>} : memref<128x64xf32, #tpu.memory_space<vmem>>, vector<1x64xf32>,
    %276 = vector.extract_strided_slice %263 {offsets = [6, 0], sizes = [1, 64], strides = [1, 1]} : vector<16x64xf32> to vector<1x64xf32>
    %277 = vector.extract_strided_slice %263 {offsets = [7, 0], sizes = [1, 64], strides = [1, 1]} : vector<16x64xf32> to vector<1x64xf32>
    %278 = arith.maximumf %276, %277 : vector<1x64xf32>
    %c84 = arith.constant 84 : index
    %c0_77 = arith.constant 0 : index
    %279 = vector.load %arg19[%c84, %c0_77] : memref<128x64xf32, #tpu.memory_space<vmem>>, vector<1x64xf32>
    tpu.vector_store %arg19[%c84, %c0_77], %278 {strides = array<i32>} : memref<128x64xf32, #tpu.memory_space<vmem>>, vector<1x64xf32>,
    %280 = vector.extract_strided_slice %263 {offsets = [8, 0], sizes = [1, 64], strides = [1, 1]} : vector<16x64xf32> to vector<1x64xf32>
    %281 = vector.extract_strided_slice %263 {offsets = [9, 0], sizes = [1, 64], strides = [1, 1]} : vector<16x64xf32> to vector<1x64xf32>
    %282 = arith.maximumf %280, %281 : vector<1x64xf32>
    %c85 = arith.constant 85 : index
    %c0_78 = arith.constant 0 : index
    %283 = vector.load %arg19[%c85, %c0_78] : memref<128x64xf32, #tpu.memory_space<vmem>>, vector<1x64xf32>
    tpu.vector_store %arg19[%c85, %c0_78], %282 {strides = array<i32>} : memref<128x64xf32, #tpu.memory_space<vmem>>, vector<1x64xf32>,
    %284 = vector.extract_strided_slice %263 {offsets = [10, 0], sizes = [1, 64], strides = [1, 1]} : vector<16x64xf32> to vector<1x64xf32>
    %285 = vector.extract_strided_slice %263 {offsets = [11, 0], sizes = [1, 64], strides = [1, 1]} : vector<16x64xf32> to vector<1x64xf32>
    %286 = arith.maximumf %284, %285 : vector<1x64xf32>
    %c86 = arith.constant 86 : index
    %c0_79 = arith.constant 0 : index
    %287 = vector.load %arg19[%c86, %c0_79] : memref<128x64xf32, #tpu.memory_space<vmem>>, vector<1x64xf32>
    tpu.vector_store %arg19[%c86, %c0_79], %286 {strides = array<i32>} : memref<128x64xf32, #tpu.memory_space<vmem>>, vector<1x64xf32>,
    %288 = vector.extract_strided_slice %263 {offsets = [12, 0], sizes = [1, 64], strides = [1, 1]} : vector<16x64xf32> to vector<1x64xf32>
    %289 = vector.extract_strided_slice %263 {offsets = [13, 0], sizes = [1, 64], strides = [1, 1]} : vector<16x64xf32> to vector<1x64xf32>
    %290 = arith.maximumf %288, %289 : vector<1x64xf32>
    %c87 = arith.constant 87 : index
    %c0_80 = arith.constant 0 : index
    %291 = vector.load %arg19[%c87, %c0_80] : memref<128x64xf32, #tpu.memory_space<vmem>>, vector<1x64xf32>
    tpu.vector_store %arg19[%c87, %c0_80], %290 {strides = array<i32>} : memref<128x64xf32, #tpu.memory_space<vmem>>, vector<1x64xf32>,
    %292 = vector.extract_strided_slice %263 {offsets = [14, 0], sizes = [1, 64], strides = [1, 1]} : vector<16x64xf32> to vector<1x64xf32>
    %293 = vector.extract_strided_slice %263 {offsets = [15, 0], sizes = [1, 64], strides = [1, 1]} : vector<16x64xf32> to vector<1x64xf32>
    %294 = arith.maximumf %292, %293 : vector<1x64xf32>
    %c88 = arith.constant 88 : index
    %c0_81 = arith.constant 0 : index
    %295 = vector.load %arg19[%c88, %c0_81] : memref<128x64xf32, #tpu.memory_space<vmem>>, vector<1x64xf32>
    tpu.vector_store %arg19[%c88, %c0_81], %294 {strides = array<i32>} : memref<128x64xf32, #tpu.memory_space<vmem>>, vector<1x64xf32>,
    %c0_82 = arith.constant 0 : index
    %c0_83 = arith.constant 0 : index
    %296 = vector.load %arg19[%c0_82, %c0_83] : memref<128x64xf32, #tpu.memory_space<vmem>>, vector<80x64xf32>
    %297 = arith.truncf %296 : vector<80x64xf32> to vector<80x64xbf16>
    %c0_84 = arith.constant 0 : index
    %c0_85 = arith.constant 0 : index
    %298 = vector.load %arg4[%c0_84, %c0_85] : memref<576x192xbf16, #tpu.memory_space<vmem>>, vector<64x192xbf16>
    %cst_86 = arith.constant dense<0.000000e+00> : vector<80x192xf32>
    %299 = tpu.matmul %297, %298, %cst_86 {dimension_numbers = #tpu.dot_dimension_numbers<[1], [0], [0], [1], [0, 0, 1, 1], [], []>} : vector<80x64xbf16>, vector<64x192xbf16>, vector<80x192xf32> -> vector<80x192xf32>
    %c1 = arith.constant 1 : index
    %c0_87 = arith.constant 0 : index
    %300 = vector.load %arg19[%c1, %c0_87] : memref<128x64xf32, #tpu.memory_space<vmem>>, vector<80x64xf32>
    %301 = arith.truncf %300 : vector<80x64xf32> to vector<80x64xbf16>
    %c64_88 = arith.constant 64 : index
    %c0_89 = arith.constant 0 : index
    %302 = vector.load %arg4[%c64_88, %c0_89] : memref<576x192xbf16, #tpu.memory_space<vmem>>, vector<64x192xbf16>
    %cst_90 = arith.constant dense<0.000000e+00> : vector<80x192xf32>
    %303 = tpu.matmul %301, %302, %cst_90 {dimension_numbers = #tpu.dot_dimension_numbers<[1], [0], [0], [1], [0, 0, 1, 1], [], []>} : vector<80x64xbf16>, vector<64x192xbf16>, vector<80x192xf32> -> vector<80x192xf32>
    %304 = arith.addf %299, %303 : vector<80x192xf32>
    %c2 = arith.constant 2 : index
    %c0_91 = arith.constant 0 : index
    %305 = vector.load %arg19[%c2, %c0_91] : memref<128x64xf32, #tpu.memory_space<vmem>>, vector<80x64xf32>
    %306 = arith.truncf %305 : vector<80x64xf32> to vector<80x64xbf16>
    %c128 = arith.constant 128 : index
    %c0_92 = arith.constant 0 : index
    %307 = vector.load %arg4[%c128, %c0_92] : memref<576x192xbf16, #tpu.memory_space<vmem>>, vector<64x192xbf16>
    %cst_93 = arith.constant dense<0.000000e+00> : vector<80x192xf32>
    %308 = tpu.matmul %306, %307, %cst_93 {dimension_numbers = #tpu.dot_dimension_numbers<[1], [0], [0], [1], [0, 0, 1, 1], [], []>} : vector<80x64xbf16>, vector<64x192xbf16>, vector<80x192xf32> -> vector<80x192xf32>
    %309 = arith.addf %304, %308 : vector<80x192xf32>
    %c10 = arith.constant 10 : index
    %c0_94 = arith.constant 0 : index
    %310 = vector.load %arg19[%c10, %c0_94] : memref<128x64xf32, #tpu.memory_space<vmem>>, vector<80x64xf32>
    %311 = arith.truncf %310 : vector<80x64xf32> to vector<80x64xbf16>
    %c192 = arith.constant 192 : index
    %c0_95 = arith.constant 0 : index
    %312 = vector.load %arg4[%c192, %c0_95] : memref<576x192xbf16, #tpu.memory_space<vmem>>, vector<64x192xbf16>
    %cst_96 = arith.constant dense<0.000000e+00> : vector<80x192xf32>
    %313 = tpu.matmul %311, %312, %cst_96 {dimension_numbers = #tpu.dot_dimension_numbers<[1], [0], [0], [1], [0, 0, 1, 1], [], []>} : vector<80x64xbf16>, vector<64x192xbf16>, vector<80x192xf32> -> vector<80x192xf32>
    %314 = arith.addf %309, %313 : vector<80x192xf32>
    %c11_97 = arith.constant 11 : index
    %c0_98 = arith.constant 0 : index
    %315 = vector.load %arg19[%c11_97, %c0_98] : memref<128x64xf32, #tpu.memory_space<vmem>>, vector<80x64xf32>
    %316 = arith.truncf %315 : vector<80x64xf32> to vector<80x64xbf16>
    %c256 = arith.constant 256 : index
    %c0_99 = arith.constant 0 : index
    %317 = vector.load %arg4[%c256, %c0_99] : memref<576x192xbf16, #tpu.memory_space<vmem>>, vector<64x192xbf16>
    %cst_100 = arith.constant dense<0.000000e+00> : vector<80x192xf32>
    %318 = tpu.matmul %316, %317, %cst_100 {dimension_numbers = #tpu.dot_dimension_numbers<[1], [0], [0], [1], [0, 0, 1, 1], [], []>} : vector<80x64xbf16>, vector<64x192xbf16>, vector<80x192xf32> -> vector<80x192xf32>
    %319 = arith.addf %314, %318 : vector<80x192xf32>
    %c12_101 = arith.constant 12 : index
    %c0_102 = arith.constant 0 : index
    %320 = vector.load %arg19[%c12_101, %c0_102] : memref<128x64xf32, #tpu.memory_space<vmem>>, vector<80x64xf32>
    %321 = arith.truncf %320 : vector<80x64xf32> to vector<80x64xbf16>
    %c320 = arith.constant 320 : index
    %c0_103 = arith.constant 0 : index
    %322 = vector.load %arg4[%c320, %c0_103] : memref<576x192xbf16, #tpu.memory_space<vmem>>, vector<64x192xbf16>
    %cst_104 = arith.constant dense<0.000000e+00> : vector<80x192xf32>
    %323 = tpu.matmul %321, %322, %cst_104 {dimension_numbers = #tpu.dot_dimension_numbers<[1], [0], [0], [1], [0, 0, 1, 1], [], []>} : vector<80x64xbf16>, vector<64x192xbf16>, vector<80x192xf32> -> vector<80x192xf32>
    %324 = arith.addf %319, %323 : vector<80x192xf32>
    %c20 = arith.constant 20 : index
    %c0_105 = arith.constant 0 : index
    %325 = vector.load %arg19[%c20, %c0_105] : memref<128x64xf32, #tpu.memory_space<vmem>>, vector<80x64xf32>
    %326 = arith.truncf %325 : vector<80x64xf32> to vector<80x64xbf16>
    %c384 = arith.constant 384 : index
    %c0_106 = arith.constant 0 : index
    %327 = vector.load %arg4[%c384, %c0_106] : memref<576x192xbf16, #tpu.memory_space<vmem>>, vector<64x192xbf16>
    %cst_107 = arith.constant dense<0.000000e+00> : vector<80x192xf32>
    %328 = tpu.matmul %326, %327, %cst_107 {dimension_numbers = #tpu.dot_dimension_numbers<[1], [0], [0], [1], [0, 0, 1, 1], [], []>} : vector<80x64xbf16>, vector<64x192xbf16>, vector<80x192xf32> -> vector<80x192xf32>
    %329 = arith.addf %324, %328 : vector<80x192xf32>
    %c21_108 = arith.constant 21 : index
    %c0_109 = arith.constant 0 : index
    %330 = vector.load %arg19[%c21_108, %c0_109] : memref<128x64xf32, #tpu.memory_space<vmem>>, vector<80x64xf32>
    %331 = arith.truncf %330 : vector<80x64xf32> to vector<80x64xbf16>
    %c448 = arith.constant 448 : index
    %c0_110 = arith.constant 0 : index
    %332 = vector.load %arg4[%c448, %c0_110] : memref<576x192xbf16, #tpu.memory_space<vmem>>, vector<64x192xbf16>
    %cst_111 = arith.constant dense<0.000000e+00> : vector<80x192xf32>
    %333 = tpu.matmul %331, %332, %cst_111 {dimension_numbers = #tpu.dot_dimension_numbers<[1], [0], [0], [1], [0, 0, 1, 1], [], []>} : vector<80x64xbf16>, vector<64x192xbf16>, vector<80x192xf32> -> vector<80x192xf32>
    %334 = arith.addf %329, %333 : vector<80x192xf32>
    %c22_112 = arith.constant 22 : index
    %c0_113 = arith.constant 0 : index
    %335 = vector.load %arg19[%c22_112, %c0_113] : memref<128x64xf32, #tpu.memory_space<vmem>>, vector<80x64xf32>
    %336 = arith.truncf %335 : vector<80x64xf32> to vector<80x64xbf16>
    %c512 = arith.constant 512 : index
    %c0_114 = arith.constant 0 : index
    %337 = vector.load %arg4[%c512, %c0_114] : memref<576x192xbf16, #tpu.memory_space<vmem>>, vector<64x192xbf16>
    %cst_115 = arith.constant dense<0.000000e+00> : vector<80x192xf32>
    %338 = tpu.matmul %336, %337, %cst_115 {dimension_numbers = #tpu.dot_dimension_numbers<[1], [0], [0], [1], [0, 0, 1, 1], [], []>} : vector<80x64xbf16>, vector<64x192xbf16>, vector<80x192xf32> -> vector<80x192xf32>
    %339 = arith.addf %334, %338 : vector<80x192xf32>
    %c0_116 = arith.constant 0 : index
    %c0_117 = arith.constant 0 : index
    %340 = vector.load %arg5[%c0_116, %c0_117] : memref<1x192xf32, #tpu.memory_space<vmem>>, vector<1x192xf32>
    %341 = vector.broadcast %340 : vector<1x192xf32> to vector<80x192xf32>
    %342 = arith.addf %339, %341 : vector<80x192xf32>
    %cst_118 = arith.constant 0.000000e+00 : f32
    %343 = vector.broadcast %cst_118 : f32 to vector<80x192xf32>
    %344 = arith.maximumf %342, %343 : vector<80x192xf32>
    %345 = vector.extract_strided_slice %344 {offsets = [0, 0], sizes = [8, 192], strides = [1, 1]} : vector<80x192xf32> to vector<8x192xf32>
    %346 = vector.extract_strided_slice %344 {offsets = [10, 0], sizes = [8, 192], strides = [1, 1]} : vector<80x192xf32> to vector<8x192xf32>
    %347 = arith.maximumf %345, %346 : vector<8x192xf32>
    %348 = vector.extract_strided_slice %347 {offsets = [0, 0], sizes = [1, 192], strides = [1, 1]} : vector<8x192xf32> to vector<1x192xf32>
    %349 = vector.extract_strided_slice %347 {offsets = [1, 0], sizes = [1, 192], strides = [1, 1]} : vector<8x192xf32> to vector<1x192xf32>
    %350 = arith.maximumf %348, %349 : vector<1x192xf32>
    %c7 = arith.constant 7 : index
    %c0_119 = arith.constant 0 : index
    %351 = vector.load %arg20[%c7, %c0_119] : memref<56x192xf32, #tpu.memory_space<vmem>>, vector<1x192xf32>
    tpu.vector_store %arg20[%c7, %c0_119], %350 {strides = array<i32>} : memref<56x192xf32, #tpu.memory_space<vmem>>, vector<1x192xf32>,
    %352 = vector.extract_strided_slice %347 {offsets = [2, 0], sizes = [1, 192], strides = [1, 1]} : vector<8x192xf32> to vector<1x192xf32>
    %353 = vector.extract_strided_slice %347 {offsets = [3, 0], sizes = [1, 192], strides = [1, 1]} : vector<8x192xf32> to vector<1x192xf32>
    %354 = arith.maximumf %352, %353 : vector<1x192xf32>
    %c8 = arith.constant 8 : index
    %c0_120 = arith.constant 0 : index
    %355 = vector.load %arg20[%c8, %c0_120] : memref<56x192xf32, #tpu.memory_space<vmem>>, vector<1x192xf32>
    tpu.vector_store %arg20[%c8, %c0_120], %354 {strides = array<i32>} : memref<56x192xf32, #tpu.memory_space<vmem>>, vector<1x192xf32>,
    %356 = vector.extract_strided_slice %347 {offsets = [4, 0], sizes = [1, 192], strides = [1, 1]} : vector<8x192xf32> to vector<1x192xf32>
    %357 = vector.extract_strided_slice %347 {offsets = [5, 0], sizes = [1, 192], strides = [1, 1]} : vector<8x192xf32> to vector<1x192xf32>
    %358 = arith.maximumf %356, %357 : vector<1x192xf32>
    %c9 = arith.constant 9 : index
    %c0_121 = arith.constant 0 : index
    %359 = vector.load %arg20[%c9, %c0_121] : memref<56x192xf32, #tpu.memory_space<vmem>>, vector<1x192xf32>
    tpu.vector_store %arg20[%c9, %c0_121], %358 {strides = array<i32>} : memref<56x192xf32, #tpu.memory_space<vmem>>, vector<1x192xf32>,
    %360 = vector.extract_strided_slice %347 {offsets = [6, 0], sizes = [1, 192], strides = [1, 1]} : vector<8x192xf32> to vector<1x192xf32>
    %361 = vector.extract_strided_slice %347 {offsets = [7, 0], sizes = [1, 192], strides = [1, 1]} : vector<8x192xf32> to vector<1x192xf32>
    %362 = arith.maximumf %360, %361 : vector<1x192xf32>
    %c10_122 = arith.constant 10 : index
    %c0_123 = arith.constant 0 : index
    %363 = vector.load %arg20[%c10_122, %c0_123] : memref<56x192xf32, #tpu.memory_space<vmem>>, vector<1x192xf32>
    tpu.vector_store %arg20[%c10_122, %c0_123], %362 {strides = array<i32>} : memref<56x192xf32, #tpu.memory_space<vmem>>, vector<1x192xf32>,
    %364 = vector.extract_strided_slice %344 {offsets = [20, 0], sizes = [8, 192], strides = [1, 1]} : vector<80x192xf32> to vector<8x192xf32>
    %365 = vector.extract_strided_slice %344 {offsets = [30, 0], sizes = [8, 192], strides = [1, 1]} : vector<80x192xf32> to vector<8x192xf32>
    %366 = arith.maximumf %364, %365 : vector<8x192xf32>
    %367 = vector.extract_strided_slice %366 {offsets = [0, 0], sizes = [1, 192], strides = [1, 1]} : vector<8x192xf32> to vector<1x192xf32>
    %368 = vector.extract_strided_slice %366 {offsets = [1, 0], sizes = [1, 192], strides = [1, 1]} : vector<8x192xf32> to vector<1x192xf32>
    %369 = arith.maximumf %367, %368 : vector<1x192xf32>
    %c13_124 = arith.constant 13 : index
    %c0_125 = arith.constant 0 : index
    %370 = vector.load %arg20[%c13_124, %c0_125] : memref<56x192xf32, #tpu.memory_space<vmem>>, vector<1x192xf32>
    tpu.vector_store %arg20[%c13_124, %c0_125], %369 {strides = array<i32>} : memref<56x192xf32, #tpu.memory_space<vmem>>, vector<1x192xf32>,
    %371 = vector.extract_strided_slice %366 {offsets = [2, 0], sizes = [1, 192], strides = [1, 1]} : vector<8x192xf32> to vector<1x192xf32>
    %372 = vector.extract_strided_slice %366 {offsets = [3, 0], sizes = [1, 192], strides = [1, 1]} : vector<8x192xf32> to vector<1x192xf32>
    %373 = arith.maximumf %371, %372 : vector<1x192xf32>
    %c14_126 = arith.constant 14 : index
    %c0_127 = arith.constant 0 : index
    %374 = vector.load %arg20[%c14_126, %c0_127] : memref<56x192xf32, #tpu.memory_space<vmem>>, vector<1x192xf32>
    tpu.vector_store %arg20[%c14_126, %c0_127], %373 {strides = array<i32>} : memref<56x192xf32, #tpu.memory_space<vmem>>, vector<1x192xf32>,
    %375 = vector.extract_strided_slice %366 {offsets = [4, 0], sizes = [1, 192], strides = [1, 1]} : vector<8x192xf32> to vector<1x192xf32>
    %376 = vector.extract_strided_slice %366 {offsets = [5, 0], sizes = [1, 192], strides = [1, 1]} : vector<8x192xf32> to vector<1x192xf32>
    %377 = arith.maximumf %375, %376 : vector<1x192xf32>
    %c15_128 = arith.constant 15 : index
    %c0_129 = arith.constant 0 : index
    %378 = vector.load %arg20[%c15_128, %c0_129] : memref<56x192xf32, #tpu.memory_space<vmem>>, vector<1x192xf32>
    tpu.vector_store %arg20[%c15_128, %c0_129], %377 {strides = array<i32>} : memref<56x192xf32, #tpu.memory_space<vmem>>, vector<1x192xf32>,
    %379 = vector.extract_strided_slice %366 {offsets = [6, 0], sizes = [1, 192], strides = [1, 1]} : vector<8x192xf32> to vector<1x192xf32>
    %380 = vector.extract_strided_slice %366 {offsets = [7, 0], sizes = [1, 192], strides = [1, 1]} : vector<8x192xf32> to vector<1x192xf32>
    %381 = arith.maximumf %379, %380 : vector<1x192xf32>
    %c16_130 = arith.constant 16 : index
    %c0_131 = arith.constant 0 : index
    %382 = vector.load %arg20[%c16_130, %c0_131] : memref<56x192xf32, #tpu.memory_space<vmem>>, vector<1x192xf32>
    tpu.vector_store %arg20[%c16_130, %c0_131], %381 {strides = array<i32>} : memref<56x192xf32, #tpu.memory_space<vmem>>, vector<1x192xf32>,
    %383 = vector.extract_strided_slice %344 {offsets = [40, 0], sizes = [8, 192], strides = [1, 1]} : vector<80x192xf32> to vector<8x192xf32>
    %384 = vector.extract_strided_slice %344 {offsets = [50, 0], sizes = [8, 192], strides = [1, 1]} : vector<80x192xf32> to vector<8x192xf32>
    %385 = arith.maximumf %383, %384 : vector<8x192xf32>
    %386 = vector.extract_strided_slice %385 {offsets = [0, 0], sizes = [1, 192], strides = [1, 1]} : vector<8x192xf32> to vector<1x192xf32>
    %387 = vector.extract_strided_slice %385 {offsets = [1, 0], sizes = [1, 192], strides = [1, 1]} : vector<8x192xf32> to vector<1x192xf32>
    %388 = arith.maximumf %386, %387 : vector<1x192xf32>
    %c19 = arith.constant 19 : index
    %c0_132 = arith.constant 0 : index
    %389 = vector.load %arg20[%c19, %c0_132] : memref<56x192xf32, #tpu.memory_space<vmem>>, vector<1x192xf32>
    tpu.vector_store %arg20[%c19, %c0_132], %388 {strides = array<i32>} : memref<56x192xf32, #tpu.memory_space<vmem>>, vector<1x192xf32>,
    %390 = vector.extract_strided_slice %385 {offsets = [2, 0], sizes = [1, 192], strides = [1, 1]} : vector<8x192xf32> to vector<1x192xf32>
    %391 = vector.extract_strided_slice %385 {offsets = [3, 0], sizes = [1, 192], strides = [1, 1]} : vector<8x192xf32> to vector<1x192xf32>
    %392 = arith.maximumf %390, %391 : vector<1x192xf32>
    %c20_133 = arith.constant 20 : index
    %c0_134 = arith.constant 0 : index
    %393 = vector.load %arg20[%c20_133, %c0_134] : memref<56x192xf32, #tpu.memory_space<vmem>>, vector<1x192xf32>
    tpu.vector_store %arg20[%c20_133, %c0_134], %392 {strides = array<i32>} : memref<56x192xf32, #tpu.memory_space<vmem>>, vector<1x192xf32>,
    %394 = vector.extract_strided_slice %385 {offsets = [4, 0], sizes = [1, 192], strides = [1, 1]} : vector<8x192xf32> to vector<1x192xf32>
    %395 = vector.extract_strided_slice %385 {offsets = [5, 0], sizes = [1, 192], strides = [1, 1]} : vector<8x192xf32> to vector<1x192xf32>
    %396 = arith.maximumf %394, %395 : vector<1x192xf32>
    %c21_135 = arith.constant 21 : index
    %c0_136 = arith.constant 0 : index
    %397 = vector.load %arg20[%c21_135, %c0_136] : memref<56x192xf32, #tpu.memory_space<vmem>>, vector<1x192xf32>
    tpu.vector_store %arg20[%c21_135, %c0_136], %396 {strides = array<i32>} : memref<56x192xf32, #tpu.memory_space<vmem>>, vector<1x192xf32>,
    %398 = vector.extract_strided_slice %385 {offsets = [6, 0], sizes = [1, 192], strides = [1, 1]} : vector<8x192xf32> to vector<1x192xf32>
    %399 = vector.extract_strided_slice %385 {offsets = [7, 0], sizes = [1, 192], strides = [1, 1]} : vector<8x192xf32> to vector<1x192xf32>
    %400 = arith.maximumf %398, %399 : vector<1x192xf32>
    %c22_137 = arith.constant 22 : index
    %c0_138 = arith.constant 0 : index
    %401 = vector.load %arg20[%c22_137, %c0_138] : memref<56x192xf32, #tpu.memory_space<vmem>>, vector<1x192xf32>
    tpu.vector_store %arg20[%c22_137, %c0_138], %400 {strides = array<i32>} : memref<56x192xf32, #tpu.memory_space<vmem>>, vector<1x192xf32>,
    %402 = vector.extract_strided_slice %344 {offsets = [60, 0], sizes = [8, 192], strides = [1, 1]} : vector<80x192xf32> to vector<8x192xf32>
    %403 = vector.extract_strided_slice %344 {offsets = [70, 0], sizes = [8, 192], strides = [1, 1]} : vector<80x192xf32> to vector<8x192xf32>
    %404 = arith.maximumf %402, %403 : vector<8x192xf32>
    %405 = vector.extract_strided_slice %404 {offsets = [0, 0], sizes = [1, 192], strides = [1, 1]} : vector<8x192xf32> to vector<1x192xf32>
    %406 = vector.extract_strided_slice %404 {offsets = [1, 0], sizes = [1, 192], strides = [1, 1]} : vector<8x192xf32> to vector<1x192xf32>
    %407 = arith.maximumf %405, %406 : vector<1x192xf32>
    %c25_139 = arith.constant 25 : index
    %c0_140 = arith.constant 0 : index
    %408 = vector.load %arg20[%c25_139, %c0_140] : memref<56x192xf32, #tpu.memory_space<vmem>>, vector<1x192xf32>
    tpu.vector_store %arg20[%c25_139, %c0_140], %407 {strides = array<i32>} : memref<56x192xf32, #tpu.memory_space<vmem>>, vector<1x192xf32>,
    %409 = vector.extract_strided_slice %404 {offsets = [2, 0], sizes = [1, 192], strides = [1, 1]} : vector<8x192xf32> to vector<1x192xf32>
    %410 = vector.extract_strided_slice %404 {offsets = [3, 0], sizes = [1, 192], strides = [1, 1]} : vector<8x192xf32> to vector<1x192xf32>
    %411 = arith.maximumf %409, %410 : vector<1x192xf32>
    %c26_141 = arith.constant 26 : index
    %c0_142 = arith.constant 0 : index
    %412 = vector.load %arg20[%c26_141, %c0_142] : memref<56x192xf32, #tpu.memory_space<vmem>>, vector<1x192xf32>
    tpu.vector_store %arg20[%c26_141, %c0_142], %411 {strides = array<i32>} : memref<56x192xf32, #tpu.memory_space<vmem>>, vector<1x192xf32>,
    %413 = vector.extract_strided_slice %404 {offsets = [4, 0], sizes = [1, 192], strides = [1, 1]} : vector<8x192xf32> to vector<1x192xf32>
    %414 = vector.extract_strided_slice %404 {offsets = [5, 0], sizes = [1, 192], strides = [1, 1]} : vector<8x192xf32> to vector<1x192xf32>
    %415 = arith.maximumf %413, %414 : vector<1x192xf32>
    %c27_143 = arith.constant 27 : index
    %c0_144 = arith.constant 0 : index
    %416 = vector.load %arg20[%c27_143, %c0_144] : memref<56x192xf32, #tpu.memory_space<vmem>>, vector<1x192xf32>
    tpu.vector_store %arg20[%c27_143, %c0_144], %415 {strides = array<i32>} : memref<56x192xf32, #tpu.memory_space<vmem>>, vector<1x192xf32>,
    %417 = vector.extract_strided_slice %404 {offsets = [6, 0], sizes = [1, 192], strides = [1, 1]} : vector<8x192xf32> to vector<1x192xf32>
    %418 = vector.extract_strided_slice %404 {offsets = [7, 0], sizes = [1, 192], strides = [1, 1]} : vector<8x192xf32> to vector<1x192xf32>
    %419 = arith.maximumf %417, %418 : vector<1x192xf32>
    %c28_145 = arith.constant 28 : index
    %c0_146 = arith.constant 0 : index
    %420 = vector.load %arg20[%c28_145, %c0_146] : memref<56x192xf32, #tpu.memory_space<vmem>>, vector<1x192xf32>
    tpu.vector_store %arg20[%c28_145, %c0_146], %419 {strides = array<i32>} : memref<56x192xf32, #tpu.memory_space<vmem>>, vector<1x192xf32>,
    %c0_147 = arith.constant 0 : index
    %c0_148 = arith.constant 0 : index
    %421 = vector.load %arg20[%c0_147, %c0_148] : memref<56x192xf32, #tpu.memory_space<vmem>>, vector<24x192xf32>
    %422 = arith.truncf %421 : vector<24x192xf32> to vector<24x192xbf16>
    %c0_149 = arith.constant 0 : index
    %c0_150 = arith.constant 0 : index
    %423 = vector.load %arg6[%c0_149, %c0_150] : memref<1728x384xbf16, #tpu.memory_space<vmem>>, vector<192x384xbf16>
    %cst_151 = arith.constant dense<0.000000e+00> : vector<24x384xf32>
    %424 = tpu.matmul %422, %423, %cst_151 {dimension_numbers = #tpu.dot_dimension_numbers<[1], [0], [0], [1], [0, 0, 1, 1], [], []>} : vector<24x192xbf16>, vector<192x384xbf16>, vector<24x384xf32> -> vector<24x384xf32>
    %c1_152 = arith.constant 1 : index
    %c0_153 = arith.constant 0 : index
    %425 = vector.load %arg20[%c1_152, %c0_153] : memref<56x192xf32, #tpu.memory_space<vmem>>, vector<24x192xf32>
    %426 = arith.truncf %425 : vector<24x192xf32> to vector<24x192xbf16>
    %c192_154 = arith.constant 192 : index
    %c0_155 = arith.constant 0 : index
    %427 = vector.load %arg6[%c192_154, %c0_155] : memref<1728x384xbf16, #tpu.memory_space<vmem>>, vector<192x384xbf16>
    %cst_156 = arith.constant dense<0.000000e+00> : vector<24x384xf32>
    %428 = tpu.matmul %426, %427, %cst_156 {dimension_numbers = #tpu.dot_dimension_numbers<[1], [0], [0], [1], [0, 0, 1, 1], [], []>} : vector<24x192xbf16>, vector<192x384xbf16>, vector<24x384xf32> -> vector<24x384xf32>
    %429 = arith.addf %424, %428 : vector<24x384xf32>
    %c2_157 = arith.constant 2 : index
    %c0_158 = arith.constant 0 : index
    %430 = vector.load %arg20[%c2_157, %c0_158] : memref<56x192xf32, #tpu.memory_space<vmem>>, vector<24x192xf32>
    %431 = arith.truncf %430 : vector<24x192xf32> to vector<24x192xbf16>
    %c384_159 = arith.constant 384 : index
    %c0_160 = arith.constant 0 : index
    %432 = vector.load %arg6[%c384_159, %c0_160] : memref<1728x384xbf16, #tpu.memory_space<vmem>>, vector<192x384xbf16>
    %cst_161 = arith.constant dense<0.000000e+00> : vector<24x384xf32>
    %433 = tpu.matmul %431, %432, %cst_161 {dimension_numbers = #tpu.dot_dimension_numbers<[1], [0], [0], [1], [0, 0, 1, 1], [], []>} : vector<24x192xbf16>, vector<192x384xbf16>, vector<24x384xf32> -> vector<24x384xf32>
    %434 = arith.addf %429, %433 : vector<24x384xf32>
    %c6 = arith.constant 6 : index
    %c0_162 = arith.constant 0 : index
    %435 = vector.load %arg20[%c6, %c0_162] : memref<56x192xf32, #tpu.memory_space<vmem>>, vector<24x192xf32>
    %436 = arith.truncf %435 : vector<24x192xf32> to vector<24x192xbf16>
    %c576 = arith.constant 576 : index
    %c0_163 = arith.constant 0 : index
    %437 = vector.load %arg6[%c576, %c0_163] : memref<1728x384xbf16, #tpu.memory_space<vmem>>, vector<192x384xbf16>
    %cst_164 = arith.constant dense<0.000000e+00> : vector<24x384xf32>
    %438 = tpu.matmul %436, %437, %cst_164 {dimension_numbers = #tpu.dot_dimension_numbers<[1], [0], [0], [1], [0, 0, 1, 1], [], []>} : vector<24x192xbf16>, vector<192x384xbf16>, vector<24x384xf32> -> vector<24x384xf32>
    %439 = arith.addf %434, %438 : vector<24x384xf32>
    %c7_165 = arith.constant 7 : index
    %c0_166 = arith.constant 0 : index
    %440 = vector.load %arg20[%c7_165, %c0_166] : memref<56x192xf32, #tpu.memory_space<vmem>>, vector<24x192xf32>
    %441 = arith.truncf %440 : vector<24x192xf32> to vector<24x192xbf16>
    %c768 = arith.constant 768 : index
    %c0_167 = arith.constant 0 : index
    %442 = vector.load %arg6[%c768, %c0_167] : memref<1728x384xbf16, #tpu.memory_space<vmem>>, vector<192x384xbf16>
    %cst_168 = arith.constant dense<0.000000e+00> : vector<24x384xf32>
    %443 = tpu.matmul %441, %442, %cst_168 {dimension_numbers = #tpu.dot_dimension_numbers<[1], [0], [0], [1], [0, 0, 1, 1], [], []>} : vector<24x192xbf16>, vector<192x384xbf16>, vector<24x384xf32> -> vector<24x384xf32>
    %444 = arith.addf %439, %443 : vector<24x384xf32>
    %c8_169 = arith.constant 8 : index
    %c0_170 = arith.constant 0 : index
    %445 = vector.load %arg20[%c8_169, %c0_170] : memref<56x192xf32, #tpu.memory_space<vmem>>, vector<24x192xf32>
    %446 = arith.truncf %445 : vector<24x192xf32> to vector<24x192xbf16>
    %c960 = arith.constant 960 : index
    %c0_171 = arith.constant 0 : index
    %447 = vector.load %arg6[%c960, %c0_171] : memref<1728x384xbf16, #tpu.memory_space<vmem>>, vector<192x384xbf16>
    %cst_172 = arith.constant dense<0.000000e+00> : vector<24x384xf32>
    %448 = tpu.matmul %446, %447, %cst_172 {dimension_numbers = #tpu.dot_dimension_numbers<[1], [0], [0], [1], [0, 0, 1, 1], [], []>} : vector<24x192xbf16>, vector<192x384xbf16>, vector<24x384xf32> -> vector<24x384xf32>
    %449 = arith.addf %444, %448 : vector<24x384xf32>
    %c12_173 = arith.constant 12 : index
    %c0_174 = arith.constant 0 : index
    %450 = vector.load %arg20[%c12_173, %c0_174] : memref<56x192xf32, #tpu.memory_space<vmem>>, vector<24x192xf32>
    %451 = arith.truncf %450 : vector<24x192xf32> to vector<24x192xbf16>
    %c1152 = arith.constant 1152 : index
    %c0_175 = arith.constant 0 : index
    %452 = vector.load %arg6[%c1152, %c0_175] : memref<1728x384xbf16, #tpu.memory_space<vmem>>, vector<192x384xbf16>
    %cst_176 = arith.constant dense<0.000000e+00> : vector<24x384xf32>
    %453 = tpu.matmul %451, %452, %cst_176 {dimension_numbers = #tpu.dot_dimension_numbers<[1], [0], [0], [1], [0, 0, 1, 1], [], []>} : vector<24x192xbf16>, vector<192x384xbf16>, vector<24x384xf32> -> vector<24x384xf32>
    %454 = arith.addf %449, %453 : vector<24x384xf32>
    %c13_177 = arith.constant 13 : index
    %c0_178 = arith.constant 0 : index
    %455 = vector.load %arg20[%c13_177, %c0_178] : memref<56x192xf32, #tpu.memory_space<vmem>>, vector<24x192xf32>
    %456 = arith.truncf %455 : vector<24x192xf32> to vector<24x192xbf16>
    %c1344 = arith.constant 1344 : index
    %c0_179 = arith.constant 0 : index
    %457 = vector.load %arg6[%c1344, %c0_179] : memref<1728x384xbf16, #tpu.memory_space<vmem>>, vector<192x384xbf16>
    %cst_180 = arith.constant dense<0.000000e+00> : vector<24x384xf32>
    %458 = tpu.matmul %456, %457, %cst_180 {dimension_numbers = #tpu.dot_dimension_numbers<[1], [0], [0], [1], [0, 0, 1, 1], [], []>} : vector<24x192xbf16>, vector<192x384xbf16>, vector<24x384xf32> -> vector<24x384xf32>
    %459 = arith.addf %454, %458 : vector<24x384xf32>
    %c14_181 = arith.constant 14 : index
    %c0_182 = arith.constant 0 : index
    %460 = vector.load %arg20[%c14_181, %c0_182] : memref<56x192xf32, #tpu.memory_space<vmem>>, vector<24x192xf32>
    %461 = arith.truncf %460 : vector<24x192xf32> to vector<24x192xbf16>
    %c1536 = arith.constant 1536 : index
    %c0_183 = arith.constant 0 : index
    %462 = vector.load %arg6[%c1536, %c0_183] : memref<1728x384xbf16, #tpu.memory_space<vmem>>, vector<192x384xbf16>
    %cst_184 = arith.constant dense<0.000000e+00> : vector<24x384xf32>
    %463 = tpu.matmul %461, %462, %cst_184 {dimension_numbers = #tpu.dot_dimension_numbers<[1], [0], [0], [1], [0, 0, 1, 1], [], []>} : vector<24x192xbf16>, vector<192x384xbf16>, vector<24x384xf32> -> vector<24x384xf32>
    %464 = arith.addf %459, %463 : vector<24x384xf32>
    %c0_185 = arith.constant 0 : index
    %c0_186 = arith.constant 0 : index
    %465 = vector.load %arg7[%c0_185, %c0_186] : memref<1x384xf32, #tpu.memory_space<vmem>>, vector<1x384xf32>
    %466 = vector.broadcast %465 : vector<1x384xf32> to vector<24x384xf32>
    %467 = arith.addf %464, %466 : vector<24x384xf32>
    %cst_187 = arith.constant 0.000000e+00 : f32
    %468 = vector.broadcast %cst_187 : f32 to vector<24x384xf32>
    %469 = arith.maximumf %467, %468 : vector<24x384xf32>
    %470 = vector.extract_strided_slice %469 {offsets = [0, 0], sizes = [4, 384], strides = [1, 1]} : vector<24x384xf32> to vector<4x384xf32>
    %c7_188 = arith.constant 7 : index
    %c0_189 = arith.constant 0 : index
    %471 = vector.load %arg21[%c7_188, %c0_189] : memref<56x384xf32, #tpu.memory_space<vmem>>, vector<4x384xf32>
    tpu.vector_store %arg21[%c7_188, %c0_189], %470 {strides = array<i32>} : memref<56x384xf32, #tpu.memory_space<vmem>>, vector<4x384xf32>,
    %472 = vector.extract_strided_slice %469 {offsets = [6, 0], sizes = [4, 384], strides = [1, 1]} : vector<24x384xf32> to vector<4x384xf32>
    %c13_190 = arith.constant 13 : index
    %c0_191 = arith.constant 0 : index
    %473 = vector.load %arg21[%c13_190, %c0_191] : memref<56x384xf32, #tpu.memory_space<vmem>>, vector<4x384xf32>
    tpu.vector_store %arg21[%c13_190, %c0_191], %472 {strides = array<i32>} : memref<56x384xf32, #tpu.memory_space<vmem>>, vector<4x384xf32>,
    %474 = vector.extract_strided_slice %469 {offsets = [12, 0], sizes = [4, 384], strides = [1, 1]} : vector<24x384xf32> to vector<4x384xf32>
    %c19_192 = arith.constant 19 : index
    %c0_193 = arith.constant 0 : index
    %475 = vector.load %arg21[%c19_192, %c0_193] : memref<56x384xf32, #tpu.memory_space<vmem>>, vector<4x384xf32>
    tpu.vector_store %arg21[%c19_192, %c0_193], %474 {strides = array<i32>} : memref<56x384xf32, #tpu.memory_space<vmem>>, vector<4x384xf32>,
    %476 = vector.extract_strided_slice %469 {offsets = [18, 0], sizes = [4, 384], strides = [1, 1]} : vector<24x384xf32> to vector<4x384xf32>
    %c25_194 = arith.constant 25 : index
    %c0_195 = arith.constant 0 : index
    %477 = vector.load %arg21[%c25_194, %c0_195] : memref<56x384xf32, #tpu.memory_space<vmem>>, vector<4x384xf32>
    tpu.vector_store %arg21[%c25_194, %c0_195], %476 {strides = array<i32>} : memref<56x384xf32, #tpu.memory_space<vmem>>, vector<4x384xf32>,
    %c0_196 = arith.constant 0 : index
    %c0_197 = arith.constant 0 : index
    %478 = vector.load %arg21[%c0_196, %c0_197] : memref<56x384xf32, #tpu.memory_space<vmem>>, vector<24x384xf32>
    %479 = arith.truncf %478 : vector<24x384xf32> to vector<24x384xbf16>
    %c0_198 = arith.constant 0 : index
    %c0_199 = arith.constant 0 : index
    %480 = vector.load %arg8[%c0_198, %c0_199] : memref<3456x256xbf16, #tpu.memory_space<vmem>>, vector<384x256xbf16>
    %cst_200 = arith.constant dense<0.000000e+00> : vector<24x256xf32>
    %481 = tpu.matmul %479, %480, %cst_200 {dimension_numbers = #tpu.dot_dimension_numbers<[1], [0], [0], [1], [0, 0, 1, 1], [], []>} : vector<24x384xbf16>, vector<384x256xbf16>, vector<24x256xf32> -> vector<24x256xf32>
    %c1_201 = arith.constant 1 : index
    %c0_202 = arith.constant 0 : index
    %482 = vector.load %arg21[%c1_201, %c0_202] : memref<56x384xf32, #tpu.memory_space<vmem>>, vector<24x384xf32>
    %483 = arith.truncf %482 : vector<24x384xf32> to vector<24x384xbf16>
    %c384_203 = arith.constant 384 : index
    %c0_204 = arith.constant 0 : index
    %484 = vector.load %arg8[%c384_203, %c0_204] : memref<3456x256xbf16, #tpu.memory_space<vmem>>, vector<384x256xbf16>
    %cst_205 = arith.constant dense<0.000000e+00> : vector<24x256xf32>
    %485 = tpu.matmul %483, %484, %cst_205 {dimension_numbers = #tpu.dot_dimension_numbers<[1], [0], [0], [1], [0, 0, 1, 1], [], []>} : vector<24x384xbf16>, vector<384x256xbf16>, vector<24x256xf32> -> vector<24x256xf32>
    %486 = arith.addf %481, %485 : vector<24x256xf32>
    %c2_206 = arith.constant 2 : index
    %c0_207 = arith.constant 0 : index
    %487 = vector.load %arg21[%c2_206, %c0_207] : memref<56x384xf32, #tpu.memory_space<vmem>>, vector<24x384xf32>
    %488 = arith.truncf %487 : vector<24x384xf32> to vector<24x384xbf16>
    %c768_208 = arith.constant 768 : index
    %c0_209 = arith.constant 0 : index
    %489 = vector.load %arg8[%c768_208, %c0_209] : memref<3456x256xbf16, #tpu.memory_space<vmem>>, vector<384x256xbf16>
    %cst_210 = arith.constant dense<0.000000e+00> : vector<24x256xf32>
    %490 = tpu.matmul %488, %489, %cst_210 {dimension_numbers = #tpu.dot_dimension_numbers<[1], [0], [0], [1], [0, 0, 1, 1], [], []>} : vector<24x384xbf16>, vector<384x256xbf16>, vector<24x256xf32> -> vector<24x256xf32>
    %491 = arith.addf %486, %490 : vector<24x256xf32>
    %c6_211 = arith.constant 6 : index
    %c0_212 = arith.constant 0 : index
    %492 = vector.load %arg21[%c6_211, %c0_212] : memref<56x384xf32, #tpu.memory_space<vmem>>, vector<24x384xf32>
    %493 = arith.truncf %492 : vector<24x384xf32> to vector<24x384xbf16>
    %c1152_213 = arith.constant 1152 : index
    %c0_214 = arith.constant 0 : index
    %494 = vector.load %arg8[%c1152_213, %c0_214] : memref<3456x256xbf16, #tpu.memory_space<vmem>>, vector<384x256xbf16>
    %cst_215 = arith.constant dense<0.000000e+00> : vector<24x256xf32>
    %495 = tpu.matmul %493, %494, %cst_215 {dimension_numbers = #tpu.dot_dimension_numbers<[1], [0], [0], [1], [0, 0, 1, 1], [], []>} : vector<24x384xbf16>, vector<384x256xbf16>, vector<24x256xf32> -> vector<24x256xf32>
    %496 = arith.addf %491, %495 : vector<24x256xf32>
    %c7_216 = arith.constant 7 : index
    %c0_217 = arith.constant 0 : index
    %497 = vector.load %arg21[%c7_216, %c0_217] : memref<56x384xf32, #tpu.memory_space<vmem>>, vector<24x384xf32>
    %498 = arith.truncf %497 : vector<24x384xf32> to vector<24x384xbf16>
    %c1536_218 = arith.constant 1536 : index
    %c0_219 = arith.constant 0 : index
    %499 = vector.load %arg8[%c1536_218, %c0_219] : memref<3456x256xbf16, #tpu.memory_space<vmem>>, vector<384x256xbf16>
    %cst_220 = arith.constant dense<0.000000e+00> : vector<24x256xf32>
    %500 = tpu.matmul %498, %499, %cst_220 {dimension_numbers = #tpu.dot_dimension_numbers<[1], [0], [0], [1], [0, 0, 1, 1], [], []>} : vector<24x384xbf16>, vector<384x256xbf16>, vector<24x256xf32> -> vector<24x256xf32>
    %501 = arith.addf %496, %500 : vector<24x256xf32>
    %c8_221 = arith.constant 8 : index
    %c0_222 = arith.constant 0 : index
    %502 = vector.load %arg21[%c8_221, %c0_222] : memref<56x384xf32, #tpu.memory_space<vmem>>, vector<24x384xf32>
    %503 = arith.truncf %502 : vector<24x384xf32> to vector<24x384xbf16>
    %c1920 = arith.constant 1920 : index
    %c0_223 = arith.constant 0 : index
    %504 = vector.load %arg8[%c1920, %c0_223] : memref<3456x256xbf16, #tpu.memory_space<vmem>>, vector<384x256xbf16>
    %cst_224 = arith.constant dense<0.000000e+00> : vector<24x256xf32>
    %505 = tpu.matmul %503, %504, %cst_224 {dimension_numbers = #tpu.dot_dimension_numbers<[1], [0], [0], [1], [0, 0, 1, 1], [], []>} : vector<24x384xbf16>, vector<384x256xbf16>, vector<24x256xf32> -> vector<24x256xf32>
    %506 = arith.addf %501, %505 : vector<24x256xf32>
    %c12_225 = arith.constant 12 : index
    %c0_226 = arith.constant 0 : index
    %507 = vector.load %arg21[%c12_225, %c0_226] : memref<56x384xf32, #tpu.memory_space<vmem>>, vector<24x384xf32>
    %508 = arith.truncf %507 : vector<24x384xf32> to vector<24x384xbf16>
    %c2304 = arith.constant 2304 : index
    %c0_227 = arith.constant 0 : index
    %509 = vector.load %arg8[%c2304, %c0_227] : memref<3456x256xbf16, #tpu.memory_space<vmem>>, vector<384x256xbf16>
    %cst_228 = arith.constant dense<0.000000e+00> : vector<24x256xf32>
    %510 = tpu.matmul %508, %509, %cst_228 {dimension_numbers = #tpu.dot_dimension_numbers<[1], [0], [0], [1], [0, 0, 1, 1], [], []>} : vector<24x384xbf16>, vector<384x256xbf16>, vector<24x256xf32> -> vector<24x256xf32>
    %511 = arith.addf %506, %510 : vector<24x256xf32>
    %c13_229 = arith.constant 13 : index
    %c0_230 = arith.constant 0 : index
    %512 = vector.load %arg21[%c13_229, %c0_230] : memref<56x384xf32, #tpu.memory_space<vmem>>, vector<24x384xf32>
    %513 = arith.truncf %512 : vector<24x384xf32> to vector<24x384xbf16>
    %c2688 = arith.constant 2688 : index
    %c0_231 = arith.constant 0 : index
    %514 = vector.load %arg8[%c2688, %c0_231] : memref<3456x256xbf16, #tpu.memory_space<vmem>>, vector<384x256xbf16>
    %cst_232 = arith.constant dense<0.000000e+00> : vector<24x256xf32>
    %515 = tpu.matmul %513, %514, %cst_232 {dimension_numbers = #tpu.dot_dimension_numbers<[1], [0], [0], [1], [0, 0, 1, 1], [], []>} : vector<24x384xbf16>, vector<384x256xbf16>, vector<24x256xf32> -> vector<24x256xf32>
    %516 = arith.addf %511, %515 : vector<24x256xf32>
    %c14_233 = arith.constant 14 : index
    %c0_234 = arith.constant 0 : index
    %517 = vector.load %arg21[%c14_233, %c0_234] : memref<56x384xf32, #tpu.memory_space<vmem>>, vector<24x384xf32>
    %518 = arith.truncf %517 : vector<24x384xf32> to vector<24x384xbf16>
    %c3072 = arith.constant 3072 : index
    %c0_235 = arith.constant 0 : index
    %519 = vector.load %arg8[%c3072, %c0_235] : memref<3456x256xbf16, #tpu.memory_space<vmem>>, vector<384x256xbf16>
    %cst_236 = arith.constant dense<0.000000e+00> : vector<24x256xf32>
    %520 = tpu.matmul %518, %519, %cst_236 {dimension_numbers = #tpu.dot_dimension_numbers<[1], [0], [0], [1], [0, 0, 1, 1], [], []>} : vector<24x384xbf16>, vector<384x256xbf16>, vector<24x256xf32> -> vector<24x256xf32>
    %521 = arith.addf %516, %520 : vector<24x256xf32>
    %c0_237 = arith.constant 0 : index
    %c0_238 = arith.constant 0 : index
    %522 = vector.load %arg9[%c0_237, %c0_238] : memref<1x256xf32, #tpu.memory_space<vmem>>, vector<1x256xf32>
    %523 = vector.broadcast %522 : vector<1x256xf32> to vector<24x256xf32>
    %524 = arith.addf %521, %523 : vector<24x256xf32>
    %cst_239 = arith.constant 0.000000e+00 : f32
    %525 = vector.broadcast %cst_239 : f32 to vector<24x256xf32>
    %526 = arith.maximumf %524, %525 : vector<24x256xf32>
    %527 = vector.extract_strided_slice %526 {offsets = [0, 0], sizes = [4, 256], strides = [1, 1]} : vector<24x256xf32> to vector<4x256xf32>
    %c7_240 = arith.constant 7 : index
    %c0_241 = arith.constant 0 : index
    %528 = vector.load %arg22[%c7_240, %c0_241] : memref<56x256xf32, #tpu.memory_space<vmem>>, vector<4x256xf32>
    tpu.vector_store %arg22[%c7_240, %c0_241], %527 {strides = array<i32>} : memref<56x256xf32, #tpu.memory_space<vmem>>, vector<4x256xf32>,
    %529 = vector.extract_strided_slice %526 {offsets = [6, 0], sizes = [4, 256], strides = [1, 1]} : vector<24x256xf32> to vector<4x256xf32>
    %c13_242 = arith.constant 13 : index
    %c0_243 = arith.constant 0 : index
    %530 = vector.load %arg22[%c13_242, %c0_243] : memref<56x256xf32, #tpu.memory_space<vmem>>, vector<4x256xf32>
    tpu.vector_store %arg22[%c13_242, %c0_243], %529 {strides = array<i32>} : memref<56x256xf32, #tpu.memory_space<vmem>>, vector<4x256xf32>,
    %531 = vector.extract_strided_slice %526 {offsets = [12, 0], sizes = [4, 256], strides = [1, 1]} : vector<24x256xf32> to vector<4x256xf32>
    %c19_244 = arith.constant 19 : index
    %c0_245 = arith.constant 0 : index
    %532 = vector.load %arg22[%c19_244, %c0_245] : memref<56x256xf32, #tpu.memory_space<vmem>>, vector<4x256xf32>
    tpu.vector_store %arg22[%c19_244, %c0_245], %531 {strides = array<i32>} : memref<56x256xf32, #tpu.memory_space<vmem>>, vector<4x256xf32>,
    %533 = vector.extract_strided_slice %526 {offsets = [18, 0], sizes = [4, 256], strides = [1, 1]} : vector<24x256xf32> to vector<4x256xf32>
    %c25_246 = arith.constant 25 : index
    %c0_247 = arith.constant 0 : index
    %534 = vector.load %arg22[%c25_246, %c0_247] : memref<56x256xf32, #tpu.memory_space<vmem>>, vector<4x256xf32>
    tpu.vector_store %arg22[%c25_246, %c0_247], %533 {strides = array<i32>} : memref<56x256xf32, #tpu.memory_space<vmem>>, vector<4x256xf32>,
    %c0_248 = arith.constant 0 : index
    %c0_249 = arith.constant 0 : index
    %535 = vector.load %arg22[%c0_248, %c0_249] : memref<56x256xf32, #tpu.memory_space<vmem>>, vector<24x256xf32>
    %536 = arith.truncf %535 : vector<24x256xf32> to vector<24x256xbf16>
    %c0_250 = arith.constant 0 : index
    %c0_251 = arith.constant 0 : index
    %537 = vector.load %arg10[%c0_250, %c0_251] : memref<2304x256xbf16, #tpu.memory_space<vmem>>, vector<256x256xbf16>
    %cst_252 = arith.constant dense<0.000000e+00> : vector<24x256xf32>
    %538 = tpu.matmul %536, %537, %cst_252 {dimension_numbers = #tpu.dot_dimension_numbers<[1], [0], [0], [1], [0, 0, 1, 1], [], []>} : vector<24x256xbf16>, vector<256x256xbf16>, vector<24x256xf32> -> vector<24x256xf32>
    %c1_253 = arith.constant 1 : index
    %c0_254 = arith.constant 0 : index
    %539 = vector.load %arg22[%c1_253, %c0_254] : memref<56x256xf32, #tpu.memory_space<vmem>>, vector<24x256xf32>
    %540 = arith.truncf %539 : vector<24x256xf32> to vector<24x256xbf16>
    %c256_255 = arith.constant 256 : index
    %c0_256 = arith.constant 0 : index
    %541 = vector.load %arg10[%c256_255, %c0_256] : memref<2304x256xbf16, #tpu.memory_space<vmem>>, vector<256x256xbf16>
    %cst_257 = arith.constant dense<0.000000e+00> : vector<24x256xf32>
    %542 = tpu.matmul %540, %541, %cst_257 {dimension_numbers = #tpu.dot_dimension_numbers<[1], [0], [0], [1], [0, 0, 1, 1], [], []>} : vector<24x256xbf16>, vector<256x256xbf16>, vector<24x256xf32> -> vector<24x256xf32>
    %543 = arith.addf %538, %542 : vector<24x256xf32>
    %c2_258 = arith.constant 2 : index
    %c0_259 = arith.constant 0 : index
    %544 = vector.load %arg22[%c2_258, %c0_259] : memref<56x256xf32, #tpu.memory_space<vmem>>, vector<24x256xf32>
    %545 = arith.truncf %544 : vector<24x256xf32> to vector<24x256xbf16>
    %c512_260 = arith.constant 512 : index
    %c0_261 = arith.constant 0 : index
    %546 = vector.load %arg10[%c512_260, %c0_261] : memref<2304x256xbf16, #tpu.memory_space<vmem>>, vector<256x256xbf16>
    %cst_262 = arith.constant dense<0.000000e+00> : vector<24x256xf32>
    %547 = tpu.matmul %545, %546, %cst_262 {dimension_numbers = #tpu.dot_dimension_numbers<[1], [0], [0], [1], [0, 0, 1, 1], [], []>} : vector<24x256xbf16>, vector<256x256xbf16>, vector<24x256xf32> -> vector<24x256xf32>
    %548 = arith.addf %543, %547 : vector<24x256xf32>
    %c6_263 = arith.constant 6 : index
    %c0_264 = arith.constant 0 : index
    %549 = vector.load %arg22[%c6_263, %c0_264] : memref<56x256xf32, #tpu.memory_space<vmem>>, vector<24x256xf32>
    %550 = arith.truncf %549 : vector<24x256xf32> to vector<24x256xbf16>
    %c768_265 = arith.constant 768 : index
    %c0_266 = arith.constant 0 : index
    %551 = vector.load %arg10[%c768_265, %c0_266] : memref<2304x256xbf16, #tpu.memory_space<vmem>>, vector<256x256xbf16>
    %cst_267 = arith.constant dense<0.000000e+00> : vector<24x256xf32>
    %552 = tpu.matmul %550, %551, %cst_267 {dimension_numbers = #tpu.dot_dimension_numbers<[1], [0], [0], [1], [0, 0, 1, 1], [], []>} : vector<24x256xbf16>, vector<256x256xbf16>, vector<24x256xf32> -> vector<24x256xf32>
    %553 = arith.addf %548, %552 : vector<24x256xf32>
    %c7_268 = arith.constant 7 : index
    %c0_269 = arith.constant 0 : index
    %554 = vector.load %arg22[%c7_268, %c0_269] : memref<56x256xf32, #tpu.memory_space<vmem>>, vector<24x256xf32>
    %555 = arith.truncf %554 : vector<24x256xf32> to vector<24x256xbf16>
    %c1024 = arith.constant 1024 : index
    %c0_270 = arith.constant 0 : index
    %556 = vector.load %arg10[%c1024, %c0_270] : memref<2304x256xbf16, #tpu.memory_space<vmem>>, vector<256x256xbf16>
    %cst_271 = arith.constant dense<0.000000e+00> : vector<24x256xf32>
    %557 = tpu.matmul %555, %556, %cst_271 {dimension_numbers = #tpu.dot_dimension_numbers<[1], [0], [0], [1], [0, 0, 1, 1], [], []>} : vector<24x256xbf16>, vector<256x256xbf16>, vector<24x256xf32> -> vector<24x256xf32>
    %558 = arith.addf %553, %557 : vector<24x256xf32>
    %c8_272 = arith.constant 8 : index
    %c0_273 = arith.constant 0 : index
    %559 = vector.load %arg22[%c8_272, %c0_273] : memref<56x256xf32, #tpu.memory_space<vmem>>, vector<24x256xf32>
    %560 = arith.truncf %559 : vector<24x256xf32> to vector<24x256xbf16>
    %c1280 = arith.constant 1280 : index
    %c0_274 = arith.constant 0 : index
    %561 = vector.load %arg10[%c1280, %c0_274] : memref<2304x256xbf16, #tpu.memory_space<vmem>>, vector<256x256xbf16>
    %cst_275 = arith.constant dense<0.000000e+00> : vector<24x256xf32>
    %562 = tpu.matmul %560, %561, %cst_275 {dimension_numbers = #tpu.dot_dimension_numbers<[1], [0], [0], [1], [0, 0, 1, 1], [], []>} : vector<24x256xbf16>, vector<256x256xbf16>, vector<24x256xf32> -> vector<24x256xf32>
    %563 = arith.addf %558, %562 : vector<24x256xf32>
    %c12_276 = arith.constant 12 : index
    %c0_277 = arith.constant 0 : index
    %564 = vector.load %arg22[%c12_276, %c0_277] : memref<56x256xf32, #tpu.memory_space<vmem>>, vector<24x256xf32>
    %565 = arith.truncf %564 : vector<24x256xf32> to vector<24x256xbf16>
    %c1536_278 = arith.constant 1536 : index
    %c0_279 = arith.constant 0 : index
    %566 = vector.load %arg10[%c1536_278, %c0_279] : memref<2304x256xbf16, #tpu.memory_space<vmem>>, vector<256x256xbf16>
    %cst_280 = arith.constant dense<0.000000e+00> : vector<24x256xf32>
    %567 = tpu.matmul %565, %566, %cst_280 {dimension_numbers = #tpu.dot_dimension_numbers<[1], [0], [0], [1], [0, 0, 1, 1], [], []>} : vector<24x256xbf16>, vector<256x256xbf16>, vector<24x256xf32> -> vector<24x256xf32>
    %568 = arith.addf %563, %567 : vector<24x256xf32>
    %c13_281 = arith.constant 13 : index
    %c0_282 = arith.constant 0 : index
    %569 = vector.load %arg22[%c13_281, %c0_282] : memref<56x256xf32, #tpu.memory_space<vmem>>, vector<24x256xf32>
    %570 = arith.truncf %569 : vector<24x256xf32> to vector<24x256xbf16>
    %c1792 = arith.constant 1792 : index
    %c0_283 = arith.constant 0 : index
    %571 = vector.load %arg10[%c1792, %c0_283] : memref<2304x256xbf16, #tpu.memory_space<vmem>>, vector<256x256xbf16>
    %cst_284 = arith.constant dense<0.000000e+00> : vector<24x256xf32>
    %572 = tpu.matmul %570, %571, %cst_284 {dimension_numbers = #tpu.dot_dimension_numbers<[1], [0], [0], [1], [0, 0, 1, 1], [], []>} : vector<24x256xbf16>, vector<256x256xbf16>, vector<24x256xf32> -> vector<24x256xf32>
    %573 = arith.addf %568, %572 : vector<24x256xf32>
    %c14_285 = arith.constant 14 : index
    %c0_286 = arith.constant 0 : index
    %574 = vector.load %arg22[%c14_285, %c0_286] : memref<56x256xf32, #tpu.memory_space<vmem>>, vector<24x256xf32>
    %575 = arith.truncf %574 : vector<24x256xf32> to vector<24x256xbf16>
    %c2048 = arith.constant 2048 : index
    %c0_287 = arith.constant 0 : index
    %576 = vector.load %arg10[%c2048, %c0_287] : memref<2304x256xbf16, #tpu.memory_space<vmem>>, vector<256x256xbf16>
    %cst_288 = arith.constant dense<0.000000e+00> : vector<24x256xf32>
    %577 = tpu.matmul %575, %576, %cst_288 {dimension_numbers = #tpu.dot_dimension_numbers<[1], [0], [0], [1], [0, 0, 1, 1], [], []>} : vector<24x256xbf16>, vector<256x256xbf16>, vector<24x256xf32> -> vector<24x256xf32>
    %578 = arith.addf %573, %577 : vector<24x256xf32>
    %c0_289 = arith.constant 0 : index
    %c0_290 = arith.constant 0 : index
    %579 = vector.load %arg11[%c0_289, %c0_290] : memref<1x256xf32, #tpu.memory_space<vmem>>, vector<1x256xf32>
    %580 = vector.broadcast %579 : vector<1x256xf32> to vector<24x256xf32>
    %581 = arith.addf %578, %580 : vector<24x256xf32>
    %cst_291 = arith.constant 0.000000e+00 : f32
    %582 = vector.broadcast %cst_291 : f32 to vector<24x256xf32>
    %583 = arith.maximumf %581, %582 : vector<24x256xf32>
    %584 = vector.extract_strided_slice %583 {offsets = [0, 0], sizes = [4, 256], strides = [1, 1]} : vector<24x256xf32> to vector<4x256xf32>
    %585 = vector.extract_strided_slice %583 {offsets = [6, 0], sizes = [4, 256], strides = [1, 1]} : vector<24x256xf32> to vector<4x256xf32>
    %586 = arith.maximumf %584, %585 : vector<4x256xf32>
    %587 = vector.extract_strided_slice %586 {offsets = [0, 0], sizes = [1, 256], strides = [1, 1]} : vector<4x256xf32> to vector<1x256xf32>
    %588 = vector.extract_strided_slice %586 {offsets = [1, 0], sizes = [1, 256], strides = [1, 1]} : vector<4x256xf32> to vector<1x256xf32>
    %589 = arith.maximumf %587, %588 : vector<1x256xf32>
    %c0_292 = arith.constant 0 : index
    %c0_293 = arith.constant 0 : index
    %590 = vector.load %arg23[%c0_292, %c0_293] : memref<1x1024xf32, #tpu.memory_space<vmem>>, vector<1x256xf32>
    tpu.vector_store %arg23[%c0_292, %c0_293], %589 {strides = array<i32>} : memref<1x1024xf32, #tpu.memory_space<vmem>>, vector<1x256xf32>,
    %591 = vector.extract_strided_slice %586 {offsets = [2, 0], sizes = [1, 256], strides = [1, 1]} : vector<4x256xf32> to vector<1x256xf32>
    %592 = vector.extract_strided_slice %586 {offsets = [3, 0], sizes = [1, 256], strides = [1, 1]} : vector<4x256xf32> to vector<1x256xf32>
    %593 = arith.maximumf %591, %592 : vector<1x256xf32>
    %c0_294 = arith.constant 0 : index
    %c256_295 = arith.constant 256 : index
    %594 = vector.load %arg23[%c0_294, %c256_295] : memref<1x1024xf32, #tpu.memory_space<vmem>>, vector<1x256xf32>
    tpu.vector_store %arg23[%c0_294, %c256_295], %593 {strides = array<i32>} : memref<1x1024xf32, #tpu.memory_space<vmem>>, vector<1x256xf32>,
    %595 = vector.extract_strided_slice %583 {offsets = [12, 0], sizes = [4, 256], strides = [1, 1]} : vector<24x256xf32> to vector<4x256xf32>
    %596 = vector.extract_strided_slice %583 {offsets = [18, 0], sizes = [4, 256], strides = [1, 1]} : vector<24x256xf32> to vector<4x256xf32>
    %597 = arith.maximumf %595, %596 : vector<4x256xf32>
    %598 = vector.extract_strided_slice %597 {offsets = [0, 0], sizes = [1, 256], strides = [1, 1]} : vector<4x256xf32> to vector<1x256xf32>
    %599 = vector.extract_strided_slice %597 {offsets = [1, 0], sizes = [1, 256], strides = [1, 1]} : vector<4x256xf32> to vector<1x256xf32>
    %600 = arith.maximumf %598, %599 : vector<1x256xf32>
    %c0_296 = arith.constant 0 : index
    %c512_297 = arith.constant 512 : index
    %601 = vector.load %arg23[%c0_296, %c512_297] : memref<1x1024xf32, #tpu.memory_space<vmem>>, vector<1x256xf32>
    tpu.vector_store %arg23[%c0_296, %c512_297], %600 {strides = array<i32>} : memref<1x1024xf32, #tpu.memory_space<vmem>>, vector<1x256xf32>,
    %602 = vector.extract_strided_slice %597 {offsets = [2, 0], sizes = [1, 256], strides = [1, 1]} : vector<4x256xf32> to vector<1x256xf32>
    %603 = vector.extract_strided_slice %597 {offsets = [3, 0], sizes = [1, 256], strides = [1, 1]} : vector<4x256xf32> to vector<1x256xf32>
    %604 = arith.maximumf %602, %603 : vector<1x256xf32>
    %c0_298 = arith.constant 0 : index
    %c768_299 = arith.constant 768 : index
    %605 = vector.load %arg23[%c0_298, %c768_299] : memref<1x1024xf32, #tpu.memory_space<vmem>>, vector<1x256xf32>
    tpu.vector_store %arg23[%c0_298, %c768_299], %604 {strides = array<i32>} : memref<1x1024xf32, #tpu.memory_space<vmem>>, vector<1x256xf32>,
    %c0_300 = arith.constant 0 : index
    %c0_301 = arith.constant 0 : index
    %606 = vector.load %arg23[%c0_300, %c0_301] : memref<1x1024xf32, #tpu.memory_space<vmem>>, vector<1x1024xf32>
    %607 = arith.truncf %606 : vector<1x1024xf32> to vector<1x1024xbf16>
    %c0_302 = arith.constant 0 : index
    %c0_303 = arith.constant 0 : index
    %608 = vector.load %arg12[%c0_302, %c0_303] : memref<1024x256xbf16, #tpu.memory_space<vmem>>, vector<1024x256xbf16>
    %cst_304 = arith.constant dense<0.000000e+00> : vector<1x256xf32>
    %609 = tpu.matmul %607, %608, %cst_304 {dimension_numbers = #tpu.dot_dimension_numbers<[1], [0], [0], [1], [0, 0, 1, 1], [], []>} : vector<1x1024xbf16>, vector<1024x256xbf16>, vector<1x256xf32> -> vector<1x256xf32>
    %c0_305 = arith.constant 0 : index
    %c0_306 = arith.constant 0 : index
    %610 = vector.load %arg13[%c0_305, %c0_306] : memref<1x256xf32, #tpu.memory_space<vmem>>, vector<1x256xf32>
    %611 = arith.addf %609, %610 : vector<1x256xf32>
    %cst_307 = arith.constant 0.000000e+00 : f32
    %612 = vector.broadcast %cst_307 : f32 to vector<1x256xf32>
    %613 = arith.maximumf %611, %612 : vector<1x256xf32>
    %614 = arith.truncf %613 : vector<1x256xf32> to vector<1x256xbf16>
    %c0_308 = arith.constant 0 : index
    %c0_309 = arith.constant 0 : index
    %615 = vector.load %arg14[%c0_308, %c0_309] : memref<256x64xbf16, #tpu.memory_space<vmem>>, vector<256x64xbf16>
    %cst_310 = arith.constant dense<0.000000e+00> : vector<1x64xf32>
    %616 = tpu.matmul %614, %615, %cst_310 {dimension_numbers = #tpu.dot_dimension_numbers<[1], [0], [0], [1], [0, 0, 1, 1], [], []>} : vector<1x256xbf16>, vector<256x64xbf16>, vector<1x64xf32> -> vector<1x64xf32>
    %c0_311 = arith.constant 0 : index
    %c0_312 = arith.constant 0 : index
    %617 = vector.load %arg15[%c0_311, %c0_312] : memref<1x64xf32, #tpu.memory_space<vmem>>, vector<1x64xf32>
    %618 = arith.addf %616, %617 : vector<1x64xf32>
    %cst_313 = arith.constant 0.000000e+00 : f32
    %619 = vector.broadcast %cst_313 : f32 to vector<1x64xf32>
    %620 = arith.maximumf %618, %619 : vector<1x64xf32>
    %621 = arith.truncf %620 : vector<1x64xf32> to vector<1x64xbf16>
    %c0_314 = arith.constant 0 : index
    %c0_315 = arith.constant 0 : index
    %622 = vector.load %arg16[%c0_314, %c0_315] : memref<64x128xbf16, #tpu.memory_space<vmem>>, vector<64x128xbf16>
    %cst_316 = arith.constant dense<0.000000e+00> : vector<1x128xf32>
    %623 = tpu.matmul %621, %622, %cst_316 {dimension_numbers = #tpu.dot_dimension_numbers<[1], [0], [0], [1], [0, 0, 1, 1], [], []>} : vector<1x64xbf16>, vector<64x128xbf16>, vector<1x128xf32> -> vector<1x128xf32>
    %c0_317 = arith.constant 0 : index
    %c0_318 = arith.constant 0 : index
    %624 = vector.load %arg17[%c0_317, %c0_318] : memref<1x128xf32, #tpu.memory_space<vmem>>, vector<1x128xf32>
    %625 = arith.addf %623, %624 : vector<1x128xf32>
    %626 = vector.shape_cast %625 : vector<1x128xf32> to vector<1x128xf32>
    %627 = vector.broadcast %626 : vector<1x128xf32> to vector<8x128xf32>
    %c0_319 = arith.constant 0 : index
    %c0_320 = arith.constant 0 : index
    %c0_321 = arith.constant 0 : index
    %628 = vector.load %arg18[%c0_319, %c0_320, %c0_321] : memref<1x8x128xf32, #tpu.memory_space<vmem>>, vector<1x8x128xf32>
    %629 = vector.shape_cast %628 : vector<1x8x128xf32> to vector<8x128xf32>
    %630 = vector.shape_cast %627 : vector<8x128xf32> to vector<1x8x128xf32>
    tpu.vector_store %arg18[%c0_319, %c0_320, %c0_321], %630 {strides = array<i32>} : memref<1x8x128xf32, #tpu.memory_space<vmem>>, vector<1x8x128xf32>,
    return
  }
  func.func @transform_0(%arg0: i32) -> (i32, i32) {
    %c0_i32 = arith.constant 0 : i32
    %c0_i32_0 = arith.constant 0 : i32
    return %arg0, %c0_i32 : i32, i32
  }
  func.func @transform_1(%arg0: i32) -> (i32, i32) {
    %c0_i32 = arith.constant 0 : i32
    %c0_i32_0 = arith.constant 0 : i32
    %c0_i32_1 = arith.constant 0 : i32
    return %c0_i32, %c0_i32_0 : i32, i32
  }
  func.func @transform_2(%arg0: i32) -> (i32, i32) {
    %c0_i32 = arith.constant 0 : i32
    %c0_i32_0 = arith.constant 0 : i32
    %c0_i32_1 = arith.constant 0 : i32
    return %c0_i32, %c0_i32_0 : i32, i32
  }
  func.func @transform_3(%arg0: i32) -> (i32, i32) {
    %c0_i32 = arith.constant 0 : i32
    %c0_i32_0 = arith.constant 0 : i32
    %c0_i32_1 = arith.constant 0 : i32
    return %c0_i32, %c0_i32_0 : i32, i32
  }
  func.func @transform_4(%arg0: i32) -> (i32, i32) {
    %c0_i32 = arith.constant 0 : i32
    %c0_i32_0 = arith.constant 0 : i32
    %c0_i32_1 = arith.constant 0 : i32
    return %c0_i32, %c0_i32_0 : i32, i32
  }
  func.func @transform_5(%arg0: i32) -> (i32, i32) {
    %c0_i32 = arith.constant 0 : i32
    %c0_i32_0 = arith.constant 0 : i32
    %c0_i32_1 = arith.constant 0 : i32
    return %c0_i32, %c0_i32_0 : i32, i32
  }
  func.func @transform_6(%arg0: i32) -> (i32, i32) {
    %c0_i32 = arith.constant 0 : i32
    %c0_i32_0 = arith.constant 0 : i32
    %c0_i32_1 = arith.constant 0 : i32
    return %c0_i32, %c0_i32_0 : i32, i32
  }
  func.func @transform_7(%arg0: i32) -> (i32, i32) {
    %c0_i32 = arith.constant 0 : i32
    %c0_i32_0 = arith.constant 0 : i32
    %c0_i32_1 = arith.constant 0 : i32
    return %c0_i32, %c0_i32_0 : i32, i32
  }
  func.func @transform_8(%arg0: i32) -> (i32, i32) {
    %c0_i32 = arith.constant 0 : i32
    %c0_i32_0 = arith.constant 0 : i32
    %c0_i32_1 = arith.constant 0 : i32
    return %c0_i32, %c0_i32_0 : i32, i32
  }
  func.func @transform_9(%arg0: i32) -> (i32, i32) {
    %c0_i32 = arith.constant 0 : i32
    %c0_i32_0 = arith.constant 0 : i32
    %c0_i32_1 = arith.constant 0 : i32
    return %c0_i32, %c0_i32_0 : i32, i32
  }
  func.func @transform_10(%arg0: i32) -> (i32, i32) {
    %c0_i32 = arith.constant 0 : i32
    %c0_i32_0 = arith.constant 0 : i32
    %c0_i32_1 = arith.constant 0 : i32
    return %c0_i32, %c0_i32_0 : i32, i32
  }
  func.func @transform_11(%arg0: i32) -> (i32, i32) {
    %c0_i32 = arith.constant 0 : i32
    %c0_i32_0 = arith.constant 0 : i32
    %c0_i32_1 = arith.constant 0 : i32
    return %c0_i32, %c0_i32_0 : i32, i32
  }
  func.func @transform_12(%arg0: i32) -> (i32, i32) {
    %c0_i32 = arith.constant 0 : i32
    %c0_i32_0 = arith.constant 0 : i32
    %c0_i32_1 = arith.constant 0 : i32
    return %c0_i32, %c0_i32_0 : i32, i32
  }
  func.func @transform_13(%arg0: i32) -> (i32, i32) {
    %c0_i32 = arith.constant 0 : i32
    %c0_i32_0 = arith.constant 0 : i32
    %c0_i32_1 = arith.constant 0 : i32
    return %c0_i32, %c0_i32_0 : i32, i32
  }
  func.func @transform_14(%arg0: i32) -> (i32, i32) {
    %c0_i32 = arith.constant 0 : i32
    %c0_i32_0 = arith.constant 0 : i32
    %c0_i32_1 = arith.constant 0 : i32
    return %c0_i32, %c0_i32_0 : i32, i32
  }
  func.func @transform_15(%arg0: i32) -> (i32, i32) {
    %c0_i32 = arith.constant 0 : i32
    %c0_i32_0 = arith.constant 0 : i32
    %c0_i32_1 = arith.constant 0 : i32
    return %c0_i32, %c0_i32_0 : i32, i32
  }
  func.func @transform_16(%arg0: i32) -> (i32, i32) {
    %c0_i32 = arith.constant 0 : i32
    %c0_i32_0 = arith.constant 0 : i32
    %c0_i32_1 = arith.constant 0 : i32
    return %c0_i32, %c0_i32_0 : i32, i32
  }
  func.func @transform_17(%arg0: i32) -> (i32, i32, i32) {
    %c0_i32 = arith.constant 0 : i32
    %c0_i32_0 = arith.constant 0 : i32
    %c0_i32_1 = arith.constant 0 : i32
    return %arg0, %c0_i32, %c0_i32_0 : i32, i32, i32
  }
}

</mosaic_0001>

<bundles_post_ra>
// kernel: alexnet_cifar10_forward.1
= control target key start
LH: loop header
LB: loop body
LE: loop exit
PB: predicated region body
PF: predicated region fallthrough
CT: control target
= control target key end

     0   :  { %s17907_s24 = smov 0   ;;  %s23682_s0 = inlined_call_operand.vmem [shape: bf16[512,32], index: 0, kind: input, shape index: {}]   ;;  %s23683_s1 = inlined_call_operand.vmem [shape: bf16[32,64], index: 1, kind: input, shape index: {}]   ;;  %s23684_s2 = inlined_call_operand.vmem [shape: f32[1,64], index: 2, kind: input, shape index: {}]   ;;  %s23685_s3 = inlined_call_operand.vmem [shape: bf16[576,192], index: 3, kind: input, shape index: {}]   ;;  %s23686_s4 = inlined_call_operand.vmem [shape: f32[1,192], index: 4, kind: input, shape index: {}]   ;;  %s23687_s5 = inlined_call_operand.vmem [shape: bf16[1728,384], index: 5, kind: input, shape index: {}]   ;;  %s23688_s6 = inlined_call_operand.vmem [shape: f32[1,384], index: 6, kind: input, shape index: {}]   ;;  %s23689_s7 = inlined_call_operand.vmem [shape: bf16[3456,256], index: 7, kind: input, shape index: {}]   ;;  %s23690_s8 = inlined_call_operand.vmem [shape: f32[1,256], index: 8, kind: input, shape index: {}]   ;;  %s23691_s9 = inlined_call_operand.vmem [shape: bf16[2304,256], index: 9, kind: input, shape index: {}]   ;;  %s23692_s10 = inlined_call_operand.vmem [shape: f32[1,256], index: 10, kind: input, shape index: {}]   ;;  %s23693_s11 = inlined_call_operand.vmem [shape: bf16[1024,256], index: 11, kind: input, shape index: {}]   ;;  %s23694_s12 = inlined_call_operand.vmem [shape: f32[1,256], index: 12, kind: input, shape index: {}]   ;;  %s23695_s13 = inlined_call_operand.vmem [shape: bf16[256,64], index: 13, kind: input, shape index: {}]   ;;  %s23696_s14 = inlined_call_operand.vmem [shape: f32[1,64], index: 14, kind: input, shape index: {}]   ;;  %s23697_s15 = inlined_call_operand.vmem [shape: bf16[64,128], index: 15, kind: input, shape index: {}]   ;;  %s23698_s16 = inlined_call_operand.vmem [shape: f32[1,128], index: 16, kind: input, shape index: {}]   ;;  %s23699_s17 = inlined_call_operand.vmem [shape: f32[2,8,128], index: 17, kind: output, shape index: {}]  }
   0x1   :  { %23704 = sst [smem:[#allocation36_spill]] %s23682_s0 }
   0x2   :  { %23705 = sst [smem:[#allocation37_spill]] %s23683_s1 }
   0x3 LB: > { %s17913_s25 = sadd.s32 4294967295, %s17811_s24   ;;  %p14452_p0 = scmp.ge.s32.totalorder %s17811_s24, 1  ;;  %s17811_s24 = sphi %s17907_s24, %s27_s24  }
   0x4   : > { %p488_p1 = scmp.lt.s32.totalorder %s17811_s24, 3 }
   0x6   : > { %p489_p2 = pnand %p14452_p0, %p488_p1 }
   0x8   : > { %492 = sbr.rel (%p489_p2) target bundleno = 3088 (0xc10), region = 88 }
   0xd   : > { %s23706_s28 = sld [smem:[#allocation37_spill]]  ;;  %s14453_s29 = sshll.u32 %s17913_s25, 5  ;;  %vm751_vm0 = vcmask 261120   ;;  %vm550_vm1 = vcmask 523264   ;;  %v17813_v18 = vmov 0.0   ;;  %v23701_v35 = vmov 0  }
   0xe   : > { %p540_p3 = scmp.lt.s32.totalorder %s14453_s29, 63  ;;  %s23707_s20 = sld [smem:[#allocation36_spill]]  ;;  %552 = vst.msk [vmem:[#allocation2 + $0x8] sm:$0xff] %vm550_vm1, %v17813_v18  ;;  %577 = vst [vmem:[#allocation3 + $0x50] sm:$0xff] %v17813_v18  ;;  %v15962_v19 = vld [vmem:[%s23685_s3 + $0x74] ss:$8 sps:$4 sm:$0xff]   ;;  %1274 = vmatprep.mubr.bf16.mxu1 %v23701_v35 }
   0xf   : > { %551 = vst.msk [vmem:[#allocation2] sm:$0xff] %vm550_vm1, %v17813_v18  ;;  %553 = vst.msk [vmem:[#allocation2 + $0x10] sm:$0xff] %vm550_vm1, %v17813_v18  ;;  %v15966_v20 = vld [vmem:[%s23685_s3 + $0xb4] ss:$8 sps:$4 sm:$0xff]   ;;  %v15964_v21 = vld [vmem:[%s23685_s3 + $0xb0] ss:$8 sps:$4 sm:$0xff]   ;;  %1250 = vmatprep.subr.bf16.mxu1 %v15962_v19 }
  0x10   : > { %s23771_s29 = smov (!%p540_p3, %s14453_s29), 63  ;;  %554 = vst.msk [vmem:[#allocation2 + $0x18] sm:$0xff] %vm550_vm1, %v17813_v18  ;;  %555 = vst.msk [vmem:[#allocation2 + $0x20] sm:$0xff] %vm550_vm1, %v17813_v18  ;;  %v15967_v22 = vld [vmem:[%s23685_s3 + $0x70] ss:$8 sps:$4 sm:$0xff]   ;;  %vm999_vm2 = vcmask 516096  }
  0x11   : > { %s14454_s18 = sshll.u32 %s23771_s29, 2  ;;  %556 = vst.msk [vmem:[#allocation2 + $0x28] sm:$0xff] %vm550_vm1, %v17813_v18  ;;  %557 = vst.msk [vmem:[#allocation2 + $0x30] sm:$0xff] %vm550_vm1, %v17813_v18  ;;  %1251 = vmatpush1.bf16.msra.mxu1 %v15967_v22  ;;  %v15968_v23 = vld [vmem:[%s23685_s3 + $0x64] ss:$8 sps:$4 sm:$0xff]   ;;  %vm1001_vm3 = vcmask 518146  }
  0x12   : > { %558 = vst.msk [vmem:[#allocation2 + $0x38] sm:$0xff] %vm550_vm1, %v17813_v18  ;;  %559 = vst.msk [vmem:[#allocation2 + $0x40] sm:$0xff] %vm550_vm1, %v17813_v18  ;;  %v15972_v24 = vld [vmem:[%s23685_s3 + $0xa4] ss:$8 sps:$4 sm:$0xff]   ;;  %v15970_v25 = vld [vmem:[%s23685_s3 + $0xa0] ss:$8 sps:$4 sm:$0xff]   ;;  %1252 = vmatprep.subr.bf16.mxu1 %v15968_v23 }
  0x13   : > { %v15944_v0 = vld [vmem:[%s23706_s28 + $0x8] sm:$0xff]   ;;  %v15945_v1 = vld [vmem:[%s23706_s28] sm:$0xff]   ;;  %560 = vst.msk [vmem:[#allocation2 + $0x48] sm:$0xff] %vm550_vm1, %v17813_v18  ;;  %561 = vst.msk [vmem:[#allocation2 + $0x50] sm:$0xff] %vm550_vm1, %v17813_v18  ;;  %vm1003_vm4 = vcmask 520196   ;;  %vm1005_vm5 = vcmask 522246  }
  0x14   : > { %15884 = vmatprep.subr.bf16.mxu0 %v15944_v0  ;;  %s17927_s21 = scalar_lea.vmem %s23707_s20, %s14454_s18  ;;  %562 = vst.msk [vmem:[#allocation2 + $0x58] sm:$0xff] %vm550_vm1, %v17813_v18  ;;  %563 = vst.msk [vmem:[#allocation2 + $0x60] sm:$0xff] %vm550_vm1, %v17813_v18  ;;  %v15973_v26 = vld [vmem:[%s23685_s3 + $0x60] ss:$8 sps:$4 sm:$0xff]   ;;  %v15974_v27 = vld [vmem:[%s23685_s3 + $0x54] ss:$8 sps:$4 sm:$0xff]  }
  0x15   : > { %15885 = vmatpush3.bf16.msra.mxu0 %v15944_v0  ;;  %v15946_v2 = vld [vmem:[%s17927_s21] sm:$0xff]   ;;  %v15947_v3 = vld [vmem:[%s17927_s21 + $0x8] sm:$0xff]   ;;  %v15948_v4 = vld [vmem:[%s17927_s21 + $0x10] sm:$0xff]   ;;  %567 = vst [vmem:[#allocation3] sm:$0xff] %v17813_v18  ;;  %1253 = vmatpush1.bf16.msra.mxu1 %v15973_v26  ;;  %vm2786_vm6 = vcmask 1045504   ;;  %vm3904_vm9 = vcmask 1046528  }
  0x16   : > { %15886 = vmatprep.subr.bf16.mxu0 %v15945_v1  ;;  %15888 = vmatprep.mubr.msk.bf16.mxu0 %vm751_vm0, %v15946_v2  ;;  %v15949_v5 = vld [vmem:[%s17927_s21 + $0x18] sm:$0xff]   ;;  %v15950_v6 = vld [vmem:[%s17927_s21 + $0x20] sm:$0xff]   ;;  %v15951_v7 = vld [vmem:[%s17927_s21 + $0x28] sm:$0xff]   ;;  %568 = vst.msk [vmem:[#allocation3 + $0x8] sm:$0xff] %vm550_vm1, %v17813_v18  ;;  %vm3217_vm8 = vsmask.f32 7424 }
  0x17   : > { %v15952_v8 = vld [vmem:[%s17927_s21 + $0x30] sm:$0xff]   ;;  %v15953_v9 = vld [vmem:[%s17927_s21 + $0x38] sm:$0xff]   ;;  %v15954_v10 = vld [vmem:[%s17927_s21 + $0x40] sm:$0xff]   ;;  %569 = vst [vmem:[#allocation3 + $0x10] sm:$0xff] %v17813_v18  ;;  %1254 = vmatprep.subr.bf16.mxu1 %v15974_v27  ;;  %vm4279_vm10 = vcmask 1044480   ;;  %vm13064_vm13 = vcmask 1041408  }
  0x18   : > { %v15955_v11 = vld [vmem:[%s17927_s21 + $0x48] sm:$0xff]   ;;  %v15956_v12 = vld [vmem:[%s17927_s21 + $0x50] sm:$0xff]   ;;  %v15957_v13 = vld [vmem:[%s17927_s21 + $0x58] sm:$0xff]   ;;  %570 = vst.msk [vmem:[#allocation3 + $0x18] sm:$0xff] %vm550_vm1, %v17813_v18  ;;  %vm4650_vm11 = vsmask.f32 4352 }
  0x19   : > { %15887 = vmatpush3.bf16.msra.mxu0 %v15945_v1  ;;  %v15958_v14 = vld [vmem:[%s17927_s21 + $0x60] sm:$0xff]   ;;  %v15959_v15 = vld [vmem:[%s17927_s21 + $0x68] sm:$0xff]   ;;  %v15960_v16 = vld [vmem:[%s17927_s21 + $0x70] sm:$0xff]   ;;  %571 = vst [vmem:[#allocation3 + $0x20] sm:$0xff] %v17813_v18  ;;  %vm5788_vm12 = vsmask.f32 5376 }
  0x1a   : > { %v15961_v17 = vld [vmem:[%s17927_s21 + $0x78] sm:$0xff]   ;;  %572 = vst.msk [vmem:[#allocation3 + $0x28] sm:$0xff] %vm550_vm1, %v17813_v18  ;;  %573 = vst [vmem:[#allocation3 + $0x30] sm:$0xff] %v17813_v18  ;;  %1549 = vmatprep.subr.bf16.mxu0 %v15966_v20  ;;  %v15980_v31 = vld [vmem:[%s23685_s3 + $0x44] ss:$8 sps:$4 sm:$0xff]   ;;  %vm17816_vm15 = vmmov 0  }
  0x1b   : > { %574 = vst.msk [vmem:[#allocation3 + $0x38] sm:$0xff] %vm550_vm1, %v17813_v18  ;;  %575 = vst [vmem:[#allocation3 + $0x40] sm:$0xff] %v17813_v18  ;;  %v15978_v28 = vld [vmem:[%s23685_s3 + $0x94] ss:$8 sps:$4 sm:$0xff]   ;;  %v15976_v29 = vld [vmem:[%s23685_s3 + $0x90] ss:$8 sps:$4 sm:$0xff]  }
  0x1c   : > { %15889 = vmatmul.mubr.msk.bf16.vlgmr.msra.gmra.mxu0 %vm751_vm0, %v15947_v3  ;;  %576 = vst.msk [vmem:[#allocation3 + $0x48] sm:$0xff] %vm550_vm1, %v17813_v18  ;;  %581 = vst [vmem:[#allocation4] sm:$0xff] %v17813_v18  ;;  %v15979_v30 = vld [vmem:[%s23685_s3 + $0x50] ss:$8 sps:$4 sm:$0xff]   ;;  %v15984_v32 = vld [vmem:[%s23685_s3 + $0x84] ss:$8 sps:$4 sm:$0xff]  }
  0x1d   : > { %15892 = vmatprep.mubr.msk.bf16.mxu0 %vm751_vm0, %v15948_v4  ;;  %582 = vst [vmem:[#allocation4 + $0x38] sm:$0xff] %v17813_v18  ;;  %583 = vst [vmem:[#allocation4 + $0x50] sm:$0xff] %v17813_v18  ;;  %1550 = vmatpush1.bf16.msra.mxu0 %v15964_v21  ;;  %v15982_v33 = vld [vmem:[%s23685_s3 + $0x80] ss:$8 sps:$4 sm:$0xff]   ;;  %v15988_v36 = vld [vmem:[%s23685_s3 + $0x34] ss:$8 sps:$4 sm:$0xff]  }
  0x1e   : > { %584 = vst [vmem:[#allocation4 + $0x18] sm:$0xff] %v17813_v18  ;;  %585 = vst [vmem:[#allocation4 + $0x30] sm:$0xff] %v17813_v18  ;;  %1551 = vmatprep.subr.bf16.mxu0 %v15972_v24  ;;  %1255 = vmatpush1.bf16.msra.mxu1 %v15979_v30  ;;  %v15985_v34 = vld [vmem:[%s23685_s3 + $0x40] ss:$8 sps:$4 sm:$0xff]   ;;  %v15997_v37 = vld [vmem:[%s23685_s3 + $0x134] ss:$8 sps:$4 sm:$0xff]  }
  0x1f   : > { %586 = vst [vmem:[#allocation4 + $0x68] sm:$0xff] %v17813_v18  ;;  %587 = vst [vmem:[#allocation4 + $0x78] sm:$0xff] %v17813_v18  ;;  %1256 = vmatprep.subr.bf16.mxu1 %v15980_v31  ;;  %v18038_v38 = vld [vmem:[%s23684_s2] ss:$0 sm:$0xff]  ;;  %v1164_v19 = vld [vmem:[#allocation2 + $0x1] sm:$0xff]  ;;  %p545_p4 = scmp.lt.s32.totalorder %s17913_s25, 1 }
  0x20   : > { %588 = vst [vmem:[#allocation4 + $0x80] sm:$0xff] %v17813_v18  ;;  %589 = vst [vmem:[#allocation4 + $0x8] sm:$0xff] %v17813_v18  ;;  %v1463_v23 = vld [vmem:[#allocation2 + $0x2] sm:$0xff] }
  0x21   : > { %590 = vst [vmem:[#allocation4 + $0x88] sm:$0xff] %v17813_v18  ;;  %591 = vst [vmem:[#allocation4 + $0x28] sm:$0xff] %v17813_v18  ;;  %1552 = vmatpush1.bf16.msra.mxu0 %v15970_v25  ;;  %s23773_s25 = smov (!%p545_p4, %s17913_s25), 1 }
  0x22   : > { %592 = vst [vmem:[#allocation4 + $0x40] sm:$0xff] %v17813_v18  ;;  %593 = vst [vmem:[#allocation4 + $0x60] sm:$0xff] %v17813_v18  ;;  %1553 = vmatprep.subr.bf16.mxu0 %v15978_v28  ;;  %1257 = vmatpush1.bf16.msra.mxu1 %v15985_v34  ;;  %s14455_s22 = sshll.u32 %s23773_s25, 3 }
  0x23   : > { %594 = vst [vmem:[#allocation4 + $0x90] sm:$0xff] %v17813_v18  ;;  %595 = vst [vmem:[#allocation4 + $0x98] sm:$0xff] %v17813_v18  ;;  %1388 = vmatprep.subr.bf16.mxu1 %v15988_v36  ;;  %s548_s27 = scalar_lea.vmem %s23699_s17, %s14455_s22 }
  0x24   : > { %15893 = vmatmul.mubr.msk.bf16.gmra.mxu0 %vm751_vm0, %v15949_v5  ;;  %602 = vst [vmem:[#allocation5 + $0x28] sm:$0xff] %v17813_v18  ;;  %603 = vst [vmem:[#allocation5 + $0x38] sm:$0xff] %v17813_v18 }
  0x25   : > { %15896 = vmatprep.mubr.msk.bf16.mxu0 %vm751_vm0, %v15950_v6  ;;  %604 = vst [vmem:[#allocation5 + $0x50] sm:$0xff] %v17813_v18  ;;  %605 = vst [vmem:[#allocation5] sm:$0xff] %v17813_v18  ;;  %1554 = vmatpush1.bf16.msra.mxu0 %v15976_v29 }
  0x26   : > { %606 = vst [vmem:[#allocation5 + $0x20] sm:$0xff] %v17813_v18  ;;  %607 = vst [vmem:[#allocation5 + $0x30] sm:$0xff] %v17813_v18  ;;  %1555 = vmatprep.subr.bf16.mxu0 %v15984_v32  ;;  %v15986_v32 = vld [vmem:[%s23685_s3 + $0x30] ss:$8 sps:$4 sm:$0xff]  }
  0x27   : > { %608 = vst [vmem:[#allocation5 + $0x18] sm:$0xff] %v17813_v18  ;;  %609 = vst [vmem:[#allocation5 + $0x40] sm:$0xff] %v17813_v18 }
  0x28   : > { %610 = vst [vmem:[#allocation5 + $0x48] sm:$0xff] %v17813_v18  ;;  %611 = vst [vmem:[#allocation5 + $0x60] sm:$0xff] %v17813_v18 }
  0x29   : > { %1556 = vmatpush1.bf16.msra.mxu0 %v15982_v33  ;;  %v15991_v33 = vld [vmem:[%s23685_s3 + $0x24] ss:$8 sps:$4 sm:$0xff]  }
  0x2a   : > { %1911 = vmatprep.subr.bf16.mxu0 %v15997_v37  ;;  %v15995_v37 = vld [vmem:[%s23685_s3 + $0x130] ss:$8 sps:$4 sm:$0xff]  }
  0x2c   : > { %15897 = vmatmul.mubr.msk.bf16.gmra.mxu0 %vm751_vm0, %v15951_v7 }
  0x2d   : > { %15900 = vmatprep.mubr.msk.bf16.mxu0 %vm751_vm0, %v15952_v8 }
  0x34   : > { %15901 = vmatmul.mubr.msk.bf16.gmra.mxu0 %vm751_vm0, %v15953_v9 }
  0x35   : > { %15904 = vmatprep.mubr.msk.bf16.mxu0 %vm751_vm0, %v15954_v10 }
  0x3c   : > { %15905 = vmatmul.mubr.msk.bf16.gmra.mxu0 %vm751_vm0, %v15955_v11 }
  0x3d   : > { %15908 = vmatprep.mubr.msk.bf16.mxu0 %vm751_vm0, %v15956_v12 }
  0x44   : > { %15909 = vmatmul.mubr.msk.bf16.gmra.mxu0 %vm751_vm0, %v15957_v13 }
  0x45   : > { %15912 = vmatprep.mubr.msk.bf16.mxu0 %vm751_vm0, %v15958_v14 }
  0x4c   : > { %15913 = vmatmul.mubr.msk.bf16.gmra.mxu0 %vm751_vm0, %v15959_v15 }
  0x4d   : > { %15916 = vmatprep.mubr.msk.bf16.mxu0 %vm751_vm0, %v15960_v16 }
  0x54   : > { %15917 = vmatmul.mubr.msk.bf16.gmra.mxu0 %vm751_vm0, %v15961_v17 }
  0x55   : > { %1573 = vmatprep.mubr.bf16.mxu0 %v23701_v35 }
  0xdc   : > { %v15890_v39 = vpop.f32.mrf.mxu0 }
  0xdd   : > { %v843_v40 = vadd.f32 %v15890_v39, %v18038_v38 }
  0xde   : > { %v834_v41 = vpop.f32.mrf.mxu0 }
  0xdf   : > { %v835_v42 = vadd.f32 %v18038_v38, %v834_v41  ;;  %v963_v44 = vmax.f32 %v843_v40, 0.0 }
  0xe0   : > { %v15891_v43 = vpop.f32.mrf.mxu0 }
  0xe1   : > { %v961_v45 = vmax.f32 %v835_v42, 0.0  ;;  %v846_v46 = vadd.f32 %v15891_v43, %v18038_v38  ;;  %v16003_v42 = vld [vmem:[%s23685_s3 + $0x124] ss:$8 sps:$4 sm:$0xff]  }
  0xe2   : > { %v837_v47 = vpop.f32.mrf.mxu0 }
  0xe3   : > { %v993_v48 = vmax.f32 %v961_v45, %v963_v44  ;;  %v838_v49 = vadd.f32 %v18038_v38, %v837_v47  ;;  %v964_v52 = vmax.f32 %v846_v46, 0.0  ;;  %v15989_v44 = vld [vmem:[%s23685_s3 + $0x20] ss:$8 sps:$4 sm:$0xff]   ;;  %v15994_v45 = vld [vmem:[%s23685_s3 + $0x14] ss:$8 sps:$4 sm:$0xff]  }
  0xe4   : > { %v15894_v50 = vpop.f32.mrf.mxu0 }
  0xe5   : > { %v996_v51 = vrot.slane %v993_v48, 1  ;;  %v962_v53 = vmax.f32 %v838_v49, 0.0  ;;  %v859_v54 = vadd.f32 %v15894_v50, %v18038_v38 }
  0xe6   : > { %v850_v55 = vpop.f32.mrf.mxu0 }
  0xe7   : > { %v998_v56 = vmax.f32 %v993_v48, %v996_v51  ;;  %v994_v57 = vmax.f32 %v962_v53, %v964_v52  ;;  %v851_v58 = vadd.f32 %v18038_v38, %v850_v55  ;;  %v967_v61 = vmax.f32 %v859_v54, 0.0  ;;  %v16001_v51 = vld [vmem:[%s23685_s3 + $0x120] ss:$8 sps:$4 sm:$0xff]   ;;  %v16006_v55 = vld [vmem:[%s23685_s3 + $0x114] ss:$8 sps:$4 sm:$0xff]  }
  0xe8   : > { %v15895_v59 = vpop.f32.mrf.mxu0 }
  0xe9   : > { %1000 = vst.msk [vmem:[#allocation2 + $0xb] sm:$0x1] %vm999_vm2, %v998_v56  ;;  %v1008_v60 = vrot.slane %v994_v57, 1  ;;  %v965_v62 = vmax.f32 %v851_v58, 0.0  ;;  %v862_v63 = vadd.f32 %v15895_v59, %v18038_v38  ;;  %v15992_v58 = vld [vmem:[%s23685_s3 + $0x10] ss:$8 sps:$4 sm:$0xff]  }
  0xea   : > { %1002 = vst.msk [vmem:[#allocation2 + $0xa] sm:$0x4] %vm1001_vm3, %v998_v56  ;;  %v853_v0 = vpop.f32.mrf.mxu0 }
  0xeb   : > { %1004 = vst.msk [vmem:[#allocation2 + $0x9] sm:$0x10] %vm1003_vm4, %v998_v56  ;;  %v1010_v1 = vmax.f32 %v994_v57, %v1008_v60  ;;  %v1015_v2 = vmax.f32 %v965_v62, %v967_v61  ;;  %v854_v3 = vadd.f32 %v18038_v38, %v853_v0  ;;  %v968_v6 = vmax.f32 %v862_v63, 0.0  ;;  %v16000_v63 = vld [vmem:[%s23685_s3 + $0x4] ss:$8 sps:$4 sm:$0xff]  }
  0xec   : > { %1006 = vst.msk [vmem:[#allocation2 + $0x8] sm:$0x40] %vm1005_vm5, %v998_v56  ;;  %v15898_v4 = vpop.f32.mrf.mxu0 }
  0xed   : > { %1011 = vst.msk [vmem:[#allocation2 + $0xf] sm:$0x1] %vm999_vm2, %v1010_v1  ;;  %v1018_v5 = vrot.slane %v1015_v2, 1  ;;  %v966_v7 = vmax.f32 %v854_v3, 0.0  ;;  %v875_v8 = vadd.f32 %v15898_v4, %v18038_v38 }
  0xee   : > { %1012 = vst.msk [vmem:[#allocation2 + $0xe] sm:$0x4] %vm1001_vm3, %v1010_v1  ;;  %v866_v9 = vpop.f32.mrf.mxu0 }
  0xef   : > { %1013 = vst.msk [vmem:[#allocation2 + $0xd] sm:$0x10] %vm1003_vm4, %v1010_v1  ;;  %v1020_v10 = vmax.f32 %v1015_v2, %v1018_v5  ;;  %v1016_v11 = vmax.f32 %v966_v7, %v968_v6  ;;  %v867_v12 = vadd.f32 %v18038_v38, %v866_v9  ;;  %v971_v15 = vmax.f32 %v875_v8, 0.0  ;;  %v15998_v6 = vld [vmem:[%s23685_s3] ss:$8 sps:$4 sm:$0xff]  }
  0xf0   : > { %1014 = vst.msk [vmem:[#allocation2 + $0xc] sm:$0x40] %vm1005_vm5, %v1010_v1  ;;  %v15899_v13 = vpop.f32.mrf.mxu0  ;;  %v16004_v1 = vld [vmem:[%s23685_s3 + $0x110] ss:$8 sps:$4 sm:$0xff]   ;;  %v16012_v7 = vld [vmem:[%s23685_s3 + $0x104] ss:$8 sps:$4 sm:$0xff]  }
  0xf1   : > { %1021 = vst.msk [vmem:[#allocation2 + $0x15] sm:$0x1] %vm999_vm2, %v1020_v10  ;;  %v1026_v14 = vrot.slane %v1016_v11, 1  ;;  %v969_v16 = vmax.f32 %v867_v12, 0.0  ;;  %v878_v17 = vadd.f32 %v15899_v13, %v18038_v38  ;;  %v16009_v13 = vld [vmem:[%s23685_s3 + $0xf4] ss:$8 sps:$4 sm:$0xff]  }
  0xf2   : > { %1022 = vst.msk [vmem:[#allocation2 + $0x14] sm:$0x4] %vm1001_vm3, %v1020_v10  ;;  %v869_v18 = vpop.f32.mrf.mxu0 }
  0xf3   : > { %1023 = vst.msk [vmem:[#allocation2 + $0x13] sm:$0x10] %vm1003_vm4, %v1020_v10  ;;  %v1028_v20 = vmax.f32 %v1016_v11, %v1026_v14  ;;  %v1033_v21 = vmax.f32 %v969_v16, %v971_v15  ;;  %v870_v22 = vadd.f32 %v18038_v38, %v869_v18  ;;  %v972_v24 = vmax.f32 %v878_v17, 0.0  ;;  %v16010_v14 = vld [vmem:[%s23685_s3 + $0x100] ss:$8 sps:$4 sm:$0xff]  }
  0xf4   : > { %1024 = vst.msk [vmem:[#allocation2 + $0x12] sm:$0x40] %vm1005_vm5, %v1020_v10  ;;  %v15902_v25 = vpop.f32.mrf.mxu0 }
  0xf5   : > { %v1165_v26 = vld [vmem:[#allocation2 + $0x9] sm:$0xff]  ;;  %1029 = vst.msk [vmem:[#allocation2 + $0x19] sm:$0x1] %vm999_vm2, %v1028_v20  ;;  %v1036_v28 = vrot.slane %v1033_v21, 1  ;;  %v970_v29 = vmax.f32 %v870_v22, 0.0  ;;  %v891_v30 = vadd.f32 %v15902_v25, %v18038_v38 }
  0xf6   : > { %v18064_v27 = vld [vmem:[#allocation2 + $0xa] sm:$0xff]  ;;  %1030 = vst.msk [vmem:[#allocation2 + $0x18] sm:$0x4] %vm1001_vm3, %v1028_v20  ;;  %v1174_v31 = vpack.c.bf16 %v1165_v26, %v1164_v19  ;;  %v882_v34 = vpop.f32.mrf.mxu0  ;;  %v16021_v19 = vld [vmem:[%s23685_s3 + $0x1b4] ss:$8 sps:$4 sm:$0xff]  }
  0xf7   : > { %1031 = vst.msk [vmem:[#allocation2 + $0x17] sm:$0x10] %vm1003_vm4, %v1028_v20  ;;  %v1473_v36 = vpack.c.bf16 %v18064_v27, %v1463_v23  ;;  %v1038_v39 = vmax.f32 %v1033_v21, %v1036_v28  ;;  %v1034_v40 = vmax.f32 %v970_v29, %v972_v24  ;;  %v883_v41 = vadd.f32 %v18038_v38, %v882_v34 }
  0xf8   : > { %1032 = vst.msk [vmem:[#allocation2 + $0x16] sm:$0x40] %vm1005_vm5, %v1028_v20  ;;  %14499 = vmatmul.mubr.msk.bf16.vlgmr.msra.gmra.mxu1 %vm550_vm1, %v1174_v31  ;;  %v15903_v43 = vpop.f32.mrf.mxu0  ;;  %v975_v47 = vmax.f32 %v891_v30, 0.0 }
  0xf9   : > { %14525 = vmatmul.mubr.msk.bf16.vlgmr.msra.gmra.mxu0 %vm550_vm1, %v1473_v36  ;;  %1284 = vmatprep.mubr.bf16.mxu1 %v23701_v35  ;;  %1039 = vst.msk [vmem:[#allocation2 + $0x1f] sm:$0x1] %vm999_vm2, %v1038_v39  ;;  %v1044_v46 = vrot.slane %v1034_v40, 1  ;;  %v973_v48 = vmax.f32 %v883_v41, 0.0  ;;  %v894_v49 = vadd.f32 %v15903_v43, %v18038_v38 }
  0xfa   : > { %1040 = vst.msk [vmem:[#allocation2 + $0x1e] sm:$0x4] %vm1001_vm3, %v1038_v39  ;;  %1583 = vmatprep.mubr.bf16.mxu0 %v23701_v35  ;;  %1389 = vmatpush1.bf16.msra.mxu1 %v15986_v32  ;;  %v885_v50 = vpop.f32.mrf.mxu0 }
  0xfb   : > { %1041 = vst.msk [vmem:[#allocation2 + $0x1d] sm:$0x10] %vm1003_vm4, %v1038_v39  ;;  %1390 = vmatprep.subr.bf16.mxu1 %v15991_v33  ;;  %1912 = vmatpush1.bf16.msra.mxu0 %v15995_v37  ;;  %v1046_v52 = vmax.f32 %v1034_v40, %v1044_v46  ;;  %v1051_v53 = vmax.f32 %v973_v48, %v975_v47  ;;  %v976_v60 = vmax.f32 %v894_v49, 0.0  ;;  %v1166_v10 = vld [vmem:[#allocation2 + $0x11] sm:$0xff] }
  0xfc   : > { %1042 = vst.msk [vmem:[#allocation2 + $0x1c] sm:$0x40] %vm1005_vm5, %v1038_v39  ;;  %v886_v54 = vadd.f32 %v18038_v38, %v885_v50  ;;  %1913 = vmatprep.subr.bf16.mxu0 %v16003_v42  ;;  %v15906_v56 = vpop.f32.mrf.mxu0  ;;  %v18107_v57 = vld [vmem:[#allocation2 + $0x12] sm:$0xff] }
  0xfd   : > { %1047 = vst.msk [vmem:[#allocation2 + $0x23] sm:$0x1] %vm999_vm2, %v1046_v52  ;;  %v1054_v59 = vrot.slane %v1051_v53, 1  ;;  %v907_v62 = vadd.f32 %v15906_v56, %v18038_v38  ;;  %v1654_v2 = vpack.c.bf16 %v18107_v57, %v18064_v27 }
  0xfe   : > { %1048 = vst.msk [vmem:[#allocation2 + $0x22] sm:$0x4] %vm1001_vm3, %v1046_v52  ;;  %v974_v61 = vmax.f32 %v886_v54, 0.0  ;;  %1391 = vmatpush1.bf16.msra.mxu1 %v15989_v44  ;;  %v898_v0 = vpop.f32.mrf.mxu0 }
  0xff   : > { %1049 = vst.msk [vmem:[#allocation2 + $0x21] sm:$0x10] %vm1003_vm4, %v1046_v52  ;;  %1392 = vmatprep.subr.bf16.mxu1 %v15994_v45  ;;  %1914 = vmatpush1.bf16.msra.mxu0 %v16001_v51  ;;  %v1056_v3 = vmax.f32 %v1051_v53, %v1054_v59  ;;  %v899_v5 = vadd.f32 %v18038_v38, %v898_v0  ;;  %v979_v8 = vmax.f32 %v907_v62, 0.0 }
 0x100   : > { %1050 = vst.msk [vmem:[#allocation2 + $0x20] sm:$0x40] %vm1005_vm5, %v1046_v52  ;;  %v1052_v4 = vmax.f32 %v974_v61, %v976_v60  ;;  %1915 = vmatprep.subr.bf16.mxu0 %v16006_v55  ;;  %v15907_v9 = vpop.f32.mrf.mxu0 }
 0x101   : > { %v1167_v11 = vld [vmem:[#allocation2 + $0x19] sm:$0xff]  ;;  %1057 = vst.msk [vmem:[#allocation2 + $0x29] sm:$0x1] %vm999_vm2, %v1056_v3  ;;  %v977_v16 = vmax.f32 %v899_v5, 0.0  ;;  %v910_v17 = vadd.f32 %v15907_v9, %v18038_v38 }
 0x102   : > { %v18132_v12 = vld [vmem:[#allocation2 + $0x1a] sm:$0xff]  ;;  %1058 = vst.msk [vmem:[#allocation2 + $0x28] sm:$0x4] %vm1001_vm3, %v1056_v3  ;;  %v1062_v15 = vrot.slane %v1052_v4, 1  ;;  %v1175_v18 = vpack.c.bf16 %v1167_v11, %v1166_v10  ;;  %1393 = vmatpush1.bf16.msra.mxu1 %v15992_v58  ;;  %v901_v20 = vpop.f32.mrf.mxu0 }
 0x103   : > { %1059 = vst.msk [vmem:[#allocation2 + $0x27] sm:$0x10] %vm1003_vm4, %v1056_v3  ;;  %v1474_v21 = vpack.c.bf16 %v18132_v12, %v18107_v57  ;;  %1394 = vmatprep.subr.bf16.mxu1 %v16000_v63  ;;  %1916 = vmatpush1.bf16.msra.mxu0 %v16004_v1  ;;  %v1069_v23 = vmax.f32 %v977_v16, %v979_v8  ;;  %v980_v28 = vmax.f32 %v910_v17, 0.0  ;;  %v16040_v57 = vld [vmem:[%s23685_s3 + $0x150] ss:$8 sps:$4 sm:$0xff]  }
 0x104   : > { %1060 = vst.msk [vmem:[#allocation2 + $0x26] sm:$0x40] %vm1005_vm5, %v1056_v3  ;;  %v1064_v22 = vmax.f32 %v1052_v4, %v1062_v15  ;;  %v902_v24 = vadd.f32 %v18038_v38, %v901_v20  ;;  %14500 = vmatmul.mubr.msk.bf16.gmra.mxu1 %vm550_vm1, %v1175_v18  ;;  %1917 = vmatprep.subr.bf16.mxu0 %v16012_v7  ;;  %v15910_v25 = vpop.f32.mrf.mxu0 }
 0x105   : > { %14526 = vmatmul.mubr.msk.bf16.gmra.mxu0 %vm550_vm1, %v1474_v21  ;;  %1294 = vmatprep.mubr.bf16.mxu1 %v23701_v35  ;;  %v1072_v26 = vrot.slane %v1069_v23, 1  ;;  %v923_v30 = vadd.f32 %v15910_v25, %v18038_v38 }
 0x106   : > { %1065 = vst.msk [vmem:[#allocation2 + $0x2d] sm:$0x1] %vm999_vm2, %v1064_v22  ;;  %v978_v29 = vmax.f32 %v902_v24, 0.0  ;;  %1593 = vmatprep.mubr.bf16.mxu0 %v23701_v35  ;;  %1395 = vmatpush1.bf16.msra.mxu1 %v15998_v6  ;;  %v914_v31 = vpop.f32.mrf.mxu0 }
 0x107   : > { %1066 = vst.msk [vmem:[#allocation2 + $0x2c] sm:$0x4] %vm1001_vm3, %v1064_v22  ;;  %1730 = vmatprep.subr.bf16.mxu1 %v16009_v13  ;;  %1918 = vmatpush1.bf16.msra.mxu0 %v16010_v14  ;;  %v1074_v32 = vmax.f32 %v1069_v23, %v1072_v26  ;;  %v915_v34 = vadd.f32 %v18038_v38, %v914_v31  ;;  %v983_v40 = vmax.f32 %v923_v30, 0.0  ;;  %v1168_v50 = vld [vmem:[#allocation2 + $0x21] sm:$0xff] }
 0x108   : > { %1067 = vst.msk [vmem:[#allocation2 + $0x2b] sm:$0x10] %vm1003_vm4, %v1064_v22  ;;  %v1070_v33 = vmax.f32 %v978_v29, %v980_v28  ;;  %2273 = vmatprep.subr.bf16.mxu0 %v16021_v19  ;;  %v15911_v36 = vpop.f32.mrf.mxu0  ;;  %v18161_v37 = vld [vmem:[#allocation2 + $0x22] sm:$0xff] }
 0x109   : > { %1068 = vst.msk [vmem:[#allocation2 + $0x2a] sm:$0x40] %vm1005_vm5, %v1064_v22  ;;  %1078 = vst.msk [vmem:[#allocation2 + $0x30] sm:$0x40] %vm1005_vm5, %v1074_v32  ;;  %v981_v41 = vmax.f32 %v915_v34, 0.0  ;;  %v926_v42 = vadd.f32 %v15911_v36, %v18038_v38  ;;  %v1655_v44 = vpack.c.bf16 %v18161_v37, %v18132_v12 }
 0x10a   : > { %1075 = vst.msk [vmem:[#allocation2 + $0x33] sm:$0x1] %vm999_vm2, %v1074_v32  ;;  %v1080_v39 = vrot.slane %v1070_v33, 1  ;;  %v917_v43 = vpop.f32.mrf.mxu0 }
 0x10b   : > { %1076 = vst.msk [vmem:[#allocation2 + $0x32] sm:$0x4] %vm1001_vm3, %v1074_v32  ;;  %v1087_v46 = vmax.f32 %v981_v41, %v983_v40  ;;  %v918_v47 = vadd.f32 %v18038_v38, %v917_v43  ;;  %v984_v48 = vmax.f32 %v926_v42, 0.0 }
 0x10c   : > { %1077 = vst.msk [vmem:[#allocation2 + $0x31] sm:$0x10] %vm1003_vm4, %v1074_v32  ;;  %v1082_v45 = vmax.f32 %v1070_v33, %v1080_v39  ;;  %v15914_v49 = vpop.f32.mrf.mxu0 }
 0x10d   : > { %v1090_v53 = vrot.slane %v1087_v46, 1  ;;  %v982_v54 = vmax.f32 %v918_v47, 0.0  ;;  %v939_v55 = vadd.f32 %v15914_v49, %v18038_v38 }
 0x10e   : > { %1083 = vst.msk [vmem:[#allocation2 + $0x37] sm:$0x1] %vm999_vm2, %v1082_v45  ;;  %v930_v58 = vpop.f32.mrf.mxu0 }
 0x10f   : > { %1084 = vst.msk [vmem:[#allocation2 + $0x36] sm:$0x4] %vm1001_vm3, %v1082_v45  ;;  %v1092_v60 = vmax.f32 %v1087_v46, %v1090_v53  ;;  %v1088_v61 = vmax.f32 %v982_v54, %v984_v48  ;;  %v931_v62 = vadd.f32 %v18038_v38, %v930_v58  ;;  %v987_v1 = vmax.f32 %v939_v55, 0.0  ;;  %v1141_v53 = vld [vmem:[#allocation2] sm:$0xff]  ;;  %v1142_v55 = vld [vmem:[#allocation2 + $0x8] sm:$0xff] }
 0x110   : > { %v1169_v51 = vld [vmem:[#allocation2 + $0x29] sm:$0xff]  ;;  %1085 = vst.msk [vmem:[#allocation2 + $0x35] sm:$0x10] %vm1003_vm4, %v1082_v45  ;;  %v15915_v63 = vpop.f32.mrf.mxu0  ;;  %v1151_v58 = vpack.c.bf16 %v1142_v55, %v1141_v53  ;;  %v18315_v53 = vld [vmem:[#allocation2 + $0x14] sm:$0xff] }
 0x111   : > { %v18171_v52 = vld [vmem:[#allocation2 + $0x2a] sm:$0xff]  ;;  %1086 = vst.msk [vmem:[#allocation2 + $0x34] sm:$0x40] %vm1005_vm5, %v1082_v45  ;;  %v1176_v56 = vpack.c.bf16 %v1169_v51, %v1168_v50  ;;  %1096 = vst.msk [vmem:[#allocation2 + $0x3a] sm:$0x40] %vm1005_vm5, %v1092_v60  ;;  %v1098_v0 = vrot.slane %v1088_v61, 1  ;;  %v942_v4 = vadd.f32 %v15915_v63, %v18038_v38 }
 0x112   : > { %v1475_v59 = vpack.c.bf16 %v18171_v52, %v18161_v37  ;;  %1093 = vst.msk [vmem:[#allocation2 + $0x3d] sm:$0x1] %vm999_vm2, %v1092_v60  ;;  %v985_v3 = vmax.f32 %v931_v62, 0.0  ;;  %v933_v5 = vpop.f32.mrf.mxu0  ;;  %v16013_v62 = vld [vmem:[%s23685_s3 + $0xe0] ss:$8 sps:$4 sm:$0xff]  }
 0x113   : > { %14501 = vmatmul.mubr.msk.bf16.gmra.mxu1 %vm550_vm1, %v1176_v56  ;;  %1094 = vst.msk [vmem:[#allocation2 + $0x3c] sm:$0x4] %vm1001_vm3, %v1092_v60  ;;  %v1100_v6 = vmax.f32 %v1088_v61, %v1098_v0  ;;  %v934_v8 = vadd.f32 %v18038_v38, %v933_v5  ;;  %v988_v13 = vmax.f32 %v942_v4, 0.0  ;;  %v16007_v56 = vld [vmem:[%s23685_s3 + $0xf0] ss:$8 sps:$4 sm:$0xff]  }
 0x114   : > { %14527 = vmatmul.mubr.msk.bf16.gmra.mxu0 %vm550_vm1, %v1475_v59  ;;  %1304 = vmatprep.mubr.bf16.mxu1 %v23701_v35  ;;  %1095 = vst.msk [vmem:[#allocation2 + $0x3b] sm:$0x10] %vm1003_vm4, %v1092_v60  ;;  %v1105_v7 = vmax.f32 %v985_v3, %v987_v1  ;;  %v15918_v9 = vpop.f32.mrf.mxu0  ;;  %v1826_v59 = vld [vmem:[#allocation2 + $0x13] sm:$0xff]  ;;  %v16015_v60 = vld [vmem:[%s23685_s3 + $0xe4] ss:$8 sps:$4 sm:$0xff]  }
 0x115   : > { %1603 = vmatprep.mubr.bf16.mxu0 %v23701_v35  ;;  %1101 = vst.msk [vmem:[#allocation2 + $0x41] sm:$0x1] %vm999_vm2, %v1100_v6  ;;  %v986_v14 = vmax.f32 %v934_v8, 0.0  ;;  %v955_v15 = vadd.f32 %v15918_v9, %v18038_v38  ;;  %v1825_v61 = vld [vmem:[#allocation2 + $0xb] sm:$0xff]  ;;  %v16018_v63 = vld [vmem:[%s23685_s3 + $0xd4] ss:$8 sps:$4 sm:$0xff]  }
 0x116   : > { %1102 = vst.msk [vmem:[#allocation2 + $0x40] sm:$0x4] %vm1001_vm3, %v1100_v6  ;;  %v1108_v11 = vrot.slane %v1105_v7, 1  ;;  %v946_v16 = vpop.f32.mrf.mxu0  ;;  %v1170_v23 = vld [vmem:[#allocation2 + $0x31] sm:$0xff]  ;;  %v16027_v3 = vld [vmem:[%s23685_s3 + $0x1a4] ss:$8 sps:$4 sm:$0xff]   ;;  %v1835_v4 = vpack.c.bf16 %v1826_v59, %v1825_v61 }
 0x117   : > { %v18191_v10 = vld [vmem:[#allocation2 + $0x32] sm:$0xff]  ;;  %1103 = vst.msk [vmem:[#allocation2 + $0x3f] sm:$0x10] %vm1003_vm4, %v1100_v6  ;;  %v1106_v19 = vmax.f32 %v986_v14, %v988_v13  ;;  %v991_v20 = vmax.f32 %v955_v15, 0.0  ;;  %v947_v21 = vadd.f32 %v18038_v38, %v946_v16  ;;  %v16025_v8 = vld [vmem:[%s23685_s3 + $0x1a0] ss:$8 sps:$4 sm:$0xff]  }
 0x118   : > { %1104 = vst.msk [vmem:[#allocation2 + $0x3e] sm:$0x40] %vm1005_vm5, %v1100_v6  ;;  %v1656_v17 = vpack.c.bf16 %v18191_v10, %v18171_v52  ;;  %v1110_v18 = vmax.f32 %v1105_v7, %v1108_v11  ;;  %v15919_v22 = vpop.f32.mrf.mxu0  ;;  %v16019_v0 = vld [vmem:[%s23685_s3 + $0x1b0] ss:$8 sps:$4 sm:$0xff]   ;;  %v16024_v7 = vld [vmem:[%s23685_s3 + $0xc4] ss:$8 sps:$4 sm:$0xff]  }
 0x119   : > { %v1116_v25 = vrot.slane %v1106_v19, 1  ;;  %v989_v26 = vmax.f32 %v947_v21, 0.0  ;;  %v958_v28 = vadd.f32 %v15919_v22, %v18038_v38  ;;  %v1144_v1 = vld [vmem:[#allocation2 + $0x18] sm:$0xff]  ;;  %v1143_v5 = vld [vmem:[#allocation2 + $0x10] sm:$0xff]  ;;  %v1828_v9 = vld [vmem:[#allocation2 + $0x23] sm:$0xff] }
 0x11a   : > { %1111 = vst.msk [vmem:[#allocation2 + $0x47] sm:$0x1] %vm999_vm2, %v1110_v18  ;;  %v949_v30 = vpop.f32.mrf.mxu0  ;;  %v16016_v6 = vld [vmem:[%s23685_s3 + $0xd0] ss:$8 sps:$4 sm:$0xff]   ;;  %v16030_v11 = vld [vmem:[%s23685_s3 + $0x194] ss:$8 sps:$4 sm:$0xff]   ;;  %v1152_v13 = vpack.c.bf16 %v1144_v1, %v1143_v5 }
 0x11b   : > { %v1171_v24 = vld [vmem:[#allocation2 + $0x39] sm:$0xff]  ;;  %1112 = vst.msk [vmem:[#allocation2 + $0x46] sm:$0x4] %vm1001_vm3, %v1110_v18  ;;  %v1118_v31 = vmax.f32 %v1106_v19, %v1116_v25  ;;  %v1123_v32 = vmax.f32 %v989_v26, %v991_v20  ;;  %v992_v33 = vmax.f32 %v958_v28, 0.0  ;;  %v950_v34 = vadd.f32 %v18038_v38, %v949_v30  ;;  %v1146_v19 = vld [vmem:[#allocation2 + $0x28] sm:$0xff] }
 0x11c   : > { %1113 = vst.msk [vmem:[#allocation2 + $0x45] sm:$0x10] %vm1003_vm4, %v1110_v18  ;;  %v1177_v29 = vpack.c.bf16 %v1171_v24, %v1170_v23  ;;  %v18208_v36 = vld [vmem:[#allocation2 + $0x3a] sm:$0xff]  ;;  %v16036_v20 = vld [vmem:[%s23685_s3 + $0x184] ss:$8 sps:$4 sm:$0xff]  }
 0x11d   : > { %1114 = vst.msk [vmem:[#allocation2 + $0x44] sm:$0x40] %vm1005_vm5, %v1110_v18  ;;  %1122 = vst.msk [vmem:[#allocation2 + $0x48] sm:$0x40] %vm1005_vm5, %v1118_v31  ;;  %v1126_v39 = vrot.slane %v1123_v32, 1  ;;  %v990_v40 = vmax.f32 %v950_v34, 0.0  ;;  %v1476_v41 = vpack.c.bf16 %v18208_v36, %v18191_v10 }
 0x11e   : > { %14502 = vmatmul.mubr.msk.bf16.gmra.mxu1 %vm550_vm1, %v1177_v29  ;;  %1119 = vst.msk [vmem:[#allocation2 + $0x4b] sm:$0x1] %vm999_vm2, %v1118_v31  ;;  %v1827_v14 = vld [vmem:[#allocation2 + $0x1b] sm:$0xff]  ;;  %v1830_v24 = vld [vmem:[#allocation2 + $0x33] sm:$0xff]  ;;  %v1829_v28 = vld [vmem:[#allocation2 + $0x2b] sm:$0xff] }
 0x11f   : > { %1314 = vmatprep.mubr.bf16.mxu1 %v23701_v35  ;;  %1120 = vst.msk [vmem:[#allocation2 + $0x4a] sm:$0x4] %vm1001_vm3, %v1118_v31  ;;  %v1128_v38 = vmax.f32 %v1123_v32, %v1126_v39  ;;  %v1124_v42 = vmax.f32 %v990_v40, %v992_v33  ;;  %14528 = vmatmul.mubr.msk.bf16.gmra.mxu0 %vm550_vm1, %v1476_v41  ;;  %v16022_v15 = vld [vmem:[%s23685_s3 + $0xc0] ss:$8 sps:$4 sm:$0xff]   ;;  %v16028_v16 = vld [vmem:[%s23685_s3 + $0x190] ss:$8 sps:$4 sm:$0xff]  }
 0x120   : > { %1121 = vst.msk [vmem:[#allocation2 + $0x49] sm:$0x10] %vm1003_vm4, %v1118_v31  ;;  %1613 = vmatprep.mubr.bf16.mxu0 %v23701_v35  ;;  %v16033_v18 = vld [vmem:[%s23685_s3 + $0x174] ss:$8 sps:$4 sm:$0xff]   ;;  %v1836_v21 = vpack.c.bf16 %v1828_v9, %v1827_v14  ;;  %v1145_v22 = vld [vmem:[#allocation2 + $0x20] sm:$0xff]  ;;  %v1837_v30 = vpack.c.bf16 %v1830_v24, %v1829_v28 }
 0x121   : > { %1129 = vst.msk [vmem:[#allocation2 + $0x51] sm:$0x1] %vm999_vm2, %v1128_v38  ;;  %v1134_v45 = vrot.slane %v1124_v42, 1  ;;  %v16034_v23 = vld [vmem:[%s23685_s3 + $0x180] ss:$8 sps:$4 sm:$0xff]   ;;  %v1153_v26 = vpack.c.bf16 %v1146_v19, %v1145_v22  ;;  %v1148_v29 = vld [vmem:[#allocation2 + $0x38] sm:$0xff] }
 0x122   : > { %1130 = vst.msk [vmem:[#allocation2 + $0x50] sm:$0x4] %vm1001_vm3, %v1128_v38  ;;  %v1172_v48 = vld [vmem:[#allocation2 + $0x41] sm:$0xff]  ;;  %v16045_v25 = vld [vmem:[%s23685_s3 + $0x234] ss:$8 sps:$4 sm:$0xff]  }
 0x123   : > { %v18219_v43 = vld [vmem:[#allocation2 + $0x42] sm:$0xff]  ;;  %1131 = vst.msk [vmem:[#allocation2 + $0x4f] sm:$0x10] %vm1003_vm4, %v1128_v38  ;;  %v1136_v47 = vmax.f32 %v1124_v42, %v1134_v45  ;;  %v1147_v31 = vld [vmem:[#allocation2 + $0x30] sm:$0xff] }
 0x124   : > { %1132 = vst.msk [vmem:[#allocation2 + $0x4e] sm:$0x40] %vm1005_vm5, %v1128_v38  ;;  %v1657_v46 = vpack.c.bf16 %v18219_v43, %v18208_v36  ;;  %v1832_v32 = vld [vmem:[#allocation2 + $0x43] sm:$0xff]  ;;  %v1154_v33 = vpack.c.bf16 %v1148_v29, %v1147_v31  ;;  %v1831_v34 = vld [vmem:[#allocation2 + $0x3b] sm:$0xff] }
 0x125   : > { %1137 = vst.msk [vmem:[#allocation2 + $0x55] sm:$0x1] %vm999_vm2, %v1136_v47  ;;  %v1838_v40 = vpack.c.bf16 %v1832_v32, %v1831_v34  ;;  %v1149_v41 = vld [vmem:[#allocation2 + $0x40] sm:$0xff]  ;;  %v16042_v55 = vld [vmem:[%s23685_s3 + $0x154] ss:$8 sps:$4 sm:$0xff]  }
 0x126   : > { %1138 = vst.msk [vmem:[#allocation2 + $0x54] sm:$0x4] %vm1001_vm3, %v1136_v47  ;;  %v16049_v59 = vld [vmem:[%s23685_s3 + $0x220] ss:$8 sps:$4 sm:$0xff]   ;;  %v16054_v61 = vld [vmem:[%s23685_s3 + $0x214] ss:$8 sps:$4 sm:$0xff]  }
 0x127   : > { %v1173_v49 = vld [vmem:[#allocation2 + $0x49] sm:$0xff]  ;;  %1139 = vst.msk [vmem:[#allocation2 + $0x53] sm:$0x10] %vm1003_vm4, %v1136_v47  ;;  %v16057_v1 = vld [vmem:[%s23685_s3 + $0x1f4] ss:$8 sps:$4 sm:$0xff]  }
 0x128   : > { %1140 = vst.msk [vmem:[#allocation2 + $0x52] sm:$0x40] %vm1005_vm5, %v1136_v47  ;;  %v1178_v50 = vpack.c.bf16 %v1173_v49, %v1172_v48  ;;  %v18232_v51 = vld [vmem:[#allocation2 + $0x4a] sm:$0xff]  ;;  %v2549_v14 = vld [vmem:[#allocation2 + $0x16] sm:$0xff] }
 0x129   : > { %v1477_v54 = vpack.c.bf16 %v18232_v51, %v18219_v43  ;;  %v1150_v39 = vld [vmem:[#allocation2 + $0x48] sm:$0xff]  ;;  %v16031_v48 = vld [vmem:[%s23685_s3 + $0x170] ss:$8 sps:$4 sm:$0xff]  }
 0x12a   : > { %14503 = vmatmul.mubr.msk.bf16.gmra.mxu1 %vm550_vm1, %v1178_v50  ;;  %v1155_v42 = vpack.c.bf16 %v1150_v39, %v1149_v41  ;;  %v1833_v45 = vld [vmem:[#allocation2 + $0x4b] sm:$0xff]  ;;  %v18313_v50 = vld [vmem:[#allocation2 + $0x1c] sm:$0xff] }
 0x12b   : > { %1412 = vmatprep.mubr.bf16.mxu1 %v23701_v35  ;;  %14529 = vmatmul.mubr.msk.bf16.gmra.mxu0 %vm550_vm1, %v1477_v54  ;;  %v16039_v49 = vld [vmem:[%s23685_s3 + $0x164] ss:$8 sps:$4 sm:$0xff]   ;;  %v16037_v54 = vld [vmem:[%s23685_s3 + $0x160] ss:$8 sps:$4 sm:$0xff]   ;;  %v2197_v27 = vpack.c.bf16 %v18313_v50, %v18315_v53  ;;  %v16055_v43 = vld [vmem:[%s23685_s3 + $0x1f0] ss:$8 sps:$4 sm:$0xff]  }
 0x12c   : > { %1935 = vmatprep.mubr.bf16.mxu0 %v23701_v35  ;;  %v16058_v37 = vld [vmem:[%s23685_s3 + $0x200] ss:$8 sps:$4 sm:$0xff]   ;;  %v16064_v19 = vld [vmem:[%s23685_s3 + $0x1d0] ss:$8 sps:$4 sm:$0xff]  }
 0x12d   : > { %v16067_v24 = vld [vmem:[%s23685_s3 + $0x1c0] ss:$8 sps:$4 sm:$0xff]   ;;  %v2553_v29 = vld [vmem:[#allocation2 + $0x36] sm:$0xff]  ;;  %v2556_v31 = vld [vmem:[#allocation2 + $0x4e] sm:$0xff] }
 0x12f   : > { %v1834_v38 = vld [vmem:[#allocation2 + $0x53] sm:$0xff] }
 0x130   : > { %v1839_v47 = vpack.c.bf16 %v1834_v38, %v1833_v45  ;;  %v1653_v52 = vld [vmem:[#allocation2 + $0x52] sm:$0xff]  ;;  %v2369_v38 = vld [vmem:[#allocation2 + $0x1d] sm:$0xff] }
 0x131   : > { %v2195_v9 = vld [vmem:[#allocation2 + $0x54] sm:$0xff] }
 0x132   : > { %14512 = vmatmul.mubr.msk.bf16.vlgmr.msra.gmra.mxu1 %vm550_vm1, %v1151_v58  ;;  %v16051_v58 = vld [vmem:[%s23685_s3 + $0x224] ss:$8 sps:$4 sm:$0xff]   ;;  %v2557_v39 = vld [vmem:[#allocation2 + $0x56] sm:$0xff] }
 0x133   : > { %1731 = vmatpush1.bf16.msra.mxu1 %v16007_v56  ;;  %1422 = vmatprep.mubr.bf16.mxu1 %v23701_v35  ;;  %v16043_v56 = vld [vmem:[%s23685_s3 + $0x230] ss:$8 sps:$4 sm:$0xff]  }
 0x134   : > { %1732 = vmatprep.subr.bf16.mxu1 %v16015_v60  ;;  %14551 = vmatmul.mubr.msk.bf16.vlgmr.msra.gmra.mxu0 %vm550_vm1, %v1835_v4  ;;  %v18347_v60 = vld [vmem:[#allocation2 + $0x2c] sm:$0xff]  ;;  %v2191_v4 = vld [vmem:[#allocation2 + $0x34] sm:$0xff] }
 0x135   : > { %1945 = vmatprep.mubr.bf16.mxu0 %v23701_v35  ;;  %2274 = vmatpush1.bf16.msra.mxu0 %v16019_v0  ;;  %v16052_v0 = vld [vmem:[%s23685_s3 + $0x210] ss:$8 sps:$4 sm:$0xff]   ;;  %v2018_v28 = vpack.c.bf16 %v2191_v4, %v18347_v60 }
 0x136   : > { %2275 = vmatprep.subr.bf16.mxu0 %v16027_v3  ;;  %v16060_v3 = vld [vmem:[%s23685_s3 + $0x204] ss:$8 sps:$4 sm:$0xff]   ;;  %v2368_v45 = vld [vmem:[#allocation2 + $0x15] sm:$0xff] }
 0x137   : > { %1733 = vmatpush1.bf16.msra.mxu1 %v16013_v62  ;;  %v18352_v62 = vld [vmem:[#allocation2 + $0x24] sm:$0xff] }
 0x138   : > { %1734 = vmatprep.subr.bf16.mxu1 %v16018_v63  ;;  %v16046_v63 = vld [vmem:[%s23685_s3 + $0x140] ss:$8 sps:$4 sm:$0xff]   ;;  %v2198_v12 = vpack.c.bf16 %v18347_v60, %v18352_v62  ;;  %v2017_v22 = vpack.c.bf16 %v18352_v62, %v18313_v50 }
 0x139   : > { %2276 = vmatpush1.bf16.msra.mxu0 %v16025_v8  ;;  %v1658_v8 = vpack.c.bf16 %v1653_v52, %v18232_v51  ;;  %v2550_v51 = vld [vmem:[#allocation2 + $0x1e] sm:$0xff] }
 0x13a   : > { %14513 = vmatmul.mubr.msk.bf16.gmra.mxu1 %vm550_vm1, %v1152_v13  ;;  %2277 = vmatprep.subr.bf16.mxu0 %v16030_v11  ;;  %v16063_v11 = vld [vmem:[%s23685_s3 + $0x1e4] ss:$8 sps:$4 sm:$0xff]  }
 0x13b   : > { %1432 = vmatprep.mubr.bf16.mxu1 %v23701_v35  ;;  %1735 = vmatpush1.bf16.msra.mxu1 %v16016_v6  ;;  %v18389_v6 = vld [vmem:[#allocation2 + $0x4c] sm:$0xff] }
 0x13c   : > { %1736 = vmatprep.subr.bf16.mxu1 %v16024_v7  ;;  %14552 = vmatmul.mubr.msk.bf16.gmra.mxu0 %vm550_vm1, %v1836_v21  ;;  %v2193_v7 = vld [vmem:[#allocation2 + $0x44] sm:$0xff]  ;;  %v2552_v21 = vld [vmem:[#allocation2 + $0x2e] sm:$0xff]  ;;  %v2020_v41 = vpack.c.bf16 %v2195_v9, %v18389_v6 }
 0x13d   : > { %1955 = vmatprep.mubr.bf16.mxu0 %v23701_v35  ;;  %2278 = vmatpush1.bf16.msra.mxu0 %v16028_v16  ;;  %v2200_v10 = vpack.c.bf16 %v18389_v6, %v2193_v7  ;;  %v16066_v16 = vld [vmem:[%s23685_s3 + $0x1d4] ss:$8 sps:$4 sm:$0xff]  }
 0x13e   : > { %2279 = vmatprep.subr.bf16.mxu0 %v16036_v20  ;;  %v16069_v20 = vld [vmem:[%s23685_s3 + $0x1c4] ss:$8 sps:$4 sm:$0xff]  }
 0x13f   : > { %1737 = vmatpush1.bf16.msra.mxu1 %v16022_v15  ;;  %v16061_v15 = vld [vmem:[%s23685_s3 + $0x1e0] ss:$8 sps:$4 sm:$0xff]  }
 0x140   : > { %2092 = vmatprep.subr.bf16.mxu1 %v16033_v18  ;;  %v2559_v18 = vpack.c.bf16 %v2550_v51, %v2549_v14 }
 0x141   : > { %2280 = vmatpush1.bf16.msra.mxu0 %v16034_v23  ;;  %v2551_v23 = vld [vmem:[#allocation2 + $0x26] sm:$0xff] }
 0x142   : > { %14514 = vmatmul.mubr.msk.bf16.gmra.mxu1 %vm550_vm1, %v1153_v26  ;;  %2635 = vmatprep.subr.bf16.mxu0 %v16045_v25  ;;  %v2560_v25 = vpack.c.bf16 %v2552_v21, %v2551_v23  ;;  %v2554_v26 = vld [vmem:[#allocation2 + $0x3e] sm:$0xff] }
 0x143   : > { %1442 = vmatprep.mubr.bf16.mxu1 %v23701_v35 }
 0x144   : > { %14553 = vmatmul.mubr.msk.bf16.gmra.mxu0 %vm550_vm1, %v1837_v30  ;;  %v2561_v30 = vpack.c.bf16 %v2554_v26, %v2553_v29 }
 0x145   : > { %1965 = vmatprep.mubr.bf16.mxu0 %v23701_v35 }
 0x14a   : > { %14515 = vmatmul.mubr.msk.bf16.gmra.mxu1 %vm550_vm1, %v1154_v33  ;;  %v2555_v33 = vld [vmem:[#allocation2 + $0x46] sm:$0xff] }
 0x14b   : > { %1452 = vmatprep.mubr.bf16.mxu1 %v23701_v35  ;;  %v2562_v34 = vpack.c.bf16 %v2556_v31, %v2555_v33 }
 0x14c   : > { %14554 = vmatmul.mubr.msk.bf16.gmra.mxu0 %vm550_vm1, %v1838_v40  ;;  %v2558_v40 = vld [vmem:[#allocation2 + $0x5e] sm:$0xff] }
 0x14d   : > { %1975 = vmatprep.mubr.bf16.mxu0 %v23701_v35 }
 0x152   : > { %14516 = vmatmul.mubr.msk.bf16.gmra.mxu1 %vm550_vm1, %v1155_v42  ;;  %v2563_v42 = vpack.c.bf16 %v2558_v40, %v2557_v39 }
 0x153   : > { %1754 = vmatprep.mubr.bf16.mxu1 %v23701_v35 }
 0x154   : > { %14555 = vmatmul.mubr.msk.bf16.gmra.mxu0 %vm550_vm1, %v1839_v47  ;;  %v2378_v47 = vpack.c.bf16 %v2369_v38, %v2368_v45 }
 0x155   : > { %2297 = vmatprep.mubr.bf16.mxu0 %v23701_v35 }
 0x15a   : > { %14538 = vmatmul.mubr.msk.bf16.vlgmr.msra.gmra.mxu1 %vm550_vm1, %v1654_v2  ;;  %v16048_v2 = vld [vmem:[%s23685_s3 + $0x144] ss:$8 sps:$4 sm:$0xff]  }
 0x15b   : > { %2093 = vmatpush1.bf16.msra.mxu1 %v16031_v48  ;;  %1764 = vmatprep.mubr.bf16.mxu1 %v23701_v35  ;;  %v2371_v48 = vld [vmem:[#allocation2 + $0x2d] sm:$0xff] }
 0x15c   : > { %2094 = vmatprep.subr.bf16.mxu1 %v16039_v49  ;;  %14577 = vmatmul.mubr.msk.bf16.vlgmr.msra.gmra.mxu0 %vm550_vm1, %v2197_v27  ;;  %v2370_v49 = vld [vmem:[#allocation2 + $0x25] sm:$0xff]  ;;  %v2375_v27 = vld [vmem:[#allocation2 + $0x4d] sm:$0xff] }
 0x15d   : > { %2307 = vmatprep.mubr.bf16.mxu0 %v23701_v35  ;;  %2636 = vmatpush1.bf16.msra.mxu0 %v16043_v56  ;;  %v2379_v50 = vpack.c.bf16 %v2371_v48, %v2370_v49 }
 0x15e   : > { %2637 = vmatprep.subr.bf16.mxu0 %v16051_v58 }
 0x15f   : > { %2095 = vmatpush1.bf16.msra.mxu1 %v16037_v54  ;;  %v2372_v54 = vld [vmem:[#allocation2 + $0x35] sm:$0xff] }
 0x160   : > { %2096 = vmatprep.subr.bf16.mxu1 %v16042_v55 }
 0x161   : > { %2638 = vmatpush1.bf16.msra.mxu0 %v16049_v59  ;;  %v2374_v59 = vld [vmem:[#allocation2 + $0x45] sm:$0xff] }
 0x162   : > { %14539 = vmatmul.mubr.msk.bf16.gmra.mxu1 %vm550_vm1, %v1655_v44  ;;  %2639 = vmatprep.subr.bf16.mxu0 %v16054_v61  ;;  %v18378_v44 = vld [vmem:[#allocation2 + $0x3c] sm:$0xff]  ;;  %v2381_v61 = vpack.c.bf16 %v2375_v27, %v2374_v59 }
 0x163   : > { %1774 = vmatprep.mubr.bf16.mxu1 %v23701_v35  ;;  %2097 = vmatpush1.bf16.msra.mxu1 %v16040_v57  ;;  %v2199_v5 = vpack.c.bf16 %v18378_v44, %v2191_v4  ;;  %v2019_v32 = vpack.c.bf16 %v2193_v7, %v18378_v44 }
 0x164   : > { %2098 = vmatprep.subr.bf16.mxu1 %v16048_v2  ;;  %14578 = vmatmul.mubr.msk.bf16.gmra.mxu0 %vm550_vm1, %v2198_v12 }
 0x165   : > { %2317 = vmatprep.mubr.bf16.mxu0 %v23701_v35  ;;  %2640 = vmatpush1.bf16.msra.mxu0 %v16052_v0  ;;  %v2377_v0 = vld [vmem:[#allocation2 + $0x5d] sm:$0xff] }
 0x166   : > { %2641 = vmatprep.subr.bf16.mxu0 %v16060_v3 }
 0x167   : > { %2099 = vmatpush1.bf16.msra.mxu1 %v16046_v63  ;;  %v2376_v63 = vld [vmem:[#allocation2 + $0x55] sm:$0xff] }
 0x168   : > { %2454 = vmatprep.subr.bf16.mxu1 %v16057_v1  ;;  %v2382_v4 = vpack.c.bf16 %v2377_v0, %v2376_v63  ;;  %v16072_v63 = vld [vmem:[%s23687_s5 + $0x1cc] ss:$12 sps:$4 sm:$0xff]  }
 0x169   : > { %2642 = vmatpush1.bf16.msra.mxu0 %v16058_v37 }
 0x16a   : > { %14540 = vmatmul.mubr.msk.bf16.gmra.mxu1 %vm550_vm1, %v1656_v17  ;;  %3499 = vmatprep.subr.bf16.mxu0 %v23701_v35  ;;  %v2196_v17 = vld [vmem:[#allocation2 + $0x5c] sm:$0xff] }
 0x16b   : > { %1784 = vmatprep.mubr.bf16.mxu1 %v23701_v35  ;;  %v2201_v36 = vpack.c.bf16 %v2196_v17, %v2195_v9 }
 0x16c   : > { %14579 = vmatmul.mubr.msk.bf16.gmra.mxu0 %vm550_vm1, %v2199_v5 }
 0x16d   : > { %2327 = vmatprep.mubr.bf16.mxu0 %v23701_v35 }
 0x172   : > { %14541 = vmatmul.mubr.msk.bf16.gmra.mxu1 %vm550_vm1, %v1657_v46  ;;  %v2006_v46 = vld [vmem:[#allocation2 + $0xc] sm:$0xff] }
 0x173   : > { %1794 = vmatprep.mubr.bf16.mxu1 %v23701_v35  ;;  %v2016_v13 = vpack.c.bf16 %v18315_v53, %v2006_v46  ;;  %v2373_v53 = vld [vmem:[#allocation2 + $0x3d] sm:$0xff] }
 0x174   : > { %14580 = vmatmul.mubr.msk.bf16.gmra.mxu0 %vm550_vm1, %v2200_v10  ;;  %v2380_v55 = vpack.c.bf16 %v2373_v53, %v2372_v54 }
 0x175   : > { %2337 = vmatprep.mubr.bf16.mxu0 %v23701_v35 }
 0x17a   : > { %14542 = vmatmul.mubr.msk.bf16.gmra.mxu1 %vm550_vm1, %v1658_v8 }
 0x17b   : > { %2116 = vmatprep.mubr.bf16.mxu1 %v23701_v35 }
 0x17c   : > { %14581 = vmatmul.mubr.msk.bf16.gmra.mxu0 %vm550_vm1, %v2201_v36 }
 0x17d   : > { %2659 = vmatprep.mubr.bf16.mxu0 %v23701_v35 }
 0x182   : > { %14564 = vmatmul.mubr.msk.bf16.vlgmr.msra.gmra.mxu1 %vm550_vm1, %v2016_v13 }
 0x183   : > { %2455 = vmatpush1.bf16.msra.mxu1 %v16055_v43  ;;  %2126 = vmatprep.mubr.bf16.mxu1 %v23701_v35 }
 0x184   : > { %2456 = vmatprep.subr.bf16.mxu1 %v16063_v11  ;;  %14603 = vmatmul.mubr.msk.bf16.vlgmr.msra.gmra.mxu0 %vm550_vm1, %v2559_v18 }
 0x185   : > { %2669 = vmatprep.mubr.bf16.mxu0 %v23701_v35 }
 0x187   : > { %2457 = vmatpush1.bf16.msra.mxu1 %v16061_v15 }
 0x188   : > { %2458 = vmatprep.subr.bf16.mxu1 %v16066_v16 }
 0x18a   : > { %14565 = vmatmul.mubr.msk.bf16.gmra.mxu1 %vm550_vm1, %v2017_v22 }
 0x18b   : > { %2136 = vmatprep.mubr.bf16.mxu1 %v23701_v35  ;;  %2459 = vmatpush1.bf16.msra.mxu1 %v16064_v19 }
 0x18c   : > { %2460 = vmatprep.subr.bf16.mxu1 %v16069_v20  ;;  %14604 = vmatmul.mubr.msk.bf16.gmra.mxu0 %vm550_vm1, %v2560_v25 }
 0x18d   : > { %2679 = vmatprep.mubr.bf16.mxu0 %v23701_v35 }
 0x18f   : > { %2461 = vmatpush1.bf16.msra.mxu1 %v16067_v24 }
 0x190   : > { %3448 = vmatprep.subr.bf16.mxu1 %v16072_v63  ;;  %v16081_v63 = vld [vmem:[%s23687_s5 + $0x1a0] ss:$12 sps:$4 sm:$0xff]  }
 0x192   : > { %14566 = vmatmul.mubr.msk.bf16.gmra.mxu1 %vm550_vm1, %v2018_v28 }
 0x193   : > { %2146 = vmatprep.mubr.bf16.mxu1 %v23701_v35 }
 0x194   : > { %14605 = vmatmul.mubr.msk.bf16.gmra.mxu0 %vm550_vm1, %v2561_v30 }
 0x195   : > { %2689 = vmatprep.mubr.bf16.mxu0 %v23701_v35 }
 0x19a   : > { %14567 = vmatmul.mubr.msk.bf16.gmra.mxu1 %vm550_vm1, %v2019_v32 }
 0x19b   : > { %2156 = vmatprep.mubr.bf16.mxu1 %v23701_v35 }
 0x19c   : > { %14606 = vmatmul.mubr.msk.bf16.gmra.mxu0 %vm550_vm1, %v2562_v34 }
 0x19d   : > { %2699 = vmatprep.mubr.bf16.mxu0 %v23701_v35 }
 0x1a2   : > { %14568 = vmatmul.mubr.msk.bf16.gmra.mxu1 %vm550_vm1, %v2020_v41 }
 0x1a3   : > { %2478 = vmatprep.mubr.bf16.mxu1 %v23701_v35 }
 0x1a4   : > { %14607 = vmatmul.mubr.msk.bf16.gmra.mxu0 %vm550_vm1, %v2563_v42 }
 0x1aa   : > { %14590 = vmatmul.mubr.msk.bf16.vlgmr.msra.gmra.mxu1 %vm550_vm1, %v2378_v47 }
 0x1ab   : > { %2488 = vmatprep.mubr.bf16.mxu1 %v23701_v35 }
 0x1b2   : > { %14591 = vmatmul.mubr.msk.bf16.gmra.mxu1 %vm550_vm1, %v2379_v50 }
 0x1b3   : > { %2498 = vmatprep.mubr.bf16.mxu1 %v23701_v35 }
 0x1b8   : > { %v1276_v56 = vpop.f32.mrf.mxu1 }
 0x1b9   : > { %v1575_v58 = vpop.f32.mrf.mxu0 }
 0x1ba   : > { %14592 = vmatmul.mubr.msk.bf16.gmra.mxu1 %vm550_vm1, %v2380_v55  ;;  %v1278_v57 = vpop.f32.mrf.mxu1 }
 0x1bb   : > { %2508 = vmatprep.mubr.bf16.mxu1 %v23701_v35  ;;  %v1577_v2 = vpop.f32.mrf.mxu0 }
 0x1bc   : > { %v1280_v60 = vpop.f32.mrf.mxu1 }
 0x1bd   : > { %v1579_v62 = vpop.f32.mrf.mxu0 }
 0x1be   : > { %v18458_v1 = vpop.f32.mrf.mxu1 }
 0x1bf   : > { %v18460_v3 = vpop.f32.mrf.mxu0 }
 0x1c2   : > { %14593 = vmatmul.mubr.msk.bf16.gmra.mxu1 %vm550_vm1, %v2381_v61 }
 0x1c3   : > { %2518 = vmatprep.mubr.bf16.mxu1 %v23701_v35 }
 0x1c4   : > { %v1286_v12 = vpop.f32.mrf.mxu1 }
 0x1c5   : > { %v1585_v37 = vpop.f32.mrf.mxu0 }
 0x1c6   : > { %v1288_v44 = vpop.f32.mrf.mxu1 }
 0x1c7   : > { %v1587_v5 = vpop.f32.mrf.mxu0 }
 0x1c8   : > { %v1290_v6 = vpop.f32.mrf.mxu1 }
 0x1c9   : > { %v1589_v7 = vpop.f32.mrf.mxu0 }
 0x1ca   : > { %14594 = vmatmul.mubr.msk.bf16.gmra.mxu1 %vm550_vm1, %v2382_v4  ;;  %v18463_v52 = vpop.f32.mrf.mxu1 }
 0x1cb   : > { %v18465_v10 = vpop.f32.mrf.mxu0 }
 0x1d3   : > { %v1296_v17 = vpop.f32.mrf.mxu1 }
 0x1d4   : > { %v1595_v8 = vpop.f32.mrf.mxu0 }
 0x1d5   : > { %v1298_v9 = vpop.f32.mrf.mxu1 }
 0x1d6   : > { %v18467_v36 = vpop.f32.mrf.mxu0 }
 0x1d7   : > { %v18469_v43 = vpop.f32.mrf.mxu1 }
 0x1d8   : > { %v18471_v46 = vpop.f32.mrf.mxu0 }
 0x1d9   : > { %v18473_v11 = vpop.f32.mrf.mxu1 }
 0x1da   : > { %v18477_v13 = vpop.f32.mrf.mxu0 }
 0x1de   : > { %v18475_v51 = vpop.f32.mrf.mxu1 }
 0x1df   : > { %v18481_v15 = vpop.f32.mrf.mxu0 }
 0x1e0   : > { %v18479_v14 = vpop.f32.mrf.mxu1 }
 0x1e1   : > { %v18485_v18 = vpop.f32.mrf.mxu0 }
 0x1e2   : > { %v18483_v16 = vpop.f32.mrf.mxu1 }
 0x1e3   : > { %v18489_v20 = vpop.f32.mrf.mxu0 }
 0x1e4   : > { %v18487_v19 = vpop.f32.mrf.mxu1 }
 0x1e5   : > { %v18493_v22 = vpop.f32.mrf.mxu0 }
 0x1ea   : > { %v18491_v21 = vpop.f32.mrf.mxu1 }
 0x1eb   : > { %v18499_v25 = vpop.f32.mrf.mxu0 }
 0x1ec   : > { %v18495_v23 = vpop.f32.mrf.mxu1 }
 0x1ed   : > { %v18503_v28 = vpop.f32.mrf.mxu0 }
 0x1ee   : > { %v18497_v24 = vpop.f32.mrf.mxu1 }
 0x1ef   : > { %v18505_v30 = vpop.f32.mrf.mxu0 }
 0x1f0   : > { %v18501_v26 = vpop.f32.mrf.mxu1 }
 0x1f1   : > { %v18507_v33 = vpop.f32.mrf.mxu0 }
 0x1f2   : > { %v1414_v29 = vpop.f32.mrf.mxu1 }
 0x1f3   : > { %v1415_v31 = vadd.f32 %v1414_v29, %v1276_v56 }
 0x1f4   : > { %v1416_v32 = vpop.f32.mrf.mxu1  ;;  %v18511_v41 = vpop.f32.mrf.mxu0 }
 0x1f5   : > { %v1417_v34 = vadd.f32 %v1416_v32, %v1278_v57  ;;  %v18509_v39 = vadd.f32 %v1575_v58, %v1415_v31 }
 0x1f6   : > { %v1418_v40 = vpop.f32.mrf.mxu1  ;;  %v18517_v47 = vpop.f32.mrf.mxu0 }
 0x1f7   : > { %v1419_v38 = vadd.f32 %v1418_v40, %v1280_v60  ;;  %v18513_v42 = vadd.f32 %v1577_v2, %v1417_v34  ;;  %v16076_v34 = vld [vmem:[%s23687_s5 + $0x1b4] ss:$12 sps:$4 sm:$0xff]  }
 0x1f8   : > { %v18515_v45 = vpop.f32.mrf.mxu1  ;;  %v18521_v50 = vpop.f32.mrf.mxu0 }
 0x1f9   : > { %v18519_v48 = vadd.f32 %v1579_v62, %v1419_v38 }
 0x1fa   : > { %v1424_v49 = vpop.f32.mrf.mxu1  ;;  %v18523_v55 = vpop.f32.mrf.mxu0 }
 0x1fb   : > { %v1425_v53 = vadd.f32 %v1424_v49, %v1286_v12  ;;  %v16077_v49 = vld [vmem:[%s23687_s5 + $0x1b8] ss:$12 sps:$4 sm:$0xff]  }
 0x1fc   : > { %v1426_v54 = vpop.f32.mrf.mxu1  ;;  %v18527_v57 = vpop.f32.mrf.mxu0 }
 0x1fd   : > { %v1427_v56 = vadd.f32 %v1426_v54, %v1288_v44  ;;  %v18525_v58 = vadd.f32 %v1585_v37, %v1425_v53  ;;  %v16070_v37 = vld [vmem:[%s23687_s5 + $0x1c8] ss:$12 sps:$4 sm:$0xff]   ;;  %v16073_v44 = vld [vmem:[%s23687_s5 + $0x1d0] ss:$12 sps:$4 sm:$0xff]  }
 0x1fe   : > { %v1428_v27 = vpop.f32.mrf.mxu1  ;;  %v18533_v61 = vpop.f32.mrf.mxu0  ;;  %3449 = vmatpush1.bf16.msra.mxu1 %v16070_v37  ;;  %3500 = vmatpush1.bf16.msra.mxu0 %v16073_v44 }
 0x1ff   : > { %v1429_v2 = vadd.f32 %v1428_v27, %v1290_v6  ;;  %v18529_v59 = vadd.f32 %v1587_v5, %v1427_v56  ;;  %3501 = vmatprep.subr.bf16.mxu0 %v23701_v35  ;;  %3450 = vmatprep.subr.bf16.mxu1 %v16076_v34  ;;  %v16080_v56 = vld [vmem:[%s23687_s5 + $0x19c] ss:$12 sps:$4 sm:$0xff]  }
 0x200   : > { %v18531_v60 = vpop.f32.mrf.mxu1  ;;  %v18540_v12 = vpop.f32.mrf.mxu0 }
 0x201   : > { %v18535_v62 = vadd.f32 %v1589_v7, %v1429_v2 }
 0x202   : > { %v1434_v0 = vpop.f32.mrf.mxu1  ;;  %v18548_v6 = vpop.f32.mrf.mxu0  ;;  %3502 = vmatpush1.bf16.msra.mxu0 %v16077_v49  ;;  %v16088_v49 = vld [vmem:[%s23687_s5 + $0x16c] ss:$12 sps:$4 sm:$0xff]  }
 0x203   : > { %v1435_v4 = vadd.f32 %v1434_v0, %v1296_v17  ;;  %3503 = vmatprep.subr.bf16.mxu0 %v23701_v35 }
 0x204   : > { %v1436_v5 = vpop.f32.mrf.mxu1  ;;  %v18553_v32 = vpop.f32.mrf.mxu0 }
 0x205   : > { %v1437_v7 = vadd.f32 %v1436_v5, %v1298_v9  ;;  %v18550_v29 = vadd.f32 %v1595_v8, %v1435_v4  ;;  %v16074_v9 = vld [vmem:[%s23687_s5 + $0x1b0] ss:$12 sps:$4 sm:$0xff]  }
 0x206   : > { %v1438_v31 = vpop.f32.mrf.mxu1  ;;  %v18567_v38 = vpop.f32.mrf.mxu0  ;;  %3451 = vmatpush1.bf16.msra.mxu1 %v16074_v9  ;;  %3504 = vmatpush1.bf16.msra.mxu0 %v16081_v63 }
 0x207   : > { %v1439_v17 = vadd.f32 %v1438_v31, %v18469_v43  ;;  %v18560_v40 = vadd.f32 %v18467_v36, %v1437_v7  ;;  %3452 = vmatprep.subr.bf16.mxu1 %v16080_v56  ;;  %v16084_v7 = vld [vmem:[%s23687_s5 + $0x184] ss:$12 sps:$4 sm:$0xff]   ;;  %3505 = vmatprep.subr.bf16.mxu0 %v23701_v35  ;;  %v16082_v31 = vld [vmem:[%s23687_s5 + $0x180] ss:$12 sps:$4 sm:$0xff]  }
 0x208   : > { %v18565_v8 = vpop.f32.mrf.mxu1  ;;  %v18575_v36 = vpop.f32.mrf.mxu0  ;;  %v16089_v56 = vld [vmem:[%s23687_s5 + $0x170] ss:$12 sps:$4 sm:$0xff]  }
 0x209   : > { %v18573_v53 = vadd.f32 %v18471_v46, %v1439_v17  ;;  %v16078_v46 = vld [vmem:[%s23687_s5 + $0x198] ss:$12 sps:$4 sm:$0xff]  }
 0x20a   : > { %v1444_v43 = vpop.f32.mrf.mxu1  ;;  %v18582_v2 = vpop.f32.mrf.mxu0  ;;  %3453 = vmatpush1.bf16.msra.mxu1 %v16078_v46 }
 0x20b   : > { %v1445_v54 = vadd.f32 %v1444_v43, %v18475_v51  ;;  %3454 = vmatprep.subr.bf16.mxu1 %v16084_v7  ;;  %v16090_v7 = vld [vmem:[%s23687_s5 + $0x150] ss:$12 sps:$4 sm:$0xff]  }
 0x20c   : > { %v1446_v27 = vpop.f32.mrf.mxu1  ;;  %v18594_v44 = vpop.f32.mrf.mxu0 }
 0x20d   : > { %v1447_v0 = vadd.f32 %v1446_v27, %v18479_v14  ;;  %v18592_v51 = vadd.f32 %v18481_v15, %v1445_v54 }
 0x20e   : > { %v1448_v37 = vpop.f32.mrf.mxu1  ;;  %v18606_v15 = vpop.f32.mrf.mxu0  ;;  %3455 = vmatpush1.bf16.msra.mxu1 %v16082_v31 }
 0x20f   : > { %v1449_v4 = vadd.f32 %v1448_v37, %v18483_v16  ;;  %v18598_v5 = vadd.f32 %v18485_v18, %v1447_v0  ;;  %v16085_v16 = vld [vmem:[%s23687_s5 + $0x188] ss:$12 sps:$4 sm:$0xff]   ;;  %3456 = vmatprep.subr.bf16.mxu1 %v16088_v49 }
 0x210   : > { %v18604_v14 = vpop.f32.mrf.mxu1  ;;  %v18617_v17 = vpop.f32.mrf.mxu0  ;;  %3506 = vmatpush1.bf16.msra.mxu0 %v16085_v16 }
 0x211   : > { %v18615_v18 = vadd.f32 %v18489_v20, %v1449_v4  ;;  %3507 = vmatprep.subr.bf16.mxu0 %v23701_v35  ;;  %v16086_v20 = vld [vmem:[%s23687_s5 + $0x168] ss:$12 sps:$4 sm:$0xff]  }
 0x212   : > { %v1454_v34 = vpop.f32.mrf.mxu1  ;;  %v18624_v54 = vpop.f32.mrf.mxu0  ;;  %3457 = vmatpush1.bf16.msra.mxu1 %v16086_v20  ;;  %v16092_v4 = vld [vmem:[%s23687_s5 + $0x154] ss:$12 sps:$4 sm:$0xff]  }
 0x213   : > { %v1455_v9 = vadd.f32 %v1454_v34, %v18491_v21  ;;  %3458 = vmatprep.subr.bf16.mxu1 %v16092_v4  ;;  %v16097_v20 = vld [vmem:[%s23687_s5 + $0x140] ss:$12 sps:$4 sm:$0xff]  }
 0x214   : > { %v1456_v43 = vpop.f32.mrf.mxu1  ;;  %v18636_v63 = vpop.f32.mrf.mxu0  ;;  %3508 = vmatpush1.bf16.msra.mxu0 %v16089_v56 }
 0x215   : > { %v1457_v27 = vadd.f32 %v1456_v43, %v18495_v23  ;;  %v18634_v21 = vadd.f32 %v18499_v25, %v1455_v9  ;;  %3509 = vmatprep.subr.bf16.mxu0 %v23701_v35  ;;  %v16096_v9 = vld [vmem:[%s23687_s5 + $0x13c] ss:$12 sps:$4 sm:$0xff]  }
 0x216   : > { %v1458_v46 = vpop.f32.mrf.mxu1  ;;  %v18648_v25 = vpop.f32.mrf.mxu0  ;;  %3459 = vmatpush1.bf16.msra.mxu1 %v16090_v7  ;;  %v16100_v7 = vld [vmem:[%s23687_s5 + $0x124] ss:$12 sps:$4 sm:$0xff]  }
 0x217   : > { %v1459_v0 = vadd.f32 %v1458_v46, %v18497_v24  ;;  %v18640_v37 = vadd.f32 %v18503_v28, %v1457_v27  ;;  %v16093_v24 = vld [vmem:[%s23687_s5 + $0x158] ss:$12 sps:$4 sm:$0xff]   ;;  %3460 = vmatprep.subr.bf16.mxu1 %v16096_v9 }
 0x218   : > { %v18646_v23 = vpop.f32.mrf.mxu1  ;;  %v18659_v16 = vpop.f32.mrf.mxu0  ;;  %3510 = vmatpush1.bf16.msra.mxu0 %v16093_v24  ;;  %v16098_v24 = vld [vmem:[%s23687_s5 + $0x120] ss:$12 sps:$4 sm:$0xff]  }
 0x219   : > { %v18657_v28 = vadd.f32 %v18505_v30, %v1459_v0  ;;  %3511 = vmatprep.subr.bf16.mxu0 %v23701_v35  ;;  %v16094_v30 = vld [vmem:[%s23687_s5 + $0x138] ss:$12 sps:$4 sm:$0xff]  }
 0x21a   : > { %v1756_v31 = vpop.f32.mrf.mxu1  ;;  %v18666_v43 = vpop.f32.mrf.mxu0  ;;  %3461 = vmatpush1.bf16.msra.mxu1 %v16094_v30 }
 0x21b   : > { %v1805_v34 = vadd.f32 %v1756_v31, %v18509_v39  ;;  %3462 = vmatprep.subr.bf16.mxu1 %v16100_v7 }
 0x21c   : > { %v1758_v49 = vpop.f32.mrf.mxu1  ;;  %v18678_v46 = vpop.f32.mrf.mxu0  ;;  %3512 = vmatpush1.bf16.msra.mxu0 %v16097_v20 }
 0x21d   : > { %v1806_v56 = vadd.f32 %v1758_v49, %v18513_v42  ;;  %v18676_v39 = vadd.f32 %v18511_v41, %v1805_v34  ;;  %3513 = vmatprep.subr.bf16.mxu0 %v23701_v35  ;;  %v16104_v49 = vld [vmem:[%s23687_s5 + $0x22c] ss:$12 sps:$4 sm:$0xff]  }
 0x21e   : > { %v1760_v27 = vpop.f32.mrf.mxu1  ;;  %v18690_v41 = vpop.f32.mrf.mxu0  ;;  %3463 = vmatpush1.bf16.msra.mxu1 %v16098_v24 }
 0x21f   : > { %v1807_v0 = vadd.f32 %v1760_v27, %v18519_v48  ;;  %v18682_v4 = vadd.f32 %v18517_v47, %v1806_v56  ;;  %v16101_v48 = vld [vmem:[%s23687_s5 + $0x128] ss:$12 sps:$4 sm:$0xff]   ;;  %v16105_v56 = vld [vmem:[%s23687_s5 + $0x230] ss:$12 sps:$4 sm:$0xff]   ;;  %3472 = vmatprep.subr.bf16.mxu1 %v16104_v49 }
 0x220   : > { %v18688_v42 = vpop.f32.mrf.mxu1  ;;  %v18701_v34 = vpop.f32.mrf.mxu0  ;;  %3514 = vmatpush1.bf16.msra.mxu0 %v16101_v48 }
 0x221   : > { %v18699_v47 = vadd.f32 %v18521_v50, %v1807_v0  ;;  %3523 = vmatprep.subr.bf16.mxu0 %v23701_v35  ;;  %v16102_v50 = vld [vmem:[%s23687_s5 + $0x228] ss:$12 sps:$4 sm:$0xff]  }
 0x222   : > { %v1766_v31 = vpop.f32.mrf.mxu1  ;;  %v18708_v20 = vpop.f32.mrf.mxu0  ;;  %3473 = vmatpush2.bf16.msra.mxu1 %v16102_v50 }
 0x223   : > { %v1809_v9 = vadd.f32 %v1766_v31, %v18525_v58  ;;  %v16108_v31 = vld [vmem:[%s23687_s5 + $0x214] ss:$12 sps:$4 sm:$0xff]  }
 0x224   : > { %v1768_v30 = vpop.f32.mrf.mxu1  ;;  %v18720_v7 = vpop.f32.mrf.mxu0  ;;  %3524 = vmatpush2.bf16.msra.mxu0 %v16105_v56  ;;  %3474 = vmatprep.subr.bf16.mxu1 %v16108_v31  ;;  %v16112_v56 = vld [vmem:[%s23687_s5 + $0x1fc] ss:$12 sps:$4 sm:$0xff]  }
 0x225   : > { %v1810_v27 = vadd.f32 %v1768_v30, %v18529_v59  ;;  %v18718_v58 = vadd.f32 %v18527_v57, %v1809_v9  ;;  %3525 = vmatprep.subr.bf16.mxu0 %v23701_v35  ;;  %v16106_v9 = vld [vmem:[%s23687_s5 + $0x210] ss:$12 sps:$4 sm:$0xff]  }
 0x226   : > { %v1770_v0 = vpop.f32.mrf.mxu1  ;;  %v18732_v57 = vpop.f32.mrf.mxu0  ;;  %3475 = vmatpush2.bf16.msra.mxu1 %v16106_v9  ;;  %v16116_v9 = vld [vmem:[%s23687_s5 + $0x1e4] ss:$12 sps:$4 sm:$0xff]  }
 0x227   : > { %v1811_v24 = vadd.f32 %v1770_v0, %v18535_v62  ;;  %v18724_v48 = vadd.f32 %v18533_v61, %v1810_v27  ;;  %v16109_v62 = vld [vmem:[%s23687_s5 + $0x218] ss:$12 sps:$4 sm:$0xff]   ;;  %3476 = vmatprep.subr.bf16.mxu1 %v16112_v56  ;;  %v23710_v56 = vmov 0  }
 0x228   : > { %v18730_v59 = vpop.f32.mrf.mxu1  ;;  %v18743_v30 = vpop.f32.mrf.mxu0  ;;  %3526 = vmatpush2.bf16.msra.mxu0 %v16109_v62 }
 0x229   : > { %v18741_v61 = vadd.f32 %v18540_v12, %v1811_v24  ;;  %3527 = vmatprep.subr.bf16.mxu0 %v23701_v35  ;;  %v16110_v12 = vld [vmem:[%s23687_s5 + $0x1f8] ss:$12 sps:$4 sm:$0xff]   ;;  %v16113_v24 = vld [vmem:[%s23687_s5 + $0x200] ss:$12 sps:$4 sm:$0xff]  }
 0x22a   : > { %v1776_v49 = vpop.f32.mrf.mxu1  ;;  %v18750_v0 = vpop.f32.mrf.mxu0  ;;  %3477 = vmatpush2.bf16.msra.mxu1 %v16110_v12  ;;  %v16114_v35 = vld [vmem:[%s23687_s5 + $0x1e0] ss:$12 sps:$4 sm:$0xff]  }
 0x22b   : > { %v1813_v50 = vadd.f32 %v1776_v49, %v18550_v29  ;;  %23708 = vst [vmem:[#allocation7_spill] sm:$0xff] %v18750_v0  ;;  %3478 = vmatprep.subr.bf16.mxu1 %v16116_v9 }
 0x22c   : > { %v1778_v27 = vpop.f32.mrf.mxu1  ;;  %v18765_v49 = vpop.f32.mrf.mxu0  ;;  %3528 = vmatpush2.bf16.msra.mxu0 %v16113_v24 }
 0x22d   : > { %v1814_v31 = vadd.f32 %v1778_v27, %v18560_v40  ;;  %v18760_v29 = vadd.f32 %v18553_v32, %v1813_v50  ;;  %23709 = vst [vmem:[#allocation8_spill] sm:$0xff] %v18765_v49  ;;  %v16117_v40 = vld [vmem:[%s23687_s5 + $0x1e8] ss:$12 sps:$4 sm:$0xff]   ;;  %3529 = vmatprep.subr.bf16.mxu0 %v23710_v56 }
 0x22e   : > { %v1780_v62 = vpop.f32.mrf.mxu1  ;;  %v18780_v12 = vpop.f32.mrf.mxu0  ;;  %3479 = vmatpush2.bf16.msra.mxu1 %v16114_v35 }
 0x22f   : > { %v1815_v32 = vadd.f32 %v1780_v62, %v18573_v53  ;;  %v18775_v50 = vadd.f32 %v18567_v38, %v1814_v31  ;;  %23711 = vst [vmem:[#allocation9_spill] sm:$0xff] %v18780_v12  ;;  %v16120_v38 = vld [vmem:[%s23687_s5 + $0xac] ss:$12 sps:$4 sm:$0xff]  }
 0x230   : > { %v18778_v27 = vpop.f32.mrf.mxu1  ;;  %v18785_v0 = vpop.f32.mrf.mxu0  ;;  %3530 = vmatpush2.bf16.msra.mxu0 %v16117_v40  ;;  %3745 = vmatprep.subr.bf16.mxu1 %v16120_v38 }
 0x231   : > { %v18783_v24 = vadd.f32 %v18575_v36, %v1815_v32  ;;  %23712 = vst [vmem:[#allocation10_spill] sm:$0xff] %v18785_v0  ;;  %3796 = vmatprep.subr.bf16.mxu0 %v23710_v56 }
 0x232   : > { %v1786_v49 = vpop.f32.mrf.mxu1  ;;  %v18792_v9 = vpop.f32.mrf.mxu0 }
 0x233   : > { %v1817_v53 = vadd.f32 %v1786_v49, %v18592_v51  ;;  %23713 = vst [vmem:[#allocation11_spill] sm:$0xff] %v18792_v9 }
 0x234   : > { %v1788_v31 = vpop.f32.mrf.mxu1  ;;  %v18798_v35 = vpop.f32.mrf.mxu0 }
 0x235   : > { %v1818_v62 = vadd.f32 %v1788_v31, %v18598_v5  ;;  %v18796_v36 = vadd.f32 %v18594_v44, %v1817_v53  ;;  %23715 = vst [vmem:[#allocation13_spill] sm:$0xff] %v18798_v35 }
 0x236   : > { %v1790_v32 = vpop.f32.mrf.mxu1  ;;  %v18806_v56 = vpop.f32.mrf.mxu0 }
 0x237   : > { %23714 = vst [vmem:[#allocation12_spill] sm:$0xff] %v18796_v36  ;;  %v1819_v51 = vadd.f32 %v1790_v32, %v18615_v18  ;;  %v18802_v49 = vadd.f32 %v18606_v15, %v1818_v62  ;;  %23717 = vst [vmem:[#allocation15_spill] sm:$0xff] %v18806_v56 }
 0x238   : > { %v18804_v40 = vpop.f32.mrf.mxu1  ;;  %v18811_v31 = vpop.f32.mrf.mxu0 }
 0x239   : > { %23716 = vst [vmem:[#allocation14_spill] sm:$0xff] %v18802_v49  ;;  %v18809_v9 = vadd.f32 %v18617_v17, %v1819_v51  ;;  %23719 = vst [vmem:[#allocation17_spill] sm:$0xff] %v18811_v31  ;;  %v2732_v49 = vlaneseq }
 0x23a   : > { %v1796_v5 = vpop.f32.mrf.mxu1  ;;  %v18814_v38 = vpop.f32.mrf.mxu0 }
 0x23b   : > { %23718 = vst [vmem:[#allocation16_spill] sm:$0xff] %v18809_v9  ;;  %v1821_v44 = vadd.f32 %v1796_v5, %v18634_v21  ;;  %23720 = vst [vmem:[#allocation18_spill] sm:$0xff] %v18814_v38  ;;  %vm19023_vm7 = vcmp.lt.s32.totalorder %v2732_v49, 192  ;;  %vm13101_vm14 = vcmp.lt.s32.totalorder %v2732_v49, 256 }
 0x23c   : > { %v1798_v53 = vpop.f32.mrf.mxu1  ;;  %v18820_v32 = vpop.f32.mrf.mxu0 }
 0x23d   : > { %v1822_v18 = vadd.f32 %v1798_v53, %v18640_v37  ;;  %v18818_v15 = vadd.f32 %v18636_v63, %v1821_v44  ;;  %23722 = vst [vmem:[#allocation20_spill] sm:$0xff] %v18820_v32 }
 0x23e   : > { %v1800_v62 = vpop.f32.mrf.mxu1  ;;  %v18826_v31 = vpop.f32.mrf.mxu0 }
 0x23f   : > { %23721 = vst [vmem:[#allocation19_spill] sm:$0xff] %v18818_v15  ;;  %v1823_v56 = vadd.f32 %v1800_v62, %v18657_v28  ;;  %v18824_v17 = vadd.f32 %v18648_v25, %v1822_v18  ;;  %23724 = vst [vmem:[#allocation22_spill] sm:$0xff] %v18826_v31 }
 0x240   : > { %v1802_v51 = vpop.f32.mrf.mxu1  ;;  %v18831_v38 = vpop.f32.mrf.mxu0 }
 0x241   : > { %23723 = vst [vmem:[#allocation21_spill] sm:$0xff] %v18824_v17  ;;  %v18829_v21 = vadd.f32 %v18659_v16, %v1823_v56  ;;  %23726 = vst [vmem:[#allocation24_spill] sm:$0xff] %v18831_v38 }
 0x242   : > { %v2118_v5 = vpop.f32.mrf.mxu1  ;;  %v18833_v63 = vpop.f32.mrf.mxu0 }
 0x243   : > { %23725 = vst [vmem:[#allocation23_spill] sm:$0xff] %v18829_v21  ;;  %23727 = vst [vmem:[#allocation25_spill] sm:$0xff] %v18833_v63 }
 0x244   : > { %v2120_v37 = vpop.f32.mrf.mxu1  ;;  %v18835_v53 = vpop.f32.mrf.mxu0 }
 0x245   : > { %23728 = vst [vmem:[#allocation26_spill] sm:$0xff] %v18835_v53  ;;  %v1421_v53 = vadd.f32 %v18515_v45, %v18458_v1  ;;  %v1461_v1 = vadd.f32 %v18646_v23, %v18501_v26 }
 0x246   : > { %v2122_v44 = vpop.f32.mrf.mxu1  ;;  %v18837_v62 = vpop.f32.mrf.mxu0 }
 0x247   : > { %23729 = vst [vmem:[#allocation27_spill] sm:$0xff] %v18837_v62  ;;  %v1643_v23 = vadd.f32 %v18507_v33, %v1461_v1  ;;  %v2730_v33 = vld [vmem:[%s23686_s4] sm:$0x3] }
 0x248   : > { %v2124_v32 = vpop.f32.mrf.mxu1  ;;  %v18839_v17 = vpop.f32.mrf.mxu0 }
 0x24a   : > { %v2128_v28 = vpop.f32.mrf.mxu1  ;;  %v18841_v56 = vpop.f32.mrf.mxu0 }
 0x24b   : > { %23730 = vst [vmem:[#allocation28_spill] sm:$0xff] %v18841_v56 }
 0x24c   : > { %v2130_v25 = vpop.f32.mrf.mxu1  ;;  %v18847_v63 = vpop.f32.mrf.mxu0 }
 0x24d   : > { %23731 = vst [vmem:[#allocation29_spill] sm:$0xff] %v18847_v63  ;;  %v1431_v63 = vadd.f32 %v18531_v60, %v18463_v52  ;;  %v17815_v52 = vmov 1966171168  }
 0x24e   : > { %v2132_v18 = vpop.f32.mrf.mxu1  ;;  %v18853_v0 = vpop.f32.mrf.mxu0  ;;  %v2809_v60 = vunpack.c.l.s4 %v17815_v52 }
 0x24f   : > { %23733 = vst [vmem:[#allocation31_spill] sm:$0xff] %v18853_v0  ;;  %v1441_v0 = vadd.f32 %v18565_v8, %v18473_v11  ;;  %v1631_v11 = vadd.f32 %v18465_v10, %v1431_v63  ;;  %v2167_v63 = vadd.f32 %v2118_v5, %v18676_v39 }
 0x250   : > { %v2134_v31 = vpop.f32.mrf.mxu1  ;;  %v18861_v56 = vpop.f32.mrf.mxu0 }
 0x251   : > { %23736 = vst [vmem:[#allocation34_spill] sm:$0xff] %v18861_v56  ;;  %v18881_v56 = vshrl.u32 %v2732_v49, 7 }
 0x252   : > { %v2138_v16 = vpop.f32.mrf.mxu1 }
 0x253   : > { %v18896_v52 = vsub.s32 0, %v18881_v56  ;;  %v18899_v10 = vsub.s32 1, %v18881_v56  ;;  %v2175_v5 = vadd.f32 %v2138_v16, %v18760_v29 }
 0x254   : > { %v18843_v21 = vpop.f32.mrf.mxu1 }
 0x256   : > { %v18845_v38 = vpop.f32.mrf.mxu1 }
 0x258   : > { %v18849_v35 = vpop.f32.mrf.mxu1 }
 0x25a   : > { %v18851_v15 = vpop.f32.mrf.mxu1 }
 0x25b   : > { %23732 = vst [vmem:[#allocation30_spill] sm:$0xff] %v18851_v15  ;;  %v18874_v15 = vpop.f32.mrf.mxu0 }
 0x25c   : > { %v18855_v62 = vpop.f32.mrf.mxu1 }
 0x25d   : > { %23734 = vst [vmem:[#allocation32_spill] sm:$0xff] %v18855_v62  ;;  %v1451_v62 = vadd.f32 %v18604_v14, %v18487_v19  ;;  %v1635_v19 = vadd.f32 %v18477_v13, %v1441_v0  ;;  %v18890_v26 = vpop.f32.mrf.mxu0  ;;  %v2169_v13 = vadd.f32 %v2122_v44, %v18699_v47  ;;  %v1824_v0 = vadd.f32 %v1802_v51, %v1643_v23 }
 0x25e   : > { %v18857_v12 = vpop.f32.mrf.mxu1 }
 0x25f   : > { %23735 = vst [vmem:[#allocation33_spill] sm:$0xff] %v18857_v12  ;;  %v1627_v12 = vadd.f32 %v18460_v3, %v1421_v53  ;;  %v1812_v3 = vadd.f32 %v18730_v59, %v1631_v11  ;;  %v1639_v14 = vadd.f32 %v18493_v22, %v1451_v62  ;;  %v2168_v62 = vadd.f32 %v2120_v37, %v18682_v4  ;;  %v18913_v47 = vpop.f32.mrf.mxu0 }
 0x260   : > { %v18863_v9 = vpop.f32.mrf.mxu1  ;;  %v2171_v11 = vadd.f32 %v2128_v28, %v18718_v58  ;;  %v18923_v4 = vrot.slane %v2730_v33, %v18899_v10  ;;  %v2348_v37 = vadd.f32 %v18678_v46, %v2167_v63 }
 0x261   : > { %v1820_v59 = vadd.f32 %v18804_v40, %v1639_v14  ;;  %v1993_v40 = vadd.f32 %v18548_v6, %v1812_v3  ;;  %v2350_v6 = vadd.f32 %v18701_v34, %v2169_v13  ;;  %v2349_v44 = vadd.f32 %v18690_v41, %v2168_v62 }
 0x262   : > { %v18867_v36 = vpop.f32.mrf.mxu1  ;;  %v2176_v34 = vadd.f32 %v18843_v21, %v18775_v50  ;;  %v23740_v23 = vld [vmem:[#allocation30_spill] sm:$0xff] }
 0x263   : > { %23737 = vst [vmem:[#allocation35_spill] sm:$0xff] %v18867_v36  ;;  %v1808_v36 = vadd.f32 %v18688_v42, %v1627_v12  ;;  %v2810_v42 = vunpack.c.0.s8 %v2809_v60  ;;  %v1816_v12 = vadd.f32 %v18778_v27, %v1635_v19  ;;  %v2172_v27 = vadd.f32 %v2130_v25, %v18724_v48  ;;  %v18934_v25 = vpop.f32.mrf.mxu0 }
 0x264   : > { %v18878_v45 = vpop.f32.mrf.mxu1  ;;  %v2001_v48 = vadd.f32 %v18624_v54, %v1820_v59 }
 0x265   : > { %v1989_v22 = vadd.f32 %v18523_v55, %v1808_v36  ;;  %v2173_v55 = vadd.f32 %v2132_v18, %v18741_v61  ;;  %v18917_v36 = vrot.slane %v2730_v33, %v18896_v52  ;;  %v18920_v51 = vsub.s32 %v2810_v42, %v18881_v56  ;;  %v23741_v42 = vld [vmem:[#allocation14_spill] sm:$0xff]  ;;  %v18952_v13 = vpop.f32.mrf.mxu0  ;;  %v23746_v33 = vld [vmem:[#allocation28_spill] sm:$0xff] }
 0x266   : > { %v18885_v8 = vpop.f32.mrf.mxu1  ;;  %v1997_v58 = vadd.f32 %v18582_v2, %v1816_v12  ;;  %v18930_v61 = vadd.f32 %v18666_v43, %v1824_v0  ;;  %v2352_v2 = vadd.f32 %v18720_v7, %v2171_v11  ;;  %v2353_v54 = vadd.f32 %v18732_v57, %v2172_v27  ;;  %v23739_v7 = vld [vmem:[#allocation12_spill] sm:$0xff]  ;;  %v23748_v27 = vld [vmem:[#allocation9_spill] sm:$0xff] }
 0x267   : > { %v2170_v60 = vadd.f32 %v2124_v32, %v1989_v22  ;;  %v2174_v32 = vadd.f32 %v2134_v31, %v1993_v40  ;;  %v2177_v43 = vadd.f32 %v18845_v38, %v18783_v24  ;;  %v2354_v41 = vadd.f32 %v18743_v30, %v2173_v55  ;;  %v23742_v12 = vld [vmem:[#allocation32_spill] sm:$0xff]  ;;  %v23749_v55 = vld [vmem:[#allocation10_spill] sm:$0xff] }
 0x268   : > { %v18893_v53 = vpop.f32.mrf.mxu1  ;;  %v2178_v16 = vadd.f32 %v18849_v35, %v1997_v58  ;;  %v2179_v57 = vadd.f32 %v23740_v23, %v23739_v7  ;;  %v2180_v50 = vadd.f32 %v23742_v12, %v23741_v42  ;;  %v23743_v24 = vld [vmem:[#allocation8_spill] sm:$0xff]  ;;  %v23745_v35 = vld [vmem:[#allocation33_spill] sm:$0xff]  ;;  %v2182_v62 = vadd.f32 %v18863_v9, %v2001_v48 }
 0x269   : > { %v2351_v31 = vadd.f32 %v18708_v20, %v2170_v60  ;;  %v23738_v20 = vld [vmem:[#allocation7_spill] sm:$0xff]  ;;  %v2356_v38 = vadd.f32 %v23743_v24, %v2175_v5  ;;  %v23744_v30 = vld [vmem:[#allocation16_spill] sm:$0xff]  ;;  %v2357_v40 = vadd.f32 %v23748_v27, %v2176_v34  ;;  %v23750_v58 = vld [vmem:[#allocation29_spill] sm:$0xff]  ;;  %v18971_v34 = vpop.f32.mrf.mxu0 }
 0x26a   : > { %v2480_v1 = vpop.f32.mrf.mxu1  ;;  %v2355_v14 = vadd.f32 %v23738_v20, %v2174_v32  ;;  %v2181_v22 = vadd.f32 %v23745_v35, %v23744_v30  ;;  %v23760_v30 = vld [vmem:[#allocation21_spill] sm:$0xff] }
 0x26b   : > { %v2529_v29 = vadd.f32 %v2480_v1, %v2348_v37  ;;  %v23747_v1 = vld [vmem:[#allocation26_spill] sm:$0xff]  ;;  %v23751_v37 = vld [vmem:[#allocation11_spill] sm:$0xff]  ;;  %v2184_v35 = vadd.f32 %v18878_v45, %v23760_v30 }
 0x26c   : > { %v2482_v39 = vpop.f32.mrf.mxu1 }
 0x26d   : > { %v2530_v21 = vadd.f32 %v2482_v39, %v2349_v44  ;;  %v2710_v60 = vadd.f32 %v23747_v1, %v2529_v29  ;;  %v2358_v39 = vadd.f32 %v23749_v55, %v2177_v43  ;;  %v2359_v44 = vadd.f32 %v23751_v37, %v2178_v16  ;;  %v23755_v29 = vld [vmem:[#allocation13_spill] sm:$0xff] }
 0x26e   : > { %v2484_v28 = vpop.f32.mrf.mxu1  ;;  %v23758_v16 = vld [vmem:[#allocation17_spill] sm:$0xff] }
 0x26f   : > { %v2531_v18 = vadd.f32 %v2484_v28, %v2350_v6  ;;  %v23752_v28 = vld [vmem:[#allocation19_spill] sm:$0xff]  ;;  %v18981_v23 = vadd.f32 %v23758_v16, %v2181_v22  ;;  %v2742_v42 = vadd.f32 %v18917_v36, %v2710_v60  ;;  %v23764_v16 = vld [vmem:[#allocation22_spill] sm:$0xff] }
 0x270   : > { %v2486_v46 = vpop.f32.mrf.mxu1 }
 0x271   : > { %v2712_v3 = vadd.f32 %v18839_v17, %v2531_v18  ;;  %v2532_v19 = vadd.f32 %v2486_v46, %v2351_v31  ;;  %v23753_v18 = vld [vmem:[#allocation35_spill] sm:$0xff] }
 0x272   : > { %v2490_v59 = vpop.f32.mrf.mxu1  ;;  %v2183_v31 = vadd.f32 %v23753_v18, %v23752_v28 }
 0x273   : > { %v2744_v17 = vadd.f32 %v18917_v36, %v2712_v3  ;;  %v2713_v0 = vadd.f32 %v23746_v33, %v2532_v19  ;;  %v2533_v63 = vadd.f32 %v2490_v59, %v2352_v2  ;;  %v23754_v2 = vld [vmem:[#allocation27_spill] sm:$0xff]  ;;  %v18969_v3 = vadd.f32 %v23755_v29, %v2179_v57  ;;  %v23759_v57 = vld [vmem:[#allocation18_spill] sm:$0xff] }
 0x274   : > { %v2492_v11 = vpop.f32.mrf.mxu1  ;;  %v2711_v46 = vadd.f32 %v23754_v2, %v2530_v21  ;;  %v23756_v19 = vld [vmem:[#allocation31_spill] sm:$0xff]  ;;  %v18985_v24 = vadd.f32 %v23759_v57, %v2182_v62  ;;  %v18998_v62 = vpop.f32.mrf.mxu0 }
 0x275   : > { %v2745_v32 = vadd.f32 %v18923_v4, %v2713_v0  ;;  %v2714_v6 = vadd.f32 %v23750_v58, %v2533_v63  ;;  %v2534_v5 = vadd.f32 %v2492_v11, %v2353_v54  ;;  %v2764_v9 = vmax.f32 %v2744_v17, 0.0  ;;  %v23757_v54 = vld [vmem:[#allocation15_spill] sm:$0xff]  ;;  %v23761_v63 = vld [vmem:[#allocation34_spill] sm:$0xff] }
 0x276   : > { %v2494_v48 = vpop.f32.mrf.mxu1  ;;  %v18978_v7 = vadd.f32 %v23757_v54, %v2180_v50  ;;  %v2743_v22 = vadd.f32 %v18923_v4, %v2711_v46 }
 0x277   : > { %v18974_v43 = vadd.f32 %v18917_v36, %v2714_v6  ;;  %v2715_v20 = vadd.f32 %v23756_v19, %v2534_v5  ;;  %v2765_v12 = vmax.f32 %v2745_v32, 0.0  ;;  %v2535_v21 = vadd.f32 %v2494_v48, %v2354_v41  ;;  %v23762_v41 = vld [vmem:[#allocation20_spill] sm:$0xff] }
 0x278   : > { %v2496_v59 = vpop.f32.mrf.mxu1  ;;  %v2787_v0 = vrot.slane %v2764_v9, 2  ;;  %v18996_v11 = vadd.f32 %v23762_v41, %v2183_v31  ;;  %v2762_v6 = vmax.f32 %v2742_v42, 0.0  ;;  %v2763_v9 = vmax.f32 %v2743_v22, 0.0 }
 0x279   : > { %v2766_v17 = vmax.f32 %v18974_v43, 0.0  ;;  %v18991_v33 = vadd.f32 %v18923_v4, %v2715_v20  ;;  %v2536_v50 = vadd.f32 %v2496_v59, %v2355_v14  ;;  %v2716_v1 = vadd.f32 %v23761_v63, %v2535_v21  ;;  %v23763_v14 = vld [vmem:[#allocation23_spill] sm:$0xff] }
 0x27a   : > { %v2500_v60 = vpop.f32.mrf.mxu1  ;;  %v2185_v58 = vadd.f32 %v18885_v8, %v23763_v14  ;;  %v2790_v5 = vrot.slane %v2765_v12, 2  ;;  %v19012_v8 = vpop.f32.mrf.mxu0  ;;  %v19017_v42 = vadd.f32 %v23764_v16, %v2184_v35  ;;  %v2186_v12 = vadd.f32 %v18893_v53, %v18930_v61  ;;  %v23767_v61 = vld [vmem:[#allocation24_spill] sm:$0xff] }
 0x27b   : > { %v2788_v45 = vrot.slane %v2766_v17, 2  ;;  %v2767_v27 = vmax.f32 %v18991_v33, 0.0  ;;  %v2717_v55 = vadd.f32 %v18874_v15, %v2536_v50  ;;  %v2537_v32 = vadd.f32 %v2500_v60, %v2356_v38 }
 0x27c   : > { %v2748_v37 = vadd.f32 %v18917_v36, %v2716_v1  ;;  %v2502_v28 = vpop.f32.mrf.mxu1  ;;  %v19030_v1 = vadd.f32 %v23767_v61, %v2185_v58 }
 0x27d   : > { %v2789_v18 = vsel %vm2786_vm6, %v2787_v0, %v2788_v45  ;;  %v2791_v31 = vrot.slane %v2767_v27, 2  ;;  %v2749_v2 = vadd.f32 %v18923_v4, %v2717_v55  ;;  %v2718_v46 = vadd.f32 %v18890_v26, %v2537_v32 }
 0x27e   : > { %v2795_v15 = vmax.f32 %v2762_v6, %v2789_v18  ;;  %v2768_v38 = vmax.f32 %v2748_v37, 0.0  ;;  %v2538_v48 = vadd.f32 %v2502_v28, %v2357_v40  ;;  %v2504_v29 = vpop.f32.mrf.mxu1  ;;  %v23768_v6 = vld [vmem:[#allocation25_spill] sm:$0xff] }
 0x27f   : > { %v2792_v19 = vsel %vm2786_vm6, %v2790_v5, %v2791_v31  ;;  %v2750_v20 = vadd.f32 %v18917_v36, %v2718_v46  ;;  %v2539_v54 = vadd.f32 %v2504_v29, %v2358_v39  ;;  %v2769_v30 = vmax.f32 %v2749_v2, 0.0 }
 0x280   : > { %v2799_v21 = vrot.slane %v2795_v15, 1  ;;  %v2796_v26 = vmax.f32 %v2763_v9, %v2792_v19  ;;  %v2719_v59 = vadd.f32 %v18913_v47, %v2538_v48  ;;  %v2506_v57 = vpop.f32.mrf.mxu1  ;;  %v2863_v0 = vrot.slane %v2768_v38, 2  ;;  %v2697_v47 = vpop.f32.mrf.mxu0 }
 0x281   : > { %v2770_v50 = vmax.f32 %v2750_v20, 0.0  ;;  %v2720_v39 = vadd.f32 %v18934_v25, %v2539_v54  ;;  %v2540_v22 = vadd.f32 %v2506_v57, %v2359_v44  ;;  %v19038_v5 = vadd.f32 %v23768_v6, %v2186_v12 }
 0x282   : > { %v2800_v35 = vrot.slane %v2796_v26, 1  ;;  %v2751_v63 = vadd.f32 %v18923_v4, %v2719_v59  ;;  %v2510_v53 = vpop.f32.mrf.mxu1  ;;  %v2803_v32 = vmax.f32 %v2795_v15, %v2799_v21  ;;  %v2866_v37 = vrot.slane %v2769_v30, 2  ;;  %v2701_v9 = vpop.f32.mrf.mxu0 }
 0x283   : > { %v2864_v60 = vrot.slane %v2770_v50, 2  ;;  %v19033_v41 = vadd.f32 %v18917_v36, %v2720_v39  ;;  %v2721_v45 = vadd.f32 %v18952_v13, %v2540_v22  ;;  %v2541_v55 = vadd.f32 %v2510_v53, %v18969_v3 }
 0x284   : > { %v2804_v25 = vmax.f32 %v2796_v26, %v2800_v35  ;;  %v2771_v44 = vmax.f32 %v2751_v63, 0.0  ;;  %v2512_v14 = vpop.f32.mrf.mxu1  ;;  %v2703_v39 = vpop.f32.mrf.mxu0 }
 0x285   : > { %v2865_v58 = vsel %vm2786_vm6, %v2863_v0, %v2864_v60  ;;  %v2875_v28 = vmax.f32 %v2768_v38, %v2864_v60  ;;  %v19042_v18 = vadd.f32 %v18923_v4, %v2721_v45  ;;  %v2772_v48 = vmax.f32 %v19033_v41, 0.0 }
 0x286   : > { %v2807_v31 = vcombine.low %v2803_v32, %v2804_v25  ;;  %v2835_v2 = vcombine.high %v2803_v32, %v2804_v25  ;;  %v2873_v13 = vmax.f32 %v2766_v17, %v2865_v58  ;;  %v2867_v3 = vrot.slane %v2771_v44, 2  ;;  %v2514_v46 = vpop.f32.mrf.mxu1 }
 0x287   : > { %v2913_v15 = vrot.slane %v2875_v28, 1  ;;  %v2722_v29 = vadd.f32 %v18971_v34, %v2541_v55  ;;  %v2542_v19 = vadd.f32 %v2512_v14, %v18978_v7  ;;  %v2773_v16 = vmax.f32 %v19042_v18, 0.0 }
 0x288   : > { %v2814_v38 = vrot.slane %v2807_v31, %v18920_v51  ;;  %v2842_v20 = vrot.slane %v2835_v2, %v18920_v51  ;;  %v2868_v54 = vsel %vm2786_vm6, %v2866_v37, %v2867_v3  ;;  %v2516_v43 = vpop.f32.mrf.mxu1  ;;  %v2879_v17 = vrot.slane %v2873_v13, 1 }
 0x289   : > { %v2874_v12 = vmax.f32 %v2767_v27, %v2868_v54  ;;  %v2876_v21 = vmax.f32 %v2769_v30, %v2867_v3  ;;  %v2754_v26 = vadd.f32 %v18917_v36, %v2722_v29  ;;  %v2917_v59 = vmax.f32 %v2875_v28, %v2913_v15 }
 0x28a   : > { %v2821_v34 = vrot.slane %v2814_v38, %v18920_v51  ;;  %v2849_v7 = vrot.slane %v2842_v20, %v18920_v51  ;;  %v2723_v57 = vadd.f32 %v18998_v62, %v2542_v19  ;;  %v2520_v50 = vpop.f32.mrf.mxu1  ;;  %v2543_v63 = vadd.f32 %v2514_v46, %v18981_v23 }
 0x28b   : > { %v2880_v22 = vrot.slane %v2874_v12, 1  ;;  %v2914_v35 = vrot.slane %v2876_v21, 1  ;;  %v2774_v0 = vmax.f32 %v2754_v26, 0.0  ;;  %v2544_v53 = vadd.f32 %v2516_v43, %v18985_v24  ;;  %v2705_v24 = vpop.f32.mrf.mxu0 }
 0x28c   : > { %2828 = vst.msk [vmem:[#allocation3 + $0x7] ss:$8 sm:$0x3] %vm19023_vm7, %v2821_v34  ;;  %v2830_v33 = vcombine.high %v2821_v34, %v2821_v34  ;;  %2852 = vst.msk [vmem:[#allocation3 + $0x11] ss:$8 sm:$0x3] %vm19023_vm7, %v2849_v7  ;;  %v2854_v27 = vcombine.high %v2849_v7, %v2849_v7  ;;  %v2755_v30 = vadd.f32 %v18923_v4, %v2723_v57  ;;  %v2522_v62 = vpop.f32.mrf.mxu1 }
 0x28d   : > { %v2883_v61 = vmax.f32 %v2873_v13, %v2879_v17  ;;  %v2884_v60 = vmax.f32 %v2874_v12, %v2880_v22  ;;  %v2918_v45 = vmax.f32 %v2876_v21, %v2914_v35  ;;  %v2724_v55 = vadd.f32 %v19012_v8, %v2543_v63 }
 0x28e   : > { %2833 = vst.msk [vmem:[#allocation3 + $0x10] ss:$8 sm:$0x3] %vm19023_vm7, %v2830_v33  ;;  %2857 = vst.msk [vmem:[#allocation3 + $0x12] ss:$8 sm:$0x3] %vm19023_vm7, %v2854_v27  ;;  %v2725_v32 = vadd.f32 %v2697_v47, %v2544_v53  ;;  %v2545_v25 = vadd.f32 %v2520_v50, %v18996_v11  ;;  %v2546_v44 = vadd.f32 %v2522_v62, %v19017_v42  ;;  %v2524_v14 = vpop.f32.mrf.mxu1 }
 0x28f   : > { %v2949_v23 = vrot.slane %v2774_v0, 2  ;;  %v2887_v6 = vcombine.high %v2883_v61, %v2884_v60  ;;  %v2921_v37 = vcombine.low %v2917_v59, %v2918_v45  ;;  %v2756_v58 = vadd.f32 %v18917_v36, %v2724_v55 }
 0x290   : > { %v2547_v8 = vadd.f32 %v2524_v14, %v19030_v1  ;;  %v2775_v28 = vmax.f32 %v2755_v30, 0.0  ;;  %v2757_v31 = vadd.f32 %v18923_v4, %v2725_v32  ;;  %v2726_v2 = vadd.f32 %v2701_v9, %v2545_v25  ;;  %v2526_v3 = vpop.f32.mrf.mxu1  ;;  %v2707_v1 = vpop.f32.mrf.mxu0 }
 0x291   : > { %v2727_v13 = vadd.f32 %v2703_v39, %v2546_v44  ;;  %v2894_v47 = vrot.slane %v2887_v6, %v18920_v51  ;;  %v2928_v11 = vrot.slane %v2921_v37, %v18920_v51  ;;  %v2776_v46 = vmax.f32 %v2756_v58, 0.0 }
 0x292   : > { %v2728_v42 = vadd.f32 %v2705_v24, %v2547_v8  ;;  %v2777_v15 = vmax.f32 %v2757_v31, 0.0  ;;  %v2758_v29 = vadd.f32 %v18917_v36, %v2726_v2  ;;  %v2548_v38 = vadd.f32 %v2526_v3, %v19038_v5 }
 0x293   : > { %v2759_v19 = vadd.f32 %v18923_v4, %v2727_v13  ;;  %v2901_v20 = vrot.slane %v2894_v47, %v18920_v51  ;;  %v2935_v9 = vrot.slane %v2928_v11, %v18920_v51  ;;  %v2950_v54 = vrot.slane %v2776_v46, 2  ;;  %v3162_v11 = vld [vmem:[#allocation3 + $0x8] sm:$0xfe] }
 0x294   : > { %v2760_v43 = vadd.f32 %v18917_v36, %v2728_v42  ;;  %v2952_v17 = vrot.slane %v2775_v28, 2  ;;  %v2953_v12 = vrot.slane %v2777_v15, 2  ;;  %v2778_v21 = vmax.f32 %v2758_v29, 0.0  ;;  %v3161_v29 = vld [vmem:[#allocation3] sm:$0xfe] }
 0x295   : > { %v2729_v26 = vadd.f32 %v2707_v1, %v2548_v38  ;;  %2904 = vst.msk [vmem:[#allocation3 + $0x15] ss:$8 sm:$0x3] %vm19023_vm7, %v2901_v20  ;;  %v2906_v34 = vcombine.high %v2901_v20, %v2901_v20  ;;  %2938 = vst.msk [vmem:[#allocation3 + $0x17] ss:$8 sm:$0x3] %vm19023_vm7, %v2935_v9  ;;  %v2940_v5 = vcombine.high %v2935_v9, %v2935_v9 }
 0x296   : > { %v2951_v7 = vsel %vm2786_vm6, %v2949_v23, %v2950_v54  ;;  %v2780_v59 = vmax.f32 %v2760_v43, 0.0  ;;  %v2954_v36 = vsel %vm2786_vm6, %v2952_v17, %v2953_v12  ;;  %v2779_v50 = vmax.f32 %v2759_v19, 0.0  ;;  %v4220_v40 = vld [vmem:[#allocation3 + $0x8] sm:$0xc0] }
 0x297   : > { %v2957_v57 = vmax.f32 %v2772_v48, %v2951_v7  ;;  %2909 = vst.msk [vmem:[#allocation3 + $0x16] ss:$8 sm:$0x3] %vm19023_vm7, %v2906_v34  ;;  %2943 = vst.msk [vmem:[#allocation3 + $0x20] ss:$8 sm:$0x3] %vm19023_vm7, %v2940_v5  ;;  %v2958_v39 = vmax.f32 %v2773_v16, %v2954_v36  ;;  %v2761_v0 = vadd.f32 %v18923_v4, %v2729_v26 }
 0x298   : > { %v3021_v22 = vrot.slane %v2778_v21, 2  ;;  %v3022_v35 = vrot.slane %v2780_v59, 2  ;;  %v3024_v61 = vrot.slane %v2779_v50, 2  ;;  %v3163_v26 = vld [vmem:[#allocation3 + $0x30] sm:$0x1] }
 0x299   : > { %v2961_v63 = vrot.slane %v2957_v57, 1  ;;  %v2962_v33 = vrot.slane %v2958_v39, 1  ;;  %v2781_v27 = vmax.f32 %v2761_v0, 0.0 }
 0x29a   : > { %v3023_v41 = vsel %vm2786_vm6, %v3021_v22, %v3022_v35  ;;  %v3033_v48 = vmax.f32 %v2778_v21, %v3022_v35  ;;  %v3164_v21 = vld [vmem:[#allocation3 + $0x38] sm:$0x1]  ;;  %v4595_v22 = vld [vmem:[#allocation3 + $0x8] sm:$0x80] }
 0x29b   : > { %v3031_v30 = vmax.f32 %v2776_v46, %v3023_v41  ;;  %v2965_v53 = vmax.f32 %v2957_v57, %v2961_v63  ;;  %v2966_v62 = vmax.f32 %v2958_v39, %v2962_v33  ;;  %v3025_v60 = vrot.slane %v2781_v27, 2  ;;  %v3844_v39 = vld [vmem:[#allocation3] sm:$0xfc] }
 0x29c   : > { %v3071_v23 = vrot.slane %v3033_v48, 1  ;;  %v4594_v63 = vld [vmem:[#allocation3] sm:$0x80] }
 0x29d   : > { %v2969_v45 = vcombine.low %v2965_v53, %v2966_v62  ;;  %v2993_v55 = vcombine.high %v2965_v53, %v2966_v62  ;;  %v3026_v18 = vsel %vm2786_vm6, %v3024_v61, %v3025_v60  ;;  %v3037_v16 = vrot.slane %v3031_v30, 1  ;;  %v4219_v53 = vld [vmem:[#allocation3] sm:$0xc0] }
 0x29e   : > { %v3032_v32 = vmax.f32 %v2777_v15, %v3026_v18  ;;  %v3034_v25 = vmax.f32 %v2779_v50, %v3025_v60  ;;  %v19105_v58 = vld [vmem:[#allocation3 + $0x18] sm:$0xff]  ;;  %v3075_v28 = vmax.f32 %v3033_v48, %v3071_v23  ;;  %v19107_v13 = vld [vmem:[#allocation3 + $0x10] sm:$0xff] }
 0x29f   : > { %v2976_v4 = vrot.slane %v2969_v45, %v18920_v51  ;;  %v3000_v44 = vrot.slane %v2993_v55, %v18920_v51  ;;  %v3041_v8 = vmax.f32 %v3031_v30, %v3037_v16  ;;  %v3166_v15 = vpack.c.bf16 %v19105_v58, %v3162_v11  ;;  %v16118_v60 = vld [vmem:[%s23687_s5 + $0xa8] ss:$12 sps:$4 sm:$0xff]  }
 0x2a0   : > { %v3038_v14 = vrot.slane %v3032_v32, 1  ;;  %v3072_v24 = vrot.slane %v3034_v25, 1  ;;  %v3165_v19 = vpack.c.bf16 %v19107_v13, %v3161_v29  ;;  %v3848_v35 = vpack.c.bf16 %v19107_v13, %v3844_v39  ;;  %v16124_v11 = vld [vmem:[%s23687_s5 + $0x94] ss:$12 sps:$4 sm:$0xff]   ;;  %v16126_v39 = vld [vmem:[%s23687_s5 + $0x78] ss:$12 sps:$4 sm:$0xff]  }
 0x2a1   : > { %v2983_v6 = vrot.slane %v2976_v4, %v18920_v51  ;;  %v3007_v37 = vrot.slane %v3000_v44, %v18920_v51  ;;  %v3233_v54 = vshll.u32 %v3166_v15, 16  ;;  %v3231_v57 = vshrl.u32 %v3166_v15, 16  ;;  %v16121_v4 = vld [vmem:[%s23687_s5 + $0xb0] ss:$12 sps:$4 sm:$0xff]  }
 0x2a2   : > { %v3042_v31 = vmax.f32 %v3032_v32, %v3038_v14  ;;  %v3076_v2 = vmax.f32 %v3034_v25, %v3072_v24  ;;  %v3221_v43 = vshll.u32 %v3165_v19, 16  ;;  %v4599_v0 = vpack.c.bf16 %v19105_v58, %v4595_v22 }
 0x2a3   : > { %2986 = vst.msk [vmem:[#allocation3 + $0x23] ss:$8 sm:$0x3] %vm19023_vm7, %v2983_v6  ;;  %v2988_v3 = vcombine.high %v2983_v6, %v2983_v6  ;;  %3010 = vst.msk [vmem:[#allocation3 + $0x25] ss:$8 sm:$0x3] %vm19023_vm7, %v3007_v37  ;;  %v3012_v47 = vcombine.high %v3007_v37, %v3007_v37  ;;  %v4598_v62 = vpack.c.bf16 %v19107_v13, %v4594_v63 }
 0x2a4   : > { %v3045_v46 = vcombine.high %v3041_v8, %v3042_v31  ;;  %v3079_v42 = vcombine.low %v3075_v28, %v3076_v2  ;;  %v3235_v5 = vrot.slane %v3233_v54, 1  ;;  %v3223_v50 = vrot.slane %v3221_v43, 1  ;;  %v16129_v63 = vld [vmem:[%s23687_s5 + $0x80] ss:$12 sps:$4 sm:$0xff]  }
 0x2a5   : > { %2991 = vst.msk [vmem:[#allocation3 + $0x24] ss:$8 sm:$0x3] %vm19023_vm7, %v2988_v3  ;;  %3015 = vst.msk [vmem:[#allocation3 + $0x26] ss:$8 sm:$0x3] %vm19023_vm7, %v3012_v47  ;;  %v4224_v45 = vpack.c.bf16 %v19105_v58, %v4220_v40  ;;  %v4223_v55 = vpack.c.bf16 %v19107_v13, %v4219_v53 }
 0x2a6   : > { %v3052_v38 = vrot.slane %v3045_v46, %v18920_v51  ;;  %v3086_v1 = vrot.slane %v3079_v42, %v18920_v51  ;;  %v3219_v27 = vshrl.u32 %v3165_v19, 16  ;;  %v3236_v61 = vor.u32 %v3235_v5, %v3231_v57  ;;  %v16122_v47 = vld [vmem:[%s23687_s5 + $0x90] ss:$12 sps:$4 sm:$0xff]  }
 0x2a7   : > { %v3905_v14 = vrot.slane %v3848_v35, 1  ;;  %v4669_v24 = vshrl.u32 %v4599_v0, 16  ;;  %v4672_v6 = vshll.u32 %v4599_v0, 16  ;;  %v4652_v3 = vshrl.u32 %v4598_v62, 16 }
 0x2a8   : > { %v3059_v20 = vrot.slane %v3052_v38, %v18920_v51  ;;  %v3093_v9 = vrot.slane %v3086_v1, %v18920_v51  ;;  %v3224_v16 = vor.u32 %v3223_v50, %v3219_v27  ;;  %v4655_v29 = vshll.u32 %v4598_v62, 16  ;;  %v3104_v62 = vld [vmem:[#allocation3 + $0x8] sm:$0xff] }
 0x2a9   : > { %v4283_v19 = vrot.slane %v4224_v45, 3  ;;  %v4280_v38 = vrot.slane %v4223_v55, 3  ;;  %v4674_v5 = vrot.slane %v4672_v6, 4  ;;  %v4654_v57 = vrot.slane %v4652_v3, 3  ;;  %v16133_v3 = vld [vmem:[%s23687_s5 + $0x68] ss:$12 sps:$4 sm:$0xff]  }
 0x2aa   : > { %3062 = vst.msk [vmem:[#allocation3 + $0x31] ss:$8 sm:$0x3] %vm19023_vm7, %v3059_v20  ;;  %v3064_v17 = vcombine.high %v3059_v20, %v3059_v20  ;;  %3096 = vst.msk [vmem:[#allocation3 + $0x33] ss:$8 sm:$0x3] %vm19023_vm7, %v3093_v9  ;;  %v3098_v12 = vcombine.high %v3093_v9, %v3093_v9 }
 0x2ab   : > { %v16125_v9 = vld [vmem:[%s23687_s5 + $0x98] ss:$12 sps:$4 sm:$0xff]   ;;  %v23769_v50 = vmov 0   ;;  %v4657_v0 = vrot.slane %v4655_v29, 4 }
 0x2ac   : > { %3067 = vst.msk [vmem:[#allocation3 + $0x32] ss:$8 sm:$0x3] %vm19023_vm7, %v3064_v17  ;;  %3101 = vst.msk [vmem:[#allocation3 + $0x34] ss:$8 sm:$0x3] %vm19023_vm7, %v3098_v12 }
 0x2ad   : > { %v19131_v34 = vld [vmem:[#allocation3 + $0x28] sm:$0xff]  ;;  %v19133_v7 = vld [vmem:[#allocation3 + $0x20] sm:$0xff]  ;;  %v4671_v12 = vrot.slane %v4669_v24, 3  ;;  %v4658_v6 = vor.u32 %v4657_v0, %v4654_v57 }
 0x2ae   : > { %v3168_v59 = vpack.c.bf16 %v3164_v21, %v19131_v34  ;;  %v19137_v36 = vpack.c.bf16 %v3163_v26, %v19133_v7  ;;  %v19143_v33 = vpack.c.bf16 %v19131_v34, %v19105_v58  ;;  %v19147_v41 = vpack.c.bf16 %v19133_v7, %v19107_v13  ;;  %v16128_v21 = vld [vmem:[%s23687_s5 + $0x7c] ss:$12 sps:$4 sm:$0xff]  }
 0x2af   : > { %v16144_v0 = vld [vmem:[%s23687_s5 + $0x1c] ss:$12 sps:$4 sm:$0xff]  }
 0x2b0   : > { %v3238_v48 = vshll.u32 %v3168_v59, 16  ;;  %v3226_v30 = vshll.u32 %v19137_v36, 16  ;;  %v3245_v32 = vshrl.u32 %v3168_v59, 16  ;;  %v3242_v22 = vshrl.u32 %v19137_v36, 16 }
 0x2b1   : > { %v3846_v25 = vld [vmem:[#allocation3 + $0x30] sm:$0x3] }
 0x2b2   : > { %v3240_v18 = vrot.slane %v3238_v48, 1  ;;  %v3228_v23 = vrot.slane %v3226_v30, 1  ;;  %v3850_v44 = vpack.c.bf16 %v3846_v25, %v19133_v7  ;;  %v3110_v25 = vpack.c.bf16 %v19105_v58, %v3104_v62  ;;  %v16150_v62 = vld [vmem:[%s23687_s5 + $0x108] ss:$12 sps:$4 sm:$0xff]  }
 0x2b3   : > { %v4222_v31 = vld [vmem:[#allocation3 + $0x38] sm:$0x3f]  ;;  %v4221_v2 = vld [vmem:[#allocation3 + $0x30] sm:$0x3f] }
 0x2b4   : > { %v3241_v37 = vsel %vm3217_vm8, %v3236_v61, %v3240_v18  ;;  %v3229_v8 = vsel %vm3217_vm8, %v3224_v16, %v3228_v23  ;;  %v3247_v28 = vor.u32 %v3245_v32, %v3240_v18  ;;  %v19170_v46 = vrot.slane %v3850_v44, 1  ;;  %v4597_v1 = vld [vmem:[#allocation3 + $0x38] sm:$0x7f]  ;;  %v4596_v20 = vld [vmem:[#allocation3 + $0x30] sm:$0x7f]  ;;  %v5356_v16 = vld [vmem:[#allocation3 + $0x28] sm:$0xff] }
 0x2b5   : > { %14644 = vmatprep.mubr.msk.bf16.mxu1 %vm550_vm1, %v3241_v37  ;;  %14646 = vmatprep.mubr.msk.bf16.mxu0 %vm550_vm1, %v3241_v37  ;;  %v4226_v42 = vpack.c.bf16 %v4222_v31, %v19131_v34  ;;  %v4225_v15 = vpack.c.bf16 %v4221_v2, %v19133_v7  ;;  %v4601_v26 = vpack.c.bf16 %v4597_v1, %v19131_v34  ;;  %v16132_v61 = vld [vmem:[%s23687_s5 + $0x64] ss:$12 sps:$4 sm:$0xff]   ;;  %v6132_v44 = vld [vmem:[#allocation3 + $0x18] sm:$0xc0]  ;;  %v6131_v31 = vld [vmem:[#allocation3 + $0x10] sm:$0xc0] }
 0x2b6   : > { %3481 = vmatmul.mubr.bf16.vlgmr.msra.gmra.mxu1 %v3229_v8  ;;  %3532 = vmatmul.mubr.bf16.vlgmr.msra.gmra.mxu0 %v3229_v8  ;;  %v19179_v54 = vsel %vm3904_vm9, %v3905_v14, %v19170_v46  ;;  %v4600_v59 = vpack.c.bf16 %v4596_v20, %v19133_v7  ;;  %v3244_v36 = vor.u32 %v3242_v22, %v3228_v23  ;;  %v5355_v32 = vld [vmem:[#allocation3 + $0x20] sm:$0xff]  ;;  %v6134_v23 = vld [vmem:[#allocation3 + $0x48] sm:$0x3f]  ;;  %v19217_v8 = vld [vmem:[#allocation3 + $0x38] sm:$0xff] }
 0x2b7   : > { %3746 = vmatpush1.bf16.msra.mxu1 %v16118_v60  ;;  %3797 = vmatpush1.bf16.msra.mxu0 %v16121_v4  ;;  %v19181_v43 = vrot.slane %v4226_v42, 3  ;;  %v19183_v17 = vrot.slane %v4225_v15, 3  ;;  %v4677_v48 = vshrl.u32 %v4601_v26, 16  ;;  %v4680_v27 = vshll.u32 %v4601_v26, 16  ;;  %v6133_v14 = vld [vmem:[#allocation3 + $0x40] sm:$0x3f] }
 0x2b8   : > { %14645 = vmatprep.mubr.msk.bf16.mxu1 %vm550_vm1, %v3247_v28  ;;  %14647 = vmatprep.mubr.msk.bf16.mxu0 %vm550_vm1, %v3247_v28  ;;  %v4660_v30 = vshrl.u32 %v4600_v59, 16  ;;  %v4663_v53 = vshll.u32 %v4600_v59, 16  ;;  %v4675_v4 = vor.u32 %v4674_v5, %v4671_v12  ;;  %v4993_v28 = vld [vmem:[#allocation3 + $0x30] sm:$0xff]  ;;  %v16130_v2 = vld [vmem:[%s23687_s5 + $0x60] ss:$12 sps:$4 sm:$0xff]  }
 0x2b9   : > { %3747 = vmatprep.subr.bf16.mxu1 %v16124_v11  ;;  %3798 = vmatprep.subr.bf16.mxu0 %v23769_v50  ;;  %v19199_v35 = vsel %vm4279_vm10, %v4283_v19, %v19181_v43  ;;  %v19203_v40 = vsel %vm4279_vm10, %v4280_v38, %v19183_v17  ;;  %v4679_v60 = vrot.slane %v4677_v48, 3  ;;  %v4682_v45 = vrot.slane %v4680_v27, 4  ;;  %v16136_v42 = vld [vmem:[%s23687_s5 + $0x4c] ss:$12 sps:$4 sm:$0xff]   ;;  %v16134_v1 = vld [vmem:[%s23687_s5 + $0x48] ss:$12 sps:$4 sm:$0xff]  }
 0x2ba   : > { %v4662_v55 = vrot.slane %v4660_v30, 3  ;;  %v4665_v18 = vrot.slane %v4663_v53, 4  ;;  %v6135_v11 = vpack.c.bf16 %v5355_v32, %v6131_v31  ;;  %v6138_v19 = vpack.c.bf16 %v6134_v23, %v19217_v8  ;;  %v16137_v20 = vld [vmem:[%s23687_s5 + $0x50] ss:$12 sps:$4 sm:$0xff]   ;;  %v16140_v5 = vld [vmem:[%s23687_s5 + $0x34] ss:$12 sps:$4 sm:$0xff]  }
 0x2bb   : > { %3748 = vmatpush1.bf16.msra.mxu1 %v16122_v47  ;;  %3799 = vmatpush1.bf16.msra.mxu0 %v16125_v9  ;;  %v19213_v24 = vor.u32 %v4682_v45, %v4679_v60  ;;  %v6136_v47 = vpack.c.bf16 %v5356_v16, %v6132_v44  ;;  %v6137_v38 = vpack.c.bf16 %v6133_v14, %v4993_v28  ;;  %v16141_v22 = vld [vmem:[%s23687_s5 + $0x38] ss:$12 sps:$4 sm:$0xff]   ;;  %v16145_v48 = vld [vmem:[%s23687_s5 + $0x20] ss:$12 sps:$4 sm:$0xff]   ;;  %v16149_v53 = vld [vmem:[%s23687_s5 + $0x8] ss:$12 sps:$4 sm:$0xff]  }
 0x2bc   : > { %3749 = vmatprep.subr.bf16.mxu1 %v16128_v21  ;;  %3800 = vmatprep.subr.bf16.mxu0 %v23769_v50  ;;  %v19215_v37 = vor.u32 %v4665_v18, %v4662_v55  ;;  %v19246_v12 = vrot.slane %v6138_v19, 3  ;;  %v6191_v21 = vrot.slane %v6135_v11, 3  ;;  %v16148_v27 = vld [vmem:[%s23687_s5 + $0x4] ss:$12 sps:$4 sm:$0xff]   ;;  %v16146_v30 = vld [vmem:[%s23687_s5] ss:$12 sps:$4 sm:$0xff]  }
 0x2bd   : > { %v19232_v15 = vsel %vm4650_vm11, %v4675_v4, %v19213_v24  ;;  %v6194_v9 = vrot.slane %v6136_v47, 3  ;;  %v19248_v26 = vrot.slane %v6137_v38, 3  ;;  %v16156_v60 = vld [vmem:[%s23687_s5 + $0xf4] ss:$12 sps:$4 sm:$0xff]   ;;  %v16154_v45 = vld [vmem:[%s23687_s5 + $0xf0] ss:$12 sps:$4 sm:$0xff]  }
 0x2be   : > { %3491 = vmatmul.mubr.bf16.gmra.mxu1 %v3244_v36  ;;  %3540 = vmatmul.mubr.bf16.gmra.mxu0 %v3244_v36  ;;  %v19236_v29 = vsel %vm4650_vm11, %v4658_v6, %v19215_v37  ;;  %v16152_v36 = vld [vmem:[%s23687_s5 + $0x10c] ss:$12 sps:$4 sm:$0xff]   ;;  %v16160_v18 = vld [vmem:[%s23687_s5 + $0xdc] ss:$12 sps:$4 sm:$0xff]   ;;  %v3103_v14 = vld [vmem:[#allocation3] sm:$0xff] }
 0x2bf   : > { %3750 = vmatpush1.bf16.msra.mxu1 %v16126_v39  ;;  %3801 = vmatpush1.bf16.msra.mxu0 %v16129_v63  ;;  %v19256_v59 = vsel %vm4279_vm10, %v6194_v9, %v19246_v12  ;;  %v19260_v57 = vsel %vm4279_vm10, %v6191_v21, %v19248_v26  ;;  %v16138_v39 = vld [vmem:[%s23687_s5 + $0x30] ss:$12 sps:$4 sm:$0xff]   ;;  %v16142_v63 = vld [vmem:[%s23687_s5 + $0x18] ss:$12 sps:$4 sm:$0xff]   ;;  %v16161_v32 = vld [vmem:[%s23687_s5 + $0xe0] ss:$12 sps:$4 sm:$0xff]   ;;  %v3109_v28 = vpack.c.bf16 %v19107_v13, %v3103_v14 }
 0x2c0   : > { %14684 = vmatprep.mubr.msk.bf16.mxu1 %vm550_vm1, %v3110_v25  ;;  %14686 = vmatprep.mubr.msk.bf16.mxu0 %vm550_vm1, %v3110_v25  ;;  %v16157_v55 = vld [vmem:[%s23687_s5 + $0xf8] ss:$12 sps:$4 sm:$0xff]   ;;  %v16162_v4 = vld [vmem:[%s23687_s5 + $0xc0] ss:$12 sps:$4 sm:$0xff]   ;;  %v16165_v44 = vld [vmem:[%s23687_s5 + $0xc8] ss:$12 sps:$4 sm:$0xff]  }
 0x2c1   : > { %3751 = vmatprep.subr.bf16.mxu1 %v16132_v61  ;;  %3802 = vmatprep.subr.bf16.mxu0 %v23769_v50  ;;  %v16153_v61 = vld [vmem:[%s23687_s5 + $0x110] ss:$12 sps:$4 sm:$0xff]   ;;  %v16158_v16 = vld [vmem:[%s23687_s5 + $0xd8] ss:$12 sps:$4 sm:$0xff]   ;;  %v16166_v31 = vld [vmem:[%s23687_s5 + $0x2e8] ss:$12 sps:$4 sm:$0xff]  }
 0x2c2   : > { %v16164_v25 = vld [vmem:[%s23687_s5 + $0xc4] ss:$12 sps:$4 sm:$0xff]   ;;  %v16168_v23 = vld [vmem:[%s23687_s5 + $0x2ec] ss:$12 sps:$4 sm:$0xff]   ;;  %v16172_v47 = vld [vmem:[%s23687_s5 + $0x2d4] ss:$12 sps:$4 sm:$0xff]  }
 0x2c3   : > { %3752 = vmatpush1.bf16.msra.mxu1 %v16130_v2  ;;  %3803 = vmatpush1.bf16.msra.mxu0 %v16133_v3  ;;  %v3847_v6 = vld [vmem:[#allocation3 + $0x38] sm:$0x3]  ;;  %v16169_v2 = vld [vmem:[%s23687_s5 + $0x2f0] ss:$12 sps:$4 sm:$0xff]   ;;  %v3112_v3 = vpack.c.bf16 %v19131_v34, %v19131_v34  ;;  %v3845_v11 = vld [vmem:[#allocation3 + $0x8] sm:$0xfc] }
 0x2c4   : > { %3753 = vmatprep.subr.bf16.mxu1 %v16136_v42  ;;  %3804 = vmatprep.subr.bf16.mxu0 %v23769_v50  ;;  %v3851_v13 = vpack.c.bf16 %v3847_v6, %v19131_v34  ;;  %v16170_v42 = vld [vmem:[%s23687_s5 + $0x2d0] ss:$12 sps:$4 sm:$0xff]   ;;  %v16173_v19 = vld [vmem:[%s23687_s5 + $0x2d8] ss:$12 sps:$4 sm:$0xff]   ;;  %v3849_v38 = vpack.c.bf16 %v19105_v58, %v3845_v11  ;;  %v16177_v58 = vld [vmem:[%s23687_s5 + $0x2c0] ss:$12 sps:$4 sm:$0xff]  }
 0x2c5   : > { %v16176_v34 = vld [vmem:[%s23687_s5 + $0x2bc] ss:$12 sps:$4 sm:$0xff]   ;;  %v16174_v9 = vld [vmem:[%s23687_s5 + $0x2b8] ss:$12 sps:$4 sm:$0xff]   ;;  %v16209_v6 = vld [vmem:[%s23687_s5 + $0x320] ss:$12 sps:$4 sm:$0xff]  }
 0x2c6   : > { %v3908_v21 = vrot.slane %v3849_v38, 1  ;;  %v16206_v14 = vld [vmem:[%s23687_s5 + $0x318] ss:$12 sps:$4 sm:$0xff]   ;;  %v16220_v11 = vld [vmem:[%s23687_s5 + $0x3f4] ss:$12 sps:$4 sm:$0xff]  }
 0x2c7   : > { %3754 = vmatpush1.bf16.msra.mxu1 %v16134_v1  ;;  %3805 = vmatpush1.bf16.msra.mxu0 %v16137_v20  ;;  %v19359_v1 = vrot.slane %v3851_v13, 1  ;;  %v3111_v20 = vpack.c.bf16 %v19133_v7, %v19133_v7  ;;  %v16217_v13 = vld [vmem:[%s23687_s5 + $0x410] ss:$12 sps:$4 sm:$0xff]   ;;  %v16222_v38 = vld [vmem:[%s23687_s5 + $0x3d8] ss:$12 sps:$4 sm:$0xff]  }
 0x2c8   : > { %3755 = vmatprep.subr.bf16.mxu1 %v16140_v5  ;;  %3806 = vmatprep.subr.bf16.mxu0 %v23769_v50  ;;  %v16180_v5 = vld [vmem:[%s23687_s5 + $0x2a4] ss:$12 sps:$4 sm:$0xff]  }
 0x2c9   : > { %v3910_v7 = vsel %vm3904_vm9, %v3908_v21, %v19359_v1  ;;  %v16233_v21 = vld [vmem:[%s23687_s5 + $0x3b0] ss:$12 sps:$4 sm:$0xff]  }
 0x2cb   : > { %3756 = vmatpush1.bf16.msra.mxu1 %v16138_v39  ;;  %3807 = vmatpush1.bf16.msra.mxu0 %v16141_v22  ;;  %v16178_v39 = vld [vmem:[%s23687_s5 + $0x2a0] ss:$12 sps:$4 sm:$0xff]   ;;  %v16181_v22 = vld [vmem:[%s23687_s5 + $0x2a8] ss:$12 sps:$4 sm:$0xff]  }
 0x2cc   : > { %3757 = vmatprep.subr.bf16.mxu1 %v16144_v0  ;;  %3808 = vmatprep.subr.bf16.mxu0 %v23769_v50  ;;  %v16184_v0 = vld [vmem:[%s23687_s5 + $0x28c] ss:$12 sps:$4 sm:$0xff]  }
 0x2cf   : > { %3758 = vmatpush1.bf16.msra.mxu1 %v16142_v63  ;;  %3809 = vmatpush1.bf16.msra.mxu0 %v16145_v48  ;;  %v16182_v63 = vld [vmem:[%s23687_s5 + $0x288] ss:$12 sps:$4 sm:$0xff]   ;;  %v16185_v48 = vld [vmem:[%s23687_s5 + $0x290] ss:$12 sps:$4 sm:$0xff]  }
 0x2d0   : > { %3759 = vmatprep.subr.bf16.mxu1 %v16148_v27  ;;  %3810 = vmatprep.subr.bf16.mxu0 %v23769_v50  ;;  %v16188_v27 = vld [vmem:[%s23687_s5 + $0x274] ss:$12 sps:$4 sm:$0xff]  }
 0x2d3   : > { %3760 = vmatpush1.bf16.msra.mxu1 %v16146_v30  ;;  %3811 = vmatpush1.bf16.msra.mxu0 %v16149_v53  ;;  %v16186_v30 = vld [vmem:[%s23687_s5 + $0x270] ss:$12 sps:$4 sm:$0xff]   ;;  %v16189_v53 = vld [vmem:[%s23687_s5 + $0x278] ss:$12 sps:$4 sm:$0xff]  }
 0x2d4   : > { %3769 = vmatprep.subr.bf16.mxu1 %v16152_v36  ;;  %3820 = vmatprep.subr.bf16.mxu0 %v23769_v50  ;;  %v16192_v36 = vld [vmem:[%s23687_s5 + $0x25c] ss:$12 sps:$4 sm:$0xff]  }
 0x2d7   : > { %3770 = vmatpush2.bf16.msra.mxu1 %v16150_v62  ;;  %3821 = vmatpush2.bf16.msra.mxu0 %v16153_v61  ;;  %v16190_v62 = vld [vmem:[%s23687_s5 + $0x258] ss:$12 sps:$4 sm:$0xff]   ;;  %v16193_v61 = vld [vmem:[%s23687_s5 + $0x260] ss:$12 sps:$4 sm:$0xff]  }
 0x2d8   : > { %3771 = vmatprep.subr.bf16.mxu1 %v16156_v60  ;;  %3822 = vmatprep.subr.bf16.mxu0 %v23769_v50  ;;  %v16196_v60 = vld [vmem:[%s23687_s5 + $0x244] ss:$12 sps:$4 sm:$0xff]  }
 0x2db   : > { %3772 = vmatpush2.bf16.msra.mxu1 %v16154_v45  ;;  %3823 = vmatpush2.bf16.msra.mxu0 %v16157_v55  ;;  %v16194_v45 = vld [vmem:[%s23687_s5 + $0x240] ss:$12 sps:$4 sm:$0xff]   ;;  %v16197_v55 = vld [vmem:[%s23687_s5 + $0x248] ss:$12 sps:$4 sm:$0xff]  }
 0x2dc   : > { %3773 = vmatprep.subr.bf16.mxu1 %v16160_v18  ;;  %3824 = vmatprep.subr.bf16.mxu0 %v23769_v50  ;;  %v16200_v18 = vld [vmem:[%s23687_s5 + $0x34c] ss:$12 sps:$4 sm:$0xff]  }
 0x2df   : > { %3774 = vmatpush2.bf16.msra.mxu1 %v16158_v16  ;;  %3825 = vmatpush2.bf16.msra.mxu0 %v16161_v32  ;;  %v16198_v16 = vld [vmem:[%s23687_s5 + $0x348] ss:$12 sps:$4 sm:$0xff]   ;;  %v16201_v32 = vld [vmem:[%s23687_s5 + $0x350] ss:$12 sps:$4 sm:$0xff]  }
 0x2e0   : > { %3775 = vmatprep.subr.bf16.mxu1 %v16164_v25  ;;  %3826 = vmatprep.subr.bf16.mxu0 %v23769_v50  ;;  %v16204_v25 = vld [vmem:[%s23687_s5 + $0x334] ss:$12 sps:$4 sm:$0xff]  }
 0x2e3   : > { %3776 = vmatpush2.bf16.msra.mxu1 %v16162_v4  ;;  %3827 = vmatpush2.bf16.msra.mxu0 %v16165_v44  ;;  %v16202_v4 = vld [vmem:[%s23687_s5 + $0x330] ss:$12 sps:$4 sm:$0xff]   ;;  %v16205_v44 = vld [vmem:[%s23687_s5 + $0x338] ss:$12 sps:$4 sm:$0xff]  }
 0x2e4   : > { %4111 = vmatprep.subr.bf16.mxu1 %v16168_v23  ;;  %4162 = vmatprep.subr.bf16.mxu0 %v23769_v50  ;;  %v16208_v23 = vld [vmem:[%s23687_s5 + $0x31c] ss:$12 sps:$4 sm:$0xff]  }
 0x2e6   : > { %3778 = vmatmul.mubr.bf16.vlgmr.msra.gmra.mxu1 %v3109_v28  ;;  %3829 = vmatmul.mubr.bf16.vlgmr.msra.gmra.mxu0 %v3109_v28  ;;  %v16212_v28 = vld [vmem:[%s23687_s5 + $0x304] ss:$12 sps:$4 sm:$0xff]  }
 0x2e7   : > { %14685 = vmatprep.mubr.msk.bf16.mxu1 %vm550_vm1, %v3112_v3  ;;  %14687 = vmatprep.mubr.msk.bf16.mxu0 %vm550_vm1, %v3112_v3  ;;  %v16216_v3 = vld [vmem:[%s23687_s5 + $0x40c] ss:$12 sps:$4 sm:$0xff]  }
 0x2e8   : > { %4112 = vmatpush1.bf16.msra.mxu1 %v16166_v31  ;;  %4163 = vmatpush1.bf16.msra.mxu0 %v16169_v2  ;;  %v16210_v31 = vld [vmem:[%s23687_s5 + $0x300] ss:$12 sps:$4 sm:$0xff]   ;;  %v16213_v2 = vld [vmem:[%s23687_s5 + $0x308] ss:$12 sps:$4 sm:$0xff]  }
 0x2e9   : > { %4113 = vmatprep.subr.bf16.mxu1 %v16172_v47  ;;  %4164 = vmatprep.subr.bf16.mxu0 %v23769_v50  ;;  %v16214_v47 = vld [vmem:[%s23687_s5 + $0x408] ss:$12 sps:$4 sm:$0xff]  }
 0x2ec   : > { %4114 = vmatpush1.bf16.msra.mxu1 %v16170_v42  ;;  %4165 = vmatpush1.bf16.msra.mxu0 %v16173_v19  ;;  %v16218_v42 = vld [vmem:[%s23687_s5 + $0x3f0] ss:$12 sps:$4 sm:$0xff]   ;;  %v16221_v19 = vld [vmem:[%s23687_s5 + $0x3f8] ss:$12 sps:$4 sm:$0xff]  }
 0x2ed   : > { %4115 = vmatprep.subr.bf16.mxu1 %v16176_v34  ;;  %4166 = vmatprep.subr.bf16.mxu0 %v23769_v50  ;;  %v16225_v34 = vld [vmem:[%s23687_s5 + $0x3e0] ss:$12 sps:$4 sm:$0xff]  }
 0x2ee   : > { %3788 = vmatmul.mubr.bf16.gmra.mxu1 %v3111_v20  ;;  %3837 = vmatmul.mubr.bf16.gmra.mxu0 %v3111_v20  ;;  %v16226_v20 = vld [vmem:[%s23687_s5 + $0x3c0] ss:$12 sps:$4 sm:$0xff]  }
 0x2ef   : > { %14724 = vmatprep.mubr.msk.bf16.mxu1 %vm550_vm1, %v3910_v7  ;;  %14726 = vmatprep.mubr.msk.bf16.mxu0 %vm550_vm1, %v3910_v7  ;;  %v16237_v7 = vld [vmem:[%s23687_s5 + $0x398] ss:$12 sps:$4 sm:$0xff]  }
 0x2f0   : > { %4116 = vmatpush1.bf16.msra.mxu1 %v16174_v9  ;;  %4167 = vmatpush1.bf16.msra.mxu0 %v16177_v58  ;;  %v16229_v9 = vld [vmem:[%s23687_s5 + $0x3c8] ss:$12 sps:$4 sm:$0xff]  }
 0x2f1   : > { %4117 = vmatprep.subr.bf16.mxu1 %v16180_v5  ;;  %4168 = vmatprep.subr.bf16.mxu0 %v23769_v50  ;;  %v16236_v58 = vld [vmem:[%s23687_s5 + $0x394] ss:$12 sps:$4 sm:$0xff]   ;;  %v16234_v5 = vld [vmem:[%s23687_s5 + $0x390] ss:$12 sps:$4 sm:$0xff]  }
 0x2f4   : > { %4118 = vmatpush1.bf16.msra.mxu1 %v16178_v39  ;;  %4169 = vmatpush1.bf16.msra.mxu0 %v16181_v22  ;;  %v16240_v39 = vld [vmem:[%s23687_s5 + $0x37c] ss:$12 sps:$4 sm:$0xff]   ;;  %v16238_v22 = vld [vmem:[%s23687_s5 + $0x378] ss:$12 sps:$4 sm:$0xff]  }
 0x2f5   : > { %4119 = vmatprep.subr.bf16.mxu1 %v16184_v0  ;;  %4170 = vmatprep.subr.bf16.mxu0 %v23769_v50  ;;  %v16241_v0 = vld [vmem:[%s23687_s5 + $0x380] ss:$12 sps:$4 sm:$0xff]  }
 0x2f8   : > { %4120 = vmatpush1.bf16.msra.mxu1 %v16182_v63  ;;  %4171 = vmatpush1.bf16.msra.mxu0 %v16185_v48  ;;  %v16244_v63 = vld [vmem:[%s23687_s5 + $0x364] ss:$12 sps:$4 sm:$0xff]   ;;  %v16242_v48 = vld [vmem:[%s23687_s5 + $0x360] ss:$12 sps:$4 sm:$0xff]  }
 0x2f9   : > { %4121 = vmatprep.subr.bf16.mxu1 %v16188_v27  ;;  %4172 = vmatprep.subr.bf16.mxu0 %v23769_v50  ;;  %v16245_v27 = vld [vmem:[%s23687_s5 + $0x368] ss:$12 sps:$4 sm:$0xff]  }
 0x2fc   : > { %4122 = vmatpush1.bf16.msra.mxu1 %v16186_v30  ;;  %4173 = vmatpush1.bf16.msra.mxu0 %v16189_v53  ;;  %v16248_v30 = vld [vmem:[%s23687_s5 + $0x46c] ss:$12 sps:$4 sm:$0xff]   ;;  %v16246_v53 = vld [vmem:[%s23687_s5 + $0x468] ss:$12 sps:$4 sm:$0xff]  }
 0x2fd   : > { %4123 = vmatprep.subr.bf16.mxu1 %v16192_v36  ;;  %4174 = vmatprep.subr.bf16.mxu0 %v23769_v50  ;;  %v16249_v36 = vld [vmem:[%s23687_s5 + $0x470] ss:$12 sps:$4 sm:$0xff]  }
 0x300   : > { %4124 = vmatpush1.bf16.msra.mxu1 %v16190_v62  ;;  %4175 = vmatpush1.bf16.msra.mxu0 %v16193_v61  ;;  %v16252_v62 = vld [vmem:[%s23687_s5 + $0x454] ss:$12 sps:$4 sm:$0xff]   ;;  %v16250_v61 = vld [vmem:[%s23687_s5 + $0x450] ss:$12 sps:$4 sm:$0xff]  }
 0x301   : > { %4125 = vmatprep.subr.bf16.mxu1 %v16196_v60  ;;  %4176 = vmatprep.subr.bf16.mxu0 %v23769_v50  ;;  %v16253_v60 = vld [vmem:[%s23687_s5 + $0x458] ss:$12 sps:$4 sm:$0xff]  }
 0x304   : > { %4126 = vmatpush1.bf16.msra.mxu1 %v16194_v45  ;;  %4177 = vmatpush1.bf16.msra.mxu0 %v16197_v55  ;;  %v16256_v45 = vld [vmem:[%s23687_s5 + $0x43c] ss:$12 sps:$4 sm:$0xff]   ;;  %v16254_v55 = vld [vmem:[%s23687_s5 + $0x438] ss:$12 sps:$4 sm:$0xff]  }
 0x305   : > { %4135 = vmatprep.subr.bf16.mxu1 %v16200_v18  ;;  %4186 = vmatprep.subr.bf16.mxu0 %v23769_v50  ;;  %v16257_v18 = vld [vmem:[%s23687_s5 + $0x440] ss:$12 sps:$4 sm:$0xff]  }
 0x308   : > { %4136 = vmatpush2.bf16.msra.mxu1 %v16198_v16  ;;  %4187 = vmatpush2.bf16.msra.mxu0 %v16201_v32  ;;  %v16260_v16 = vld [vmem:[%s23687_s5 + $0x424] ss:$12 sps:$4 sm:$0xff]   ;;  %v16258_v32 = vld [vmem:[%s23687_s5 + $0x420] ss:$12 sps:$4 sm:$0xff]  }
 0x309   : > { %4137 = vmatprep.subr.bf16.mxu1 %v16204_v25  ;;  %4188 = vmatprep.subr.bf16.mxu0 %v23769_v50  ;;  %v16261_v25 = vld [vmem:[%s23687_s5 + $0x428] ss:$12 sps:$4 sm:$0xff]  }
 0x30c   : > { %4138 = vmatpush2.bf16.msra.mxu1 %v16202_v4  ;;  %4189 = vmatpush2.bf16.msra.mxu0 %v16205_v44  ;;  %v16264_v4 = vld [vmem:[%s23687_s5 + $0x52c] ss:$12 sps:$4 sm:$0xff]   ;;  %v16262_v44 = vld [vmem:[%s23687_s5 + $0x528] ss:$12 sps:$4 sm:$0xff]  }
 0x30d   : > { %4139 = vmatprep.subr.bf16.mxu1 %v16208_v23  ;;  %4190 = vmatprep.subr.bf16.mxu0 %v23769_v50  ;;  %v16265_v23 = vld [vmem:[%s23687_s5 + $0x530] ss:$12 sps:$4 sm:$0xff]  }
 0x310   : > { %4140 = vmatpush2.bf16.msra.mxu1 %v16206_v14  ;;  %4191 = vmatpush2.bf16.msra.mxu0 %v16209_v6  ;;  %v16268_v14 = vld [vmem:[%s23687_s5 + $0x514] ss:$12 sps:$4 sm:$0xff]   ;;  %v16266_v6 = vld [vmem:[%s23687_s5 + $0x510] ss:$12 sps:$4 sm:$0xff]  }
 0x311   : > { %4141 = vmatprep.subr.bf16.mxu1 %v16212_v28  ;;  %4192 = vmatprep.subr.bf16.mxu0 %v23769_v50  ;;  %v16269_v28 = vld [vmem:[%s23687_s5 + $0x518] ss:$12 sps:$4 sm:$0xff]  }
 0x314   : > { %4142 = vmatpush2.bf16.msra.mxu1 %v16210_v31  ;;  %4193 = vmatpush2.bf16.msra.mxu0 %v16213_v2  ;;  %v16273_v31 = vld [vmem:[%s23687_s5 + $0x500] ss:$12 sps:$4 sm:$0xff]   ;;  %v16276_v2 = vld [vmem:[%s23687_s5 + $0x4e4] ss:$12 sps:$4 sm:$0xff]  }
 0x315   : > { %4486 = vmatprep.subr.bf16.mxu1 %v16216_v3  ;;  %4537 = vmatprep.subr.bf16.mxu0 %v23769_v50  ;;  %v16274_v3 = vld [vmem:[%s23687_s5 + $0x4e0] ss:$12 sps:$4 sm:$0xff]  }
 0x317   : > { %4144 = vmatmul.mubr.bf16.vlgmr.msra.gmra.mxu1 %v19179_v54  ;;  %4195 = vmatmul.mubr.bf16.vlgmr.msra.gmra.mxu0 %v19179_v54  ;;  %v16224_v54 = vld [vmem:[%s23687_s5 + $0x3dc] ss:$12 sps:$4 sm:$0xff]  }
 0x318   : > { %14725 = vmatprep.mubr.msk.bf16.mxu1 %vm550_vm1, %v19359_v1  ;;  %14727 = vmatprep.mubr.msk.bf16.mxu0 %vm550_vm1, %v19359_v1  ;;  %v16228_v1 = vld [vmem:[%s23687_s5 + $0x3c4] ss:$12 sps:$4 sm:$0xff]  }
 0x319   : > { %4487 = vmatpush1.bf16.msra.mxu1 %v16214_v47  ;;  %4538 = vmatpush1.bf16.msra.mxu0 %v16217_v13  ;;  %v16277_v47 = vld [vmem:[%s23687_s5 + $0x4e8] ss:$12 sps:$4 sm:$0xff]   ;;  %v16281_v13 = vld [vmem:[%s23687_s5 + $0x4d0] ss:$12 sps:$4 sm:$0xff]  }
 0x31a   : > { %4488 = vmatprep.subr.bf16.mxu1 %v16220_v11  ;;  %4539 = vmatprep.subr.bf16.mxu0 %v23769_v50  ;;  %v16284_v11 = vld [vmem:[%s23687_s5 + $0x4b4] ss:$12 sps:$4 sm:$0xff]  }
 0x31d   : > { %4489 = vmatpush1.bf16.msra.mxu1 %v16218_v42  ;;  %4540 = vmatpush1.bf16.msra.mxu0 %v16221_v19  ;;  %v16282_v42 = vld [vmem:[%s23687_s5 + $0x4b0] ss:$12 sps:$4 sm:$0xff]   ;;  %v16285_v19 = vld [vmem:[%s23687_s5 + $0x4b8] ss:$12 sps:$4 sm:$0xff]  }
 0x31e   : > { %4490 = vmatprep.subr.bf16.mxu1 %v16224_v54  ;;  %4541 = vmatprep.subr.bf16.mxu0 %v23769_v50  ;;  %v16288_v54 = vld [vmem:[%s23687_s5 + $0x49c] ss:$12 sps:$4 sm:$0xff]  }
 0x31f   : > { %4154 = vmatmul.mubr.bf16.gmra.mxu1 %v19170_v46  ;;  %4203 = vmatmul.mubr.bf16.gmra.mxu0 %v19170_v46  ;;  %v16232_v46 = vld [vmem:[%s23687_s5 + $0x3ac] ss:$12 sps:$4 sm:$0xff]  }
 0x320   : > { %14764 = vmatprep.mubr.msk.bf16.mxu1 %vm550_vm1, %v19199_v35  ;;  %14766 = vmatprep.mubr.msk.bf16.mxu0 %vm550_vm1, %v19199_v35  ;;  %v16230_v35 = vld [vmem:[%s23687_s5 + $0x3a8] ss:$12 sps:$4 sm:$0xff]  }
 0x321   : > { %4491 = vmatpush1.bf16.msra.mxu1 %v16222_v38  ;;  %4542 = vmatpush1.bf16.msra.mxu0 %v16225_v34  ;;  %v16286_v38 = vld [vmem:[%s23687_s5 + $0x498] ss:$12 sps:$4 sm:$0xff]   ;;  %v16289_v34 = vld [vmem:[%s23687_s5 + $0x4a0] ss:$12 sps:$4 sm:$0xff]  }
 0x322   : > { %4492 = vmatprep.subr.bf16.mxu1 %v16228_v1  ;;  %4543 = vmatprep.subr.bf16.mxu0 %v23769_v50  ;;  %v16292_v1 = vld [vmem:[%s23687_s5 + $0x484] ss:$12 sps:$4 sm:$0xff]  }
 0x325   : > { %4493 = vmatpush1.bf16.msra.mxu1 %v16226_v20  ;;  %4544 = vmatpush1.bf16.msra.mxu0 %v16229_v9  ;;  %v16290_v20 = vld [vmem:[%s23687_s5 + $0x480] ss:$12 sps:$4 sm:$0xff]   ;;  %v16293_v9 = vld [vmem:[%s23687_s5 + $0x488] ss:$12 sps:$4 sm:$0xff]  }
 0x326   : > { %4494 = vmatprep.subr.bf16.mxu1 %v16232_v46  ;;  %4545 = vmatprep.subr.bf16.mxu0 %v23769_v50  ;;  %v16296_v46 = vld [vmem:[%s23687_s5 + $0x58c] ss:$12 sps:$4 sm:$0xff]  }
 0x329   : > { %4495 = vmatpush1.bf16.msra.mxu1 %v16230_v35  ;;  %4546 = vmatpush1.bf16.msra.mxu0 %v16233_v21  ;;  %v16294_v35 = vld [vmem:[%s23687_s5 + $0x588] ss:$12 sps:$4 sm:$0xff]   ;;  %v16297_v21 = vld [vmem:[%s23687_s5 + $0x590] ss:$12 sps:$4 sm:$0xff]  }
 0x32a   : > { %4496 = vmatprep.subr.bf16.mxu1 %v16236_v58  ;;  %4547 = vmatprep.subr.bf16.mxu0 %v23769_v50  ;;  %v16300_v58 = vld [vmem:[%s23687_s5 + $0x574] ss:$12 sps:$4 sm:$0xff]  }
 0x32d   : > { %4497 = vmatpush1.bf16.msra.mxu1 %v16234_v5  ;;  %4548 = vmatpush1.bf16.msra.mxu0 %v16237_v7  ;;  %v16298_v5 = vld [vmem:[%s23687_s5 + $0x570] ss:$12 sps:$4 sm:$0xff]   ;;  %v16301_v7 = vld [vmem:[%s23687_s5 + $0x578] ss:$12 sps:$4 sm:$0xff]  }
 0x32e   : > { %4498 = vmatprep.subr.bf16.mxu1 %v16240_v39  ;;  %4549 = vmatprep.subr.bf16.mxu0 %v23769_v50  ;;  %v16304_v39 = vld [vmem:[%s23687_s5 + $0x55c] ss:$12 sps:$4 sm:$0xff]  }
 0x331   : > { %4499 = vmatpush1.bf16.msra.mxu1 %v16238_v22  ;;  %4550 = vmatpush1.bf16.msra.mxu0 %v16241_v0  ;;  %v16302_v22 = vld [vmem:[%s23687_s5 + $0x558] ss:$12 sps:$4 sm:$0xff]   ;;  %v16305_v0 = vld [vmem:[%s23687_s5 + $0x560] ss:$12 sps:$4 sm:$0xff]  }
 0x332   : > { %4500 = vmatprep.subr.bf16.mxu1 %v16244_v63  ;;  %4551 = vmatprep.subr.bf16.mxu0 %v23769_v50  ;;  %v16308_v63 = vld [vmem:[%s23687_s5 + $0x544] ss:$12 sps:$4 sm:$0xff]  }
 0x335   : > { %4501 = vmatpush1.bf16.msra.mxu1 %v16242_v48  ;;  %4552 = vmatpush1.bf16.msra.mxu0 %v16245_v27  ;;  %v16306_v48 = vld [vmem:[%s23687_s5 + $0x540] ss:$12 sps:$4 sm:$0xff]   ;;  %v16309_v27 = vld [vmem:[%s23687_s5 + $0x548] ss:$12 sps:$4 sm:$0xff]  }
 0x336   : > { %4510 = vmatprep.subr.bf16.mxu1 %v16248_v30  ;;  %4561 = vmatprep.subr.bf16.mxu0 %v23769_v50  ;;  %v16312_v30 = vld [vmem:[%s23687_s5 + $0x64c] ss:$12 sps:$4 sm:$0xff]  }
 0x339   : > { %4511 = vmatpush2.bf16.msra.mxu1 %v16246_v53  ;;  %4562 = vmatpush2.bf16.msra.mxu0 %v16249_v36 }
 0x33a   : > { %4512 = vmatprep.subr.bf16.mxu1 %v16252_v62  ;;  %4563 = vmatprep.subr.bf16.mxu0 %v23769_v50  ;;  %v16310_v62 = vld [vmem:[%s23687_s5 + $0x648] ss:$12 sps:$4 sm:$0xff]  }
 0x33d   : > { %4513 = vmatpush2.bf16.msra.mxu1 %v16250_v61  ;;  %4564 = vmatpush2.bf16.msra.mxu0 %v16253_v60  ;;  %v16313_v61 = vld [vmem:[%s23687_s5 + $0x650] ss:$12 sps:$4 sm:$0xff]  }
 0x33e   : > { %4514 = vmatprep.subr.bf16.mxu1 %v16256_v45  ;;  %4565 = vmatprep.subr.bf16.mxu0 %v23769_v50 }
 0x341   : > { %4515 = vmatpush2.bf16.msra.mxu1 %v16254_v55  ;;  %4566 = vmatpush2.bf16.msra.mxu0 %v16257_v18  ;;  %v16316_v55 = vld [vmem:[%s23687_s5 + $0x634] ss:$12 sps:$4 sm:$0xff]  }
 0x342   : > { %4516 = vmatprep.subr.bf16.mxu1 %v16260_v16  ;;  %4567 = vmatprep.subr.bf16.mxu0 %v23769_v50 }
 0x345   : > { %4517 = vmatpush2.bf16.msra.mxu1 %v16258_v32  ;;  %4568 = vmatpush2.bf16.msra.mxu0 %v16261_v25  ;;  %v16314_v32 = vld [vmem:[%s23687_s5 + $0x630] ss:$12 sps:$4 sm:$0xff]  }
 0x346   : > { %4885 = vmatprep.subr.bf16.mxu1 %v16264_v4  ;;  %4936 = vmatprep.subr.bf16.mxu0 %v23769_v50  ;;  %v16320_v4 = vld [vmem:[%s23687_s5 + $0x61c] ss:$12 sps:$4 sm:$0xff]  }
 0x348   : > { %4519 = vmatmul.mubr.bf16.vlgmr.msra.gmra.mxu1 %v19203_v40  ;;  %4570 = vmatmul.mubr.bf16.vlgmr.msra.gmra.mxu0 %v19203_v40  ;;  %v16272_v40 = vld [vmem:[%s23687_s5 + $0x4fc] ss:$12 sps:$4 sm:$0xff]  }
 0x349   : > { %14765 = vmatprep.mubr.msk.bf16.mxu1 %vm550_vm1, %v19181_v43  ;;  %14767 = vmatprep.mubr.msk.bf16.mxu0 %vm550_vm1, %v19181_v43  ;;  %v16270_v43 = vld [vmem:[%s23687_s5 + $0x4f8] ss:$12 sps:$4 sm:$0xff]  }
 0x34a   : > { %4886 = vmatpush1.bf16.msra.mxu1 %v16262_v44  ;;  %4937 = vmatpush1.bf16.msra.mxu0 %v16265_v23 }
 0x34b   : > { %4887 = vmatprep.subr.bf16.mxu1 %v16268_v14  ;;  %4938 = vmatprep.subr.bf16.mxu0 %v23769_v50  ;;  %v16318_v14 = vld [vmem:[%s23687_s5 + $0x618] ss:$12 sps:$4 sm:$0xff]  }
 0x34e   : > { %4888 = vmatpush1.bf16.msra.mxu1 %v16266_v6  ;;  %4939 = vmatpush1.bf16.msra.mxu0 %v16269_v28  ;;  %v16321_v6 = vld [vmem:[%s23687_s5 + $0x620] ss:$12 sps:$4 sm:$0xff]  }
 0x34f   : > { %4889 = vmatprep.subr.bf16.mxu1 %v16272_v40  ;;  %4940 = vmatprep.subr.bf16.mxu0 %v23769_v50 }
 0x350   : > { %4529 = vmatmul.mubr.bf16.gmra.mxu1 %v19183_v17  ;;  %4578 = vmatmul.mubr.bf16.gmra.mxu0 %v19183_v17  ;;  %v16280_v17 = vld [vmem:[%s23687_s5 + $0x4cc] ss:$12 sps:$4 sm:$0xff]  }
 0x351   : > { %14804 = vmatprep.mubr.msk.bf16.mxu1 %vm550_vm1, %v19232_v15  ;;  %14806 = vmatprep.mubr.msk.bf16.mxu0 %vm550_vm1, %v19232_v15  ;;  %v16278_v15 = vld [vmem:[%s23687_s5 + $0x4c8] ss:$12 sps:$4 sm:$0xff]  }
 0x352   : > { %4890 = vmatpush1.bf16.msra.mxu1 %v16270_v43  ;;  %4941 = vmatpush1.bf16.msra.mxu0 %v16273_v31  ;;  %v16324_v43 = vld [vmem:[%s23687_s5 + $0x604] ss:$12 sps:$4 sm:$0xff]  }
 0x353   : > { %4891 = vmatprep.subr.bf16.mxu1 %v16276_v2  ;;  %4942 = vmatprep.subr.bf16.mxu0 %v23769_v50 }
 0x356   : > { %4892 = vmatpush1.bf16.msra.mxu1 %v16274_v3  ;;  %4943 = vmatpush1.bf16.msra.mxu0 %v16277_v47  ;;  %v16322_v3 = vld [vmem:[%s23687_s5 + $0x600] ss:$12 sps:$4 sm:$0xff]   ;;  %v16325_v47 = vld [vmem:[%s23687_s5 + $0x608] ss:$12 sps:$4 sm:$0xff]  }
 0x357   : > { %4893 = vmatprep.subr.bf16.mxu1 %v16280_v17  ;;  %4944 = vmatprep.subr.bf16.mxu0 %v23769_v50 }
 0x35a   : > { %4894 = vmatpush1.bf16.msra.mxu1 %v16278_v15  ;;  %4945 = vmatpush1.bf16.msra.mxu0 %v16281_v13  ;;  %v16326_v15 = vld [vmem:[%s23687_s5 + $0x5e8] ss:$12 sps:$4 sm:$0xff]   ;;  %v16329_v13 = vld [vmem:[%s23687_s5 + $0x5f0] ss:$12 sps:$4 sm:$0xff]  }
 0x35b   : > { %4895 = vmatprep.subr.bf16.mxu1 %v16284_v11  ;;  %4946 = vmatprep.subr.bf16.mxu0 %v23769_v50  ;;  %v16332_v11 = vld [vmem:[%s23687_s5 + $0x5d4] ss:$12 sps:$4 sm:$0xff]  }
 0x35e   : > { %4896 = vmatpush1.bf16.msra.mxu1 %v16282_v42  ;;  %4947 = vmatpush1.bf16.msra.mxu0 %v16285_v19  ;;  %v16330_v42 = vld [vmem:[%s23687_s5 + $0x5d0] ss:$12 sps:$4 sm:$0xff]   ;;  %v16333_v19 = vld [vmem:[%s23687_s5 + $0x5d8] ss:$12 sps:$4 sm:$0xff]  }
 0x35f   : > { %4897 = vmatprep.subr.bf16.mxu1 %v16288_v54  ;;  %4948 = vmatprep.subr.bf16.mxu0 %v23769_v50  ;;  %v16336_v54 = vld [vmem:[%s23687_s5 + $0x5bc] ss:$12 sps:$4 sm:$0xff]  }
 0x362   : > { %4898 = vmatpush1.bf16.msra.mxu1 %v16286_v38  ;;  %4949 = vmatpush1.bf16.msra.mxu0 %v16289_v34  ;;  %v16334_v38 = vld [vmem:[%s23687_s5 + $0x5b8] ss:$12 sps:$4 sm:$0xff]   ;;  %v16337_v34 = vld [vmem:[%s23687_s5 + $0x5c0] ss:$12 sps:$4 sm:$0xff]  }
 0x363   : > { %4899 = vmatprep.subr.bf16.mxu1 %v16292_v1  ;;  %4950 = vmatprep.subr.bf16.mxu0 %v23769_v50  ;;  %v16340_v1 = vld [vmem:[%s23687_s5 + $0x5a4] ss:$12 sps:$4 sm:$0xff]  }
 0x366   : > { %4900 = vmatpush1.bf16.msra.mxu1 %v16290_v20  ;;  %4951 = vmatpush1.bf16.msra.mxu0 %v16293_v9  ;;  %v16338_v20 = vld [vmem:[%s23687_s5 + $0x5a0] ss:$12 sps:$4 sm:$0xff]   ;;  %v16341_v9 = vld [vmem:[%s23687_s5 + $0x5a8] ss:$12 sps:$4 sm:$0xff]  }
 0x367   : > { %4909 = vmatprep.subr.bf16.mxu1 %v16296_v46  ;;  %4960 = vmatprep.subr.bf16.mxu0 %v23769_v50  ;;  %v16344_v46 = vld [vmem:[%s23687_s5 + $0x6ac] ss:$12 sps:$4 sm:$0xff]  }
 0x36a   : > { %4910 = vmatpush2.bf16.msra.mxu1 %v16294_v35  ;;  %4961 = vmatpush2.bf16.msra.mxu0 %v16297_v21  ;;  %v16342_v35 = vld [vmem:[%s23687_s5 + $0x6a8] ss:$12 sps:$4 sm:$0xff]   ;;  %v16345_v21 = vld [vmem:[%s23687_s5 + $0x6b0] ss:$12 sps:$4 sm:$0xff]  }
 0x36b   : > { %4911 = vmatprep.subr.bf16.mxu1 %v16300_v58  ;;  %4962 = vmatprep.subr.bf16.mxu0 %v23769_v50  ;;  %v16348_v58 = vld [vmem:[%s23687_s5 + $0x694] ss:$12 sps:$4 sm:$0xff]  }
 0x36e   : > { %4912 = vmatpush2.bf16.msra.mxu1 %v16298_v5  ;;  %4963 = vmatpush2.bf16.msra.mxu0 %v16301_v7  ;;  %v16346_v5 = vld [vmem:[%s23687_s5 + $0x690] ss:$12 sps:$4 sm:$0xff]   ;;  %v16349_v7 = vld [vmem:[%s23687_s5 + $0x698] ss:$12 sps:$4 sm:$0xff]  }
 0x36f   : > { %4913 = vmatprep.subr.bf16.mxu1 %v16304_v39  ;;  %4964 = vmatprep.subr.bf16.mxu0 %v23769_v50  ;;  %v16352_v39 = vld [vmem:[%s23687_s5 + $0x67c] ss:$12 sps:$4 sm:$0xff]  }
 0x372   : > { %4914 = vmatpush2.bf16.msra.mxu1 %v16302_v22  ;;  %4965 = vmatpush2.bf16.msra.mxu0 %v16305_v0  ;;  %v16350_v22 = vld [vmem:[%s23687_s5 + $0x678] ss:$12 sps:$4 sm:$0xff]   ;;  %v16353_v0 = vld [vmem:[%s23687_s5 + $0x680] ss:$12 sps:$4 sm:$0xff]  }
 0x373   : > { %4915 = vmatprep.subr.bf16.mxu1 %v16308_v63  ;;  %4966 = vmatprep.subr.bf16.mxu0 %v23769_v50  ;;  %v16356_v63 = vld [vmem:[%s23687_s5 + $0x664] ss:$12 sps:$4 sm:$0xff]  }
 0x376   : > { %4916 = vmatpush2.bf16.msra.mxu1 %v16306_v48  ;;  %4967 = vmatpush2.bf16.msra.mxu0 %v16309_v27  ;;  %v19731_v53 = vpop.f32.mrf.mxu1  ;;  %v19733_v36 = vpop.f32.mrf.mxu0  ;;  %v16354_v48 = vld [vmem:[%s23687_s5 + $0x660] ss:$12 sps:$4 sm:$0xff]   ;;  %v16357_v27 = vld [vmem:[%s23687_s5 + $0x668] ss:$12 sps:$4 sm:$0xff]  }
 0x377   : > { %5245 = vmatprep.subr.bf16.mxu1 %v16312_v30  ;;  %5296 = vmatprep.subr.bf16.mxu0 %v23769_v50  ;;  %v16360_v30 = vld [vmem:[%s23687_s5 + $0x76c] ss:$12 sps:$4 sm:$0xff]  }
 0x378   : > { %v19742_v60 = vpop.f32.mrf.mxu1  ;;  %v3535_v45 = vpop.f32.mrf.mxu0 }
 0x379   : > { %4918 = vmatmul.mubr.bf16.vlgmr.msra.gmra.mxu1 %v19236_v29  ;;  %4969 = vmatmul.mubr.bf16.vlgmr.msra.gmra.mxu0 %v19236_v29  ;;  %v16317_v29 = vld [vmem:[%s23687_s5 + $0x638] ss:$12 sps:$4 sm:$0xff]  }
 0x37a   : > { %14805 = vmatprep.mubr.msk.bf16.mxu1 %vm550_vm1, %v19213_v24  ;;  %14807 = vmatprep.mubr.msk.bf16.mxu0 %vm550_vm1, %v19213_v24  ;;  %v19753_v18 = vpop.f32.mrf.mxu1  ;;  %v19755_v16 = vpop.f32.mrf.mxu0 }
 0x37b   : > { %5246 = vmatpush1.bf16.msra.mxu1 %v16310_v62  ;;  %5297 = vmatpush1.bf16.msra.mxu0 %v16313_v61 }
 0x37c   : > { %5247 = vmatprep.subr.bf16.mxu1 %v16316_v55  ;;  %5298 = vmatprep.subr.bf16.mxu0 %v23769_v50  ;;  %v19764_v25 = vpop.f32.mrf.mxu1  ;;  %v3538_v24 = vpop.f32.mrf.mxu0 }
 0x37d   : > { %v16361_v24 = vld [vmem:[%s23687_s5 + $0x770] ss:$12 sps:$4 sm:$0xff]  }
 0x37e   : > { %v19769_v44 = vpop.f32.mrf.mxu1  ;;  %v19771_v23 = vpop.f32.mrf.mxu0 }
 0x37f   : > { %5248 = vmatpush1.bf16.msra.mxu1 %v16314_v32  ;;  %5299 = vmatpush1.bf16.msra.mxu0 %v16317_v29  ;;  %v5360_v32 = vld [vmem:[#allocation3 + $0x48] sm:$0xf] }
 0x380   : > { %5249 = vmatprep.subr.bf16.mxu1 %v16320_v4  ;;  %5300 = vmatprep.subr.bf16.mxu0 %v23769_v50  ;;  %v19780_v28 = vpop.f32.mrf.mxu1  ;;  %v3543_v40 = vpop.f32.mrf.mxu0  ;;  %v16358_v29 = vld [vmem:[%s23687_s5 + $0x768] ss:$12 sps:$4 sm:$0xff]  }
 0x381   : > { %4928 = vmatmul.mubr.bf16.gmra.mxu1 %v19215_v37  ;;  %4977 = vmatmul.mubr.bf16.gmra.mxu0 %v19215_v37 }
 0x382   : > { %14844 = vmatprep.mubr.msk.bf16.mxu1 %vm550_vm1, %v19143_v33  ;;  %14846 = vmatprep.mubr.msk.bf16.mxu0 %vm550_vm1, %v19143_v33  ;;  %v3496_v31 = vpop.f32.mrf.mxu1  ;;  %v3544_v2 = vpop.f32.mrf.mxu0  ;;  %v16328_v33 = vld [vmem:[%s23687_s5 + $0x5ec] ss:$12 sps:$4 sm:$0xff]  }
 0x383   : > { %5250 = vmatpush1.bf16.msra.mxu1 %v16318_v14  ;;  %5301 = vmatpush1.bf16.msra.mxu0 %v16321_v6  ;;  %v16364_v6 = vld [vmem:[%s23687_s5 + $0x754] ss:$12 sps:$4 sm:$0xff]   ;;  %v5364_v31 = vpack.c.bf16 %v5360_v32, %v19217_v8  ;;  %v16388_v32 = vld [vmem:[%s23687_s5 + $0x6c4] ss:$12 sps:$4 sm:$0xff]  }
 0x384   : > { %5251 = vmatprep.subr.bf16.mxu1 %v16324_v43  ;;  %5302 = vmatprep.subr.bf16.mxu0 %v23769_v50  ;;  %v3497_v37 = vpop.f32.mrf.mxu1  ;;  %v3545_v17 = vpop.f32.mrf.mxu0 }
 0x385   : > { %v19921_v17 = vld [vmem:[#allocation3 + $0x28] sm:$0xff] }
 0x387   : > { %5252 = vmatpush1.bf16.msra.mxu1 %v16322_v3  ;;  %5303 = vmatpush1.bf16.msra.mxu0 %v16325_v47  ;;  %v5354_v3 = vld [vmem:[#allocation3 + $0x18] sm:$0xf0] }
 0x388   : > { %5253 = vmatprep.subr.bf16.mxu1 %v16328_v33  ;;  %5304 = vmatprep.subr.bf16.mxu0 %v23769_v50 }
 0x38b   : > { %5254 = vmatpush1.bf16.msra.mxu1 %v16326_v15  ;;  %5305 = vmatpush1.bf16.msra.mxu0 %v16329_v13  ;;  %v19928_v13 = vrot.slane %v5364_v31, 2  ;;  %v16400_v31 = vld [vmem:[%s23687_s5 + $0x79c] ss:$12 sps:$4 sm:$0xff]  }
 0x38c   : > { %5255 = vmatprep.subr.bf16.mxu1 %v16332_v11  ;;  %5306 = vmatprep.subr.bf16.mxu0 %v23769_v50 }
 0x38f   : > { %5256 = vmatpush1.bf16.msra.mxu1 %v16330_v42  ;;  %5307 = vmatpush1.bf16.msra.mxu0 %v16333_v19  ;;  %v19936_v19 = vld [vmem:[#allocation3 + $0x30] sm:$0xff] }
 0x390   : > { %5257 = vmatprep.subr.bf16.mxu1 %v16336_v54  ;;  %5308 = vmatprep.subr.bf16.mxu0 %v23769_v50  ;;  %v4997_v54 = vpack.c.bf16 %v19936_v19, %v19936_v19 }
 0x393   : > { %5258 = vmatpush1.bf16.msra.mxu1 %v16334_v38  ;;  %5309 = vmatpush1.bf16.msra.mxu0 %v16337_v34  ;;  %v16366_v38 = vld [vmem:[%s23687_s5 + $0x738] ss:$12 sps:$4 sm:$0xff]  }
 0x394   : > { %5259 = vmatprep.subr.bf16.mxu1 %v16340_v1  ;;  %5310 = vmatprep.subr.bf16.mxu0 %v23769_v50 }
 0x397   : > { %5260 = vmatpush1.bf16.msra.mxu1 %v16338_v20  ;;  %5311 = vmatpush1.bf16.msra.mxu0 %v16341_v9  ;;  %v16372_v9 = vld [vmem:[%s23687_s5 + $0x724] ss:$12 sps:$4 sm:$0xff]  }
 0x398   : > { %5269 = vmatprep.subr.bf16.mxu1 %v16344_v46  ;;  %5320 = vmatprep.subr.bf16.mxu0 %v23769_v50 }
 0x39b   : > { %5270 = vmatpush2.bf16.msra.mxu1 %v16342_v35  ;;  %5321 = vmatpush2.bf16.msra.mxu0 %v16345_v21 }
 0x39c   : > { %5271 = vmatprep.subr.bf16.mxu1 %v16348_v58  ;;  %5322 = vmatprep.subr.bf16.mxu0 %v23769_v50  ;;  %v16373_v58 = vld [vmem:[%s23687_s5 + $0x728] ss:$12 sps:$4 sm:$0xff]  }
 0x39f   : > { %5272 = vmatpush2.bf16.msra.mxu1 %v16346_v5  ;;  %5323 = vmatpush2.bf16.msra.mxu0 %v16349_v7 }
 0x3a0   : > { %5273 = vmatprep.subr.bf16.mxu1 %v16352_v39  ;;  %5324 = vmatprep.subr.bf16.mxu0 %v23769_v50  ;;  %v16376_v39 = vld [vmem:[%s23687_s5 + $0x70c] ss:$12 sps:$4 sm:$0xff]  }
 0x3a3   : > { %5274 = vmatpush2.bf16.msra.mxu1 %v16350_v22  ;;  %5325 = vmatpush2.bf16.msra.mxu0 %v16353_v0  ;;  %v16374_v22 = vld [vmem:[%s23687_s5 + $0x708] ss:$12 sps:$4 sm:$0xff]   ;;  %v16377_v0 = vld [vmem:[%s23687_s5 + $0x710] ss:$12 sps:$4 sm:$0xff]  }
 0x3a4   : > { %5275 = vmatprep.subr.bf16.mxu1 %v16356_v63  ;;  %5326 = vmatprep.subr.bf16.mxu0 %v23769_v50  ;;  %v16380_v63 = vld [vmem:[%s23687_s5 + $0x6f4] ss:$12 sps:$4 sm:$0xff]  }
 0x3a6   : > { %v3779_v62 = vpop.f32.mrf.mxu1  ;;  %v3830_v61 = vpop.f32.mrf.mxu0 }
 0x3a7   : > { %5276 = vmatpush2.bf16.msra.mxu1 %v16354_v48  ;;  %5327 = vmatpush2.bf16.msra.mxu0 %v16357_v27  ;;  %v19882_v45 = vadd.f32 %v3779_v62, %v19731_v53  ;;  %v19885_v55 = vadd.f32 %v3830_v61, %v19733_v36  ;;  %v4998_v53 = vpack.c.bf16 %v19217_v8, %v19217_v8  ;;  %v16365_v8 = vld [vmem:[%s23687_s5 + $0x758] ss:$12 sps:$4 sm:$0xff]   ;;  %v16378_v48 = vld [vmem:[%s23687_s5 + $0x6f0] ss:$12 sps:$4 sm:$0xff]   ;;  %v16385_v61 = vld [vmem:[%s23687_s5 + $0x6e0] ss:$12 sps:$4 sm:$0xff]  }
 0x3a8   : > { %5624 = vmatprep.subr.bf16.mxu1 %v16360_v30  ;;  %5675 = vmatprep.subr.bf16.mxu0 %v23769_v50  ;;  %v3781_v4 = vpop.f32.mrf.mxu1  ;;  %v3832_v14 = vpop.f32.mrf.mxu0  ;;  %v16381_v27 = vld [vmem:[%s23687_s5 + $0x6f8] ss:$12 sps:$4 sm:$0xff]   ;;  %v16384_v30 = vld [vmem:[%s23687_s5 + $0x6dc] ss:$12 sps:$4 sm:$0xff]  }
 0x3a9   : > { %v19897_v36 = vadd.f32 %v3781_v4, %v19742_v60  ;;  %v16382_v62 = vld [vmem:[%s23687_s5 + $0x6d8] ss:$12 sps:$4 sm:$0xff]   ;;  %v16390_v14 = vld [vmem:[%s23687_s5 + $0x7c8] ss:$12 sps:$4 sm:$0xff]  }
 0x3aa   : > { %5278 = vmatmul.mubr.bf16.vlgmr.msra.gmra.mxu1 %v19147_v41  ;;  %5329 = vmatmul.mubr.bf16.vlgmr.msra.gmra.mxu0 %v19147_v41  ;;  %v3783_v40 = vpop.f32.mrf.mxu1  ;;  %v3833_v43 = vpop.f32.mrf.mxu0  ;;  %v16362_v41 = vld [vmem:[%s23687_s5 + $0x750] ss:$12 sps:$4 sm:$0xff]   ;;  %v16392_v4 = vld [vmem:[%s23687_s5 + $0x7cc] ss:$12 sps:$4 sm:$0xff]  }
 0x3ab   : > { %14845 = vmatprep.mubr.msk.bf16.mxu1 %vm550_vm1, %v4998_v53  ;;  %14847 = vmatprep.mubr.msk.bf16.mxu0 %vm550_vm1, %v4998_v53  ;;  %v19908_v2 = vadd.f32 %v3783_v40, %v19753_v18  ;;  %v19911_v60 = vadd.f32 %v3833_v43, %v19755_v16  ;;  %v5362_v18 = vpack.c.bf16 %v19921_v17, %v5354_v3  ;;  %v16368_v16 = vld [vmem:[%s23687_s5 + $0x73c] ss:$12 sps:$4 sm:$0xff]   ;;  %v16397_v43 = vld [vmem:[%s23687_s5 + $0x7b8] ss:$12 sps:$4 sm:$0xff]   ;;  %v5359_v3 = vld [vmem:[#allocation3 + $0x40] sm:$0xf] }
 0x3ac   : > { %5625 = vmatpush1.bf16.msra.mxu1 %v16358_v29  ;;  %5676 = vmatpush1.bf16.msra.mxu0 %v16361_v24  ;;  %v19919_v47 = vpop.f32.mrf.mxu1  ;;  %v3835_v37 = vpop.f32.mrf.mxu0  ;;  %v16386_v29 = vld [vmem:[%s23687_s5 + $0x6c0] ss:$12 sps:$4 sm:$0xff]   ;;  %v16389_v24 = vld [vmem:[%s23687_s5 + $0x6c8] ss:$12 sps:$4 sm:$0xff]   ;;  %v16393_v53 = vld [vmem:[%s23687_s5 + $0x7d0] ss:$12 sps:$4 sm:$0xff]  }
 0x3ad   : > { %5626 = vmatprep.subr.bf16.mxu1 %v16364_v6  ;;  %5677 = vmatprep.subr.bf16.mxu0 %v23769_v50  ;;  %v5421_v34 = vrot.slane %v5362_v18, 2  ;;  %v16396_v6 = vld [vmem:[%s23687_s5 + $0x7b4] ss:$12 sps:$4 sm:$0xff]   ;;  %v16394_v40 = vld [vmem:[%s23687_s5 + $0x7b0] ss:$12 sps:$4 sm:$0xff]  }
 0x3ae   : > { %v3789_v33 = vpop.f32.mrf.mxu1  ;;  %v3838_v15 = vpop.f32.mrf.mxu0  ;;  %v5735_v37 = vld [vmem:[#allocation3 + $0x48] sm:$0x1f]  ;;  %v16404_v18 = vld [vmem:[%s23687_s5 + $0x784] ss:$12 sps:$4 sm:$0xff]  }
 0x3af   : > { %v19931_v11 = vadd.f32 %v3789_v33, %v19769_v44  ;;  %v19934_v42 = vadd.f32 %v3838_v15, %v19771_v23  ;;  %v16369_v44 = vld [vmem:[%s23687_s5 + $0x740] ss:$12 sps:$4 sm:$0xff]   ;;  %v5423_v46 = vsel %vm2786_vm6, %v5421_v34, %v19928_v13  ;;  %v5353_v33 = vld [vmem:[#allocation3 + $0x10] sm:$0xf0]  ;;  %v17796_v15 = vld [vmem:[#allocation3 + $0x38] sm:$0xff] }
 0x3b0   : > { %5627 = vmatpush1.bf16.msra.mxu1 %v16362_v41  ;;  %5678 = vmatpush1.bf16.msra.mxu0 %v16365_v8  ;;  %v3791_v1 = vpop.f32.mrf.mxu1  ;;  %v3840_v20 = vpop.f32.mrf.mxu0  ;;  %v16398_v41 = vld [vmem:[%s23687_s5 + $0x798] ss:$12 sps:$4 sm:$0xff]   ;;  %v16401_v8 = vld [vmem:[%s23687_s5 + $0x7a0] ss:$12 sps:$4 sm:$0xff]   ;;  %v16405_v34 = vld [vmem:[%s23687_s5 + $0x788] ss:$12 sps:$4 sm:$0xff]  }
 0x3b1   : > { %5628 = vmatprep.subr.bf16.mxu1 %v16368_v16  ;;  %5679 = vmatprep.subr.bf16.mxu0 %v23769_v50  ;;  %v19948_v23 = vadd.f32 %v3791_v1, %v19780_v28  ;;  %v16370_v28 = vld [vmem:[%s23687_s5 + $0x720] ss:$12 sps:$4 sm:$0xff]   ;;  %v5363_v16 = vpack.c.bf16 %v5359_v3, %v19936_v19  ;;  %v5733_v20 = vld [vmem:[#allocation3 + $0x18] sm:$0xe0] }
 0x3b2   : > { %5288 = vmatmul.mubr.bf16.gmra.mxu1 %v4997_v54  ;;  %5337 = vmatmul.mubr.bf16.gmra.mxu0 %v4997_v54  ;;  %v3793_v35 = vpop.f32.mrf.mxu1  ;;  %v3841_v21 = vpop.f32.mrf.mxu0  ;;  %v5739_v54 = vpack.c.bf16 %v5735_v37, %v17796_v15  ;;  %v16414_v37 = vld [vmem:[%s23687_s5 + $0x858] ss:$12 sps:$4 sm:$0xff]  }
 0x3b3   : > { %14884 = vmatprep.mubr.msk.bf16.mxu1 %vm550_vm1, %v5423_v46  ;;  %14886 = vmatprep.mubr.msk.bf16.mxu0 %vm550_vm1, %v5423_v46  ;;  %v5737_v46 = vpack.c.bf16 %v19921_v17, %v5733_v20  ;;  %v5419_v35 = vrot.slane %v5363_v16, 2  ;;  %v16409_v17 = vld [vmem:[%s23687_s5 + $0x890] ss:$12 sps:$4 sm:$0xff]   ;;  %v16417_v16 = vld [vmem:[%s23687_s5 + $0x860] ss:$12 sps:$4 sm:$0xff]  }
 0x3b4   : > { %5629 = vmatpush1.bf16.msra.mxu1 %v16366_v38  ;;  %5680 = vmatpush1.bf16.msra.mxu0 %v16369_v44  ;;  %v3794_v5 = vpop.f32.mrf.mxu1  ;;  %v3842_v7 = vpop.f32.mrf.mxu0  ;;  %v16402_v38 = vld [vmem:[%s23687_s5 + $0x780] ss:$12 sps:$4 sm:$0xff]  }
 0x3b5   : > { %5630 = vmatprep.subr.bf16.mxu1 %v16372_v9  ;;  %5681 = vmatprep.subr.bf16.mxu0 %v23769_v50  ;;  %v20044_v44 = vld [vmem:[#allocation3 + $0x20] sm:$0xff]  ;;  %v16408_v9 = vld [vmem:[%s23687_s5 + $0x88c] ss:$12 sps:$4 sm:$0xff]   ;;  %v5818_v5 = vshll.u32 %v5739_v54, 16 }
 0x3b6   : > { %v5361_v1 = vpack.c.bf16 %v20044_v44, %v5353_v33 }
 0x3b8   : > { %5631 = vmatpush1.bf16.msra.mxu1 %v16370_v28  ;;  %5682 = vmatpush1.bf16.msra.mxu0 %v16373_v58  ;;  %v5815_v58 = vshrl.u32 %v5739_v54, 16 }
 0x3b9   : > { %5632 = vmatprep.subr.bf16.mxu1 %v16376_v39  ;;  %5683 = vmatprep.subr.bf16.mxu0 %v23769_v50 }
 0x3bc   : > { %5633 = vmatpush1.bf16.msra.mxu1 %v16374_v22  ;;  %5684 = vmatpush1.bf16.msra.mxu0 %v16377_v0  ;;  %v5418_v22 = vrot.slane %v5361_v1, 2  ;;  %v16406_v0 = vld [vmem:[%s23687_s5 + $0x888] ss:$12 sps:$4 sm:$0xff]  }
 0x3bd   : > { %5634 = vmatprep.subr.bf16.mxu1 %v16380_v63  ;;  %5685 = vmatprep.subr.bf16.mxu0 %v23769_v50  ;;  %v16421_v1 = vld [vmem:[%s23687_s5 + $0x848] ss:$12 sps:$4 sm:$0xff]  }
 0x3c0   : > { %5635 = vmatpush1.bf16.msra.mxu1 %v16378_v48  ;;  %5686 = vmatpush1.bf16.msra.mxu0 %v16381_v27  ;;  %v5807_v27 = vshrl.u32 %v5737_v46, 16 }
 0x3c1   : > { %5636 = vmatprep.subr.bf16.mxu1 %v16384_v30  ;;  %5687 = vmatprep.subr.bf16.mxu0 %v23769_v50  ;;  %v5420_v30 = vsel %vm2786_vm6, %v5418_v22, %v5419_v35  ;;  %v16432_v22 = vld [vmem:[%s23687_s5 + $0x7fc] ss:$12 sps:$4 sm:$0xff]  }
 0x3c4   : > { %5637 = vmatpush1.bf16.msra.mxu1 %v16382_v62  ;;  %5688 = vmatpush1.bf16.msra.mxu0 %v16385_v61  ;;  %v16412_v62 = vld [vmem:[%s23687_s5 + $0x874] ss:$12 sps:$4 sm:$0xff]  }
 0x3c5   : > { %5638 = vmatprep.subr.bf16.mxu1 %v16388_v32  ;;  %5689 = vmatprep.subr.bf16.mxu0 %v23769_v50 }
 0x3c8   : > { %5639 = vmatpush1.bf16.msra.mxu1 %v16386_v29  ;;  %5690 = vmatpush1.bf16.msra.mxu0 %v16389_v24  ;;  %v5817_v29 = vrot.slane %v5815_v58, 2  ;;  %v5820_v24 = vrot.slane %v5818_v5, 3  ;;  %v16426_v58 = vld [vmem:[%s23687_s5 + $0x810] ss:$12 sps:$4 sm:$0xff]   ;;  %v16429_v5 = vld [vmem:[%s23687_s5 + $0x818] ss:$12 sps:$4 sm:$0xff]  }
 0x3c9   : > { %5648 = vmatprep.subr.bf16.mxu1 %v16392_v4  ;;  %5699 = vmatprep.subr.bf16.mxu0 %v23769_v50 }
 0x3ca   : > { %v20094_v3 = vor.u32 %v5820_v24, %v5817_v29  ;;  %v5732_v24 = vld [vmem:[#allocation3 + $0x10] sm:$0xe0] }
 0x3cc   : > { %5649 = vmatpush2.bf16.msra.mxu1 %v16390_v14  ;;  %5700 = vmatpush2.bf16.msra.mxu0 %v16393_v53  ;;  %v16410_v14 = vld [vmem:[%s23687_s5 + $0x870] ss:$12 sps:$4 sm:$0xff]   ;;  %v16413_v53 = vld [vmem:[%s23687_s5 + $0x878] ss:$12 sps:$4 sm:$0xff]  }
 0x3cd   : > { %5650 = vmatprep.subr.bf16.mxu1 %v16396_v6  ;;  %5701 = vmatprep.subr.bf16.mxu0 %v23769_v50 }
 0x3d0   : > { %5651 = vmatpush2.bf16.msra.mxu1 %v16394_v40  ;;  %5702 = vmatpush2.bf16.msra.mxu0 %v16397_v43 }
 0x3d1   : > { %5652 = vmatprep.subr.bf16.mxu1 %v16400_v31  ;;  %5703 = vmatprep.subr.bf16.mxu0 %v23769_v50 }
 0x3d4   : > { %5653 = vmatpush2.bf16.msra.mxu1 %v16398_v41  ;;  %5704 = vmatpush2.bf16.msra.mxu0 %v16401_v8 }
 0x3d5   : > { %5654 = vmatprep.subr.bf16.mxu1 %v16404_v18  ;;  %5705 = vmatprep.subr.bf16.mxu0 %v23769_v50 }
 0x3d7   : > { %v4145_v21 = vpop.f32.mrf.mxu1  ;;  %v4196_v28 = vpop.f32.mrf.mxu0 }
 0x3d8   : > { %5655 = vmatpush2.bf16.msra.mxu1 %v16402_v38  ;;  %5706 = vmatpush2.bf16.msra.mxu0 %v16405_v34  ;;  %v20053_v7 = vadd.f32 %v4145_v21, %v19882_v45  ;;  %v20056_v39 = vadd.f32 %v4196_v28, %v19885_v55  ;;  %v5810_v45 = vshll.u32 %v5737_v46, 16  ;;  %v16424_v46 = vld [vmem:[%s23687_s5 + $0x82c] ss:$12 sps:$4 sm:$0xff]   ;;  %v16425_v21 = vld [vmem:[%s23687_s5 + $0x830] ss:$12 sps:$4 sm:$0xff]  }
 0x3d9   : > { %6023 = vmatprep.subr.bf16.mxu1 %v16408_v9  ;;  %6074 = vmatprep.subr.bf16.mxu0 %v23769_v50  ;;  %v4147_v63 = vpop.f32.mrf.mxu1  ;;  %v4198_v48 = vpop.f32.mrf.mxu0  ;;  %v16428_v28 = vld [vmem:[%s23687_s5 + $0x814] ss:$12 sps:$4 sm:$0xff]  }
 0x3da   : > { %v20067_v55 = vadd.f32 %v4147_v63, %v19897_v36  ;;  %v5812_v43 = vrot.slane %v5810_v45, 3  ;;  %v16436_v63 = vld [vmem:[%s23687_s5 + $0x7e4] ss:$12 sps:$4 sm:$0xff]   ;;  %v16434_v48 = vld [vmem:[%s23687_s5 + $0x7e0] ss:$12 sps:$4 sm:$0xff]  }
 0x3db   : > { %5657 = vmatmul.mubr.bf16.vlgmr.msra.gmra.mxu1 %v5420_v30  ;;  %5708 = vmatmul.mubr.bf16.vlgmr.msra.gmra.mxu0 %v5420_v30  ;;  %v4149_v61 = vpop.f32.mrf.mxu1  ;;  %v4199_v32 = vpop.f32.mrf.mxu0  ;;  %v16440_v45 = vld [vmem:[%s23687_s5 + $0x8ec] ss:$12 sps:$4 sm:$0xff]   ;;  %v5734_v30 = vld [vmem:[#allocation3 + $0x40] sm:$0x1f] }
 0x3dc   : > { %14885 = vmatprep.mubr.msk.bf16.mxu1 %vm550_vm1, %v19928_v13  ;;  %14887 = vmatprep.mubr.msk.bf16.mxu0 %vm550_vm1, %v19928_v13  ;;  %v20077_v4 = vadd.f32 %v4149_v61, %v19908_v2  ;;  %v20080_v36 = vadd.f32 %v4199_v32, %v19911_v60  ;;  %v5809_v13 = vrot.slane %v5807_v27, 2  ;;  %v16416_v2 = vld [vmem:[%s23687_s5 + $0x85c] ss:$12 sps:$4 sm:$0xff]   ;;  %v16444_v32 = vld [vmem:[%s23687_s5 + $0x8d4] ss:$12 sps:$4 sm:$0xff]   ;;  %v5738_v29 = vpack.c.bf16 %v5734_v30, %v19936_v19 }
 0x3dd   : > { %6024 = vmatpush1.bf16.msra.mxu1 %v16406_v0  ;;  %6075 = vmatpush1.bf16.msra.mxu0 %v16409_v17  ;;  %v20088_v6 = vpop.f32.mrf.mxu1  ;;  %v4201_v40 = vpop.f32.mrf.mxu0  ;;  %v16430_v0 = vld [vmem:[%s23687_s5 + $0x7f8] ss:$12 sps:$4 sm:$0xff]   ;;  %v16433_v17 = vld [vmem:[%s23687_s5 + $0x800] ss:$12 sps:$4 sm:$0xff]   ;;  %v16437_v27 = vld [vmem:[%s23687_s5 + $0x7e8] ss:$12 sps:$4 sm:$0xff]  }
 0x3de   : > { %6025 = vmatprep.subr.bf16.mxu1 %v16412_v62  ;;  %6076 = vmatprep.subr.bf16.mxu0 %v23769_v50  ;;  %v5813_v18 = vor.u32 %v5812_v43, %v5809_v13  ;;  %v16438_v62 = vld [vmem:[%s23687_s5 + $0x8e8] ss:$12 sps:$4 sm:$0xff]   ;;  %v16441_v61 = vld [vmem:[%s23687_s5 + $0x8f0] ss:$12 sps:$4 sm:$0xff]   ;;  %v5736_v40 = vpack.c.bf16 %v20044_v44, %v5732_v24  ;;  %v5798_v13 = vshrl.u32 %v5738_v29, 16  ;;  %v5801_v43 = vshll.u32 %v5738_v29, 16 }
 0x3df   : > { %v4155_v60 = vpop.f32.mrf.mxu1  ;;  %v4204_v31 = vpop.f32.mrf.mxu0  ;;  %v16448_v19 = vld [vmem:[%s23687_s5 + $0x8bc] ss:$12 sps:$4 sm:$0xff]  }
 0x3e0   : > { %v20097_v41 = vadd.f32 %v4155_v60, %v19931_v11  ;;  %v20100_v8 = vadd.f32 %v4204_v31, %v19934_v42  ;;  %v16420_v42 = vld [vmem:[%s23687_s5 + $0x844] ss:$12 sps:$4 sm:$0xff]   ;;  %v5822_v54 = vsel %vm5788_vm12, %v5813_v18, %v20094_v3  ;;  %v16449_v60 = vld [vmem:[%s23687_s5 + $0x8c0] ss:$12 sps:$4 sm:$0xff]   ;;  %v5790_v44 = vshrl.u32 %v5736_v40, 16 }
 0x3e1   : > { %6026 = vmatpush1.bf16.msra.mxu1 %v16410_v14  ;;  %6077 = vmatpush1.bf16.msra.mxu0 %v16413_v53  ;;  %v4157_v33 = vpop.f32.mrf.mxu1  ;;  %v4206_v15 = vpop.f32.mrf.mxu0  ;;  %v16442_v14 = vld [vmem:[%s23687_s5 + $0x8d0] ss:$12 sps:$4 sm:$0xff]   ;;  %v16445_v53 = vld [vmem:[%s23687_s5 + $0x8d8] ss:$12 sps:$4 sm:$0xff]   ;;  %v5793_v31 = vshll.u32 %v5736_v40, 16  ;;  %v5800_v18 = vrot.slane %v5798_v13, 2 }
 0x3e2   : > { %6027 = vmatprep.subr.bf16.mxu1 %v16416_v2  ;;  %6078 = vmatprep.subr.bf16.mxu0 %v23769_v50  ;;  %v20110_v11 = vadd.f32 %v4157_v33, %v19948_v23  ;;  %v16418_v23 = vld [vmem:[%s23687_s5 + $0x840] ss:$12 sps:$4 sm:$0xff]   ;;  %v16446_v2 = vld [vmem:[%s23687_s5 + $0x8b8] ss:$12 sps:$4 sm:$0xff]   ;;  %v16453_v15 = vld [vmem:[%s23687_s5 + $0x8a8] ss:$12 sps:$4 sm:$0xff]  }
 0x3e3   : > { %5667 = vmatmul.mubr.bf16.gmra.mxu1 %v5419_v35  ;;  %5716 = vmatmul.mubr.bf16.gmra.mxu0 %v5419_v35  ;;  %v4159_v38 = vpop.f32.mrf.mxu1  ;;  %v4207_v34 = vpop.f32.mrf.mxu0  ;;  %v16422_v35 = vld [vmem:[%s23687_s5 + $0x828] ss:$12 sps:$4 sm:$0xff]   ;;  %v16450_v33 = vld [vmem:[%s23687_s5 + $0x8a0] ss:$12 sps:$4 sm:$0xff]  }
 0x3e4   : > { %14924 = vmatprep.mubr.msk.bf16.mxu1 %vm550_vm1, %v5822_v54  ;;  %14926 = vmatprep.mubr.msk.bf16.mxu0 %vm550_vm1, %v5822_v54  ;;  %v5795_v54 = vrot.slane %v5793_v31, 3  ;;  %v16456_v38 = vld [vmem:[%s23687_s5 + $0x9ac] ss:$12 sps:$4 sm:$0xff]   ;;  %v16469_v40 = vld [vmem:[%s23687_s5 + $0x968] ss:$12 sps:$4 sm:$0xff]  }
 0x3e5   : > { %6028 = vmatpush1.bf16.msra.mxu1 %v16414_v37  ;;  %6079 = vmatpush1.bf16.msra.mxu0 %v16417_v16  ;;  %v4160_v20 = vpop.f32.mrf.mxu1  ;;  %v4208_v9 = vpop.f32.mrf.mxu0  ;;  %v16452_v37 = vld [vmem:[%s23687_s5 + $0x8a4] ss:$12 sps:$4 sm:$0xff]   ;;  %v5803_v16 = vrot.slane %v5801_v43, 3  ;;  %v16472_v43 = vld [vmem:[%s23687_s5 + $0x94c] ss:$12 sps:$4 sm:$0xff]  }
 0x3e6   : > { %6029 = vmatprep.subr.bf16.mxu1 %v16420_v42  ;;  %6080 = vmatprep.subr.bf16.mxu0 %v23769_v50  ;;  %v5792_v42 = vrot.slane %v5790_v44, 2  ;;  %v16474_v44 = vld [vmem:[%s23687_s5 + $0x930] ss:$12 sps:$4 sm:$0xff]   ;;  %v16477_v31 = vld [vmem:[%s23687_s5 + $0x938] ss:$12 sps:$4 sm:$0xff]  }
 0x3e7   : > { %v5804_v34 = vor.u32 %v5803_v16, %v5800_v18  ;;  %v16478_v18 = vld [vmem:[%s23687_s5 + $0x918] ss:$12 sps:$4 sm:$0xff]   ;;  %v16481_v16 = vld [vmem:[%s23687_s5 + $0x920] ss:$12 sps:$4 sm:$0xff]  }
 0x3e9   : > { %6030 = vmatpush1.bf16.msra.mxu1 %v16418_v23  ;;  %6081 = vmatpush1.bf16.msra.mxu0 %v16421_v1 }
 0x3ea   : > { %6031 = vmatprep.subr.bf16.mxu1 %v16424_v46  ;;  %6082 = vmatprep.subr.bf16.mxu0 %v23769_v50  ;;  %v5796_v46 = vor.u32 %v5795_v54, %v5792_v42  ;;  %v16485_v42 = vld [vmem:[%s23687_s5 + $0x908] ss:$12 sps:$4 sm:$0xff]   ;;  %v16488_v54 = vld [vmem:[%s23687_s5 + $0xa0c] ss:$12 sps:$4 sm:$0xff]  }
 0x3ed   : > { %6032 = vmatpush1.bf16.msra.mxu1 %v16422_v35  ;;  %6083 = vmatpush1.bf16.msra.mxu0 %v16425_v21  ;;  %v16454_v35 = vld [vmem:[%s23687_s5 + $0x9a8] ss:$12 sps:$4 sm:$0xff]   ;;  %v16457_v21 = vld [vmem:[%s23687_s5 + $0x9b0] ss:$12 sps:$4 sm:$0xff]  }
 0x3ee   : > { %6033 = vmatprep.subr.bf16.mxu1 %v16428_v28  ;;  %6084 = vmatprep.subr.bf16.mxu0 %v23769_v50 }
 0x3f1   : > { %6034 = vmatpush1.bf16.msra.mxu1 %v16426_v58  ;;  %6085 = vmatpush1.bf16.msra.mxu0 %v16429_v5 }
 0x3f2   : > { %6035 = vmatprep.subr.bf16.mxu1 %v16432_v22  ;;  %6086 = vmatprep.subr.bf16.mxu0 %v23769_v50 }
 0x3f5   : > { %6036 = vmatpush1.bf16.msra.mxu1 %v16430_v0  ;;  %6087 = vmatpush1.bf16.msra.mxu0 %v16433_v17 }
 0x3f6   : > { %6037 = vmatprep.subr.bf16.mxu1 %v16436_v63  ;;  %6088 = vmatprep.subr.bf16.mxu0 %v23769_v50  ;;  %v16458_v63 = vld [vmem:[%s23687_s5 + $0x990] ss:$12 sps:$4 sm:$0xff]  }
 0x3f9   : > { %6038 = vmatpush1.bf16.msra.mxu1 %v16434_v48  ;;  %6089 = vmatpush1.bf16.msra.mxu0 %v16437_v27  ;;  %v16461_v48 = vld [vmem:[%s23687_s5 + $0x998] ss:$12 sps:$4 sm:$0xff]  }
 0x3fa   : > { %6047 = vmatprep.subr.bf16.mxu1 %v16440_v45  ;;  %6098 = vmatprep.subr.bf16.mxu0 %v23769_v50 }
 0x3fd   : > { %6048 = vmatpush2.bf16.msra.mxu1 %v16438_v62  ;;  %6099 = vmatpush2.bf16.msra.mxu0 %v16441_v61  ;;  %v16462_v61 = vld [vmem:[%s23687_s5 + $0x978] ss:$12 sps:$4 sm:$0xff]  }
 0x3fe   : > { %6049 = vmatprep.subr.bf16.mxu1 %v16444_v32  ;;  %6100 = vmatprep.subr.bf16.mxu0 %v23769_v50  ;;  %v16465_v32 = vld [vmem:[%s23687_s5 + $0x980] ss:$12 sps:$4 sm:$0xff]  }
 0x401   : > { %6050 = vmatpush2.bf16.msra.mxu1 %v16442_v14  ;;  %6101 = vmatpush2.bf16.msra.mxu0 %v16445_v53 }
 0x402   : > { %6051 = vmatprep.subr.bf16.mxu1 %v16448_v19  ;;  %6102 = vmatprep.subr.bf16.mxu0 %v23769_v50 }
 0x405   : > { %6052 = vmatpush2.bf16.msra.mxu1 %v16446_v2  ;;  %6103 = vmatpush2.bf16.msra.mxu0 %v16449_v60  ;;  %v16473_v2 = vld [vmem:[%s23687_s5 + $0x950] ss:$12 sps:$4 sm:$0xff]   ;;  %v16476_v60 = vld [vmem:[%s23687_s5 + $0x934] ss:$12 sps:$4 sm:$0xff]  }
 0x406   : > { %6053 = vmatprep.subr.bf16.mxu1 %v16452_v37  ;;  %6104 = vmatprep.subr.bf16.mxu0 %v23769_v50  ;;  %v16480_v37 = vld [vmem:[%s23687_s5 + $0x91c] ss:$12 sps:$4 sm:$0xff]  }
 0x408   : > { %v4520_v23 = vpop.f32.mrf.mxu1  ;;  %v4571_v1 = vpop.f32.mrf.mxu0 }
 0x409   : > { %6054 = vmatpush2.bf16.msra.mxu1 %v16450_v33  ;;  %6105 = vmatpush2.bf16.msra.mxu0 %v16453_v15  ;;  %v20212_v20 = vadd.f32 %v4520_v23, %v20053_v7  ;;  %v20215_v9 = vadd.f32 %v4571_v1, %v20056_v39  ;;  %v5805_v7 = vsel %vm5788_vm12, %v5796_v46, %v5804_v34  ;;  %v16460_v39 = vld [vmem:[%s23687_s5 + $0x994] ss:$12 sps:$4 sm:$0xff]   ;;  %v16484_v33 = vld [vmem:[%s23687_s5 + $0x904] ss:$12 sps:$4 sm:$0xff]  }
 0x40a   : > { %6397 = vmatprep.subr.bf16.mxu1 %v16456_v38  ;;  %6448 = vmatprep.subr.bf16.mxu0 %v23769_v50  ;;  %v4522_v28 = vpop.f32.mrf.mxu1  ;;  %v4573_v58 = vpop.f32.mrf.mxu0  ;;  %v16482_v15 = vld [vmem:[%s23687_s5 + $0x900] ss:$12 sps:$4 sm:$0xff]   ;;  %v16486_v38 = vld [vmem:[%s23687_s5 + $0xa08] ss:$12 sps:$4 sm:$0xff]   ;;  %v16490_v1 = vld [vmem:[%s23687_s5 + $0x9f0] ss:$12 sps:$4 sm:$0xff]  }
 0x40b   : > { %v20226_v5 = vadd.f32 %v4522_v28, %v20067_v55  ;;  %v16492_v23 = vld [vmem:[%s23687_s5 + $0x9f4] ss:$12 sps:$4 sm:$0xff]   ;;  %v16493_v46 = vld [vmem:[%s23687_s5 + $0x9f8] ss:$12 sps:$4 sm:$0xff]  }
 0x40c   : > { %6056 = vmatmul.mubr.bf16.vlgmr.msra.gmra.mxu1 %v5805_v7  ;;  %6107 = vmatmul.mubr.bf16.vlgmr.msra.gmra.mxu0 %v5805_v7  ;;  %v4524_v22 = vpop.f32.mrf.mxu1  ;;  %v4574_v0 = vpop.f32.mrf.mxu0  ;;  %v16497_v28 = vld [vmem:[%s23687_s5 + $0x9e0] ss:$12 sps:$4 sm:$0xff]   ;;  %v16500_v58 = vld [vmem:[%s23687_s5 + $0x9c4] ss:$12 sps:$4 sm:$0xff]  }
 0x40d   : > { %14925 = vmatprep.mubr.msk.bf16.mxu1 %vm550_vm1, %v20094_v3  ;;  %14927 = vmatprep.mubr.msk.bf16.mxu0 %vm550_vm1, %v20094_v3  ;;  %v20236_v17 = vadd.f32 %v4524_v22, %v20077_v4  ;;  %v20239_v55 = vadd.f32 %v4574_v0, %v20080_v36  ;;  %v16464_v4 = vld [vmem:[%s23687_s5 + $0x97c] ss:$12 sps:$4 sm:$0xff]   ;;  %v16498_v7 = vld [vmem:[%s23687_s5 + $0x9c0] ss:$12 sps:$4 sm:$0xff]  }
 0x40e   : > { %6398 = vmatpush1.bf16.msra.mxu1 %v16454_v35  ;;  %6449 = vmatpush1.bf16.msra.mxu0 %v16457_v21  ;;  %v20247_v27 = vpop.f32.mrf.mxu1  ;;  %v4576_v45 = vpop.f32.mrf.mxu0  ;;  %v16496_v35 = vld [vmem:[%s23687_s5 + $0x9dc] ss:$12 sps:$4 sm:$0xff]   ;;  %v16494_v21 = vld [vmem:[%s23687_s5 + $0x9d8] ss:$12 sps:$4 sm:$0xff]  }
 0x40f   : > { %6399 = vmatprep.subr.bf16.mxu1 %v16460_v39  ;;  %6450 = vmatprep.subr.bf16.mxu0 %v23769_v50  ;;  %v16501_v39 = vld [vmem:[%s23687_s5 + $0x9c8] ss:$12 sps:$4 sm:$0xff]  }
 0x410   : > { %v4530_v36 = vpop.f32.mrf.mxu1  ;;  %v4579_v3 = vpop.f32.mrf.mxu0 }
 0x411   : > { %v20254_v30 = vadd.f32 %v4530_v36, %v20097_v41  ;;  %v20257_v62 = vadd.f32 %v4579_v3, %v20100_v8  ;;  %v16468_v8 = vld [vmem:[%s23687_s5 + $0x964] ss:$12 sps:$4 sm:$0xff]  }
 0x412   : > { %6400 = vmatpush1.bf16.msra.mxu1 %v16458_v63  ;;  %6451 = vmatpush1.bf16.msra.mxu0 %v16461_v48  ;;  %v4532_v29 = vpop.f32.mrf.mxu1  ;;  %v4581_v24 = vpop.f32.mrf.mxu0 }
 0x413   : > { %6401 = vmatprep.subr.bf16.mxu1 %v16464_v4  ;;  %6452 = vmatprep.subr.bf16.mxu0 %v23769_v50  ;;  %v20267_v41 = vadd.f32 %v4532_v29, %v20110_v11  ;;  %v16466_v11 = vld [vmem:[%s23687_s5 + $0x960] ss:$12 sps:$4 sm:$0xff]  }
 0x414   : > { %6066 = vmatmul.mubr.bf16.gmra.mxu1 %v5804_v34  ;;  %6115 = vmatmul.mubr.bf16.gmra.mxu0 %v5804_v34  ;;  %v4534_v14 = vpop.f32.mrf.mxu1  ;;  %v4582_v53 = vpop.f32.mrf.mxu0  ;;  %v16489_v34 = vld [vmem:[%s23687_s5 + $0xa10] ss:$12 sps:$4 sm:$0xff]  }
 0x415   : > { %14964 = vmatprep.mubr.msk.bf16.mxu1 %vm550_vm1, %v19256_v59  ;;  %14966 = vmatprep.mubr.msk.bf16.mxu0 %vm550_vm1, %v19256_v59  ;;  %v16470_v59 = vld [vmem:[%s23687_s5 + $0x948] ss:$12 sps:$4 sm:$0xff]  }
 0x416   : > { %6402 = vmatpush1.bf16.msra.mxu1 %v16462_v61  ;;  %6453 = vmatpush1.bf16.msra.mxu0 %v16465_v32  ;;  %v4535_v19 = vpop.f32.mrf.mxu1  ;;  %v4583_v13 = vpop.f32.mrf.mxu0 }
 0x417   : > { %6403 = vmatprep.subr.bf16.mxu1 %v16468_v8  ;;  %6454 = vmatprep.subr.bf16.mxu0 %v23769_v50  ;;  %v16510_v19 = vld [vmem:[%s23689_s7 + $0x1d4] ss:$8 sps:$4 sm:$0xff]   ;;  %v16526_v13 = vld [vmem:[%s23689_s7 + $0x2f0] ss:$8 sps:$4 sm:$0xff]  }
 0x41a   : > { %6404 = vmatpush1.bf16.msra.mxu1 %v16466_v11  ;;  %6455 = vmatpush1.bf16.msra.mxu0 %v16469_v40 }
 0x41b   : > { %6405 = vmatprep.subr.bf16.mxu1 %v16472_v43  ;;  %6456 = vmatprep.subr.bf16.mxu0 %v23769_v50  ;;  %v16528_v43 = vld [vmem:[%s23689_s7 + $0x2f4] ss:$8 sps:$4 sm:$0xff]  }
 0x41e   : > { %6406 = vmatpush1.bf16.msra.mxu1 %v16470_v59  ;;  %6457 = vmatpush1.bf16.msra.mxu0 %v16473_v2  ;;  %v16508_v59 = vld [vmem:[%s23689_s7 + $0x1d0] ss:$8 sps:$4 sm:$0xff]   ;;  %v16513_v2 = vld [vmem:[%s23689_s7 + $0x1c4] ss:$8 sps:$4 sm:$0xff]  }
 0x41f   : > { %6407 = vmatprep.subr.bf16.mxu1 %v16476_v60  ;;  %6458 = vmatprep.subr.bf16.mxu0 %v23769_v50  ;;  %v16511_v60 = vld [vmem:[%s23689_s7 + $0x1c0] ss:$8 sps:$4 sm:$0xff]  }
 0x422   : > { %6408 = vmatpush1.bf16.msra.mxu1 %v16474_v44  ;;  %6459 = vmatpush1.bf16.msra.mxu0 %v16477_v31  ;;  %v16516_v44 = vld [vmem:[%s23689_s7 + $0x1b4] ss:$8 sps:$4 sm:$0xff]   ;;  %v16514_v31 = vld [vmem:[%s23689_s7 + $0x1b0] ss:$8 sps:$4 sm:$0xff]  }
 0x423   : > { %6409 = vmatprep.subr.bf16.mxu1 %v16480_v37  ;;  %6460 = vmatprep.subr.bf16.mxu0 %v23769_v50 }
 0x426   : > { %6410 = vmatpush1.bf16.msra.mxu1 %v16478_v18  ;;  %6461 = vmatpush1.bf16.msra.mxu0 %v16481_v16  ;;  %v16519_v16 = vld [vmem:[%s23689_s7 + $0x1a4] ss:$8 sps:$4 sm:$0xff]  }
 0x427   : > { %6411 = vmatprep.subr.bf16.mxu1 %v16484_v33  ;;  %6462 = vmatprep.subr.bf16.mxu0 %v23769_v50 }
 0x42a   : > { %6412 = vmatpush1.bf16.msra.mxu1 %v16482_v15  ;;  %6463 = vmatpush1.bf16.msra.mxu0 %v16485_v42 }
 0x42b   : > { %6421 = vmatprep.subr.bf16.mxu1 %v16488_v54  ;;  %6472 = vmatprep.subr.bf16.mxu0 %v23769_v50 }
 0x42e   : > { %6422 = vmatpush2.bf16.msra.mxu1 %v16486_v38  ;;  %6473 = vmatpush2.bf16.msra.mxu0 %v16489_v34  ;;  %v16517_v34 = vld [vmem:[%s23689_s7 + $0x1a0] ss:$8 sps:$4 sm:$0xff]  }
 0x42f   : > { %6423 = vmatprep.subr.bf16.mxu1 %v16492_v23  ;;  %6474 = vmatprep.subr.bf16.mxu0 %v23769_v50 }
 0x432   : > { %6424 = vmatpush2.bf16.msra.mxu1 %v16490_v1  ;;  %6475 = vmatpush2.bf16.msra.mxu0 %v16493_v46  ;;  %v16522_v46 = vld [vmem:[%s23689_s7 + $0x194] ss:$8 sps:$4 sm:$0xff]  }
 0x433   : > { %6425 = vmatprep.subr.bf16.mxu1 %v16496_v35  ;;  %6476 = vmatprep.subr.bf16.mxu0 %v23769_v50 }
 0x436   : > { %6426 = vmatpush2.bf16.msra.mxu1 %v16494_v21  ;;  %6477 = vmatpush2.bf16.msra.mxu0 %v16497_v28 }
 0x437   : > { %6427 = vmatprep.subr.bf16.mxu1 %v16500_v58  ;;  %6478 = vmatprep.subr.bf16.mxu0 %v23769_v50 }
 0x439   : > { %v4919_v22 = vpop.f32.mrf.mxu1  ;;  %v4970_v0 = vpop.f32.mrf.mxu0 }
 0x43a   : > { %6428 = vmatpush2.bf16.msra.mxu1 %v16498_v7  ;;  %6479 = vmatpush2.bf16.msra.mxu0 %v16501_v39  ;;  %v4984_v63 = vadd.f32 %v4919_v22, %v20212_v20  ;;  %v4986_v48 = vadd.f32 %v4970_v0, %v20215_v9  ;;  %v16520_v7 = vld [vmem:[%s23689_s7 + $0x190] ss:$8 sps:$4 sm:$0xff]   ;;  %v16525_v0 = vld [vmem:[%s23689_s7 + $0x184] ss:$8 sps:$4 sm:$0xff]  }
 0x43b   : > { %v4921_v45 = vpop.f32.mrf.mxu1  ;;  %v4972_v4 = vpop.f32.mrf.mxu0  ;;  %7057 = vmatprep.subr.bf16.mxu0 %v16528_v43  ;;  %v16558_v43 = vld [vmem:[%s23689_s7 + $0x2a4] ss:$8 sps:$4 sm:$0xff]  }
 0x43c   : > { %v4985_v36 = vadd.f32 %v4921_v45, %v20226_v5 }
 0x43d   : > { %6430 = vmatmul.mubr.bf16.vlgmr.msra.gmra.mxu1 %v19260_v57  ;;  %6481 = vmatmul.mubr.bf16.vlgmr.msra.gmra.mxu0 %v19260_v57  ;;  %v4923_v3 = vpop.f32.mrf.mxu1  ;;  %v4973_v61 = vpop.f32.mrf.mxu0 }
 0x43e   : > { %14965 = vmatprep.mubr.msk.bf16.mxu1 %vm550_vm1, %v19246_v12  ;;  %14967 = vmatprep.mubr.msk.bf16.mxu0 %vm550_vm1, %v19246_v12  ;;  %v4987_v20 = vadd.f32 %v4923_v3, %v20236_v17  ;;  %v4989_v9 = vadd.f32 %v4973_v61, %v20239_v55  ;;  %v16523_v3 = vld [vmem:[%s23689_s7 + $0x180] ss:$8 sps:$4 sm:$0xff]  }
 0x43f   : > { %v20374_v32 = vpop.f32.mrf.mxu1  ;;  %v4975_v29 = vpop.f32.mrf.mxu0  ;;  %7058 = vmatpush1.bf16.msra.mxu0 %v16526_v13  ;;  %v16555_v13 = vld [vmem:[%s23689_s7 + $0x234] ss:$8 sps:$4 sm:$0xff]  }
 0x441   : > { %v4929_v5 = vpop.f32.mrf.mxu1  ;;  %v4978_v24 = vpop.f32.mrf.mxu0 }
 0x442   : > { %v4990_v8 = vadd.f32 %v4929_v5, %v20254_v30  ;;  %v4992_v57 = vadd.f32 %v4978_v24, %v20257_v62  ;;  %v16502_v30 = vld [vmem:[%s23689_s7 + $0x1f0] ss:$8 sps:$4 sm:$0xff]   ;;  %v16504_v62 = vld [vmem:[%s23689_s7 + $0x1f4] ss:$8 sps:$4 sm:$0xff]  }
 0x443   : > { %v4931_v14 = vpop.f32.mrf.mxu1  ;;  %v4980_v53 = vpop.f32.mrf.mxu0  ;;  %7006 = vmatprep.subr.bf16.mxu1 %v16504_v62  ;;  %v16529_v5 = vld [vmem:[%s23689_s7 + $0x270] ss:$8 sps:$4 sm:$0xff]   ;;  %v16531_v24 = vld [vmem:[%s23689_s7 + $0x274] ss:$8 sps:$4 sm:$0xff]   ;;  %v16549_v62 = vld [vmem:[%s23689_s7 + $0x244] ss:$8 sps:$4 sm:$0xff]  }
 0x444   : > { %v4991_v11 = vadd.f32 %v4931_v14, %v20267_v41  ;;  %v16507_v41 = vld [vmem:[%s23689_s7 + $0x1e4] ss:$8 sps:$4 sm:$0xff]   ;;  %7007 = vmatpush1.bf16.msra.mxu1 %v16502_v30  ;;  %v16535_v53 = vld [vmem:[%s23689_s7 + $0x260] ss:$8 sps:$4 sm:$0xff]  }
 0x445   : > { %6440 = vmatmul.mubr.bf16.gmra.mxu1 %v19248_v26  ;;  %6489 = vmatmul.mubr.bf16.gmra.mxu0 %v19248_v26  ;;  %v4933_v12 = vpop.f32.mrf.mxu1  ;;  %v4981_v17 = vpop.f32.mrf.mxu0  ;;  %v16505_v26 = vld [vmem:[%s23689_s7 + $0x1e0] ss:$8 sps:$4 sm:$0xff]   ;;  %v16537_v14 = vld [vmem:[%s23689_s7 + $0x264] ss:$8 sps:$4 sm:$0xff]  }
 0x446   : > { %7089 = vmatprep.mubr.bf16.mxu0 %v23769_v50  ;;  %7008 = vmatprep.subr.bf16.mxu1 %v16507_v41  ;;  %v16538_v12 = vld [vmem:[%s23689_s7 + $0x2d0] ss:$8 sps:$4 sm:$0xff]   ;;  %v16546_v30 = vld [vmem:[%s23689_s7 + $0x2c4] ss:$8 sps:$4 sm:$0xff]   ;;  %v16552_v41 = vld [vmem:[%s23689_s7 + $0x2b4] ss:$8 sps:$4 sm:$0xff]  }
 0x447   : > { %v4934_v55 = vpop.f32.mrf.mxu1  ;;  %v4982_v40 = vpop.f32.mrf.mxu0  ;;  %v16541_v17 = vld [vmem:[%s23689_s7 + $0x250] ss:$8 sps:$4 sm:$0xff]  }
 0x448   : > { %7009 = vmatpush1.bf16.msra.mxu1 %v16505_v26  ;;  %v16543_v55 = vld [vmem:[%s23689_s7 + $0x254] ss:$8 sps:$4 sm:$0xff]   ;;  %v16544_v40 = vld [vmem:[%s23689_s7 + $0x2c0] ss:$8 sps:$4 sm:$0xff]  }
 0x449   : > { %7010 = vmatprep.subr.bf16.mxu1 %v16510_v19  ;;  %v16547_v26 = vld [vmem:[%s23689_s7 + $0x240] ss:$8 sps:$4 sm:$0xff]   ;;  %v16550_v19 = vld [vmem:[%s23689_s7 + $0x2b0] ss:$8 sps:$4 sm:$0xff]  }
 0x44c   : > { %7011 = vmatpush1.bf16.msra.mxu1 %v16508_v59  ;;  %v16553_v59 = vld [vmem:[%s23689_s7 + $0x230] ss:$8 sps:$4 sm:$0xff]  }
 0x44d   : > { %7012 = vmatprep.subr.bf16.mxu1 %v16513_v2  ;;  %v16556_v2 = vld [vmem:[%s23689_s7 + $0x2a0] ss:$8 sps:$4 sm:$0xff]  }
 0x450   : > { %7013 = vmatpush1.bf16.msra.mxu1 %v16511_v60  ;;  %v16561_v60 = vld [vmem:[%s23689_s7 + $0x224] ss:$8 sps:$4 sm:$0xff]  }
 0x451   : > { %7014 = vmatprep.subr.bf16.mxu1 %v16516_v44  ;;  %v16564_v44 = vld [vmem:[%s23689_s7 + $0x294] ss:$8 sps:$4 sm:$0xff]  }
 0x454   : > { %7015 = vmatpush1.bf16.msra.mxu1 %v16514_v31  ;;  %v16559_v31 = vld [vmem:[%s23689_s7 + $0x220] ss:$8 sps:$4 sm:$0xff]  }
 0x455   : > { %7016 = vmatprep.subr.bf16.mxu1 %v16519_v16  ;;  %v16562_v16 = vld [vmem:[%s23689_s7 + $0x290] ss:$8 sps:$4 sm:$0xff]  }
 0x458   : > { %7017 = vmatpush1.bf16.msra.mxu1 %v16517_v34 }
 0x459   : > { %7018 = vmatprep.subr.bf16.mxu1 %v16522_v46 }
 0x45c   : > { %7019 = vmatpush1.bf16.msra.mxu1 %v16520_v7  ;;  %v16565_v7 = vld [vmem:[%s23689_s7 + $0x210] ss:$8 sps:$4 sm:$0xff]  }
 0x45d   : > { %7020 = vmatprep.subr.bf16.mxu1 %v16525_v0 }
 0x460   : > { %7021 = vmatpush1.bf16.msra.mxu1 %v16523_v3 }
 0x461   : > { %7022 = vmatprep.subr.bf16.mxu1 %v16531_v24 }
 0x464   : > { %7023 = vmatpush2.bf16.msra.mxu1 %v16529_v5 }
 0x465   : > { %7024 = vmatprep.subr.bf16.mxu1 %v16537_v14 }
 0x468   : > { %7025 = vmatpush2.bf16.msra.mxu1 %v16535_v53 }
 0x469   : > { %7026 = vmatprep.subr.bf16.mxu1 %v16543_v55 }
 0x46a   : > { %v5279_v37 = vpop.f32.mrf.mxu1  ;;  %v5330_v18 = vpop.f32.mrf.mxu0 }
 0x46b   : > { %v20421_v33 = vadd.f32 %v5279_v37, %v4984_v63  ;;  %v20423_v15 = vadd.f32 %v5330_v18, %v4986_v48 }
 0x46c   : > { %v5281_v42 = vpop.f32.mrf.mxu1  ;;  %v5332_v54 = vpop.f32.mrf.mxu0  ;;  %7027 = vmatpush2.bf16.msra.mxu1 %v16541_v17 }
 0x46d   : > { %v20425_v38 = vadd.f32 %v5281_v42, %v4985_v36  ;;  %7028 = vmatprep.subr.bf16.mxu1 %v16549_v62  ;;  %v16567_v42 = vld [vmem:[%s23689_s7 + $0x214] ss:$8 sps:$4 sm:$0xff]  }
 0x46e   : > { %v5283_v23 = vpop.f32.mrf.mxu1  ;;  %v5333_v1 = vpop.f32.mrf.mxu0 }
 0x46f   : > { %v20433_v35 = vadd.f32 %v5283_v23, %v4987_v20  ;;  %v20435_v21 = vadd.f32 %v5333_v1, %v4989_v9  ;;  %v16570_v23 = vld [vmem:[%s23689_s7 + $0x284] ss:$8 sps:$4 sm:$0xff]  }
 0x470   : > { %v20437_v28 = vpop.f32.mrf.mxu1  ;;  %v5335_v58 = vpop.f32.mrf.mxu0  ;;  %7029 = vmatpush2.bf16.msra.mxu1 %v16547_v26 }
 0x471   : > { %7030 = vmatprep.subr.bf16.mxu1 %v16555_v13 }
 0x472   : > { %v5289_v39 = vpop.f32.mrf.mxu1  ;;  %v5338_v22 = vpop.f32.mrf.mxu0 }
 0x473   : > { %v20445_v63 = vadd.f32 %v5289_v39, %v4990_v8  ;;  %v20447_v48 = vadd.f32 %v5338_v22, %v4992_v57  ;;  %v16532_v8 = vld [vmem:[%s23689_s7 + $0x2e0] ss:$8 sps:$4 sm:$0xff]   ;;  %v16534_v57 = vld [vmem:[%s23689_s7 + $0x2e4] ss:$8 sps:$4 sm:$0xff]  }
 0x474   : > { %v5291_v45 = vpop.f32.mrf.mxu1  ;;  %v5340_v4 = vpop.f32.mrf.mxu0  ;;  %7059 = vmatprep.subr.bf16.mxu0 %v16534_v57  ;;  %7031 = vmatpush2.bf16.msra.mxu1 %v16553_v59 }
 0x475   : > { %v20449_v36 = vadd.f32 %v5291_v45, %v4991_v11  ;;  %7060 = vmatpush1.bf16.msra.mxu0 %v16532_v8  ;;  %v16540_v11 = vld [vmem:[%s23689_s7 + $0x2d4] ss:$8 sps:$4 sm:$0xff]   ;;  %7032 = vmatprep.subr.bf16.mxu1 %v16561_v60  ;;  %v3786_v60 = vadd.f32 %v19919_v47, %v19764_v25 }
 0x476   : > { %v5293_v61 = vpop.f32.mrf.mxu1  ;;  %v5341_v20 = vpop.f32.mrf.mxu0  ;;  %7061 = vmatprep.subr.bf16.mxu0 %v16540_v11  ;;  %v16576_v45 = vld [vmem:[%s23689_s7 + $0x74] ss:$8 sps:$4 sm:$0xff]  }
 0x477   : > { %v16571_v61 = vld [vmem:[%s23689_s7 + $0x200] ss:$8 sps:$4 sm:$0xff]  }
 0x478   : > { %v5294_v9 = vpop.f32.mrf.mxu1  ;;  %v5342_v29 = vpop.f32.mrf.mxu0  ;;  %7033 = vmatpush2.bf16.msra.mxu1 %v16559_v31  ;;  %v4214_v31 = vadd.f32 %v20088_v6, %v3786_v60 }
 0x479   : > { %7062 = vmatpush1.bf16.msra.mxu0 %v16538_v12  ;;  %7034 = vmatprep.subr.bf16.mxu1 %v16567_v42 }
 0x47a   : > { %7063 = vmatprep.subr.bf16.mxu0 %v16546_v30 }
 0x47c   : > { %7035 = vmatpush2.bf16.msra.mxu1 %v16565_v7 }
 0x47d   : > { %7064 = vmatpush1.bf16.msra.mxu0 %v16544_v40 }
 0x47e   : > { %7065 = vmatprep.subr.bf16.mxu0 %v16552_v41 }
 0x481   : > { %7066 = vmatpush1.bf16.msra.mxu0 %v16550_v19 }
 0x482   : > { %7067 = vmatprep.subr.bf16.mxu0 %v16558_v43 }
 0x485   : > { %7068 = vmatpush1.bf16.msra.mxu0 %v16556_v2 }
 0x486   : > { %7069 = vmatprep.subr.bf16.mxu0 %v16564_v44  ;;  %v6517_v44 = vsub.s32 2, %v18881_v56 }
 0x489   : > { %7070 = vmatpush1.bf16.msra.mxu0 %v16562_v16 }
 0x48a   : > { %7071 = vmatprep.subr.bf16.mxu0 %v16570_v23 }
 0x49b   : > { %v5658_v37 = vpop.f32.mrf.mxu1  ;;  %v5709_v18 = vpop.f32.mrf.mxu0 }
 0x49c   : > { %v5723_v54 = vadd.f32 %v5658_v37, %v20421_v33  ;;  %v5725_v34 = vadd.f32 %v5709_v18, %v20423_v15  ;;  %v16568_v33 = vld [vmem:[%s23689_s7 + $0x280] ss:$8 sps:$4 sm:$0xff]   ;;  %v16573_v15 = vld [vmem:[%s23689_s7 + $0x204] ss:$8 sps:$4 sm:$0xff]   ;;  %v4589_v18 = vadd.f32 %v20247_v27, %v4214_v31 }
 0x49d   : > { %v5660_v1 = vpop.f32.mrf.mxu1  ;;  %v5711_v46 = vpop.f32.mrf.mxu0  ;;  %7072 = vmatpush1.bf16.msra.mxu0 %v16568_v33  ;;  %7036 = vmatprep.subr.bf16.mxu1 %v16573_v15  ;;  %v6505_v37 = vld [vmem:[%s23688_s6] sm:$0x7] }
 0x49e   : > { %v5724_v58 = vadd.f32 %v5660_v1, %v20425_v38  ;;  %7348 = vmatprep.subr.bf16.mxu0 %v16576_v45  ;;  %7037 = vmatpush2.bf16.msra.mxu1 %v16571_v61  ;;  %v6510_v23 = vrot.slane %v6505_v37, %v18896_v52  ;;  %v6518_v1 = vrot.slane %v6505_v37, %v6517_v44 }
 0x49f   : > { %v5662_v39 = vpop.f32.mrf.mxu1  ;;  %v5712_v22 = vpop.f32.mrf.mxu0  ;;  %v4988_v46 = vadd.f32 %v20374_v32, %v4589_v18 }
 0x4a0   : > { %v5726_v0 = vadd.f32 %v5662_v39, %v20433_v35  ;;  %v20546_v38 = vadd.f32 %v5712_v22, %v20435_v21  ;;  %v16579_v35 = vld [vmem:[%s23689_s7 + $0x174] ss:$8 sps:$4 sm:$0xff]   ;;  %v6514_v22 = vrot.slane %v6505_v37, %v18899_v10 }
 0x4a1   : > { %v5664_v4 = vpop.f32.mrf.mxu1  ;;  %v5714_v3 = vpop.f32.mrf.mxu0  ;;  %7399 = vmatprep.subr.bf16.mxu1 %v16579_v35  ;;  %v5348_v33 = vadd.f32 %v20437_v28, %v4988_v46 }
 0x4a3   : > { %v5668_v20 = vpop.f32.mrf.mxu1  ;;  %v5717_v9 = vpop.f32.mrf.mxu0  ;;  %v5727_v61 = vadd.f32 %v5664_v4, %v5348_v33 }
 0x4a4   : > { %v5729_v21 = vadd.f32 %v5668_v20, %v20445_v63  ;;  %v5731_v29 = vadd.f32 %v5717_v9, %v20447_v48 }
 0x4a5   : > { %v5670_v5 = vpop.f32.mrf.mxu1  ;;  %v5719_v24 = vpop.f32.mrf.mxu0 }
 0x4a6   : > { %v20560_v8 = vadd.f32 %v5670_v5, %v20449_v36 }
 0x4a7   : > { %v5672_v57 = vpop.f32.mrf.mxu1  ;;  %v5720_v14 = vpop.f32.mrf.mxu0 }
 0x4a9   : > { %v5673_v53 = vpop.f32.mrf.mxu1  ;;  %v5721_v11 = vpop.f32.mrf.mxu0 }
 0x4cc   : > { %v6057_v12 = vpop.f32.mrf.mxu1  ;;  %v6108_v17 = vpop.f32.mrf.mxu0 }
 0x4cd   : > { %v6122_v16 = vadd.f32 %v6057_v12, %v5723_v54  ;;  %v6124_v42 = vadd.f32 %v6108_v17, %v5725_v34 }
 0x4ce   : > { %v6059_v55 = vpop.f32.mrf.mxu1  ;;  %v6110_v40 = vpop.f32.mrf.mxu0 }
 0x4cf   : > { %v6123_v7 = vadd.f32 %v6059_v55, %v5724_v58 }
 0x4d0   : > { %v6061_v30 = vpop.f32.mrf.mxu1  ;;  %v6111_v63 = vpop.f32.mrf.mxu0 }
 0x4d1   : > { %v6125_v54 = vadd.f32 %v6061_v30, %v5726_v0  ;;  %v6127_v20 = vadd.f32 %v6111_v63, %v20546_v38 }
 0x4d2   : > { %v6063_v62 = vpop.f32.mrf.mxu1  ;;  %v6113_v48 = vpop.f32.mrf.mxu0 }
 0x4d3   : > { %v6126_v57 = vadd.f32 %v6063_v62, %v5727_v61 }
 0x4d4   : > { %v6067_v41 = vpop.f32.mrf.mxu1  ;;  %v6116_v26 = vpop.f32.mrf.mxu0 }
 0x4d5   : > { %v6128_v14 = vadd.f32 %v6067_v41, %v5729_v21  ;;  %v6130_v53 = vadd.f32 %v6116_v26, %v5731_v29 }
 0x4d6   : > { %v6069_v19 = vpop.f32.mrf.mxu1  ;;  %v6118_v13 = vpop.f32.mrf.mxu0 }
 0x4d7   : > { %v6129_v4 = vadd.f32 %v6069_v19, %v20560_v8 }
 0x4d8   : > { %v6071_v36 = vpop.f32.mrf.mxu1  ;;  %v6119_v43 = vpop.f32.mrf.mxu0 }
 0x4da   : > { %v6072_v59 = vpop.f32.mrf.mxu1  ;;  %v6120_v2 = vpop.f32.mrf.mxu0 }
 0x4fd   : > { %v6431_v25 = vpop.f32.mrf.mxu1  ;;  %v6482_v47 = vpop.f32.mrf.mxu0 }
 0x4fe   : > { %v6496_v39 = vadd.f32 %v6431_v25, %v6122_v16  ;;  %v6498_v6 = vadd.f32 %v6482_v47, %v6124_v42 }
 0x4ff   : > { %v6433_v15 = vpop.f32.mrf.mxu1  ;;  %v6484_v27 = vpop.f32.mrf.mxu0 }
 0x500   : > { %v6522_v34 = vadd.f32 %v6510_v23, %v6496_v39  ;;  %v6524_v45 = vadd.f32 %v6518_v1, %v6498_v6  ;;  %v6497_v3 = vadd.f32 %v6433_v15, %v6123_v7 }
 0x501   : > { %v6435_v9 = vpop.f32.mrf.mxu1  ;;  %v6485_v32 = vpop.f32.mrf.mxu0 }
 0x502   : > { %v6531_v35 = vmax.f32 %v6522_v34, 0.0  ;;  %v6533_v5 = vmax.f32 %v6524_v45, 0.0  ;;  %v6523_v58 = vadd.f32 %v6514_v22, %v6497_v3  ;;  %v6499_v24 = vadd.f32 %v6435_v9, %v6125_v54  ;;  %v6658_v54 = vld [vmem:[#allocation4 + $0x88] sm:$0x1] }
 0x503   : > { %v6501_v11 = vadd.f32 %v6485_v32, %v6127_v20  ;;  %v6437_v28 = vpop.f32.mrf.mxu1  ;;  %v6487_v12 = vpop.f32.mrf.mxu0  ;;  %v6659_v34 = vld [vmem:[#allocation4 + $0x28] sm:$0x1] }
 0x504   : > { %v6543_v17 = vrot.slane %v6531_v35, 1  ;;  %v6545_v0 = vrot.slane %v6533_v5, 1  ;;  %v6532_v55 = vmax.f32 %v6523_v58, 0.0  ;;  %v6525_v40 = vadd.f32 %v6510_v23, %v6499_v24 }
 0x505   : > { %v6527_v30 = vadd.f32 %v6518_v1, %v6501_v11  ;;  %v6500_v38 = vadd.f32 %v6437_v28, %v6126_v57  ;;  %v6441_v63 = vpop.f32.mrf.mxu1  ;;  %v6490_v48 = vpop.f32.mrf.mxu0 }
 0x506   : > { %6549 = vst [vmem:[#allocation4 + $0x18] ss:$-20 sps:$4 sm:$0x87] %v6543_v17   ;;  %6551 = vst [vmem:[#allocation4 + $0x68] ss:$-20 sps:$4 sm:$0x87] %v6545_v0   ;;  %v6502_v62 = vadd.f32 %v6441_v63, %v6128_v14  ;;  %v6504_v21 = vadd.f32 %v6490_v48, %v6130_v53 }
 0x507   : > { %v6544_v13 = vrot.slane %v6532_v55, 1  ;;  %v6534_v36 = vmax.f32 %v6525_v40, 0.0  ;;  %v6536_v29 = vmax.f32 %v6527_v30, 0.0  ;;  %v6526_v41 = vadd.f32 %v6514_v22, %v6500_v38  ;;  %v6443_v26 = vpop.f32.mrf.mxu1  ;;  %v6492_v43 = vpop.f32.mrf.mxu0  ;;  %v16574_v48 = vld [vmem:[%s23689_s7 + $0x70] ss:$8 sps:$4 sm:$0xff]  }
 0x508   : > { %v6528_v2 = vadd.f32 %v6510_v23, %v6502_v62  ;;  %v6530_v60 = vadd.f32 %v6518_v1, %v6504_v21  ;;  %v6503_v31 = vadd.f32 %v6443_v26, %v6129_v4 }
 0x509   : > { %6550 = vst [vmem:[#allocation4 + $0x30] ss:$12 sps:$4 sm:$0x87] %v6544_v13   ;;  %v6559_v59 = vrot.slane %v6534_v36, 1  ;;  %v6563_v8 = vrot.slane %v6536_v29, 1  ;;  %v6535_v19 = vmax.f32 %v6526_v41, 0.0  ;;  %v6445_v37 = vpop.f32.mrf.mxu1  ;;  %v6493_v18 = vpop.f32.mrf.mxu0 }
 0x50a   : > { %v6537_v42 = vmax.f32 %v6528_v2, 0.0  ;;  %v6539_v46 = vmax.f32 %v6530_v60, 0.0  ;;  %v6529_v25 = vadd.f32 %v6514_v22, %v6503_v31  ;;  %v6660_v22 = vld [vmem:[#allocation4 + $0x40] sm:$0x1]  ;;  %v16582_v41 = vld [vmem:[%s23689_s7 + $0x64] ss:$8 sps:$4 sm:$0xff]  }
 0x50b   : > { %v6560_v16 = vsel %vm3904_vm9, %v6543_v17, %v6559_v59  ;;  %6574 = vst [vmem:[#allocation4 + $0x78] sm:$0x79] %v6559_v59   ;;  %v6564_v47 = vsel %vm3904_vm9, %v6545_v0, %v6563_v8  ;;  %6576 = vst [vmem:[#allocation4 + $0x8] sm:$0x79] %v6563_v8   ;;  %v6561_v7 = vrot.slane %v6535_v19, 1  ;;  %v6446_v39 = vpop.f32.mrf.mxu1  ;;  %v6494_v6 = vpop.f32.mrf.mxu0 }
 0x50c   : > { %6571 = vst [vmem:[#allocation4 + $0x18] sm:$0xe0] %v6560_v16  ;;  %6573 = vst [vmem:[#allocation4 + $0x68] sm:$0xe0] %v6564_v47  ;;  %v6583_v23 = vrot.slane %v6537_v42, 1  ;;  %v6585_v1 = vrot.slane %v6539_v46, 1 }
 0x50d   : > { %v6538_v33 = vmax.f32 %v6529_v25, 0.0  ;;  %v6562_v15 = vsel %vm3904_vm9, %v6544_v13, %v6561_v7  ;;  %6575 = vst [vmem:[#allocation4 + $0x80] sm:$0x79] %v6561_v7   ;;  %v6655_v20 = vld [vmem:[#allocation4] sm:$0xfe] }
 0x50e   : > { %6572 = vst [vmem:[#allocation4 + $0x30] sm:$0xe0] %v6562_v15  ;;  %6589 = vst [vmem:[#allocation4 + $0x88] sm:$0x1e] %v6583_v23  ;;  %v6657_v35 = vld [vmem:[#allocation4 + $0x50] sm:$0xfe] }
 0x50f   : > { %6591 = vst [vmem:[#allocation4 + $0x40] sm:$0x1e] %v6585_v1  ;;  %v6584_v27 = vrot.slane %v6538_v33, 1  ;;  %v7452_v46 = vld [vmem:[#allocation4 + $0x50] sm:$0xfc] }
 0x510   : > { %v6656_v28 = vld [vmem:[#allocation4 + $0x38] sm:$0xfe]  ;;  %v16577_v39 = vld [vmem:[%s23689_s7 + $0x170] ss:$8 sps:$4 sm:$0xff]  }
 0x511   : > { %6590 = vst [vmem:[#allocation4 + $0x28] sm:$0x1e] %v6584_v27  ;;  %v20605_v43 = vld [vmem:[#allocation4 + $0x38] sm:$0xff]  ;;  %v7450_v1 = vld [vmem:[#allocation4] sm:$0xfc] }
 0x512   : > { %v20581_v45 = vld [vmem:[#allocation4 + $0x78] sm:$0xff]  ;;  %v20583_v3 = vld [vmem:[#allocation4 + $0x8] sm:$0xff] }
 0x513   : > { %v20585_v61 = vld [vmem:[#allocation4 + $0x18] sm:$0xff]  ;;  %v6664_v9 = vpack.c.bf16 %v6658_v54, %v20581_v45  ;;  %v20588_v32 = vld [vmem:[#allocation4 + $0x68] sm:$0xff]  ;;  %v6666_v5 = vpack.c.bf16 %v6660_v22, %v20583_v3 }
 0x514   : > { %v6661_v58 = vpack.c.bf16 %v20585_v61, %v6655_v20  ;;  %v6663_v24 = vpack.c.bf16 %v20588_v32, %v6657_v35  ;;  %v20593_v57 = vld [vmem:[#allocation4 + $0x80] sm:$0xff]  ;;  %v7458_v23 = vpack.c.bf16 %v20588_v32, %v7452_v46  ;;  %v16580_v33 = vld [vmem:[%s23689_s7 + $0x60] ss:$8 sps:$4 sm:$0xff]   ;;  %v7456_v54 = vpack.c.bf16 %v20585_v61, %v7450_v1  ;;  %v16585_v35 = vld [vmem:[%s23689_s7 + $0x164] ss:$8 sps:$4 sm:$0xff]  }
 0x515   : > { %v6723_v14 = vshll.u32 %v6664_v9, 16  ;;  %v6747_v53 = vshll.u32 %v6666_v5, 16  ;;  %v20595_v11 = vld [vmem:[#allocation4 + $0x30] sm:$0xff]  ;;  %v6665_v12 = vpack.c.bf16 %v6659_v34, %v20593_v57  ;;  %v6757_v26 = vshrl.u32 %v6666_v5, 16  ;;  %v7453_v19 = vld [vmem:[#allocation4 + $0x88] sm:$0x3] }
 0x516   : > { %v6718_v17 = vshll.u32 %v6661_v58, 16  ;;  %v6742_v0 = vshll.u32 %v6663_v24, 16  ;;  %v6662_v55 = vpack.c.bf16 %v20595_v11, %v6656_v28  ;;  %v6716_v40 = vshrl.u32 %v6661_v58, 16  ;;  %v7455_v8 = vld [vmem:[#allocation4 + $0x40] sm:$0x3] }
 0x517   : > { %v6749_v4 = vrot.slane %v6747_v53, 1  ;;  %v6735_v30 = vshll.u32 %v6665_v12, 16  ;;  %v6725_v63 = vrot.slane %v6723_v14, 1  ;;  %v6740_v13 = vshrl.u32 %v6663_v24, 16  ;;  %v7880_v34 = vld [vmem:[#allocation4 + $0x38] sm:$0xc0] }
 0x518   : > { %v6720_v38 = vrot.slane %v6718_v17, 1  ;;  %v6744_v36 = vrot.slane %v6742_v0, 1  ;;  %v6730_v62 = vshll.u32 %v6662_v55, 16  ;;  %v6751_v59 = vshrl.u32 %v6664_v9, 16  ;;  %v7883_v25 = vld [vmem:[#allocation4 + $0x28] sm:$0x3f] }
 0x519   : > { %v6737_v21 = vrot.slane %v6735_v30, 1  ;;  %v6728_v60 = vshrl.u32 %v6662_v55, 16  ;;  %v6754_v37 = vshrl.u32 %v6665_v12, 16  ;;  %v20607_v18 = vor.u32 %v6757_v26, %v6749_v4  ;;  %v7884_v20 = vld [vmem:[#allocation4 + $0x40] sm:$0x3f] }
 0x51a   : > { %v6721_v29 = vor.u32 %v6720_v38, %v6716_v40  ;;  %v6745_v2 = vor.u32 %v6744_v36, %v6740_v13  ;;  %v6732_v31 = vrot.slane %v6730_v62, 1  ;;  %v6602_v16 = vpack.c.bf16 %v20595_v11, %v20605_v43  ;;  %v16588_v5 = vld [vmem:[%s23689_s7 + $0x54] ss:$8 sps:$4 sm:$0xff]   ;;  %v7881_v14 = vld [vmem:[#allocation4 + $0x50] sm:$0xc0] }
 0x51b   : > { %v20611_v42 = vor.u32 %v6751_v59, %v6725_v63  ;;  %v6756_v15 = vor.u32 %v6754_v37, %v6737_v21  ;;  %v7461_v27 = vpack.c.bf16 %v7455_v8, %v20583_v3  ;;  %v7459_v22 = vpack.c.bf16 %v7453_v19, %v20581_v45  ;;  %v8312_v0 = vld [vmem:[#allocation4 + $0x28] sm:$0x7f]  ;;  %v8309_v38 = vld [vmem:[#allocation4 + $0x38] sm:$0x80] }
 0x51c   : > { %v6750_v47 = vsel %vm3217_vm8, %v6745_v2, %v6749_v4  ;;  %v6733_v7 = vor.u32 %v6732_v31, %v6728_v60  ;;  %v6726_v6 = vsel %vm3217_vm8, %v6721_v29, %v6725_v63  ;;  %v7886_v58 = vpack.c.bf16 %v20595_v11, %v7880_v34  ;;  %v7882_v63 = vld [vmem:[#allocation4 + $0x88] sm:$0x3f]  ;;  %v7879_v60 = vld [vmem:[#allocation4] sm:$0xc0]  ;;  %v16594_v8 = vld [vmem:[%s23689_s7 + $0x44] ss:$8 sps:$4 sm:$0xff]  }
 0x51d   : > { %7090 = vmatmul.mubr.bf16.vlgmr.msra.gmra.mxu0 %v6750_v47  ;;  %v7889_v24 = vpack.c.bf16 %v7883_v25, %v20593_v57  ;;  %v7522_v53 = vrot.slane %v7458_v23, 1  ;;  %v20635_v28 = vrot.slane %v7461_v27, 1  ;;  %v7516_v12 = vrot.slane %v7456_v54, 1  ;;  %v16586_v13 = vld [vmem:[%s23689_s7 + $0x50] ss:$8 sps:$4 sm:$0xff]  }
 0x51e   : > { %7349 = vmatpush1.bf16.msra.mxu0 %v16574_v48  ;;  %v6738_v9 = vsel %vm3217_vm8, %v6733_v7, %v6737_v21  ;;  %7099 = vmatprep.mubr.bf16.mxu0 %v23769_v50  ;;  %v20637_v17 = vrot.slane %v7459_v22, 1  ;;  %v7948_v55 = vrot.slane %v7886_v58, 3  ;;  %v7887_v4 = vpack.c.bf16 %v20588_v32, %v7881_v14  ;;  %v16583_v48 = vld [vmem:[%s23689_s7 + $0x160] ss:$8 sps:$4 sm:$0xff]   ;;  %v16591_v29 = vld [vmem:[%s23689_s7 + $0x154] ss:$8 sps:$4 sm:$0xff]  }
 0x51f   : > { %7038 = vmatprep.mubr.bf16.mxu1 %v6738_v9  ;;  %7350 = vmatprep.subr.bf16.mxu0 %v16582_v41  ;;  %v20639_v40 = vrot.slane %v7889_v24, 3  ;;  %v7890_v30 = vpack.c.bf16 %v7884_v20, %v20583_v3  ;;  %v20651_v36 = vsel %vm3904_vm9, %v7522_v53, %v20635_v28  ;;  %v8315_v21 = vpack.c.bf16 %v20595_v11, %v8309_v38  ;;  %v16589_v31 = vld [vmem:[%s23689_s7 + $0x150] ss:$8 sps:$4 sm:$0xff]   ;;  %v8310_v47 = vld [vmem:[#allocation4 + $0x50] sm:$0x80] }
 0x520   : > { %7039 = vmatmul.mubr.bf16.vlgmr.msra.gmra.mxu1 %v6726_v6  ;;  %v20655_v62 = vsel %vm3904_vm9, %v7516_v12, %v20637_v17  ;;  %v7951_v26 = vrot.slane %v7887_v4, 3  ;;  %v8318_v2 = vpack.c.bf16 %v8312_v0, %v20593_v57  ;;  %v7885_v46 = vpack.c.bf16 %v20585_v61, %v7879_v60  ;;  %v16592_v7 = vld [vmem:[%s23689_s7 + $0x40] ss:$8 sps:$4 sm:$0xff]   ;;  %v8311_v20 = vld [vmem:[#allocation4 + $0x88] sm:$0x7f] }
 0x521   : > { %7400 = vmatpush1.bf16.msra.mxu1 %v16577_v39  ;;  %7048 = vmatprep.mubr.bf16.mxu1 %v6756_v15  ;;  %v20663_v41 = vsel %vm4279_vm10, %v7948_v55, %v20639_v40  ;;  %v20665_v59 = vrot.slane %v7890_v30, 3  ;;  %v8386_v19 = vshrl.u32 %v8315_v21, 16  ;;  %v8389_v37 = vshll.u32 %v8315_v21, 16  ;;  %v16597_v39 = vld [vmem:[%s23689_s7 + $0x144] ss:$8 sps:$4 sm:$0xff]  }
 0x522   : > { %7351 = vmatpush1.bf16.msra.mxu0 %v16580_v33  ;;  %7401 = vmatprep.subr.bf16.mxu1 %v16585_v35  ;;  %v7888_v25 = vpack.c.bf16 %v7882_v63, %v20581_v45  ;;  %v8394_v23 = vshrl.u32 %v8318_v2, 16  ;;  %v8397_v1 = vshll.u32 %v8318_v2, 16  ;;  %v8313_v33 = vld [vmem:[#allocation4 + $0x40] sm:$0x7f]  ;;  %v8316_v15 = vpack.c.bf16 %v20588_v32, %v8310_v47  ;;  %v8308_v24 = vld [vmem:[#allocation4] sm:$0x80] }
 0x523   : > { %7352 = vmatprep.subr.bf16.mxu0 %v16588_v5  ;;  %v20684_v6 = vsel %vm4279_vm10, %v7951_v26, %v20665_v59  ;;  %v8388_v27 = vrot.slane %v8386_v19, 3  ;;  %v8391_v54 = vrot.slane %v8389_v37, 4  ;;  %v7945_v22 = vrot.slane %v7885_v46, 3  ;;  %v16595_v30 = vld [vmem:[%s23689_s7 + $0x140] ss:$8 sps:$4 sm:$0xff]  }
 0x524   : > { %v20688_v34 = vrot.slane %v7888_v25, 3  ;;  %v8396_v9 = vrot.slane %v8394_v23, 3  ;;  %v8399_v35 = vrot.slane %v8397_v1, 4  ;;  %v8319_v5 = vpack.c.bf16 %v8313_v33, %v20583_v3  ;;  %v16603_v21 = vld [vmem:[%s23689_s7 + $0x134] ss:$8 sps:$4 sm:$0xff]  }
 0x525   : > { %7402 = vmatpush1.bf16.msra.mxu1 %v16583_v48  ;;  %7100 = vmatmul.mubr.bf16.gmra.mxu0 %v20607_v18  ;;  %v8403_v58 = vshrl.u32 %v8316_v15, 16  ;;  %v16600_v18 = vld [vmem:[%s23689_s7 + $0x34] ss:$8 sps:$4 sm:$0xff]   ;;  %v8392_v14 = vor.u32 %v8391_v54, %v8388_v27  ;;  %v8406_v12 = vshll.u32 %v8316_v15, 16  ;;  %v8314_v43 = vpack.c.bf16 %v20585_v61, %v8308_v24  ;;  %v16606_v26 = vld [vmem:[%s23689_s7 + $0x24] ss:$8 sps:$4 sm:$0xff]  }
 0x526   : > { %7353 = vmatpush1.bf16.msra.mxu0 %v16586_v13  ;;  %7380 = vmatprep.mubr.bf16.mxu0 %v6602_v16  ;;  %v20699_v53 = vsel %vm4279_vm10, %v7945_v22, %v20688_v34  ;;  %v20703_v16 = vor.u32 %v8399_v35, %v8396_v9  ;;  %v8317_v0 = vpack.c.bf16 %v8311_v20, %v20581_v45  ;;  %v8414_v48 = vshll.u32 %v8319_v5, 16  ;;  %v16598_v13 = vld [vmem:[%s23689_s7 + $0x30] ss:$8 sps:$4 sm:$0xff]   ;;  %v16604_v23 = vld [vmem:[%s23689_s7 + $0x20] ss:$8 sps:$4 sm:$0xff]  }
 0x527   : > { %7403 = vmatprep.subr.bf16.mxu1 %v16591_v29  ;;  %7354 = vmatprep.subr.bf16.mxu0 %v16594_v8  ;;  %v8777_v55 = vpack.c.bf16 %v20593_v57, %v20595_v11  ;;  %v8778_v4 = vpack.c.bf16 %v20583_v3, %v20588_v32  ;;  %v8405_v38 = vrot.slane %v8403_v58, 3  ;;  %v8408_v63 = vrot.slane %v8406_v12, 4  ;;  %v16601_v46 = vld [vmem:[%s23689_s7 + $0x130] ss:$8 sps:$4 sm:$0xff]   ;;  %v16609_v1 = vld [vmem:[%s23689_s7 + $0x124] ss:$8 sps:$4 sm:$0xff]  }
 0x528   : > { %7049 = vmatmul.mubr.bf16.gmra.mxu1 %v20611_v42  ;;  %v8411_v42 = vshrl.u32 %v8319_v5, 16  ;;  %v20722_v29 = vsel %vm4650_vm11, %v8392_v14, %v20703_v16  ;;  %v8416_v60 = vrot.slane %v8414_v48, 4  ;;  %v8372_v8 = vshll.u32 %v8314_v43, 16  ;;  %v16612_v33 = vld [vmem:[%s23689_s7 + $0x14] ss:$8 sps:$4 sm:$0xff]  }
 0x529   : > { %7404 = vmatpush1.bf16.msra.mxu1 %v16589_v31  ;;  %7431 = vmatprep.mubr.bf16.mxu1 %v23769_v50  ;;  %v8369_v31 = vshrl.u32 %v8314_v43, 16  ;;  %v8377_v19 = vshrl.u32 %v8317_v0, 16  ;;  %v8380_v37 = vshll.u32 %v8317_v0, 16  ;;  %v8409_v25 = vor.u32 %v8408_v63, %v8405_v38  ;;  %v16607_v20 = vld [vmem:[%s23689_s7 + $0x120] ss:$8 sps:$4 sm:$0xff]   ;;  %v9182_v12 = vld [vmem:[#allocation4 + $0x80] sm:$0xff] }
 0x52a   : > { %7355 = vmatpush1.bf16.msra.mxu0 %v16592_v7  ;;  %7405 = vmatprep.subr.bf16.mxu1 %v16597_v39  ;;  %v8413_v2 = vrot.slane %v8411_v42, 3  ;;  %v8776_v39 = vpack.c.bf16 %v20581_v45, %v20585_v61  ;;  %v8374_v27 = vrot.slane %v8372_v8, 4  ;;  %v16610_v9 = vld [vmem:[%s23689_s7 + $0x10] ss:$8 sps:$4 sm:$0xff]   ;;  %v16615_v58 = vld [vmem:[%s23689_s7 + $0x114] ss:$8 sps:$4 sm:$0xff]  }
 0x52b   : > { %7356 = vmatprep.subr.bf16.mxu0 %v16600_v18  ;;  %v8371_v7 = vrot.slane %v8369_v31, 3  ;;  %v8379_v54 = vrot.slane %v8377_v19, 3  ;;  %v8382_v22 = vrot.slane %v8380_v37, 4  ;;  %v16618_v24 = vld [vmem:[%s23689_s7 + $0x4] ss:$8 sps:$4 sm:$0xff]   ;;  %v20765_v43 = vld [vmem:[#allocation4 + $0x28] sm:$0xff] }
 0x52c   : > { %v20730_v47 = vor.u32 %v8416_v60, %v8413_v2  ;;  %v10082_v18 = vld [vmem:[#allocation4 + $0x90] sm:$0x3f]  ;;  %v10079_v0 = vld [vmem:[#allocation4 + $0x30] sm:$0xc0]  ;;  %v9183_v2 = vld [vmem:[#allocation4 + $0x8] sm:$0xff] }
 0x52d   : > { %7406 = vmatpush1.bf16.msra.mxu1 %v16595_v30  ;;  %v8375_v35 = vor.u32 %v8374_v27, %v8371_v7  ;;  %v20753_v5 = vor.u32 %v8382_v22, %v8379_v54  ;;  %v16613_v30 = vld [vmem:[%s23689_s7 + $0x110] ss:$8 sps:$4 sm:$0xff]   ;;  %v16616_v38 = vld [vmem:[%s23689_s7] ss:$8 sps:$4 sm:$0xff]   ;;  %v16621_v63 = vld [vmem:[%s23689_s7 + $0x104] ss:$8 sps:$4 sm:$0xff]   ;;  %v10085_v42 = vpack.c.bf16 %v9182_v12, %v10079_v0  ;;  %v10088_v48 = vpack.c.bf16 %v10082_v18, %v20765_v43 }
 0x52e   : > { %7357 = vmatpush1.bf16.msra.mxu0 %v16598_v13  ;;  %7407 = vmatprep.subr.bf16.mxu1 %v16603_v21  ;;  %v20745_v15 = vsel %vm4650_vm11, %v8409_v25, %v20730_v47  ;;  %v16619_v13 = vld [vmem:[%s23689_s7 + $0x100] ss:$8 sps:$4 sm:$0xff]   ;;  %v16624_v21 = vld [vmem:[%s23689_s7 + $0xf4] ss:$8 sps:$4 sm:$0xff]   ;;  %v16630_v25 = vld [vmem:[%s23689_s7 + $0xe4] ss:$8 sps:$4 sm:$0xff]  }
 0x52f   : > { %7358 = vmatprep.subr.bf16.mxu0 %v16606_v26  ;;  %v20763_v14 = vsel %vm4650_vm11, %v8375_v35, %v20753_v5  ;;  %v16622_v26 = vld [vmem:[%s23689_s7 + $0xf0] ss:$8 sps:$4 sm:$0xff]   ;;  %v10080_v60 = vld [vmem:[#allocation4 + $0x68] sm:$0xc0]  ;;  %v10147_v31 = vrot.slane %v10085_v42, 3  ;;  %v20786_v8 = vrot.slane %v10088_v48, 3 }
 0x530   : > { %v10083_v19 = vld [vmem:[#allocation4 + $0x98] sm:$0x3f]  ;;  %v10081_v37 = vld [vmem:[#allocation4 + $0x60] sm:$0x3f]  ;;  %v10086_v27 = vpack.c.bf16 %v9183_v2, %v10080_v60  ;;  %v10078_v54 = vld [vmem:[#allocation4 + $0x18] sm:$0xc0] }
 0x531   : > { %7408 = vmatpush1.bf16.msra.mxu1 %v16601_v46  ;;  %v16627_v46 = vld [vmem:[%s23689_s7 + $0x374] ss:$8 sps:$4 sm:$0xff]   ;;  %v6594_v22 = vld [vmem:[#allocation4 + $0x50] sm:$0xff]  ;;  %v16634_v60 = vld [vmem:[%s23689_s7 + $0xd0] ss:$8 sps:$4 sm:$0xff]  }
 0x532   : > { %7359 = vmatpush1.bf16.msra.mxu0 %v16604_v23  ;;  %7409 = vmatprep.subr.bf16.mxu1 %v16609_v1  ;;  %v20794_v7 = vld [vmem:[#allocation4 + $0x40] sm:$0xff]  ;;  %v8773_v23 = vld [vmem:[#allocation4 + $0x88] sm:$0xff]  ;;  %v9181_v1 = vld [vmem:[#allocation4 + $0x78] sm:$0xff] }
 0x533   : > { %7360 = vmatprep.subr.bf16.mxu0 %v16612_v33  ;;  %v20798_v33 = vsel %vm4279_vm10, %v10147_v31, %v20786_v8  ;;  %v10089_v35 = vpack.c.bf16 %v10083_v19, %v20794_v7  ;;  %v16633_v18 = vld [vmem:[%s23689_s7 + $0x364] ss:$8 sps:$4 sm:$0xff]   ;;  %v10084_v12 = vpack.c.bf16 %v9181_v1, %v10078_v54  ;;  %v10087_v0 = vpack.c.bf16 %v10081_v37, %v8773_v23  ;;  %v16639_v31 = vld [vmem:[%s23689_s7 + $0x354] ss:$8 sps:$4 sm:$0xff]   ;;  %v16637_v23 = vld [vmem:[%s23689_s7 + $0x350] ss:$8 sps:$4 sm:$0xff]  }
 0x534   : > { %v6606_v1 = vpack.c.bf16 %v20583_v3, %v20583_v3  ;;  %v16927_v3 = vld [vmem:[%s23689_s7 + $0x954] ss:$8 sps:$4 sm:$0xff]  }
 0x535   : > { %7410 = vmatpush1.bf16.msra.mxu1 %v16607_v20  ;;  %v16625_v20 = vld [vmem:[%s23689_s7 + $0x370] ss:$8 sps:$4 sm:$0xff]   ;;  %v10144_v48 = vrot.slane %v10084_v12, 3 }
 0x536   : > { %7361 = vmatpush1.bf16.msra.mxu0 %v16610_v9  ;;  %7411 = vmatprep.subr.bf16.mxu1 %v16615_v58  ;;  %v7454_v9 = vld [vmem:[#allocation4 + $0x28] sm:$0x3]  ;;  %v6603_v58 = vpack.c.bf16 %v20588_v32, %v6594_v22  ;;  %v16645_v22 = vld [vmem:[%s23689_s7 + $0x344] ss:$8 sps:$4 sm:$0xff]   ;;  %v21475_v32 = vld [vmem:[#allocation4 + $0x80] sm:$0xff] }
 0x537   : > { %7362 = vmatprep.subr.bf16.mxu0 %v16618_v24  ;;  %v16628_v24 = vld [vmem:[%s23689_s7 + $0xe0] ss:$8 sps:$4 sm:$0xff]   ;;  %v7460_v42 = vpack.c.bf16 %v7454_v9, %v20593_v57  ;;  %v16649_v12 = vld [vmem:[%s23689_s7 + $0x330] ss:$8 sps:$4 sm:$0xff]  }
 0x539   : > { %7412 = vmatpush1.bf16.msra.mxu1 %v16613_v30  ;;  %v16636_v30 = vld [vmem:[%s23689_s7 + $0xd4] ss:$8 sps:$4 sm:$0xff]  }
 0x53a   : > { %7363 = vmatpush1.bf16.msra.mxu0 %v16616_v38  ;;  %7413 = vmatprep.subr.bf16.mxu1 %v16621_v63  ;;  %v10150_v38 = vrot.slane %v10086_v27, 3  ;;  %v20814_v63 = vrot.slane %v10089_v35, 3  ;;  %v16640_v27 = vld [vmem:[%s23689_s7 + $0xc0] ss:$8 sps:$4 sm:$0xff]  }
 0x53b   : > { %7364 = vmatprep.subr.bf16.mxu0 %v16624_v21  ;;  %v16631_v21 = vld [vmem:[%s23689_s7 + $0x360] ss:$8 sps:$4 sm:$0xff]  }
 0x53c   : > { %v20825_v2 = vsel %vm4279_vm10, %v10150_v38, %v20814_v63  ;;  %v16643_v35 = vld [vmem:[%s23689_s7 + $0x340] ss:$8 sps:$4 sm:$0xff]   ;;  %v16660_v38 = vld [vmem:[%s23689_s7 + $0x94] ss:$8 sps:$4 sm:$0xff]  }
 0x53d   : > { %7414 = vmatpush1.bf16.msra.mxu1 %v16619_v13  ;;  %v20817_v13 = vrot.slane %v10087_v0, 3  ;;  %v16652_v0 = vld [vmem:[%s23689_s7 + $0xa0] ss:$8 sps:$4 sm:$0xff]  }
 0x53e   : > { %7365 = vmatpush2.bf16.msra.mxu0 %v16622_v26  ;;  %7771 = vmatprep.subr.bf16.mxu1 %v16627_v46  ;;  %v7451_v26 = vld [vmem:[#allocation4 + $0x38] sm:$0xfc] }
 0x53f   : > { %7366 = vmatprep.subr.bf16.mxu0 %v16630_v25  ;;  %v7457_v19 = vpack.c.bf16 %v20595_v11, %v7451_v26  ;;  %v20836_v37 = vsel %vm4279_vm10, %v10144_v48, %v20817_v13  ;;  %v16642_v46 = vld [vmem:[%s23689_s7 + $0xc4] ss:$8 sps:$4 sm:$0xff]   ;;  %v20841_v25 = vrot.slane %v7460_v42, 1  ;;  %v16655_v42 = vld [vmem:[%s23689_s7 + $0x320] ss:$8 sps:$4 sm:$0xff]  }
 0x540   : > { %7432 = vmatmul.mubr.bf16.vlgmr.msra.gmra.mxu1 %v6603_v58  ;;  %v16646_v58 = vld [vmem:[%s23689_s7 + $0xb0] ss:$8 sps:$4 sm:$0xff]   ;;  %v16666_v26 = vld [vmem:[%s23689_s7 + $0x84] ss:$8 sps:$4 sm:$0xff]  }
 0x541   : > { %7772 = vmatpush1.bf16.msra.mxu1 %v16625_v20  ;;  %7441 = vmatprep.mubr.bf16.mxu1 %v23769_v50  ;;  %v7519_v54 = vrot.slane %v7457_v19, 1  ;;  %v16648_v20 = vld [vmem:[%s23689_s7 + $0xb4] ss:$8 sps:$4 sm:$0xff]   ;;  %v16658_v48 = vld [vmem:[%s23689_s7 + $0x90] ss:$8 sps:$4 sm:$0xff]  }
 0x542   : > { %7367 = vmatpush2.bf16.msra.mxu0 %v16628_v24  ;;  %7773 = vmatprep.subr.bf16.mxu1 %v16633_v18  ;;  %v16651_v24 = vld [vmem:[%s23689_s7 + $0x334] ss:$8 sps:$4 sm:$0xff]   ;;  %v16654_v18 = vld [vmem:[%s23689_s7 + $0xa4] ss:$8 sps:$4 sm:$0xff]  }
 0x543   : > { %7368 = vmatprep.subr.bf16.mxu0 %v16636_v30  ;;  %v7521_v9 = vsel %vm3904_vm9, %v7519_v54, %v20841_v25  ;;  %v16657_v30 = vld [vmem:[%s23689_s7 + $0x324] ss:$8 sps:$4 sm:$0xff]  }
 0x544   : > { %v16669_v19 = vld [vmem:[%s23689_s7 + $0x304] ss:$8 sps:$4 sm:$0xff]  }
 0x545   : > { %7774 = vmatpush1.bf16.msra.mxu1 %v16631_v21  ;;  %v16663_v21 = vld [vmem:[%s23689_s7 + $0x314] ss:$8 sps:$4 sm:$0xff]  }
 0x546   : > { %7369 = vmatpush2.bf16.msra.mxu0 %v16634_v60  ;;  %7775 = vmatprep.subr.bf16.mxu1 %v16639_v31  ;;  %v16661_v60 = vld [vmem:[%s23689_s7 + $0x310] ss:$8 sps:$4 sm:$0xff]   ;;  %v16664_v31 = vld [vmem:[%s23689_s7 + $0x80] ss:$8 sps:$4 sm:$0xff]  }
 0x547   : > { %7370 = vmatprep.subr.bf16.mxu0 %v16642_v46  ;;  %v16672_v46 = vld [vmem:[%s23689_s7 + $0x474] ss:$8 sps:$4 sm:$0xff]  }
 0x548   : > { %7442 = vmatmul.mubr.bf16.gmra.mxu1 %v6606_v1  ;;  %v6592_v1 = vld [vmem:[#allocation4] sm:$0xff] }
 0x549   : > { %7776 = vmatpush1.bf16.msra.mxu1 %v16637_v23  ;;  %7803 = vmatprep.mubr.bf16.mxu1 %v7521_v9  ;;  %v16667_v23 = vld [vmem:[%s23689_s7 + $0x300] ss:$8 sps:$4 sm:$0xff]   ;;  %v6601_v54 = vpack.c.bf16 %v20585_v61, %v6592_v1  ;;  %v6605_v9 = vpack.c.bf16 %v20593_v57, %v20593_v57  ;;  %v16697_v1 = vld [vmem:[%s23689_s7 + $0x3b0] ss:$8 sps:$4 sm:$0xff]  }
 0x54a   : > { %7371 = vmatpush2.bf16.msra.mxu0 %v16640_v27  ;;  %7777 = vmatprep.subr.bf16.mxu1 %v16645_v22  ;;  %v16670_v27 = vld [vmem:[%s23689_s7 + $0x470] ss:$8 sps:$4 sm:$0xff]   ;;  %v16675_v22 = vld [vmem:[%s23689_s7 + $0x3f4] ss:$8 sps:$4 sm:$0xff]  }
 0x54b   : > { %7372 = vmatprep.subr.bf16.mxu0 %v16648_v20  ;;  %v16678_v20 = vld [vmem:[%s23689_s7 + $0x464] ss:$8 sps:$4 sm:$0xff]  }
 0x54d   : > { %7778 = vmatpush1.bf16.msra.mxu1 %v16643_v35  ;;  %v16673_v35 = vld [vmem:[%s23689_s7 + $0x3f0] ss:$8 sps:$4 sm:$0xff]  }
 0x54e   : > { %7373 = vmatpush2.bf16.msra.mxu0 %v16646_v58  ;;  %7779 = vmatprep.subr.bf16.mxu1 %v16651_v24  ;;  %v16676_v58 = vld [vmem:[%s23689_s7 + $0x460] ss:$8 sps:$4 sm:$0xff]   ;;  %v16681_v24 = vld [vmem:[%s23689_s7 + $0x3e4] ss:$8 sps:$4 sm:$0xff]  }
 0x54f   : > { %7374 = vmatprep.subr.bf16.mxu0 %v16654_v18  ;;  %v16684_v18 = vld [vmem:[%s23689_s7 + $0x454] ss:$8 sps:$4 sm:$0xff]  }
 0x551   : > { %7780 = vmatpush1.bf16.msra.mxu1 %v16649_v12  ;;  %v16679_v12 = vld [vmem:[%s23689_s7 + $0x3e0] ss:$8 sps:$4 sm:$0xff]  }
 0x552   : > { %7375 = vmatpush2.bf16.msra.mxu0 %v16652_v0  ;;  %7781 = vmatprep.subr.bf16.mxu1 %v16657_v30  ;;  %v16682_v0 = vld [vmem:[%s23689_s7 + $0x450] ss:$8 sps:$4 sm:$0xff]   ;;  %v16687_v30 = vld [vmem:[%s23689_s7 + $0x3d4] ss:$8 sps:$4 sm:$0xff]  }
 0x553   : > { %7376 = vmatprep.subr.bf16.mxu0 %v16660_v38  ;;  %v6604_v38 = vpack.c.bf16 %v20581_v45, %v20581_v45  ;;  %v16972_v45 = vld [vmem:[%s23689_s7 + $0xa54] ss:$8 sps:$4 sm:$0xff]  }
 0x555   : > { %7782 = vmatpush1.bf16.msra.mxu1 %v16655_v42  ;;  %v16690_v42 = vld [vmem:[%s23689_s7 + $0x444] ss:$8 sps:$4 sm:$0xff]  }
 0x556   : > { %7377 = vmatpush2.bf16.msra.mxu0 %v16658_v48  ;;  %7783 = vmatprep.subr.bf16.mxu1 %v16663_v21  ;;  %v16685_v48 = vld [vmem:[%s23689_s7 + $0x3d0] ss:$8 sps:$4 sm:$0xff]   ;;  %v16688_v21 = vld [vmem:[%s23689_s7 + $0x440] ss:$8 sps:$4 sm:$0xff]  }
 0x557   : > { %7378 = vmatprep.subr.bf16.mxu0 %v16666_v26  ;;  %v16693_v26 = vld [vmem:[%s23689_s7 + $0x3c4] ss:$8 sps:$4 sm:$0xff]  }
 0x559   : > { %7784 = vmatpush1.bf16.msra.mxu1 %v16661_v60  ;;  %v16696_v60 = vld [vmem:[%s23689_s7 + $0x434] ss:$8 sps:$4 sm:$0xff]  }
 0x55a   : > { %7379 = vmatpush2.bf16.msra.mxu0 %v16664_v31  ;;  %7785 = vmatprep.subr.bf16.mxu1 %v16669_v19  ;;  %v16691_v31 = vld [vmem:[%s23689_s7 + $0x3c0] ss:$8 sps:$4 sm:$0xff]   ;;  %v16694_v19 = vld [vmem:[%s23689_s7 + $0x430] ss:$8 sps:$4 sm:$0xff]  }
 0x55b   : > { %7822 = vmatprep.subr.bf16.mxu0 %v16672_v46  ;;  %v16699_v46 = vld [vmem:[%s23689_s7 + $0x3b4] ss:$8 sps:$4 sm:$0xff]  }
 0x55d   : > { %7381 = vmatmul.mubr.bf16.vlgmr.msra.gmra.mxu0 %v6601_v54  ;;  %7786 = vmatpush1.bf16.msra.mxu1 %v16667_v23  ;;  %v16702_v23 = vld [vmem:[%s23689_s7 + $0x424] ss:$8 sps:$4 sm:$0xff]  }
 0x55e   : > { %7390 = vmatprep.mubr.bf16.mxu0 %v6605_v9  ;;  %7823 = vmatpush1.bf16.msra.mxu0 %v16670_v27  ;;  %v16700_v27 = vld [vmem:[%s23689_s7 + $0x420] ss:$8 sps:$4 sm:$0xff]   ;;  %v16705_v54 = vld [vmem:[%s23689_s7 + $0x3a4] ss:$8 sps:$4 sm:$0xff]   ;;  %v16706_v9 = vld [vmem:[%s23689_s7 + $0x410] ss:$8 sps:$4 sm:$0xff]  }
 0x55f   : > { %7787 = vmatprep.subr.bf16.mxu1 %v16675_v22  ;;  %7824 = vmatprep.subr.bf16.mxu0 %v16678_v20  ;;  %v16708_v22 = vld [vmem:[%s23689_s7 + $0x414] ss:$8 sps:$4 sm:$0xff]   ;;  %v16703_v20 = vld [vmem:[%s23689_s7 + $0x3a0] ss:$8 sps:$4 sm:$0xff]  }
 0x561   : > { %7788 = vmatpush2.bf16.msra.mxu1 %v16673_v35  ;;  %v16711_v35 = vld [vmem:[%s23689_s7 + $0x394] ss:$8 sps:$4 sm:$0xff]  }
 0x562   : > { %7825 = vmatpush1.bf16.msra.mxu0 %v16676_v58  ;;  %7789 = vmatprep.subr.bf16.mxu1 %v16681_v24  ;;  %v16714_v58 = vld [vmem:[%s23689_s7 + $0x404] ss:$8 sps:$4 sm:$0xff]   ;;  %v16709_v24 = vld [vmem:[%s23689_s7 + $0x390] ss:$8 sps:$4 sm:$0xff]  }
 0x563   : > { %7826 = vmatprep.subr.bf16.mxu0 %v16684_v18  ;;  %v16712_v18 = vld [vmem:[%s23689_s7 + $0x400] ss:$8 sps:$4 sm:$0xff]  }
 0x565   : > { %7391 = vmatmul.mubr.bf16.gmra.mxu0 %v6604_v38  ;;  %7790 = vmatpush2.bf16.msra.mxu1 %v16679_v12  ;;  %v16717_v12 = vld [vmem:[%s23689_s7 + $0x384] ss:$8 sps:$4 sm:$0xff]   ;;  %v16718_v38 = vld [vmem:[%s23689_s7 + $0x4f0] ss:$8 sps:$4 sm:$0xff]  }
 0x566   : > { %7827 = vmatpush1.bf16.msra.mxu0 %v16682_v0  ;;  %7791 = vmatprep.subr.bf16.mxu1 %v16687_v30  ;;  %v16720_v0 = vld [vmem:[%s23689_s7 + $0x4f4] ss:$8 sps:$4 sm:$0xff]   ;;  %v16715_v30 = vld [vmem:[%s23689_s7 + $0x380] ss:$8 sps:$4 sm:$0xff]  }
 0x567   : > { %7828 = vmatprep.subr.bf16.mxu0 %v16690_v42  ;;  %7854 = vmatprep.mubr.bf16.mxu0 %v23769_v50  ;;  %v16723_v42 = vld [vmem:[%s23689_s7 + $0x5f4] ss:$8 sps:$4 sm:$0xff]  }
 0x569   : > { %7792 = vmatpush2.bf16.msra.mxu1 %v16685_v48  ;;  %v16726_v48 = vld [vmem:[%s23689_s7 + $0x4e4] ss:$8 sps:$4 sm:$0xff]  }
 0x56a   : > { %7829 = vmatpush1.bf16.msra.mxu0 %v16688_v21  ;;  %7793 = vmatprep.subr.bf16.mxu1 %v16693_v26  ;;  %v16721_v21 = vld [vmem:[%s23689_s7 + $0x5f0] ss:$8 sps:$4 sm:$0xff]   ;;  %v16724_v26 = vld [vmem:[%s23689_s7 + $0x4e0] ss:$8 sps:$4 sm:$0xff]  }
 0x56b   : > { %7830 = vmatprep.subr.bf16.mxu0 %v16696_v60  ;;  %v16729_v60 = vld [vmem:[%s23689_s7 + $0x5e4] ss:$8 sps:$4 sm:$0xff]  }
 0x56d   : > { %7794 = vmatpush2.bf16.msra.mxu1 %v16691_v31  ;;  %v16727_v31 = vld [vmem:[%s23689_s7 + $0x5e0] ss:$8 sps:$4 sm:$0xff]  }
 0x56e   : > { %7831 = vmatpush1.bf16.msra.mxu0 %v16694_v19  ;;  %7795 = vmatprep.subr.bf16.mxu1 %v16699_v46  ;;  %v16730_v19 = vld [vmem:[%s23689_s7 + $0x4d0] ss:$8 sps:$4 sm:$0xff]   ;;  %v16735_v46 = vld [vmem:[%s23689_s7 + $0x5d4] ss:$8 sps:$4 sm:$0xff]  }
 0x56f   : > { %7832 = vmatprep.subr.bf16.mxu0 %v16702_v23  ;;  %v16736_v23 = vld [vmem:[%s23689_s7 + $0x4c0] ss:$8 sps:$4 sm:$0xff]  }
 0x571   : > { %7796 = vmatpush2.bf16.msra.mxu1 %v16697_v1  ;;  %v16741_v1 = vld [vmem:[%s23689_s7 + $0x5c4] ss:$8 sps:$4 sm:$0xff]  }
 0x572   : > { %7833 = vmatpush1.bf16.msra.mxu0 %v16700_v27  ;;  %7797 = vmatprep.subr.bf16.mxu1 %v16705_v54  ;;  %v16742_v27 = vld [vmem:[%s23689_s7 + $0x4b0] ss:$8 sps:$4 sm:$0xff]   ;;  %v16747_v54 = vld [vmem:[%s23689_s7 + $0x5b4] ss:$8 sps:$4 sm:$0xff]  }
 0x573   : > { %7834 = vmatprep.subr.bf16.mxu0 %v16708_v22  ;;  %v16745_v22 = vld [vmem:[%s23689_s7 + $0x5b0] ss:$8 sps:$4 sm:$0xff]  }
 0x575   : > { %7798 = vmatpush2.bf16.msra.mxu1 %v16703_v20  ;;  %v16748_v20 = vld [vmem:[%s23689_s7 + $0x4a0] ss:$8 sps:$4 sm:$0xff]  }
 0x576   : > { %7835 = vmatpush1.bf16.msra.mxu0 %v16706_v9  ;;  %7799 = vmatprep.subr.bf16.mxu1 %v16711_v35  ;;  %v16753_v9 = vld [vmem:[%s23689_s7 + $0x5a4] ss:$8 sps:$4 sm:$0xff]   ;;  %v16756_v35 = vld [vmem:[%s23689_s7 + $0x494] ss:$8 sps:$4 sm:$0xff]  }
 0x577   : > { %7836 = vmatprep.subr.bf16.mxu0 %v16714_v58  ;;  %v16751_v58 = vld [vmem:[%s23689_s7 + $0x5a0] ss:$8 sps:$4 sm:$0xff]  }
 0x579   : > { %7800 = vmatpush2.bf16.msra.mxu1 %v16709_v24  ;;  %v16754_v24 = vld [vmem:[%s23689_s7 + $0x490] ss:$8 sps:$4 sm:$0xff]  }
 0x57a   : > { %7837 = vmatpush1.bf16.msra.mxu0 %v16712_v18  ;;  %7801 = vmatprep.subr.bf16.mxu1 %v16717_v12  ;;  %v16759_v18 = vld [vmem:[%s23689_s7 + $0x594] ss:$8 sps:$4 sm:$0xff]   ;;  %v16762_v12 = vld [vmem:[%s23689_s7 + $0x484] ss:$8 sps:$4 sm:$0xff]  }
 0x57b   : > { %8200 = vmatprep.subr.bf16.mxu0 %v16720_v0  ;;  %v16757_v0 = vld [vmem:[%s23689_s7 + $0x590] ss:$8 sps:$4 sm:$0xff]  }
 0x57d   : > { %7802 = vmatpush2.bf16.msra.mxu1 %v16715_v30  ;;  %7855 = vmatmul.mubr.bf16.vlgmr.msra.gmra.mxu0 %v20651_v36  ;;  %v16732_v36 = vld [vmem:[%s23689_s7 + $0x4d4] ss:$8 sps:$4 sm:$0xff]   ;;  %v16760_v30 = vld [vmem:[%s23689_s7 + $0x480] ss:$8 sps:$4 sm:$0xff]  }
 0x57e   : > { %8201 = vmatpush1.bf16.msra.mxu0 %v16718_v38  ;;  %8251 = vmatprep.subr.bf16.mxu1 %v16723_v42  ;;  %v16765_v38 = vld [vmem:[%s23689_s7 + $0x584] ss:$8 sps:$4 sm:$0xff]   ;;  %v16768_v42 = vld [vmem:[%s23689_s7 + $0x574] ss:$8 sps:$4 sm:$0xff]  }
 0x57f   : > { %8202 = vmatprep.subr.bf16.mxu0 %v16726_v48  ;;  %7864 = vmatprep.mubr.bf16.mxu0 %v23769_v50  ;;  %v16763_v48 = vld [vmem:[%s23689_s7 + $0x580] ss:$8 sps:$4 sm:$0xff]  }
 0x580   : > { %7804 = vmatmul.mubr.bf16.vlgmr.msra.gmra.mxu1 %v20655_v62  ;;  %v16738_v62 = vld [vmem:[%s23689_s7 + $0x4c4] ss:$8 sps:$4 sm:$0xff]  }
 0x581   : > { %7813 = vmatprep.mubr.bf16.mxu1 %v20841_v25  ;;  %8252 = vmatpush1.bf16.msra.mxu1 %v16721_v21  ;;  %v16733_v25 = vld [vmem:[%s23689_s7 + $0x5d0] ss:$8 sps:$4 sm:$0xff]  }
 0x582   : > { %8203 = vmatpush1.bf16.msra.mxu0 %v16724_v26  ;;  %8253 = vmatprep.subr.bf16.mxu1 %v16729_v60  ;;  %v16766_v21 = vld [vmem:[%s23689_s7 + $0x570] ss:$8 sps:$4 sm:$0xff]   ;;  %v16771_v26 = vld [vmem:[%s23689_s7 + $0x674] ss:$8 sps:$4 sm:$0xff]   ;;  %v16774_v60 = vld [vmem:[%s23689_s7 + $0x564] ss:$8 sps:$4 sm:$0xff]  }
 0x583   : > { %8204 = vmatprep.subr.bf16.mxu0 %v16732_v36  ;;  %v16769_v36 = vld [vmem:[%s23689_s7 + $0x670] ss:$8 sps:$4 sm:$0xff]  }
 0x585   : > { %7865 = vmatmul.mubr.bf16.gmra.mxu0 %v20635_v28  ;;  %8254 = vmatpush1.bf16.msra.mxu1 %v16727_v31  ;;  %v16744_v28 = vld [vmem:[%s23689_s7 + $0x4b4] ss:$8 sps:$4 sm:$0xff]   ;;  %v16772_v31 = vld [vmem:[%s23689_s7 + $0x560] ss:$8 sps:$4 sm:$0xff]  }
 0x586   : > { %8205 = vmatpush1.bf16.msra.mxu0 %v16730_v19  ;;  %8232 = vmatprep.mubr.bf16.mxu0 %v20663_v41  ;;  %v16739_v41 = vld [vmem:[%s23689_s7 + $0x5c0] ss:$8 sps:$4 sm:$0xff]   ;;  %v16777_v19 = vld [vmem:[%s23689_s7 + $0x664] ss:$8 sps:$4 sm:$0xff]  }
 0x587   : > { %8255 = vmatprep.subr.bf16.mxu1 %v16735_v46  ;;  %8206 = vmatprep.subr.bf16.mxu0 %v16738_v62  ;;  %v16780_v46 = vld [vmem:[%s23689_s7 + $0x554] ss:$8 sps:$4 sm:$0xff]   ;;  %v16775_v62 = vld [vmem:[%s23689_s7 + $0x660] ss:$8 sps:$4 sm:$0xff]  }
 0x588   : > { %7814 = vmatmul.mubr.bf16.gmra.mxu1 %v20637_v17  ;;  %v16750_v17 = vld [vmem:[%s23689_s7 + $0x4a4] ss:$8 sps:$4 sm:$0xff]  }
 0x589   : > { %8256 = vmatpush1.bf16.msra.mxu1 %v16733_v25  ;;  %8283 = vmatprep.mubr.bf16.mxu1 %v23769_v50  ;;  %v16778_v25 = vld [vmem:[%s23689_s7 + $0x550] ss:$8 sps:$4 sm:$0xff]  }
 0x58a   : > { %8207 = vmatpush1.bf16.msra.mxu0 %v16736_v23  ;;  %8257 = vmatprep.subr.bf16.mxu1 %v16741_v1  ;;  %v16783_v23 = vld [vmem:[%s23689_s7 + $0x654] ss:$8 sps:$4 sm:$0xff]   ;;  %v16781_v1 = vld [vmem:[%s23689_s7 + $0x650] ss:$8 sps:$4 sm:$0xff]  }
 0x58b   : > { %8208 = vmatprep.subr.bf16.mxu0 %v16744_v28  ;;  %v16784_v28 = vld [vmem:[%s23689_s7 + $0x540] ss:$8 sps:$4 sm:$0xff]  }
 0x58d   : > { %8258 = vmatpush1.bf16.msra.mxu1 %v16739_v41  ;;  %v16789_v41 = vld [vmem:[%s23689_s7 + $0x644] ss:$8 sps:$4 sm:$0xff]  }
 0x58e   : > { %8209 = vmatpush1.bf16.msra.mxu0 %v16742_v27  ;;  %8259 = vmatprep.subr.bf16.mxu1 %v16747_v54  ;;  %v16792_v27 = vld [vmem:[%s23689_s7 + $0x534] ss:$8 sps:$4 sm:$0xff]   ;;  %v16787_v54 = vld [vmem:[%s23689_s7 + $0x640] ss:$8 sps:$4 sm:$0xff]  }
 0x58f   : > { %8210 = vmatprep.subr.bf16.mxu0 %v16750_v17  ;;  %v16790_v17 = vld [vmem:[%s23689_s7 + $0x530] ss:$8 sps:$4 sm:$0xff]  }
 0x591   : > { %8260 = vmatpush1.bf16.msra.mxu1 %v16745_v22  ;;  %v16795_v22 = vld [vmem:[%s23689_s7 + $0x634] ss:$8 sps:$4 sm:$0xff]  }
 0x592   : > { %8211 = vmatpush1.bf16.msra.mxu0 %v16748_v20  ;;  %8261 = vmatprep.subr.bf16.mxu1 %v16753_v9  ;;  %v16796_v20 = vld [vmem:[%s23689_s7 + $0x520] ss:$8 sps:$4 sm:$0xff]   ;;  %v16801_v9 = vld [vmem:[%s23689_s7 + $0x624] ss:$8 sps:$4 sm:$0xff]  }
 0x593   : > { %8212 = vmatprep.subr.bf16.mxu0 %v16756_v35  ;;  %v16804_v35 = vld [vmem:[%s23689_s7 + $0x514] ss:$8 sps:$4 sm:$0xff]  }
 0x595   : > { %8262 = vmatpush1.bf16.msra.mxu1 %v16751_v58  ;;  %v16799_v58 = vld [vmem:[%s23689_s7 + $0x620] ss:$8 sps:$4 sm:$0xff]  }
 0x596   : > { %8213 = vmatpush1.bf16.msra.mxu0 %v16754_v24  ;;  %8263 = vmatprep.subr.bf16.mxu1 %v16759_v18  ;;  %v16802_v24 = vld [vmem:[%s23689_s7 + $0x510] ss:$8 sps:$4 sm:$0xff]   ;;  %v16807_v18 = vld [vmem:[%s23689_s7 + $0x614] ss:$8 sps:$4 sm:$0xff]  }
 0x597   : > { %8214 = vmatprep.subr.bf16.mxu0 %v16762_v12  ;;  %v16810_v12 = vld [vmem:[%s23689_s7 + $0x504] ss:$8 sps:$4 sm:$0xff]  }
 0x599   : > { %8264 = vmatpush1.bf16.msra.mxu1 %v16757_v0  ;;  %v16805_v0 = vld [vmem:[%s23689_s7 + $0x610] ss:$8 sps:$4 sm:$0xff]  }
 0x59a   : > { %8215 = vmatpush1.bf16.msra.mxu0 %v16760_v30  ;;  %8265 = vmatprep.subr.bf16.mxu1 %v16765_v38  ;;  %v16808_v30 = vld [vmem:[%s23689_s7 + $0x500] ss:$8 sps:$4 sm:$0xff]   ;;  %v16813_v38 = vld [vmem:[%s23689_s7 + $0x604] ss:$8 sps:$4 sm:$0xff]  }
 0x59b   : > { %8216 = vmatprep.subr.bf16.mxu0 %v16768_v42  ;;  %v16816_v42 = vld [vmem:[%s23689_s7 + $0x774] ss:$8 sps:$4 sm:$0xff]  }
 0x59d   : > { %8266 = vmatpush1.bf16.msra.mxu1 %v16763_v48  ;;  %v16811_v48 = vld [vmem:[%s23689_s7 + $0x600] ss:$8 sps:$4 sm:$0xff]  }
 0x59e   : > { %8217 = vmatpush2.bf16.msra.mxu0 %v16766_v21  ;;  %8665 = vmatprep.subr.bf16.mxu1 %v16771_v26  ;;  %v16814_v21 = vld [vmem:[%s23689_s7 + $0x770] ss:$8 sps:$4 sm:$0xff]   ;;  %v16819_v26 = vld [vmem:[%s23689_s7 + $0x6f4] ss:$8 sps:$4 sm:$0xff]  }
 0x59f   : > { %8218 = vmatprep.subr.bf16.mxu0 %v16774_v60  ;;  %v16822_v60 = vld [vmem:[%s23689_s7 + $0x764] ss:$8 sps:$4 sm:$0xff]  }
 0x5a0   : > { %8284 = vmatmul.mubr.bf16.vlgmr.msra.gmra.mxu1 %v20684_v6  ;;  %v16786_v6 = vld [vmem:[%s23689_s7 + $0x544] ss:$8 sps:$4 sm:$0xff]  }
 0x5a1   : > { %8666 = vmatpush1.bf16.msra.mxu1 %v16769_v36  ;;  %8293 = vmatprep.mubr.bf16.mxu1 %v23769_v50  ;;  %v16817_v36 = vld [vmem:[%s23689_s7 + $0x6f0] ss:$8 sps:$4 sm:$0xff]  }
 0x5a2   : > { %8219 = vmatpush2.bf16.msra.mxu0 %v16772_v31  ;;  %8667 = vmatprep.subr.bf16.mxu1 %v16777_v19  ;;  %v16820_v31 = vld [vmem:[%s23689_s7 + $0x760] ss:$8 sps:$4 sm:$0xff]   ;;  %v16825_v19 = vld [vmem:[%s23689_s7 + $0x6e4] ss:$8 sps:$4 sm:$0xff]  }
 0x5a3   : > { %8220 = vmatprep.subr.bf16.mxu0 %v16780_v46  ;;  %v16826_v46 = vld [vmem:[%s23689_s7 + $0x750] ss:$8 sps:$4 sm:$0xff]  }
 0x5a5   : > { %8668 = vmatpush1.bf16.msra.mxu1 %v16775_v62  ;;  %v16831_v62 = vld [vmem:[%s23689_s7 + $0x6d4] ss:$8 sps:$4 sm:$0xff]  }
 0x5a6   : > { %8221 = vmatpush2.bf16.msra.mxu0 %v16778_v25  ;;  %8669 = vmatprep.subr.bf16.mxu1 %v16783_v23  ;;  %v16834_v25 = vld [vmem:[%s23689_s7 + $0x744] ss:$8 sps:$4 sm:$0xff]   ;;  %v16829_v23 = vld [vmem:[%s23689_s7 + $0x6d0] ss:$8 sps:$4 sm:$0xff]  }
 0x5a7   : > { %8222 = vmatprep.subr.bf16.mxu0 %v16786_v6  ;;  %v16832_v6 = vld [vmem:[%s23689_s7 + $0x740] ss:$8 sps:$4 sm:$0xff]  }
 0x5a8   : > { %8294 = vmatmul.mubr.bf16.gmra.mxu1 %v20665_v59  ;;  %v16798_v59 = vld [vmem:[%s23689_s7 + $0x524] ss:$8 sps:$4 sm:$0xff]  }
 0x5a9   : > { %8670 = vmatpush1.bf16.msra.mxu1 %v16781_v1  ;;  %8697 = vmatprep.mubr.bf16.mxu1 %v20722_v29  ;;  %v16793_v29 = vld [vmem:[%s23689_s7 + $0x630] ss:$8 sps:$4 sm:$0xff]   ;;  %v16837_v1 = vld [vmem:[%s23689_s7 + $0x6c4] ss:$8 sps:$4 sm:$0xff]  }
 0x5aa   : > { %8223 = vmatpush2.bf16.msra.mxu0 %v16784_v28  ;;  %8671 = vmatprep.subr.bf16.mxu1 %v16789_v41  ;;  %v16835_v28 = vld [vmem:[%s23689_s7 + $0x6c0] ss:$8 sps:$4 sm:$0xff]   ;;  %v16838_v41 = vld [vmem:[%s23689_s7 + $0x730] ss:$8 sps:$4 sm:$0xff]  }
 0x5ab   : > { %8224 = vmatprep.subr.bf16.mxu0 %v16792_v27  ;;  %v16843_v27 = vld [vmem:[%s23689_s7 + $0x6b4] ss:$8 sps:$4 sm:$0xff]  }
 0x5ad   : > { %8672 = vmatpush1.bf16.msra.mxu1 %v16787_v54  ;;  %v16846_v54 = vld [vmem:[%s23689_s7 + $0x724] ss:$8 sps:$4 sm:$0xff]  }
 0x5ae   : > { %8225 = vmatpush2.bf16.msra.mxu0 %v16790_v17  ;;  %8673 = vmatprep.subr.bf16.mxu1 %v16795_v22  ;;  %v16841_v17 = vld [vmem:[%s23689_s7 + $0x6b0] ss:$8 sps:$4 sm:$0xff]   ;;  %v16844_v22 = vld [vmem:[%s23689_s7 + $0x720] ss:$8 sps:$4 sm:$0xff]  }
 0x5af   : > { %8226 = vmatprep.subr.bf16.mxu0 %v16798_v59  ;;  %v16849_v59 = vld [vmem:[%s23689_s7 + $0x6a4] ss:$8 sps:$4 sm:$0xff]  }
 0x5b1   : > { %8674 = vmatpush1.bf16.msra.mxu1 %v16793_v29  ;;  %v16852_v29 = vld [vmem:[%s23689_s7 + $0x714] ss:$8 sps:$4 sm:$0xff]  }
 0x5b2   : > { %8227 = vmatpush2.bf16.msra.mxu0 %v16796_v20  ;;  %8675 = vmatprep.subr.bf16.mxu1 %v16801_v9  ;;  %v16847_v20 = vld [vmem:[%s23689_s7 + $0x6a0] ss:$8 sps:$4 sm:$0xff]   ;;  %v16850_v9 = vld [vmem:[%s23689_s7 + $0x710] ss:$8 sps:$4 sm:$0xff]  }
 0x5b3   : > { %8228 = vmatprep.subr.bf16.mxu0 %v16804_v35  ;;  %v16855_v35 = vld [vmem:[%s23689_s7 + $0x694] ss:$8 sps:$4 sm:$0xff]  }
 0x5b5   : > { %8676 = vmatpush1.bf16.msra.mxu1 %v16799_v58  ;;  %v16858_v58 = vld [vmem:[%s23689_s7 + $0x704] ss:$8 sps:$4 sm:$0xff]  }
 0x5b6   : > { %8229 = vmatpush2.bf16.msra.mxu0 %v16802_v24  ;;  %8677 = vmatprep.subr.bf16.mxu1 %v16807_v18  ;;  %v16853_v24 = vld [vmem:[%s23689_s7 + $0x690] ss:$8 sps:$4 sm:$0xff]   ;;  %v16856_v18 = vld [vmem:[%s23689_s7 + $0x700] ss:$8 sps:$4 sm:$0xff]  }
 0x5b7   : > { %8230 = vmatprep.subr.bf16.mxu0 %v16810_v12  ;;  %v16861_v12 = vld [vmem:[%s23689_s7 + $0x684] ss:$8 sps:$4 sm:$0xff]  }
 0x5b9   : > { %8678 = vmatpush1.bf16.msra.mxu1 %v16805_v0  ;;  %v16864_v0 = vld [vmem:[%s23689_s7 + $0x7f4] ss:$8 sps:$4 sm:$0xff]  }
 0x5ba   : > { %8231 = vmatpush2.bf16.msra.mxu0 %v16808_v30  ;;  %8679 = vmatprep.subr.bf16.mxu1 %v16813_v38  ;;  %v16859_v30 = vld [vmem:[%s23689_s7 + $0x680] ss:$8 sps:$4 sm:$0xff]   ;;  %v16862_v38 = vld [vmem:[%s23689_s7 + $0x7f0] ss:$8 sps:$4 sm:$0xff]  }
 0x5bb   : > { %8716 = vmatprep.subr.bf16.mxu0 %v16816_v42  ;;  %v16867_v42 = vld [vmem:[%s23689_s7 + $0x8f4] ss:$8 sps:$4 sm:$0xff]  }
 0x5bd   : > { %8233 = vmatmul.mubr.bf16.vlgmr.msra.gmra.mxu0 %v20699_v53  ;;  %8680 = vmatpush1.bf16.msra.mxu1 %v16811_v48  ;;  %v16828_v53 = vld [vmem:[%s23689_s7 + $0x754] ss:$8 sps:$4 sm:$0xff]   ;;  %v16870_v48 = vld [vmem:[%s23689_s7 + $0x7e4] ss:$8 sps:$4 sm:$0xff]  }
 0x5be   : > { %8242 = vmatprep.mubr.bf16.mxu0 %v20639_v40  ;;  %8717 = vmatpush1.bf16.msra.mxu0 %v16814_v21  ;;  %v16823_v40 = vld [vmem:[%s23689_s7 + $0x6e0] ss:$8 sps:$4 sm:$0xff]  }
 0x5bf   : > { %8681 = vmatprep.subr.bf16.mxu1 %v16819_v26  ;;  %8718 = vmatprep.subr.bf16.mxu0 %v16822_v60  ;;  %v16865_v26 = vld [vmem:[%s23689_s7 + $0x8f0] ss:$8 sps:$4 sm:$0xff]   ;;  %v16868_v60 = vld [vmem:[%s23689_s7 + $0x7e0] ss:$8 sps:$4 sm:$0xff]  }
 0x5c1   : > { %8682 = vmatpush2.bf16.msra.mxu1 %v16817_v36  ;;  %v16873_v36 = vld [vmem:[%s23689_s7 + $0x8e4] ss:$8 sps:$4 sm:$0xff]  }
 0x5c2   : > { %8719 = vmatpush1.bf16.msra.mxu0 %v16820_v31  ;;  %8683 = vmatprep.subr.bf16.mxu1 %v16825_v19 }
 0x5c3   : > { %8720 = vmatprep.subr.bf16.mxu0 %v16828_v53 }
 0x5c5   : > { %8243 = vmatmul.mubr.bf16.gmra.mxu0 %v20688_v34  ;;  %8684 = vmatpush2.bf16.msra.mxu1 %v16823_v40  ;;  %v16840_v34 = vld [vmem:[%s23689_s7 + $0x734] ss:$8 sps:$4 sm:$0xff]  }
 0x5c6   : > { %8721 = vmatpush1.bf16.msra.mxu0 %v16826_v46  ;;  %8685 = vmatprep.subr.bf16.mxu1 %v16831_v62  ;;  %v16871_v46 = vld [vmem:[%s23689_s7 + $0x8e0] ss:$8 sps:$4 sm:$0xff]  }
 0x5c7   : > { %8722 = vmatprep.subr.bf16.mxu0 %v16834_v25  ;;  %8748 = vmatprep.mubr.bf16.mxu0 %v23769_v50  ;;  %v16874_v25 = vld [vmem:[%s23689_s7 + $0x7d0] ss:$8 sps:$4 sm:$0xff]  }
 0x5c9   : > { %8686 = vmatpush2.bf16.msra.mxu1 %v16829_v23 }
 0x5ca   : > { %8723 = vmatpush1.bf16.msra.mxu0 %v16832_v6  ;;  %8687 = vmatprep.subr.bf16.mxu1 %v16837_v1  ;;  %v16882_v6 = vld [vmem:[%s23689_s7 + $0x7c4] ss:$8 sps:$4 sm:$0xff]  }
 0x5cb   : > { %8724 = vmatprep.subr.bf16.mxu0 %v16840_v34 }
 0x5cd   : > { %8688 = vmatpush2.bf16.msra.mxu1 %v16835_v28 }
 0x5ce   : > { %8725 = vmatpush1.bf16.msra.mxu0 %v16838_v41  ;;  %8689 = vmatprep.subr.bf16.mxu1 %v16843_v27  ;;  %v16877_v41 = vld [vmem:[%s23689_s7 + $0x8d0] ss:$8 sps:$4 sm:$0xff]  }
 0x5cf   : > { %8726 = vmatprep.subr.bf16.mxu0 %v16846_v54  ;;  %v16880_v54 = vld [vmem:[%s23689_s7 + $0x7c0] ss:$8 sps:$4 sm:$0xff]  }
 0x5d1   : > { %8690 = vmatpush2.bf16.msra.mxu1 %v16841_v17 }
 0x5d2   : > { %8727 = vmatpush1.bf16.msra.mxu0 %v16844_v22  ;;  %8691 = vmatprep.subr.bf16.mxu1 %v16849_v59  ;;  %v16888_v22 = vld [vmem:[%s23689_s7 + $0x7b4] ss:$8 sps:$4 sm:$0xff]   ;;  %v16883_v59 = vld [vmem:[%s23689_s7 + $0x8c0] ss:$8 sps:$4 sm:$0xff]  }
 0x5d3   : > { %8728 = vmatprep.subr.bf16.mxu0 %v16852_v29 }
 0x5d5   : > { %8692 = vmatpush2.bf16.msra.mxu1 %v16847_v20  ;;  %v16886_v20 = vld [vmem:[%s23689_s7 + $0x7b0] ss:$8 sps:$4 sm:$0xff]  }
 0x5d6   : > { %8729 = vmatpush1.bf16.msra.mxu0 %v16850_v9  ;;  %8693 = vmatprep.subr.bf16.mxu1 %v16855_v35 }
 0x5d7   : > { %8730 = vmatprep.subr.bf16.mxu0 %v16858_v58  ;;  %v16894_v58 = vld [vmem:[%s23689_s7 + $0x7a4] ss:$8 sps:$4 sm:$0xff]  }
 0x5d9   : > { %8694 = vmatpush2.bf16.msra.mxu1 %v16853_v24 }
 0x5da   : > { %8731 = vmatpush1.bf16.msra.mxu0 %v16856_v18  ;;  %8695 = vmatprep.subr.bf16.mxu1 %v16861_v12  ;;  %v16889_v18 = vld [vmem:[%s23689_s7 + $0x8b0] ss:$8 sps:$4 sm:$0xff]  }
 0x5db   : > { %9070 = vmatprep.subr.bf16.mxu0 %v16864_v0  ;;  %v16892_v0 = vld [vmem:[%s23689_s7 + $0x7a0] ss:$8 sps:$4 sm:$0xff]  }
 0x5dd   : > { %8696 = vmatpush2.bf16.msra.mxu1 %v16859_v30  ;;  %8749 = vmatmul.mubr.bf16.vlgmr.msra.gmra.mxu0 %v20745_v15  ;;  %v7091_v21 = vpop.f32.mrf.mxu0  ;;  %v16876_v15 = vld [vmem:[%s23689_s7 + $0x7d4] ss:$8 sps:$4 sm:$0xff]   ;;  %v16897_v30 = vld [vmem:[%s23689_s7 + $0x8a4] ss:$8 sps:$4 sm:$0xff]  }
 0x5de   : > { %9071 = vmatpush1.bf16.msra.mxu0 %v16862_v38  ;;  %9121 = vmatprep.subr.bf16.mxu1 %v16867_v42  ;;  %v16900_v38 = vld [vmem:[%s23689_s7 + $0x794] ss:$8 sps:$4 sm:$0xff]   ;;  %v16895_v42 = vld [vmem:[%s23689_s7 + $0x8a0] ss:$8 sps:$4 sm:$0xff]  }
 0x5df   : > { %v7093_v31 = vpop.f32.mrf.mxu0  ;;  %9072 = vmatprep.subr.bf16.mxu0 %v16870_v48  ;;  %8758 = vmatprep.mubr.bf16.mxu0 %v23769_v50  ;;  %v16898_v48 = vld [vmem:[%s23689_s7 + $0x790] ss:$8 sps:$4 sm:$0xff]  }
 0x5e0   : > { %8698 = vmatmul.mubr.bf16.vlgmr.msra.gmra.mxu1 %v20763_v14  ;;  %v7040_v19 = vpop.f32.mrf.mxu1 }
 0x5e1   : > { %v21340_v53 = vadd.f32 %v7091_v21, %v7040_v19  ;;  %8707 = vmatprep.mubr.bf16.mxu1 %v20703_v16  ;;  %9122 = vmatpush1.bf16.msra.mxu1 %v16865_v26  ;;  %v7095_v40 = vpop.f32.mrf.mxu0  ;;  %v16879_v16 = vld [vmem:[%s23689_s7 + $0x8d4] ss:$8 sps:$4 sm:$0xff]   ;;  %v16906_v26 = vld [vmem:[%s23689_s7 + $0x784] ss:$8 sps:$4 sm:$0xff]   ;;  %v16907_v19 = vld [vmem:[%s23689_s7 + $0x880] ss:$8 sps:$4 sm:$0xff]  }
 0x5e2   : > { %9073 = vmatpush1.bf16.msra.mxu0 %v16868_v60  ;;  %v7042_v62 = vpop.f32.mrf.mxu1  ;;  %9123 = vmatprep.subr.bf16.mxu1 %v16873_v36  ;;  %v16903_v21 = vld [vmem:[%s23689_s7 + $0x894] ss:$8 sps:$4 sm:$0xff]   ;;  %v16901_v60 = vld [vmem:[%s23689_s7 + $0x890] ss:$8 sps:$4 sm:$0xff]   ;;  %v16904_v36 = vld [vmem:[%s23689_s7 + $0x780] ss:$8 sps:$4 sm:$0xff]  }
 0x5e3   : > { %v21349_v23 = vadd.f32 %v7093_v31, %v7042_v62  ;;  %v21351_v14 = vpop.f32.mrf.mxu0  ;;  %9074 = vmatprep.subr.bf16.mxu0 %v16876_v15  ;;  %v16909_v31 = vld [vmem:[%s23689_s7 + $0x884] ss:$8 sps:$4 sm:$0xff]   ;;  %v16912_v15 = vld [vmem:[%s23689_s7 + $0x874] ss:$8 sps:$4 sm:$0xff]  }
 0x5e4   : > { %v7044_v1 = vpop.f32.mrf.mxu1  ;;  %v16918_v62 = vld [vmem:[%s23689_s7 + $0x864] ss:$8 sps:$4 sm:$0xff]  }
 0x5e5   : > { %v21359_v34 = vadd.f32 %v7095_v40, %v7044_v1  ;;  %8759 = vmatmul.mubr.bf16.gmra.mxu0 %v20730_v47  ;;  %9124 = vmatpush1.bf16.msra.mxu1 %v16871_v46  ;;  %v7101_v28 = vpop.f32.mrf.mxu0  ;;  %v16885_v47 = vld [vmem:[%s23689_s7 + $0x8c4] ss:$8 sps:$4 sm:$0xff]   ;;  %v16910_v40 = vld [vmem:[%s23689_s7 + $0x870] ss:$8 sps:$4 sm:$0xff]   ;;  %v16915_v46 = vld [vmem:[%s23689_s7 + $0x974] ss:$8 sps:$4 sm:$0xff]  }
 0x5e6   : > { %9075 = vmatpush1.bf16.msra.mxu0 %v16874_v25  ;;  %9102 = vmatprep.mubr.bf16.mxu0 %v8777_v55  ;;  %v21368_v27 = vpop.f32.mrf.mxu1  ;;  %v16913_v25 = vld [vmem:[%s23689_s7 + $0x970] ss:$8 sps:$4 sm:$0xff]   ;;  %v16921_v1 = vld [vmem:[%s23689_s7 + $0x964] ss:$8 sps:$4 sm:$0xff]  }
 0x5e7   : > { %v7103_v17 = vpop.f32.mrf.mxu0  ;;  %9125 = vmatprep.subr.bf16.mxu1 %v16879_v16  ;;  %9076 = vmatprep.subr.bf16.mxu0 %v16882_v6  ;;  %v9188_v16 = vld [vmem:[#allocation4 + $0x90] sm:$0xf] }
 0x5e8   : > { %8708 = vmatmul.mubr.bf16.gmra.mxu1 %v20753_v5  ;;  %v7050_v57 = vpop.f32.mrf.mxu1  ;;  %v16891_v5 = vld [vmem:[%s23689_s7 + $0x8b4] ss:$8 sps:$4 sm:$0xff]   ;;  %v16916_v6 = vld [vmem:[%s23689_s7 + $0x860] ss:$8 sps:$4 sm:$0xff]  }
 0x5e9   : > { %v21380_v11 = vadd.f32 %v7101_v28, %v7050_v57  ;;  %9126 = vmatpush1.bf16.msra.mxu1 %v16877_v41  ;;  %v7105_v55 = vpop.f32.mrf.mxu0  ;;  %9153 = vmatprep.mubr.bf16.mxu1 %v23769_v50  ;;  %v16924_v28 = vld [vmem:[%s23689_s7 + $0x854] ss:$8 sps:$4 sm:$0xff]   ;;  %v9179_v41 = vld [vmem:[#allocation4 + $0x30] sm:$0xf0]  ;;  %v16922_v57 = vld [vmem:[%s23689_s7 + $0x850] ss:$8 sps:$4 sm:$0xff]  }
 0x5ea   : > { %9077 = vmatpush1.bf16.msra.mxu0 %v16880_v54  ;;  %v7052_v29 = vpop.f32.mrf.mxu1  ;;  %9127 = vmatprep.subr.bf16.mxu1 %v16885_v47  ;;  %v9194_v47 = vpack.c.bf16 %v9188_v16, %v20765_v43  ;;  %v16930_v43 = vld [vmem:[%s23689_s7 + $0x844] ss:$8 sps:$4 sm:$0xff]   ;;  %v16952_v16 = vld [vmem:[%s23689_s7 + $0x800] ss:$8 sps:$4 sm:$0xff]  }
 0x5eb   : > { %v21392_v9 = vadd.f32 %v7103_v17, %v7052_v29  ;;  %v7106_v35 = vpop.f32.mrf.mxu0  ;;  %9078 = vmatprep.subr.bf16.mxu0 %v16888_v22  ;;  %v16919_v17 = vld [vmem:[%s23689_s7 + $0x960] ss:$8 sps:$4 sm:$0xff]   ;;  %v16925_v29 = vld [vmem:[%s23689_s7 + $0x950] ss:$8 sps:$4 sm:$0xff]  }
 0x5ec   : > { %v7054_v24 = vpop.f32.mrf.mxu1  ;;  %v16928_v35 = vld [vmem:[%s23689_s7 + $0x840] ss:$8 sps:$4 sm:$0xff]  }
 0x5ed   : > { %9128 = vmatpush1.bf16.msra.mxu1 %v16883_v59  ;;  %v21483_v59 = vrot.slane %v9194_v47, 2  ;;  %v16933_v24 = vld [vmem:[%s23689_s7 + $0x944] ss:$8 sps:$4 sm:$0xff]   ;;  %v16963_v47 = vld [vmem:[%s23689_s7 + $0x9f4] ss:$8 sps:$4 sm:$0xff]  }
 0x5ee   : > { %9079 = vmatpush1.bf16.msra.mxu0 %v16886_v20  ;;  %v7055_v12 = vpop.f32.mrf.mxu1  ;;  %9129 = vmatprep.subr.bf16.mxu1 %v16891_v5  ;;  %v8781_v5 = vpack.c.bf16 %v20794_v7, %v20794_v7 }
 0x5ef   : > { %9080 = vmatprep.subr.bf16.mxu0 %v16894_v58 }
 0x5f1   : > { %9130 = vmatpush1.bf16.msra.mxu1 %v16889_v18  ;;  %v16936_v18 = vld [vmem:[%s23689_s7 + $0x834] ss:$8 sps:$4 sm:$0xff]  }
 0x5f2   : > { %9081 = vmatpush1.bf16.msra.mxu0 %v16892_v0  ;;  %9131 = vmatprep.subr.bf16.mxu1 %v16897_v30  ;;  %v16931_v0 = vld [vmem:[%s23689_s7 + $0x940] ss:$8 sps:$4 sm:$0xff]  }
 0x5f3   : > { %9082 = vmatprep.subr.bf16.mxu0 %v16900_v38  ;;  %v16934_v38 = vld [vmem:[%s23689_s7 + $0x830] ss:$8 sps:$4 sm:$0xff]  }
 0x5f5   : > { %9132 = vmatpush1.bf16.msra.mxu1 %v16895_v42  ;;  %v16939_v42 = vld [vmem:[%s23689_s7 + $0x934] ss:$8 sps:$4 sm:$0xff]  }
 0x5f6   : > { %9083 = vmatpush1.bf16.msra.mxu0 %v16898_v48  ;;  %9133 = vmatprep.subr.bf16.mxu1 %v16903_v21  ;;  %v16942_v48 = vld [vmem:[%s23689_s7 + $0x824] ss:$8 sps:$4 sm:$0xff]  }
 0x5f7   : > { %9084 = vmatprep.subr.bf16.mxu0 %v16906_v26  ;;  %v16937_v26 = vld [vmem:[%s23689_s7 + $0x930] ss:$8 sps:$4 sm:$0xff]  }
 0x5f9   : > { %9134 = vmatpush1.bf16.msra.mxu1 %v16901_v60 }
 0x5fa   : > { %9085 = vmatpush1.bf16.msra.mxu0 %v16904_v36  ;;  %9135 = vmatprep.subr.bf16.mxu1 %v16909_v31  ;;  %v16940_v36 = vld [vmem:[%s23689_s7 + $0x820] ss:$8 sps:$4 sm:$0xff]   ;;  %v16945_v31 = vld [vmem:[%s23689_s7 + $0x924] ss:$8 sps:$4 sm:$0xff]  }
 0x5fb   : > { %9086 = vmatprep.subr.bf16.mxu0 %v16912_v15  ;;  %v16948_v15 = vld [vmem:[%s23689_s7 + $0x814] ss:$8 sps:$4 sm:$0xff]  }
 0x5fd   : > { %9136 = vmatpush1.bf16.msra.mxu1 %v16907_v19  ;;  %v16943_v19 = vld [vmem:[%s23689_s7 + $0x920] ss:$8 sps:$4 sm:$0xff]  }
 0x5fe   : > { %9087 = vmatpush2.bf16.msra.mxu0 %v16910_v40  ;;  %9505 = vmatprep.subr.bf16.mxu1 %v16915_v46  ;;  %v16946_v40 = vld [vmem:[%s23689_s7 + $0x810] ss:$8 sps:$4 sm:$0xff]   ;;  %v16951_v46 = vld [vmem:[%s23689_s7 + $0x914] ss:$8 sps:$4 sm:$0xff]  }
 0x5ff   : > { %9088 = vmatprep.subr.bf16.mxu0 %v16918_v62  ;;  %v16954_v62 = vld [vmem:[%s23689_s7 + $0x804] ss:$8 sps:$4 sm:$0xff]  }
 0x600   : > { %v21457_v54 = vpop.f32.mrf.mxu1  ;;  %9154 = vmatmul.mubr.bf16.vlgmr.msra.gmra.mxu1 %v8778_v4  ;;  %v9191_v4 = vpack.c.bf16 %v21475_v32, %v9179_v41  ;;  %v16958_v41 = vld [vmem:[%s23689_s7 + $0xa70] ss:$8 sps:$4 sm:$0xff]  }
 0x601   : > { %9506 = vmatpush1.bf16.msra.mxu1 %v16913_v25  ;;  %9163 = vmatprep.mubr.bf16.mxu1 %v23769_v50  ;;  %v16949_v25 = vld [vmem:[%s23689_s7 + $0x910] ss:$8 sps:$4 sm:$0xff]  }
 0x602   : > { %v21467_v22 = vpop.f32.mrf.mxu1  ;;  %9089 = vmatpush2.bf16.msra.mxu0 %v16916_v6  ;;  %9507 = vmatprep.subr.bf16.mxu1 %v16921_v1  ;;  %v9253_v58 = vrot.slane %v9191_v4, 2  ;;  %v16957_v6 = vld [vmem:[%s23689_s7 + $0x904] ss:$8 sps:$4 sm:$0xff]   ;;  %v16960_v1 = vld [vmem:[%s23689_s7 + $0xa74] ss:$8 sps:$4 sm:$0xff]  }
 0x603   : > { %9090 = vmatprep.subr.bf16.mxu0 %v16924_v28  ;;  %v16955_v28 = vld [vmem:[%s23689_s7 + $0x900] ss:$8 sps:$4 sm:$0xff]  }
 0x604   : > { %v21481_v55 = vpop.f32.mrf.mxu1  ;;  %v9255_v7 = vsel %vm2786_vm6, %v9253_v58, %v21483_v59 }
 0x605   : > { %9508 = vmatpush1.bf16.msra.mxu1 %v16919_v17  ;;  %v16966_v17 = vld [vmem:[%s23689_s7 + $0xa64] ss:$8 sps:$4 sm:$0xff]  }
 0x606   : > { %v21488_v20 = vpop.f32.mrf.mxu1  ;;  %9091 = vmatpush2.bf16.msra.mxu0 %v16922_v57  ;;  %9509 = vmatprep.subr.bf16.mxu1 %v16927_v3  ;;  %v21567_v57 = vld [vmem:[#allocation4 + $0x28] sm:$0xff] }
 0x607   : > { %9092 = vmatprep.subr.bf16.mxu0 %v16930_v43  ;;  %v8780_v3 = vpack.c.bf16 %v21567_v57, %v21567_v57  ;;  %v16961_v43 = vld [vmem:[%s23689_s7 + $0x9f0] ss:$8 sps:$4 sm:$0xff]  }
 0x608   : > { %v21501_v12 = vpop.f32.mrf.mxu1  ;;  %9164 = vmatmul.mubr.bf16.gmra.mxu1 %v8781_v5  ;;  %v16964_v5 = vld [vmem:[%s23689_s7 + $0xa60] ss:$8 sps:$4 sm:$0xff]  }
 0x609   : > { %9510 = vmatpush1.bf16.msra.mxu1 %v16925_v29  ;;  %9537 = vmatprep.mubr.bf16.mxu1 %v9255_v7 }
 0x60a   : > { %v21508_v30 = vpop.f32.mrf.mxu1  ;;  %9093 = vmatpush2.bf16.msra.mxu0 %v16928_v35  ;;  %9511 = vmatprep.subr.bf16.mxu1 %v16933_v24  ;;  %v16969_v35 = vld [vmem:[%s23689_s7 + $0x9e4] ss:$8 sps:$4 sm:$0xff]   ;;  %v16967_v24 = vld [vmem:[%s23689_s7 + $0x9e0] ss:$8 sps:$4 sm:$0xff]  }
 0x60b   : > { %9094 = vmatprep.subr.bf16.mxu0 %v16936_v18  ;;  %v7098_v18 = vadd.f32 %v21351_v14, %v21368_v27 }
 0x60c   : > { %v7447_v21 = vpop.f32.mrf.mxu1 }
 0x60d   : > { %9512 = vmatpush1.bf16.msra.mxu1 %v16931_v0  ;;  %v16973_v21 = vld [vmem:[%s23689_s7 + $0x9d0] ss:$8 sps:$4 sm:$0xff]  }
 0x60e   : > { %v7448_v60 = vpop.f32.mrf.mxu1  ;;  %9095 = vmatpush2.bf16.msra.mxu0 %v16934_v38  ;;  %9513 = vmatprep.subr.bf16.mxu1 %v16939_v42  ;;  %v21606_v42 = vld [vmem:[#allocation4 + $0x88] sm:$0xff] }
 0x60f   : > { %9096 = vmatprep.subr.bf16.mxu0 %v16942_v48  ;;  %v8779_v14 = vpack.c.bf16 %v21606_v42, %v21606_v42 }
 0x611   : > { %9514 = vmatpush1.bf16.msra.mxu1 %v16937_v26 }
 0x612   : > { %9097 = vmatpush2.bf16.msra.mxu0 %v16940_v36  ;;  %9515 = vmatprep.subr.bf16.mxu1 %v16945_v31  ;;  %v16981_v36 = vld [vmem:[%s23689_s7 + $0x9c4] ss:$8 sps:$4 sm:$0xff]  }
 0x613   : > { %9098 = vmatprep.subr.bf16.mxu0 %v16948_v15  ;;  %v16984_v15 = vld [vmem:[%s23689_s7 + $0xa34] ss:$8 sps:$4 sm:$0xff]  }
 0x615   : > { %9516 = vmatpush1.bf16.msra.mxu1 %v16943_v19 }
 0x616   : > { %9099 = vmatpush2.bf16.msra.mxu0 %v16946_v40  ;;  %9517 = vmatprep.subr.bf16.mxu1 %v16951_v46  ;;  %v16979_v40 = vld [vmem:[%s23689_s7 + $0x9c0] ss:$8 sps:$4 sm:$0xff]  }
 0x617   : > { %9100 = vmatprep.subr.bf16.mxu0 %v16954_v62  ;;  %v16982_v62 = vld [vmem:[%s23689_s7 + $0xa30] ss:$8 sps:$4 sm:$0xff]  }
 0x619   : > { %9518 = vmatpush1.bf16.msra.mxu1 %v16949_v25  ;;  %v16990_v25 = vld [vmem:[%s23689_s7 + $0xa24] ss:$8 sps:$4 sm:$0xff]  }
 0x61a   : > { %9101 = vmatpush2.bf16.msra.mxu0 %v16952_v16  ;;  %9519 = vmatprep.subr.bf16.mxu1 %v16957_v6  ;;  %v16988_v16 = vld [vmem:[%s23689_s7 + $0xa20] ss:$8 sps:$4 sm:$0xff]   ;;  %v16993_v6 = vld [vmem:[%s23689_s7 + $0x9a4] ss:$8 sps:$4 sm:$0xff]  }
 0x61b   : > { %9556 = vmatprep.subr.bf16.mxu0 %v16960_v1  ;;  %v16996_v1 = vld [vmem:[%s23689_s7 + $0xa14] ss:$8 sps:$4 sm:$0xff]  }
 0x61d   : > { %v7382_v4 = vpop.f32.mrf.mxu0  ;;  %9103 = vmatmul.mubr.bf16.vlgmr.msra.gmra.mxu0 %v8776_v39  ;;  %9520 = vmatpush1.bf16.msra.mxu1 %v16955_v28  ;;  %v16991_v28 = vld [vmem:[%s23689_s7 + $0x9a0] ss:$8 sps:$4 sm:$0xff]  }
 0x61e   : > { %v7383_v29 = vadd.f32 %v7382_v4, %v21340_v53  ;;  %9112 = vmatprep.mubr.bf16.mxu0 %v8780_v3  ;;  %9557 = vmatpush1.bf16.msra.mxu0 %v16958_v41  ;;  %v9189_v41 = vld [vmem:[#allocation4 + $0x98] sm:$0xf]  ;;  %v9617_v3 = vld [vmem:[#allocation4 + $0x90] sm:$0x1f] }
 0x61f   : > { %v7384_v58 = vpop.f32.mrf.mxu0  ;;  %9521 = vmatprep.subr.bf16.mxu1 %v16963_v47  ;;  %9558 = vmatprep.subr.bf16.mxu0 %v16966_v17  ;;  %v16994_v47 = vld [vmem:[%s23689_s7 + $0xa10] ss:$8 sps:$4 sm:$0xff]   ;;  %v16999_v17 = vld [vmem:[%s23689_s7 + $0x994] ss:$8 sps:$4 sm:$0xff]   ;;  %v17002_v4 = vld [vmem:[%s23689_s7 + $0xa04] ss:$8 sps:$4 sm:$0xff]  }
 0x620   : > { %v21588_v61 = vadd.f32 %v21457_v54, %v7383_v29  ;;  %v7385_v39 = vadd.f32 %v7384_v58, %v21349_v23  ;;  %v16970_v23 = vld [vmem:[%s23689_s7 + $0xa50] ss:$8 sps:$4 sm:$0xff]   ;;  %v16975_v54 = vld [vmem:[%s23689_s7 + $0x9d4] ss:$8 sps:$4 sm:$0xff]   ;;  %v9614_v58 = vld [vmem:[#allocation4 + $0x30] sm:$0xe0] }
 0x621   : > { %v7386_v53 = vpop.f32.mrf.mxu0  ;;  %9522 = vmatpush2.bf16.msra.mxu1 %v16961_v43  ;;  %v9180_v43 = vld [vmem:[#allocation4 + $0x68] sm:$0xf0]  ;;  %v21676_v29 = vld [vmem:[#allocation4 + $0x40] sm:$0xff] }
 0x622   : > { %v21597_v7 = vadd.f32 %v21467_v22, %v7385_v39  ;;  %v7387_v0 = vadd.f32 %v7386_v53, %v21359_v34  ;;  %9559 = vmatpush1.bf16.msra.mxu0 %v16964_v5  ;;  %9523 = vmatprep.subr.bf16.mxu1 %v16969_v35  ;;  %v16978_v34 = vld [vmem:[%s23689_s7 + $0xa44] ss:$8 sps:$4 sm:$0xff]   ;;  %v9195_v5 = vpack.c.bf16 %v9189_v41, %v21676_v29  ;;  %v9187_v35 = vld [vmem:[#allocation4 + $0x60] sm:$0xf]  ;;  %v17000_v53 = vld [vmem:[%s23689_s7 + $0xa00] ss:$8 sps:$4 sm:$0xff]  }
 0x623   : > { %v7388_v38 = vpop.f32.mrf.mxu0  ;;  %9560 = vmatprep.subr.bf16.mxu0 %v16972_v45  ;;  %v16997_v45 = vld [vmem:[%s23689_s7 + $0x990] ss:$8 sps:$4 sm:$0xff]   ;;  %v9623_v39 = vpack.c.bf16 %v9617_v3, %v21567_v57  ;;  %v17008_v57 = vld [vmem:[%s23689_s7 + $0xaf4] ss:$8 sps:$4 sm:$0xff]  }
 0x624   : > { %v21614_v27 = vadd.f32 %v21481_v55, %v7387_v0  ;;  %v7389_v22 = vadd.f32 %v7388_v38, %v7098_v18  ;;  %v16976_v55 = vld [vmem:[%s23689_s7 + $0xa40] ss:$8 sps:$4 sm:$0xff]   ;;  %v21689_v18 = vld [vmem:[#allocation4 + $0x8] sm:$0xff]  ;;  %v9620_v38 = vpack.c.bf16 %v21475_v32, %v9614_v58 }
 0x625   : > { %v7392_v48 = vpop.f32.mrf.mxu0  ;;  %9113 = vmatmul.mubr.bf16.gmra.mxu0 %v8779_v14  ;;  %9524 = vmatpush2.bf16.msra.mxu1 %v16967_v24  ;;  %v17005_v24 = vld [vmem:[%s23689_s7 + $0x984] ss:$8 sps:$4 sm:$0xff]   ;;  %v9192_v0 = vpack.c.bf16 %v21689_v18, %v9180_v43  ;;  %v9257_v14 = vrot.slane %v9195_v5, 2  ;;  %v17011_v32 = vld [vmem:[%s23689_s7 + $0xbf4] ss:$8 sps:$4 sm:$0xff]  }
 0x626   : > { %v21620_v26 = vadd.f32 %v21488_v20, %v7389_v22  ;;  %v7393_v60 = vadd.f32 %v7392_v48, %v21380_v11  ;;  %9561 = vmatpush1.bf16.msra.mxu0 %v16970_v23  ;;  %9525 = vmatprep.subr.bf16.mxu1 %v16975_v54  ;;  %v9178_v23 = vld [vmem:[#allocation4 + $0x18] sm:$0xf0]  ;;  %v9193_v54 = vpack.c.bf16 %v9187_v35, %v21606_v42  ;;  %v17020_v41 = vld [vmem:[%s23689_s7 + $0xad4] ss:$8 sps:$4 sm:$0xff]   ;;  %v17015_v5 = vld [vmem:[%s23689_s7 + $0xbe0] ss:$8 sps:$4 sm:$0xff]  }
 0x627   : > { %v7394_v31 = vpop.f32.mrf.mxu0  ;;  %9562 = vmatprep.subr.bf16.mxu0 %v16978_v34  ;;  %9588 = vmatprep.mubr.bf16.mxu0 %v23769_v50  ;;  %v17003_v34 = vld [vmem:[%s23689_s7 + $0x980] ss:$8 sps:$4 sm:$0xff]  }
 0x628   : > { %v21634_v11 = vadd.f32 %v21501_v12, %v7393_v60  ;;  %v7395_v20 = vadd.f32 %v7394_v31, %v21392_v9  ;;  %v16987_v12 = vld [vmem:[%s23689_s7 + $0x9b4] ss:$8 sps:$4 sm:$0xff]   ;;  %v21700_v22 = vld [vmem:[#allocation4 + $0x78] sm:$0xff]  ;;  %v9702_v60 = vshll.u32 %v9623_v39, 16  ;;  %v9251_v31 = vrot.slane %v9193_v54, 2 }
 0x629   : > { %v7396_v19 = vpop.f32.mrf.mxu0  ;;  %9526 = vmatpush2.bf16.msra.mxu1 %v16973_v21  ;;  %v9190_v48 = vpack.c.bf16 %v21700_v22, %v9178_v23  ;;  %v9699_v21 = vshrl.u32 %v9623_v39, 16  ;;  %v17026_v23 = vld [vmem:[%s23689_s7 + $0xac4] ss:$8 sps:$4 sm:$0xff]  }
 0x62a   : > { %v21641_v46 = vadd.f32 %v21508_v30, %v7395_v20  ;;  %9563 = vmatpush1.bf16.msra.mxu0 %v16976_v55  ;;  %9527 = vmatprep.subr.bf16.mxu1 %v16981_v36  ;;  %v16985_v30 = vld [vmem:[%s23689_s7 + $0x9b0] ss:$8 sps:$4 sm:$0xff]   ;;  %v9256_v55 = vrot.slane %v9192_v0, 2  ;;  %v9691_v20 = vshrl.u32 %v9620_v38, 16  ;;  %v9694_v19 = vshll.u32 %v9620_v38, 16 }
 0x62b   : > { %v7397_v9 = vpop.f32.mrf.mxu0  ;;  %9564 = vmatprep.subr.bf16.mxu0 %v16984_v15  ;;  %v17006_v36 = vld [vmem:[%s23689_s7 + $0xaf0] ss:$8 sps:$4 sm:$0xff]   ;;  %v17014_v15 = vld [vmem:[%s23689_s7 + $0xae4] ss:$8 sps:$4 sm:$0xff]   ;;  %v17023_v0 = vld [vmem:[%s23689_s7 + $0xbd4] ss:$8 sps:$4 sm:$0xff]  }
 0x62c   : > { %v17009_v9 = vld [vmem:[%s23689_s7 + $0xbf0] ss:$8 sps:$4 sm:$0xff]  }
 0x62d   : > { %9528 = vmatpush2.bf16.msra.mxu1 %v16979_v40  ;;  %v9258_v40 = vsel %vm2786_vm6, %v9256_v55, %v9257_v14 }
 0x62e   : > { %9565 = vmatpush1.bf16.msra.mxu0 %v16982_v62  ;;  %9529 = vmatprep.subr.bf16.mxu1 %v16987_v12  ;;  %v9250_v12 = vrot.slane %v9190_v48, 2  ;;  %v17021_v48 = vld [vmem:[%s23689_s7 + $0xbd0] ss:$8 sps:$4 sm:$0xff]  }
 0x62f   : > { %9566 = vmatprep.subr.bf16.mxu0 %v16990_v25  ;;  %v9701_v25 = vrot.slane %v9699_v21, 2 }
 0x631   : > { %9530 = vmatpush2.bf16.msra.mxu1 %v16985_v30  ;;  %v9704_v30 = vrot.slane %v9702_v60, 3  ;;  %v17024_v60 = vld [vmem:[%s23689_s7 + $0xac0] ss:$8 sps:$4 sm:$0xff]  }
 0x632   : > { %9567 = vmatpush1.bf16.msra.mxu0 %v16988_v16  ;;  %9531 = vmatprep.subr.bf16.mxu1 %v16993_v6  ;;  %v17012_v16 = vld [vmem:[%s23689_s7 + $0xae0] ss:$8 sps:$4 sm:$0xff]   ;;  %v17017_v6 = vld [vmem:[%s23689_s7 + $0xbe4] ss:$8 sps:$4 sm:$0xff]  }
 0x633   : > { %9568 = vmatprep.subr.bf16.mxu0 %v16996_v1  ;;  %v21731_v35 = vor.u32 %v9704_v30, %v9701_v25  ;;  %v17038_v30 = vld [vmem:[%s23689_s7 + $0xaa4] ss:$8 sps:$4 sm:$0xff]  }
 0x635   : > { %9532 = vmatpush2.bf16.msra.mxu1 %v16991_v28  ;;  %v9252_v28 = vsel %vm2786_vm6, %v9250_v12, %v9251_v31  ;;  %v17030_v12 = vld [vmem:[%s23689_s7 + $0xab0] ss:$8 sps:$4 sm:$0xff]  }
 0x636   : > { %9569 = vmatpush1.bf16.msra.mxu0 %v16994_v47  ;;  %9533 = vmatprep.subr.bf16.mxu1 %v16999_v17  ;;  %v9693_v47 = vrot.slane %v9691_v20, 2  ;;  %v9696_v17 = vrot.slane %v9694_v19, 3 }
 0x637   : > { %9570 = vmatprep.subr.bf16.mxu0 %v17002_v4 }
 0x639   : > { %9534 = vmatpush2.bf16.msra.mxu1 %v16997_v45  ;;  %v17018_v45 = vld [vmem:[%s23689_s7 + $0xad0] ss:$8 sps:$4 sm:$0xff]  }
 0x63a   : > { %9571 = vmatpush1.bf16.msra.mxu0 %v17000_v53  ;;  %9535 = vmatprep.subr.bf16.mxu1 %v17005_v24 }
 0x63b   : > { %9970 = vmatprep.subr.bf16.mxu0 %v17008_v57 }
 0x63d   : > { %v7856_v62 = vpop.f32.mrf.mxu0  ;;  %9536 = vmatpush2.bf16.msra.mxu1 %v17003_v34  ;;  %9589 = vmatmul.mubr.bf16.vlgmr.msra.gmra.mxu0 %v9258_v40 }
 0x63e   : > { %9971 = vmatpush1.bf16.msra.mxu0 %v17006_v36  ;;  %10021 = vmatprep.subr.bf16.mxu1 %v17011_v32  ;;  %v17032_v32 = vld [vmem:[%s23689_s7 + $0xab4] ss:$8 sps:$4 sm:$0xff]  }
 0x63f   : > { %v7858_v1 = vpop.f32.mrf.mxu0  ;;  %9972 = vmatprep.subr.bf16.mxu0 %v17014_v15  ;;  %9598 = vmatprep.mubr.bf16.mxu0 %v23769_v50 }
 0x640   : > { %v7805_v3 = vpop.f32.mrf.mxu1  ;;  %9538 = vmatmul.mubr.bf16.vlgmr.msra.gmra.mxu1 %v9252_v28  ;;  %v17033_v28 = vld [vmem:[%s23689_s7 + $0xbb0] ss:$8 sps:$4 sm:$0xff]  }
 0x641   : > { %v7857_v4 = vadd.f32 %v7856_v62, %v7805_v3  ;;  %v7860_v43 = vpop.f32.mrf.mxu0  ;;  %9547 = vmatprep.mubr.bf16.mxu1 %v21483_v59  ;;  %10022 = vmatpush1.bf16.msra.mxu1 %v17009_v9  ;;  %v9697_v59 = vor.u32 %v9696_v17, %v9693_v47  ;;  %v17041_v47 = vld [vmem:[%s23689_s7 + $0xba4] ss:$8 sps:$4 sm:$0xff]   ;;  %v9615_v17 = vld [vmem:[#allocation4 + $0x68] sm:$0xe0] }
 0x642   : > { %v7807_v58 = vpop.f32.mrf.mxu1  ;;  %9973 = vmatpush1.bf16.msra.mxu0 %v17012_v16  ;;  %10023 = vmatprep.subr.bf16.mxu1 %v17017_v6  ;;  %v9618_v6 = vld [vmem:[#allocation4 + $0x98] sm:$0x1f] }
 0x643   : > { %v21737_v39 = vadd.f32 %v7857_v4, %v21588_v61  ;;  %v7859_v53 = vadd.f32 %v7858_v1, %v7807_v58  ;;  %v7862_v24 = vpop.f32.mrf.mxu0  ;;  %9974 = vmatprep.subr.bf16.mxu0 %v17020_v41  ;;  %v9706_v61 = vsel %vm5788_vm12, %v9697_v59, %v21731_v35  ;;  %v9624_v3 = vpack.c.bf16 %v9618_v6, %v21676_v29  ;;  %v17039_v4 = vld [vmem:[%s23689_s7 + $0xba0] ss:$8 sps:$4 sm:$0xff]   ;;  %v17047_v58 = vld [vmem:[%s23689_s7 + $0xb94] ss:$8 sps:$4 sm:$0xff]   ;;  %v17050_v29 = vld [vmem:[%s23689_s7 + $0xa84] ss:$8 sps:$4 sm:$0xff]  }
 0x644   : > { %v7809_v57 = vpop.f32.mrf.mxu1 }
 0x645   : > { %v21746_v54 = vadd.f32 %v7859_v53, %v21597_v7  ;;  %v7861_v38 = vadd.f32 %v7860_v43, %v7809_v57  ;;  %v7866_v34 = vpop.f32.mrf.mxu0  ;;  %9599 = vmatmul.mubr.bf16.gmra.mxu0 %v9257_v14  ;;  %10024 = vmatpush1.bf16.msra.mxu1 %v17015_v5  ;;  %v17029_v7 = vld [vmem:[%s23689_s7 + $0xbc4] ss:$8 sps:$4 sm:$0xff]   ;;  %v9621_v43 = vpack.c.bf16 %v21689_v18, %v9615_v17  ;;  %v17042_v5 = vld [vmem:[%s23689_s7 + $0xa90] ss:$8 sps:$4 sm:$0xff]   ;;  %v9719_v53 = vshll.u32 %v9624_v3, 16 }
 0x646   : > { %v7811_v21 = vpop.f32.mrf.mxu1  ;;  %9975 = vmatpush1.bf16.msra.mxu0 %v17018_v45  ;;  %10002 = vmatprep.mubr.bf16.mxu0 %v9706_v61  ;;  %v9716_v45 = vshrl.u32 %v9624_v3, 16  ;;  %v17045_v18 = vld [vmem:[%s23689_s7 + $0xb90] ss:$8 sps:$4 sm:$0xff]   ;;  %v17056_v57 = vld [vmem:[%s23689_s7 + $0xb74] ss:$8 sps:$4 sm:$0xff]  }
 0x647   : > { %v21760_v14 = vadd.f32 %v7861_v38, %v21614_v27  ;;  %v7863_v55 = vadd.f32 %v7862_v24, %v7811_v21  ;;  %v7868_v36 = vpop.f32.mrf.mxu0  ;;  %10025 = vmatprep.subr.bf16.mxu1 %v17023_v0  ;;  %9976 = vmatprep.subr.bf16.mxu0 %v17026_v23  ;;  %v17027_v27 = vld [vmem:[%s23689_s7 + $0xbc0] ss:$8 sps:$4 sm:$0xff]   ;;  %v9708_v24 = vshrl.u32 %v9621_v43, 16  ;;  %v9711_v59 = vshll.u32 %v9621_v43, 16  ;;  %v17053_v23 = vld [vmem:[%s23689_s7 + $0xb84] ss:$8 sps:$4 sm:$0xff]  }
 0x648   : > { %v7815_v15 = vpop.f32.mrf.mxu1  ;;  %9548 = vmatmul.mubr.bf16.gmra.mxu1 %v9251_v31  ;;  %v17048_v0 = vld [vmem:[%s23689_s7 + $0xa80] ss:$8 sps:$4 sm:$0xff]   ;;  %v9718_v38 = vrot.slane %v9716_v45, 2  ;;  %v17080_v17 = vld [vmem:[%s23689_s7 + $0xb34] ss:$8 sps:$4 sm:$0xff]  }
 0x649   : > { %v21766_v20 = vadd.f32 %v7863_v55, %v21620_v26  ;;  %v7867_v19 = vadd.f32 %v7866_v34, %v7815_v15  ;;  %v7870_v40 = vpop.f32.mrf.mxu0  ;;  %10026 = vmatpush1.bf16.msra.mxu1 %v17021_v48  ;;  %10053 = vmatprep.mubr.bf16.mxu1 %v23769_v50  ;;  %v17035_v26 = vld [vmem:[%s23689_s7 + $0xbb4] ss:$8 sps:$4 sm:$0xff]   ;;  %v9721_v34 = vrot.slane %v9719_v53, 3  ;;  %v17051_v61 = vld [vmem:[%s23689_s7 + $0xb80] ss:$8 sps:$4 sm:$0xff]   ;;  %v9710_v48 = vrot.slane %v9708_v24, 2 }
 0x64a   : > { %v7817_v62 = vpop.f32.mrf.mxu1  ;;  %9977 = vmatpush1.bf16.msra.mxu0 %v17024_v60  ;;  %10027 = vmatprep.subr.bf16.mxu1 %v17029_v7  ;;  %v9713_v21 = vrot.slane %v9711_v59, 3  ;;  %v17054_v60 = vld [vmem:[%s23689_s7 + $0xb70] ss:$8 sps:$4 sm:$0xff]   ;;  %v17059_v7 = vld [vmem:[%s23689_s7 + $0xc74] ss:$8 sps:$4 sm:$0xff]  }
 0x64b   : > { %v21779_v31 = vadd.f32 %v7867_v19, %v21634_v11  ;;  %v7869_v9 = vadd.f32 %v7868_v36, %v7817_v62  ;;  %v7871_v25 = vpop.f32.mrf.mxu0  ;;  %9978 = vmatprep.subr.bf16.mxu0 %v17032_v32  ;;  %v17036_v11 = vld [vmem:[%s23689_s7 + $0xaa0] ss:$8 sps:$4 sm:$0xff]   ;;  %v9722_v55 = vor.u32 %v9721_v34, %v9718_v38  ;;  %v17062_v36 = vld [vmem:[%s23689_s7 + $0xb64] ss:$8 sps:$4 sm:$0xff]   ;;  %v17057_v15 = vld [vmem:[%s23689_s7 + $0xc70] ss:$8 sps:$4 sm:$0xff]  }
 0x64c   : > { %v7819_v16 = vpop.f32.mrf.mxu1  ;;  %v9714_v32 = vor.u32 %v9713_v21, %v9710_v48  ;;  %v17060_v19 = vld [vmem:[%s23689_s7 + $0xb60] ss:$8 sps:$4 sm:$0xff]   ;;  %v17065_v40 = vld [vmem:[%s23689_s7 + $0xc64] ss:$8 sps:$4 sm:$0xff]   ;;  %v17068_v62 = vld [vmem:[%s23689_s7 + $0xb54] ss:$8 sps:$4 sm:$0xff]  }
 0x64d   : > { %v21785_v1 = vadd.f32 %v7869_v9, %v21641_v46  ;;  %10028 = vmatpush1.bf16.msra.mxu1 %v17027_v27  ;;  %v17044_v46 = vld [vmem:[%s23689_s7 + $0xa94] ss:$8 sps:$4 sm:$0xff]   ;;  %v17066_v25 = vld [vmem:[%s23689_s7 + $0xb50] ss:$8 sps:$4 sm:$0xff]   ;;  %v17074_v16 = vld [vmem:[%s23689_s7 + $0xb44] ss:$8 sps:$4 sm:$0xff]  }
 0x64e   : > { %v7820_v41 = vpop.f32.mrf.mxu1  ;;  %9979 = vmatpush1.bf16.msra.mxu0 %v17030_v12  ;;  %10029 = vmatprep.subr.bf16.mxu1 %v17035_v26  ;;  %v9723_v27 = vsel %vm5788_vm12, %v9714_v32, %v9722_v55  ;;  %v17063_v26 = vld [vmem:[%s23689_s7 + $0xc60] ss:$8 sps:$4 sm:$0xff]  }
 0x64f   : > { %9980 = vmatprep.subr.bf16.mxu0 %v17038_v30  ;;  %v17071_v30 = vld [vmem:[%s23689_s7 + $0xc54] ss:$8 sps:$4 sm:$0xff]   ;;  %v17075_v3 = vld [vmem:[%s23689_s7 + $0xc40] ss:$8 sps:$4 sm:$0xff]  }
 0x650   : > { %v17084_v59 = vld [vmem:[%s23689_s7 + $0xb20] ss:$8 sps:$4 sm:$0xff]  }
 0x651   : > { %10030 = vmatpush1.bf16.msra.mxu1 %v17033_v28  ;;  %v17069_v28 = vld [vmem:[%s23689_s7 + $0xc50] ss:$8 sps:$4 sm:$0xff]   ;;  %v17087_v34 = vld [vmem:[%s23689_s7 + $0xc20] ss:$8 sps:$4 sm:$0xff]  }
 0x652   : > { %9981 = vmatpush1.bf16.msra.mxu0 %v17036_v11  ;;  %10031 = vmatprep.subr.bf16.mxu1 %v17041_v47  ;;  %v17072_v11 = vld [vmem:[%s23689_s7 + $0xb40] ss:$8 sps:$4 sm:$0xff]   ;;  %v17077_v47 = vld [vmem:[%s23689_s7 + $0xc44] ss:$8 sps:$4 sm:$0xff]  }
 0x653   : > { %9982 = vmatprep.subr.bf16.mxu0 %v17044_v46  ;;  %v17096_v32 = vld [vmem:[%s23689_s7 + $0xb00] ss:$8 sps:$4 sm:$0xff]  }
 0x655   : > { %10032 = vmatpush1.bf16.msra.mxu1 %v17039_v4  ;;  %v9616_v4 = vld [vmem:[#allocation4 + $0x60] sm:$0x1f] }
 0x656   : > { %9983 = vmatpush1.bf16.msra.mxu0 %v17042_v5  ;;  %10033 = vmatprep.subr.bf16.mxu1 %v17047_v58  ;;  %v17078_v5 = vld [vmem:[%s23689_s7 + $0xb30] ss:$8 sps:$4 sm:$0xff]   ;;  %v17083_v58 = vld [vmem:[%s23689_s7 + $0xc34] ss:$8 sps:$4 sm:$0xff]   ;;  %v9622_v53 = vpack.c.bf16 %v9616_v4, %v21606_v42  ;;  %v17108_v4 = vld [vmem:[%s23689_s7 + $0xd60] ss:$8 sps:$4 sm:$0xff]  }
 0x657   : > { %9984 = vmatprep.subr.bf16.mxu0 %v17050_v29  ;;  %v9613_v29 = vld [vmem:[#allocation4 + $0x18] sm:$0xe0]  ;;  %v17092_v42 = vld [vmem:[%s23689_s7 + $0xb14] ss:$8 sps:$4 sm:$0xff]  }
 0x658   : > { %v9685_v38 = vshll.u32 %v9622_v53, 16 }
 0x659   : > { %10034 = vmatpush1.bf16.msra.mxu1 %v17045_v18  ;;  %v17081_v18 = vld [vmem:[%s23689_s7 + $0xc30] ss:$8 sps:$4 sm:$0xff]  }
 0x65a   : > { %9985 = vmatpush1.bf16.msra.mxu0 %v17048_v0  ;;  %10035 = vmatprep.subr.bf16.mxu1 %v17053_v23  ;;  %v17089_v0 = vld [vmem:[%s23689_s7 + $0xc24] ss:$8 sps:$4 sm:$0xff]   ;;  %v9619_v23 = vpack.c.bf16 %v21700_v22, %v9613_v29  ;;  %v17095_v22 = vld [vmem:[%s23689_s7 + $0xc14] ss:$8 sps:$4 sm:$0xff]  }
 0x65b   : > { %9986 = vmatprep.subr.bf16.mxu0 %v17056_v57  ;;  %v9682_v57 = vshrl.u32 %v9622_v53, 16 }
 0x65c   : > { %v9674_v48 = vshrl.u32 %v9619_v23, 16  ;;  %v9677_v21 = vshll.u32 %v9619_v23, 16  ;;  %v17117_v23 = vld [vmem:[%s23689_s7 + $0xcd0] ss:$8 sps:$4 sm:$0xff]  }
 0x65d   : > { %10036 = vmatpush1.bf16.msra.mxu1 %v17051_v61  ;;  %v17090_v61 = vld [vmem:[%s23689_s7 + $0xb10] ss:$8 sps:$4 sm:$0xff]  }
 0x65e   : > { %9987 = vmatpush2.bf16.msra.mxu0 %v17054_v60  ;;  %10399 = vmatprep.subr.bf16.mxu1 %v17059_v7  ;;  %v17098_v60 = vld [vmem:[%s23689_s7 + $0xb04] ss:$8 sps:$4 sm:$0xff]   ;;  %v9684_v7 = vrot.slane %v9682_v57, 2 }
 0x65f   : > { %9988 = vmatprep.subr.bf16.mxu0 %v17062_v36  ;;  %v17093_v36 = vld [vmem:[%s23689_s7 + $0xc10] ss:$8 sps:$4 sm:$0xff]  }
 0x660   : > { %v21850_v12 = vpop.f32.mrf.mxu1  ;;  %10054 = vmatmul.mubr.bf16.vlgmr.msra.gmra.mxu1 %v9723_v27  ;;  %v17104_v27 = vld [vmem:[%s23689_s7 + $0xd74] ss:$8 sps:$4 sm:$0xff]  }
 0x661   : > { %10400 = vmatpush1.bf16.msra.mxu1 %v17057_v15  ;;  %10063 = vmatprep.mubr.bf16.mxu1 %v23769_v50  ;;  %v17101_v15 = vld [vmem:[%s23689_s7 + $0xc04] ss:$8 sps:$4 sm:$0xff]  }
 0x662   : > { %v21856_v9 = vpop.f32.mrf.mxu1  ;;  %9989 = vmatpush2.bf16.msra.mxu0 %v17060_v19  ;;  %10401 = vmatprep.subr.bf16.mxu1 %v17065_v40  ;;  %v9676_v19 = vrot.slane %v9674_v48, 2  ;;  %v9679_v40 = vrot.slane %v9677_v21, 3  ;;  %v17126_v21 = vld [vmem:[%s23689_s7 + $0xd30] ss:$8 sps:$4 sm:$0xff]  }
 0x663   : > { %9990 = vmatprep.subr.bf16.mxu0 %v17068_v62 }
 0x664   : > { %v21867_v6 = vpop.f32.mrf.mxu1 }
 0x665   : > { %10402 = vmatpush1.bf16.msra.mxu1 %v17063_v26  ;;  %v17099_v26 = vld [vmem:[%s23689_s7 + $0xc00] ss:$8 sps:$4 sm:$0xff]  }
 0x666   : > { %v21872_v41 = vpop.f32.mrf.mxu1  ;;  %9991 = vmatpush2.bf16.msra.mxu0 %v17066_v25  ;;  %10403 = vmatprep.subr.bf16.mxu1 %v17071_v30  ;;  %v9680_v25 = vor.u32 %v9679_v40, %v9676_v19  ;;  %v17102_v30 = vld [vmem:[%s23689_s7 + $0xd70] ss:$8 sps:$4 sm:$0xff]   ;;  %v17143_v19 = vld [vmem:[%s23689_s7 + $0xc94] ss:$8 sps:$4 sm:$0xff]   ;;  %v17146_v40 = vld [vmem:[%s23689_s7 + $0xd04] ss:$8 sps:$4 sm:$0xff]  }
 0x667   : > { %9992 = vmatprep.subr.bf16.mxu0 %v17074_v16  ;;  %v17107_v16 = vld [vmem:[%s23689_s7 + $0xcf4] ss:$8 sps:$4 sm:$0xff]  }
 0x668   : > { %v21883_v46 = vpop.f32.mrf.mxu1  ;;  %10064 = vmatmul.mubr.bf16.gmra.mxu1 %v9722_v55  ;;  %v9687_v55 = vrot.slane %v9685_v38, 3 }
 0x669   : > { %10404 = vmatpush1.bf16.msra.mxu1 %v17069_v28  ;;  %10431 = vmatprep.mubr.bf16.mxu1 %v20798_v33  ;;  %v17086_v33 = vld [vmem:[%s23689_s7 + $0xb24] ss:$8 sps:$4 sm:$0xff]  }
 0x66a   : > { %v21889_v43 = vpop.f32.mrf.mxu1  ;;  %9993 = vmatpush2.bf16.msra.mxu0 %v17072_v11  ;;  %10405 = vmatprep.subr.bf16.mxu1 %v17077_v47  ;;  %v9688_v62 = vor.u32 %v9687_v55, %v9684_v7  ;;  %v17110_v28 = vld [vmem:[%s23689_s7 + $0xd64] ss:$8 sps:$4 sm:$0xff]   ;;  %v17132_v7 = vld [vmem:[%s23689_s7 + $0xd20] ss:$8 sps:$4 sm:$0xff]  }
 0x66b   : > { %9994 = vmatprep.subr.bf16.mxu0 %v17080_v17  ;;  %v17105_v17 = vld [vmem:[%s23689_s7 + $0xcf0] ss:$8 sps:$4 sm:$0xff]   ;;  %v17137_v55 = vld [vmem:[%s23689_s7 + $0xca4] ss:$8 sps:$4 sm:$0xff]  }
 0x66c   : > { %v8299_v45 = vpop.f32.mrf.mxu1  ;;  %v9689_v11 = vsel %vm5788_vm12, %v9680_v25, %v9688_v62  ;;  %v17147_v25 = vld [vmem:[%s23689_s7 + $0xc80] ss:$8 sps:$4 sm:$0xff]  }
 0x66d   : > { %10406 = vmatpush1.bf16.msra.mxu1 %v17075_v3  ;;  %v17111_v45 = vld [vmem:[%s23689_s7 + $0xce0] ss:$8 sps:$4 sm:$0xff]  }
 0x66e   : > { %v8300_v24 = vpop.f32.mrf.mxu1  ;;  %9995 = vmatpush2.bf16.msra.mxu0 %v17078_v5  ;;  %10407 = vmatprep.subr.bf16.mxu1 %v17083_v58  ;;  %v17113_v5 = vld [vmem:[%s23689_s7 + $0xce4] ss:$8 sps:$4 sm:$0xff]  }
 0x66f   : > { %9996 = vmatprep.subr.bf16.mxu0 %v17086_v33  ;;  %v17116_v33 = vld [vmem:[%s23689_s7 + $0xd54] ss:$8 sps:$4 sm:$0xff]  }
 0x671   : > { %10408 = vmatpush1.bf16.msra.mxu1 %v17081_v18 }
 0x672   : > { %9997 = vmatpush2.bf16.msra.mxu0 %v17084_v59  ;;  %10409 = vmatprep.subr.bf16.mxu1 %v17089_v0  ;;  %v17122_v59 = vld [vmem:[%s23689_s7 + $0xd44] ss:$8 sps:$4 sm:$0xff]  }
 0x673   : > { %9998 = vmatprep.subr.bf16.mxu0 %v17092_v42 }
 0x675   : > { %10410 = vmatpush1.bf16.msra.mxu1 %v17087_v34  ;;  %v17128_v34 = vld [vmem:[%s23689_s7 + $0xd34] ss:$8 sps:$4 sm:$0xff]  }
 0x676   : > { %9999 = vmatpush2.bf16.msra.mxu0 %v17090_v61  ;;  %10411 = vmatprep.subr.bf16.mxu1 %v17095_v22  ;;  %v17123_v22 = vld [vmem:[%s23689_s7 + $0xcc0] ss:$8 sps:$4 sm:$0xff]  }
 0x677   : > { %10000 = vmatprep.subr.bf16.mxu0 %v17098_v60  ;;  %v17134_v60 = vld [vmem:[%s23689_s7 + $0xd24] ss:$8 sps:$4 sm:$0xff]  }
 0x679   : > { %10412 = vmatpush1.bf16.msra.mxu1 %v17093_v36  ;;  %v17140_v36 = vld [vmem:[%s23689_s7 + $0xd14] ss:$8 sps:$4 sm:$0xff]  }
 0x67a   : > { %10001 = vmatpush2.bf16.msra.mxu0 %v17096_v32  ;;  %10413 = vmatprep.subr.bf16.mxu1 %v17101_v15  ;;  %v17135_v32 = vld [vmem:[%s23689_s7 + $0xca0] ss:$8 sps:$4 sm:$0xff]   ;;  %v17138_v15 = vld [vmem:[%s23689_s7 + $0xd10] ss:$8 sps:$4 sm:$0xff]  }
 0x67b   : > { %10450 = vmatprep.subr.bf16.mxu0 %v17104_v27  ;;  %v17141_v27 = vld [vmem:[%s23689_s7 + $0xc90] ss:$8 sps:$4 sm:$0xff]  }
 0x67d   : > { %v8234_v47 = vpop.f32.mrf.mxu0  ;;  %10003 = vmatmul.mubr.bf16.vlgmr.msra.gmra.mxu0 %v9689_v11  ;;  %10414 = vmatpush1.bf16.msra.mxu1 %v17099_v26  ;;  %v17149_v26 = vld [vmem:[%s23689_s7 + $0xc84] ss:$8 sps:$4 sm:$0xff]  }
 0x67e   : > { %v8286_v3 = vadd.f32 %v21850_v12, %v8234_v47  ;;  %10012 = vmatprep.mubr.bf16.mxu0 %v21731_v35  ;;  %10451 = vmatpush1.bf16.msra.mxu0 %v17102_v30 }
 0x67f   : > { %v8236_v58 = vpop.f32.mrf.mxu0  ;;  %10415 = vmatprep.subr.bf16.mxu1 %v17107_v16  ;;  %10452 = vmatprep.subr.bf16.mxu0 %v17110_v28 }
 0x680   : > { %v21966_v12 = vadd.f32 %v8286_v3, %v21737_v39  ;;  %v8288_v35 = vadd.f32 %v21856_v9, %v8236_v58  ;;  %v17114_v39 = vld [vmem:[%s23689_s7 + $0xd50] ss:$8 sps:$4 sm:$0xff]   ;;  %v17119_v9 = vld [vmem:[%s23689_s7 + $0xcd4] ss:$8 sps:$4 sm:$0xff]  }
 0x681   : > { %v8238_v29 = vpop.f32.mrf.mxu0  ;;  %10416 = vmatpush2.bf16.msra.mxu1 %v17105_v17 }
 0x682   : > { %v21973_v53 = vadd.f32 %v8288_v35, %v21746_v54  ;;  %v8290_v18 = vadd.f32 %v21867_v6, %v8238_v29  ;;  %10453 = vmatpush1.bf16.msra.mxu0 %v17108_v4  ;;  %10417 = vmatprep.subr.bf16.mxu1 %v17113_v5 }
 0x683   : > { %v8240_v24 = vpop.f32.mrf.mxu0  ;;  %10454 = vmatprep.subr.bf16.mxu0 %v17116_v33 }
 0x684   : > { %v21986_v54 = vadd.f32 %v8290_v18, %v21760_v14  ;;  %v8292_v6 = vadd.f32 %v21872_v41, %v8240_v24  ;;  %v17120_v14 = vld [vmem:[%s23689_s7 + $0xd40] ss:$8 sps:$4 sm:$0xff]   ;;  %v17125_v41 = vld [vmem:[%s23689_s7 + $0xcc4] ss:$8 sps:$4 sm:$0xff]  }
 0x685   : > { %v8244_v0 = vpop.f32.mrf.mxu0  ;;  %10013 = vmatmul.mubr.bf16.gmra.mxu0 %v9688_v62  ;;  %10418 = vmatpush2.bf16.msra.mxu1 %v17111_v45  ;;  %v17144_v62 = vld [vmem:[%s23689_s7 + $0xd00] ss:$8 sps:$4 sm:$0xff]  }
 0x686   : > { %v21993_v42 = vadd.f32 %v8292_v6, %v21766_v20  ;;  %v8296_v57 = vadd.f32 %v21883_v46, %v8244_v0  ;;  %10455 = vmatpush1.bf16.msra.mxu0 %v17114_v39  ;;  %10419 = vmatprep.subr.bf16.mxu1 %v17119_v9  ;;  %v17152_v0 = vld [vmem:[%s23691_s9 + $0x74] ss:$8 sps:$4 sm:$0xff]  }
 0x687   : > { %v8246_v38 = vpop.f32.mrf.mxu0  ;;  %10456 = vmatprep.subr.bf16.mxu0 %v17122_v59  ;;  %10482 = vmatprep.mubr.bf16.mxu0 %v23769_v50 }
 0x688   : > { %v22007_v20 = vadd.f32 %v8296_v57, %v21779_v31  ;;  %v8298_v46 = vadd.f32 %v21889_v43, %v8246_v38  ;;  %v17131_v31 = vld [vmem:[%s23689_s7 + $0xcb4] ss:$8 sps:$4 sm:$0xff]   ;;  %v17153_v57 = vld [vmem:[%s23691_s9 + $0x60] ss:$8 sps:$4 sm:$0xff]  }
 0x689   : > { %v8248_v61 = vpop.f32.mrf.mxu0  ;;  %10420 = vmatpush2.bf16.msra.mxu1 %v17117_v23 }
 0x68a   : > { %v22014_v48 = vadd.f32 %v8298_v46, %v21785_v1  ;;  %10457 = vmatpush1.bf16.msra.mxu0 %v17120_v14  ;;  %10421 = vmatprep.subr.bf16.mxu1 %v17125_v41  ;;  %v17129_v1 = vld [vmem:[%s23689_s7 + $0xcb0] ss:$8 sps:$4 sm:$0xff]   ;;  %v17155_v14 = vld [vmem:[%s23691_s9 + $0x64] ss:$8 sps:$4 sm:$0xff]   ;;  %v17161_v61 = vld [vmem:[%s23691_s9 + $0x54] ss:$8 sps:$4 sm:$0xff]  }
 0x68b   : > { %v8249_v43 = vpop.f32.mrf.mxu0  ;;  %10458 = vmatprep.subr.bf16.mxu0 %v17128_v34  ;;  %v17156_v34 = vld [vmem:[%s23691_s9 + $0x170] ss:$8 sps:$4 sm:$0xff]  }
 0x68c   : > { %v17159_v46 = vld [vmem:[%s23691_s9 + $0x50] ss:$8 sps:$4 sm:$0xff]   ;;  %v17165_v43 = vld [vmem:[%s23691_s9 + $0x40] ss:$8 sps:$4 sm:$0xff]  }
 0x68d   : > { %10422 = vmatpush2.bf16.msra.mxu1 %v17123_v22 }
 0x68e   : > { %10459 = vmatpush1.bf16.msra.mxu0 %v17126_v21  ;;  %10423 = vmatprep.subr.bf16.mxu1 %v17131_v31  ;;  %v17162_v21 = vld [vmem:[%s23691_s9 + $0x160] ss:$8 sps:$4 sm:$0xff]   ;;  %v17164_v31 = vld [vmem:[%s23691_s9 + $0x164] ss:$8 sps:$4 sm:$0xff]  }
 0x68f   : > { %10460 = vmatprep.subr.bf16.mxu0 %v17134_v60  ;;  %v17167_v60 = vld [vmem:[%s23691_s9 + $0x44] ss:$8 sps:$4 sm:$0xff]  }
 0x691   : > { %10424 = vmatpush2.bf16.msra.mxu1 %v17129_v1  ;;  %v17170_v1 = vld [vmem:[%s23691_s9 + $0x154] ss:$8 sps:$4 sm:$0xff]  }
 0x692   : > { %10461 = vmatpush1.bf16.msra.mxu0 %v17132_v7  ;;  %10425 = vmatprep.subr.bf16.mxu1 %v17137_v55  ;;  %v17173_v55 = vld [vmem:[%s23691_s9 + $0x34] ss:$8 sps:$4 sm:$0xff]  }
 0x693   : > { %10462 = vmatprep.subr.bf16.mxu0 %v17140_v36  ;;  %v17168_v36 = vld [vmem:[%s23691_s9 + $0x150] ss:$8 sps:$4 sm:$0xff]  }
 0x695   : > { %10426 = vmatpush2.bf16.msra.mxu1 %v17135_v32 }
 0x696   : > { %10463 = vmatpush1.bf16.msra.mxu0 %v17138_v15  ;;  %10427 = vmatprep.subr.bf16.mxu1 %v17143_v19  ;;  %v17171_v15 = vld [vmem:[%s23691_s9 + $0x30] ss:$8 sps:$4 sm:$0xff]   ;;  %v17176_v19 = vld [vmem:[%s23691_s9 + $0x144] ss:$8 sps:$4 sm:$0xff]  }
 0x697   : > { %10464 = vmatprep.subr.bf16.mxu0 %v17146_v40  ;;  %v17179_v40 = vld [vmem:[%s23691_s9 + $0x24] ss:$8 sps:$4 sm:$0xff]  }
 0x699   : > { %10428 = vmatpush2.bf16.msra.mxu1 %v17141_v27  ;;  %v17174_v27 = vld [vmem:[%s23691_s9 + $0x140] ss:$8 sps:$4 sm:$0xff]  }
 0x69a   : > { %10465 = vmatpush1.bf16.msra.mxu0 %v17144_v62  ;;  %10429 = vmatprep.subr.bf16.mxu1 %v17149_v26  ;;  %v17177_v62 = vld [vmem:[%s23691_s9 + $0x20] ss:$8 sps:$4 sm:$0xff]   ;;  %v17182_v26 = vld [vmem:[%s23691_s9 + $0x134] ss:$8 sps:$4 sm:$0xff]  }
 0x69d   : > { %v8750_v30 = vpop.f32.mrf.mxu0  ;;  %10430 = vmatpush2.bf16.msra.mxu1 %v17147_v25  ;;  %10483 = vmatmul.mubr.bf16.vlgmr.msra.gmra.mxu0 %v20825_v2  ;;  %v17185_v25 = vld [vmem:[%s23691_s9 + $0x14] ss:$8 sps:$4 sm:$0xff]  }
 0x69e   : > { %10492 = vmatprep.mubr.bf16.mxu0 %v23769_v50  ;;  %11052 = vmatprep.subr.bf16.mxu1 %v17152_v0 }
 0x69f   : > { %v8752_v16 = vpop.f32.mrf.mxu0 }
 0x6a0   : > { %v8699_v28 = vpop.f32.mrf.mxu1  ;;  %10432 = vmatmul.mubr.bf16.vlgmr.msra.gmra.mxu1 %v20836_v37 }
 0x6a1   : > { %v8751_v11 = vadd.f32 %v8750_v30, %v8699_v28  ;;  %v8754_v47 = vpop.f32.mrf.mxu0  ;;  %10441 = vmatprep.mubr.bf16.mxu1 %v20786_v8  ;;  %v17180_v30 = vld [vmem:[%s23691_s9 + $0x130] ss:$8 sps:$4 sm:$0xff]   ;;  %v17188_v28 = vld [vmem:[%s23691_s9 + $0x124] ss:$8 sps:$4 sm:$0xff]  }
 0x6a2   : > { %v8701_v17 = vpop.f32.mrf.mxu1 }
 0x6a3   : > { %v22066_v3 = vadd.f32 %v8751_v11, %v21966_v12  ;;  %v8753_v4 = vadd.f32 %v8752_v16, %v8701_v17  ;;  %v8756_v5 = vpop.f32.mrf.mxu0  ;;  %v17183_v16 = vld [vmem:[%s23691_s9 + $0x10] ss:$8 sps:$4 sm:$0xff]   ;;  %v17191_v11 = vld [vmem:[%s23691_s9 + $0x4] ss:$8 sps:$4 sm:$0xff]   ;;  %v17189_v17 = vld [vmem:[%s23691_s9] ss:$8 sps:$4 sm:$0xff]  }
 0x6a4   : > { %v8703_v58 = vpop.f32.mrf.mxu1 }
 0x6a5   : > { %v22069_v33 = vadd.f32 %v8753_v4, %v21973_v53  ;;  %v8755_v2 = vadd.f32 %v8754_v47, %v8703_v58  ;;  %v8760_v50 = vpop.f32.mrf.mxu0  ;;  %10493 = vmatmul.mubr.bf16.gmra.mxu0 %v20814_v63  ;;  %v17186_v47 = vld [vmem:[%s23691_s9 + $0x120] ss:$8 sps:$4 sm:$0xff]   ;;  %v17194_v4 = vld [vmem:[%s23691_s9 + $0x114] ss:$8 sps:$4 sm:$0xff]  }
 0x6a6   : > { %v8705_v35 = vpop.f32.mrf.mxu1 }
 0x6a7   : > { %v22073_v37 = vadd.f32 %v8755_v2, %v21986_v54  ;;  %v8757_v29 = vadd.f32 %v8756_v5, %v8705_v35  ;;  %v8762_v8 = vpop.f32.mrf.mxu0  ;;  %v17197_v5 = vld [vmem:[%s23691_s9 + $0xf4] ss:$8 sps:$4 sm:$0xff]   ;;  %v17192_v2 = vld [vmem:[%s23691_s9 + $0x110] ss:$8 sps:$4 sm:$0xff]  }
 0x6a8   : > { %v8709_v45 = vpop.f32.mrf.mxu1  ;;  %10442 = vmatmul.mubr.bf16.gmra.mxu1 %v20817_v13  ;;  %v17150_v13 = vld [vmem:[%s23691_s9 + $0x70] ss:$8 sps:$4 sm:$0xff]  }
 0x6a9   : > { %v22077_v12 = vadd.f32 %v8757_v29, %v21993_v42  ;;  %v8761_v18 = vadd.f32 %v8760_v50, %v8709_v45  ;;  %v8764_v39 = vpop.f32.mrf.mxu0  ;;  %11053 = vmatpush1.bf16.msra.mxu1 %v17150_v13  ;;  %v17195_v35 = vld [vmem:[%s23691_s9 + $0xf0] ss:$8 sps:$4 sm:$0xff]  }
 0x6aa   : > { %v8711_v53 = vpop.f32.mrf.mxu1  ;;  %11054 = vmatprep.subr.bf16.mxu1 %v17155_v14 }
 0x6ab   : > { %v22080_v9 = vadd.f32 %v8761_v18, %v22007_v20  ;;  %v8763_v24 = vadd.f32 %v8762_v8, %v8711_v53  ;;  %v8765_v63 = vpop.f32.mrf.mxu0  ;;  %v17158_v20 = vld [vmem:[%s23691_s9 + $0x174] ss:$8 sps:$4 sm:$0xff]   ;;  %v17200_v8 = vld [vmem:[%s23691_s9 + $0x104] ss:$8 sps:$4 sm:$0xff]   ;;  %v17198_v53 = vld [vmem:[%s23691_s9 + $0x100] ss:$8 sps:$4 sm:$0xff]  }
 0x6ac   : > { %v8713_v59 = vpop.f32.mrf.mxu1  ;;  %10841 = vmatprep.subr.bf16.mxu0 %v17158_v20  ;;  %v17209_v20 = vld [vmem:[%s23691_s9 + $0xd4] ss:$8 sps:$4 sm:$0xff]  }
 0x6ad   : > { %v22083_v54 = vadd.f32 %v8763_v24, %v22014_v48  ;;  %11055 = vmatpush1.bf16.msra.mxu1 %v17153_v57  ;;  %10842 = vmatpush1.bf16.msra.mxu0 %v17156_v34  ;;  %v17206_v34 = vld [vmem:[%s23691_s9 + $0x1f4] ss:$8 sps:$4 sm:$0xff]  }
 0x6ae   : > { %v8714_v6 = vpop.f32.mrf.mxu1  ;;  %11056 = vmatprep.subr.bf16.mxu1 %v17161_v61  ;;  %10843 = vmatprep.subr.bf16.mxu0 %v17164_v31  ;;  %v17212_v61 = vld [vmem:[%s23691_s9 + $0x1e4] ss:$8 sps:$4 sm:$0xff]   ;;  %v17218_v31 = vld [vmem:[%s23691_s9 + $0x1d4] ss:$8 sps:$4 sm:$0xff]  }
 0x6b1   : > { %11057 = vmatpush1.bf16.msra.mxu1 %v17159_v46  ;;  %10844 = vmatpush1.bf16.msra.mxu0 %v17162_v21  ;;  %v17210_v46 = vld [vmem:[%s23691_s9 + $0x1e0] ss:$8 sps:$4 sm:$0xff]   ;;  %v17216_v21 = vld [vmem:[%s23691_s9 + $0x1d0] ss:$8 sps:$4 sm:$0xff]  }
 0x6b2   : > { %11058 = vmatprep.subr.bf16.mxu1 %v17167_v60  ;;  %10845 = vmatprep.subr.bf16.mxu0 %v17170_v1  ;;  %v17224_v60 = vld [vmem:[%s23691_s9 + $0x1c4] ss:$8 sps:$4 sm:$0xff]   ;;  %v17219_v1 = vld [vmem:[%s23691_s9 + $0xb0] ss:$8 sps:$4 sm:$0xff]  }
 0x6b5   : > { %11059 = vmatpush1.bf16.msra.mxu1 %v17165_v43  ;;  %10846 = vmatpush1.bf16.msra.mxu0 %v17168_v36  ;;  %v17221_v43 = vld [vmem:[%s23691_s9 + $0xb4] ss:$8 sps:$4 sm:$0xff]  }
 0x6b6   : > { %11060 = vmatprep.subr.bf16.mxu1 %v17173_v55  ;;  %10847 = vmatprep.subr.bf16.mxu0 %v17176_v19  ;;  %v17222_v55 = vld [vmem:[%s23691_s9 + $0x1c0] ss:$8 sps:$4 sm:$0xff]   ;;  %v17230_v36 = vld [vmem:[%s23691_s9 + $0x1b4] ss:$8 sps:$4 sm:$0xff]  }
 0x6b9   : > { %11061 = vmatpush1.bf16.msra.mxu1 %v17171_v15  ;;  %10848 = vmatpush1.bf16.msra.mxu0 %v17174_v27  ;;  %v17233_v15 = vld [vmem:[%s23691_s9 + $0x94] ss:$8 sps:$4 sm:$0xff]   ;;  %v17236_v27 = vld [vmem:[%s23691_s9 + $0x1a4] ss:$8 sps:$4 sm:$0xff]  }
 0x6ba   : > { %11062 = vmatprep.subr.bf16.mxu1 %v17179_v40  ;;  %10849 = vmatprep.subr.bf16.mxu0 %v17182_v26  ;;  %v17228_v40 = vld [vmem:[%s23691_s9 + $0x1b0] ss:$8 sps:$4 sm:$0xff]  }
 0x6bb   : > { %v17231_v26 = vld [vmem:[%s23691_s9 + $0x90] ss:$8 sps:$4 sm:$0xff]  }
 0x6bd   : > { %11063 = vmatpush1.bf16.msra.mxu1 %v17177_v62  ;;  %10850 = vmatpush1.bf16.msra.mxu0 %v17180_v30  ;;  %v17239_v30 = vld [vmem:[%s23691_s9 + $0x84] ss:$8 sps:$4 sm:$0xff]  }
 0x6be   : > { %11064 = vmatprep.subr.bf16.mxu1 %v17185_v25  ;;  %10851 = vmatprep.subr.bf16.mxu0 %v17188_v28 }
 0x6c0   : > { %v22091_v23 = vpop.f32.mrf.mxu1 }
 0x6c1   : > { %11065 = vmatpush1.bf16.msra.mxu1 %v17183_v16  ;;  %10852 = vmatpush1.bf16.msra.mxu0 %v17186_v47 }
 0x6c2   : > { %v22093_v42 = vpop.f32.mrf.mxu1  ;;  %11066 = vmatprep.subr.bf16.mxu1 %v17191_v11  ;;  %10853 = vmatprep.subr.bf16.mxu0 %v17194_v4  ;;  %v17234_v11 = vld [vmem:[%s23691_s9 + $0x1a0] ss:$8 sps:$4 sm:$0xff]  }
 0x6c4   : > { %v22101_v41 = vpop.f32.mrf.mxu1 }
 0x6c5   : > { %11067 = vmatpush1.bf16.msra.mxu1 %v17189_v17  ;;  %10854 = vmatpush1.bf16.msra.mxu0 %v17192_v2  ;;  %v17242_v17 = vld [vmem:[%s23691_s9 + $0x194] ss:$8 sps:$4 sm:$0xff]   ;;  %v17237_v2 = vld [vmem:[%s23691_s9 + $0x80] ss:$8 sps:$4 sm:$0xff]  }
 0x6c6   : > { %v22103_v38 = vpop.f32.mrf.mxu1  ;;  %11068 = vmatprep.subr.bf16.mxu1 %v17197_v5  ;;  %10855 = vmatprep.subr.bf16.mxu0 %v17200_v8 }
 0x6c8   : > { %v22117_v22 = vpop.f32.mrf.mxu1 }
 0x6c9   : > { %11069 = vmatpush2.bf16.msra.mxu1 %v17195_v35  ;;  %10856 = vmatpush1.bf16.msra.mxu0 %v17198_v53  ;;  %v17245_v35 = vld [vmem:[%s23691_s9 + $0x374] ss:$8 sps:$4 sm:$0xff]   ;;  %v17248_v53 = vld [vmem:[%s23691_s9 + $0x184] ss:$8 sps:$4 sm:$0xff]  }
 0x6ca   : > { %v22119_v48 = vpop.f32.mrf.mxu1  ;;  %10857 = vmatprep.subr.bf16.mxu0 %v17206_v34 }
 0x6cc   : > { %v9169_v7 = vpop.f32.mrf.mxu1 }
 0x6cd   : > { %v17227_v7 = vld [vmem:[%s23691_s9 + $0xa4] ss:$8 sps:$4 sm:$0xff]  }
 0x6ce   : > { %v9170_v32 = vpop.f32.mrf.mxu1 }
 0x6cf   : > { %v17225_v32 = vld [vmem:[%s23691_s9 + $0xa0] ss:$8 sps:$4 sm:$0xff]  }
 0x6dd   : > { %v9104_v58 = vpop.f32.mrf.mxu0 }
 0x6de   : > { %v9156_v50 = vadd.f32 %v22091_v23, %v9104_v58 }
 0x6df   : > { %v9106_v29 = vpop.f32.mrf.mxu0 }
 0x6e0   : > { %v22198_v45 = vadd.f32 %v9156_v50, %v22066_v3  ;;  %v9158_v18 = vadd.f32 %v22093_v42, %v9106_v29 }
 0x6e1   : > { %v9108_v39 = vpop.f32.mrf.mxu0 }
 0x6e2   : > { %v22205_v24 = vadd.f32 %v9158_v18, %v22069_v33  ;;  %v9160_v63 = vadd.f32 %v22101_v41, %v9108_v39 }
 0x6e3   : > { %v9110_v59 = vpop.f32.mrf.mxu0 }
 0x6e4   : > { %v22209_v6 = vadd.f32 %v9160_v63, %v22073_v37  ;;  %v9162_v3 = vadd.f32 %v22103_v38, %v9110_v59  ;;  %v17201_v38 = vld [vmem:[%s23691_s9 + $0xe0] ss:$8 sps:$4 sm:$0xff]  }
 0x6e5   : > { %v9114_v13 = vpop.f32.mrf.mxu0 }
 0x6e6   : > { %v22213_v0 = vadd.f32 %v9162_v3, %v22077_v12  ;;  %v9166_v23 = vadd.f32 %v22117_v22, %v9114_v13  ;;  %v17203_v12 = vld [vmem:[%s23691_s9 + $0xe4] ss:$8 sps:$4 sm:$0xff]   ;;  %v17213_v22 = vld [vmem:[%s23691_s9 + $0xc0] ss:$8 sps:$4 sm:$0xff]  }
 0x6e7   : > { %v9116_v42 = vpop.f32.mrf.mxu0  ;;  %11070 = vmatprep.subr.bf16.mxu1 %v17203_v12 }
 0x6e8   : > { %v22217_v33 = vadd.f32 %v9166_v23, %v22080_v9  ;;  %v9168_v57 = vadd.f32 %v22119_v48, %v9116_v42  ;;  %v17204_v9 = vld [vmem:[%s23691_s9 + $0x1f0] ss:$8 sps:$4 sm:$0xff]   ;;  %11071 = vmatpush2.bf16.msra.mxu1 %v17201_v38  ;;  %v17215_v48 = vld [vmem:[%s23691_s9 + $0xc4] ss:$8 sps:$4 sm:$0xff]  }
 0x6e9   : > { %v9118_v14 = vpop.f32.mrf.mxu0  ;;  %10858 = vmatpush2.bf16.msra.mxu0 %v17204_v9  ;;  %11072 = vmatprep.subr.bf16.mxu1 %v17209_v20 }
 0x6ea   : > { %v22221_v41 = vadd.f32 %v9168_v57, %v22083_v54  ;;  %v17207_v54 = vld [vmem:[%s23691_s9 + $0xd0] ss:$8 sps:$4 sm:$0xff]   ;;  %10859 = vmatprep.subr.bf16.mxu0 %v17212_v61  ;;  %v17246_v57 = vld [vmem:[%s23691_s9 + $0x180] ss:$8 sps:$4 sm:$0xff]  }
 0x6eb   : > { %v9119_v37 = vpop.f32.mrf.mxu0 }
 0x6ec   : > { %11073 = vmatpush2.bf16.msra.mxu1 %v17207_v54 }
 0x6ed   : > { %10860 = vmatpush2.bf16.msra.mxu0 %v17210_v46  ;;  %11074 = vmatprep.subr.bf16.mxu1 %v17215_v48 }
 0x6ee   : > { %10861 = vmatprep.subr.bf16.mxu0 %v17218_v31 }
 0x6f0   : > { %11075 = vmatpush2.bf16.msra.mxu1 %v17213_v22 }
 0x6f1   : > { %11076 = vmatprep.subr.bf16.mxu1 %v17221_v43  ;;  %10862 = vmatpush2.bf16.msra.mxu0 %v17216_v21 }
 0x6f2   : > { %10863 = vmatprep.subr.bf16.mxu0 %v17224_v60 }
 0x6f4   : > { %11077 = vmatpush2.bf16.msra.mxu1 %v17219_v1 }
 0x6f5   : > { %11078 = vmatprep.subr.bf16.mxu1 %v17227_v7  ;;  %10864 = vmatpush2.bf16.msra.mxu0 %v17222_v55 }
 0x6f6   : > { %10865 = vmatprep.subr.bf16.mxu0 %v17230_v36 }
 0x6f8   : > { %11079 = vmatpush2.bf16.msra.mxu1 %v17225_v32 }
 0x6f9   : > { %11080 = vmatprep.subr.bf16.mxu1 %v17233_v15  ;;  %10866 = vmatpush2.bf16.msra.mxu0 %v17228_v40 }
 0x6fa   : > { %10867 = vmatprep.subr.bf16.mxu0 %v17236_v27 }
 0x6fc   : > { %11081 = vmatpush2.bf16.msra.mxu1 %v17231_v26 }
 0x6fd   : > { %v9590_v19 = vpop.f32.mrf.mxu0  ;;  %11082 = vmatprep.subr.bf16.mxu1 %v17239_v30  ;;  %10868 = vmatpush2.bf16.msra.mxu0 %v17234_v11 }
 0x6fe   : > { %10869 = vmatprep.subr.bf16.mxu0 %v17242_v17 }
 0x6ff   : > { %v9592_v62 = vpop.f32.mrf.mxu0 }
 0x700   : > { %v9539_v25 = vpop.f32.mrf.mxu1  ;;  %11083 = vmatpush2.bf16.msra.mxu1 %v17237_v2 }
 0x701   : > { %v9591_v16 = vadd.f32 %v9590_v19, %v9539_v25  ;;  %v9594_v28 = vpop.f32.mrf.mxu0  ;;  %11588 = vmatprep.subr.bf16.mxu1 %v17245_v35  ;;  %v10507_v19 = vld [vmem:[%s23690_s8] sm:$0x3] }
 0x702   : > { %v9541_v47 = vpop.f32.mrf.mxu1  ;;  %v10516_v2 = vrot.slane %v10507_v19, %v18899_v10 }
 0x703   : > { %v9607_v4 = vadd.f32 %v9591_v16, %v22198_v45  ;;  %v9593_v5 = vadd.f32 %v9592_v62, %v9541_v47  ;;  %v9596_v58 = vpop.f32.mrf.mxu0  ;;  %v17240_v45 = vld [vmem:[%s23691_s9 + $0x190] ss:$8 sps:$4 sm:$0xff]   ;;  %v10512_v16 = vrot.slane %v10507_v19, %v18896_v52 }
 0x704   : > { %v9543_v50 = vpop.f32.mrf.mxu1  ;;  %10870 = vmatpush2.bf16.msra.mxu0 %v17240_v45 }
 0x705   : > { %v9608_v29 = vadd.f32 %v9593_v5, %v22205_v24  ;;  %v9595_v8 = vadd.f32 %v9594_v28, %v9543_v50  ;;  %v9600_v18 = vpop.f32.mrf.mxu0  ;;  %10871 = vmatprep.subr.bf16.mxu0 %v17248_v53 }
 0x706   : > { %v9545_v39 = vpop.f32.mrf.mxu1 }
 0x707   : > { %v9609_v63 = vadd.f32 %v9595_v8, %v22209_v6  ;;  %v9597_v59 = vadd.f32 %v9596_v58, %v9545_v39  ;;  %v9602_v3 = vpop.f32.mrf.mxu0  ;;  %v17254_v6 = vld [vmem:[%s23691_s9 + $0x274] ss:$8 sps:$4 sm:$0xff]  }
 0x708   : > { %v9549_v13 = vpop.f32.mrf.mxu1  ;;  %10872 = vmatpush2.bf16.msra.mxu0 %v17246_v57 }
 0x709   : > { %v9610_v24 = vadd.f32 %v9597_v59, %v22213_v0  ;;  %v9601_v23 = vadd.f32 %v9600_v18, %v9549_v13  ;;  %v9604_v42 = vpop.f32.mrf.mxu0  ;;  %11317 = vmatprep.subr.bf16.mxu0 %v17254_v6 }
 0x70a   : > { %v9551_v14 = vpop.f32.mrf.mxu1 }
 0x70b   : > { %v22324_v37 = vadd.f32 %v9601_v23, %v22217_v33  ;;  %v9603_v38 = vadd.f32 %v9602_v3, %v9551_v14  ;;  %v9605_v12 = vpop.f32.mrf.mxu0 }
 0x70c   : > { %v9553_v9 = vpop.f32.mrf.mxu1 }
 0x70d   : > { %v9612_v0 = vadd.f32 %v9603_v38, %v22221_v41 }
 0x70e   : > { %v9554_v34 = vpop.f32.mrf.mxu1 }
 0x720   : > { %v10055_v54 = vpop.f32.mrf.mxu1 }
 0x722   : > { %v10057_v20 = vpop.f32.mrf.mxu1 }
 0x724   : > { %v10059_v46 = vpop.f32.mrf.mxu1 }
 0x726   : > { %v10061_v61 = vpop.f32.mrf.mxu1 }
 0x728   : > { %v10065_v22 = vpop.f32.mrf.mxu1 }
 0x72a   : > { %v10067_v48 = vpop.f32.mrf.mxu1 }
 0x72c   : > { %v10069_v21 = vpop.f32.mrf.mxu1 }
 0x72e   : > { %v10070_v31 = vpop.f32.mrf.mxu1 }
 0x73d   : > { %v10004_v43 = vpop.f32.mrf.mxu0 }
 0x73e   : > { %v10056_v41 = vadd.f32 %v10055_v54, %v10004_v43 }
 0x73f   : > { %v10006_v60 = vpop.f32.mrf.mxu0 }
 0x740   : > { %v10058_v40 = vadd.f32 %v10057_v20, %v10006_v60  ;;  %v10072_v26 = vadd.f32 %v10056_v41, %v9607_v4 }
 0x741   : > { %v10008_v33 = vpop.f32.mrf.mxu0 }
 0x742   : > { %v10060_v25 = vadd.f32 %v10059_v46, %v10008_v33  ;;  %v10073_v17 = vadd.f32 %v10058_v40, %v9608_v29 }
 0x743   : > { %v10010_v1 = vpop.f32.mrf.mxu0 }
 0x744   : > { %v10062_v11 = vadd.f32 %v10061_v61, %v10010_v1  ;;  %v10074_v8 = vadd.f32 %v10060_v25, %v9609_v63  ;;  %v10609_v25 = vld [vmem:[#allocation5 + $0x18] sm:$0x1] }
 0x745   : > { %v10014_v7 = vpop.f32.mrf.mxu0 }
 0x746   : > { %v10075_v4 = vadd.f32 %v10062_v11, %v9610_v24  ;;  %v10066_v59 = vadd.f32 %v10065_v22, %v10014_v7 }
 0x747   : > { %v10016_v55 = vpop.f32.mrf.mxu0 }
 0x748   : > { %v10068_v3 = vadd.f32 %v10067_v48, %v10016_v55  ;;  %v10076_v63 = vadd.f32 %v10066_v59, %v22324_v37 }
 0x749   : > { %v10018_v36 = vpop.f32.mrf.mxu0 }
 0x74a   : > { %v10077_v20 = vadd.f32 %v10068_v3, %v9612_v0 }
 0x74b   : > { %v10019_v32 = vpop.f32.mrf.mxu0 }
 0x75d   : > { %v10484_v15 = vpop.f32.mrf.mxu0 }
 0x75f   : > { %v10486_v27 = vpop.f32.mrf.mxu0 }
 0x760   : > { %v10433_v62 = vpop.f32.mrf.mxu1 }
 0x761   : > { %v10485_v30 = vadd.f32 %v10484_v15, %v10433_v62  ;;  %v10488_v28 = vpop.f32.mrf.mxu0  ;;  %v10610_v62 = vld [vmem:[#allocation5 + $0x40] sm:$0x1] }
 0x762   : > { %v10435_v47 = vpop.f32.mrf.mxu1 }
 0x763   : > { %v10501_v5 = vadd.f32 %v10485_v30, %v10072_v26  ;;  %v10487_v58 = vadd.f32 %v10486_v27, %v10435_v47  ;;  %v10490_v50 = vpop.f32.mrf.mxu0 }
 0x764   : > { %v10437_v35 = vpop.f32.mrf.mxu1 }
 0x765   : > { %v10519_v18 = vadd.f32 %v10512_v16, %v10501_v5  ;;  %v10502_v45 = vadd.f32 %v10487_v58, %v10073_v17  ;;  %v10489_v39 = vadd.f32 %v10488_v28, %v10437_v35  ;;  %v10494_v53 = vpop.f32.mrf.mxu0  ;;  %v17243_v35 = vld [vmem:[%s23691_s9 + $0x370] ss:$8 sps:$4 sm:$0xff]  }
 0x766   : > { %v10439_v13 = vpop.f32.mrf.mxu1 }
 0x767   : > { %v10525_v23 = vmax.f32 %v10519_v18, 0.0  ;;  %v10520_v42 = vadd.f32 %v10516_v2, %v10502_v45  ;;  %v10503_v57 = vadd.f32 %v10489_v39, %v10074_v8  ;;  %v10491_v14 = vadd.f32 %v10490_v50, %v10439_v13  ;;  %v10496_v29 = vpop.f32.mrf.mxu0 }
 0x768   : > { %v10443_v6 = vpop.f32.mrf.mxu1 }
 0x769   : > { %v10533_v38 = vrot.slane %v10525_v23, 1  ;;  %v10526_v12 = vmax.f32 %v10520_v42, 0.0  ;;  %v10521_v9 = vadd.f32 %v10512_v16, %v10503_v57  ;;  %v10504_v34 = vadd.f32 %v10491_v14, %v10075_v4  ;;  %v10498_v54 = vpop.f32.mrf.mxu0 }
 0x76a   : > { %v10495_v46 = vadd.f32 %v10494_v53, %v10443_v6  ;;  %v10445_v61 = vpop.f32.mrf.mxu1  ;;  %v17251_v53 = vld [vmem:[%s23691_s9 + $0x364] ss:$8 sps:$4 sm:$0xff]  }
 0x76b   : > { %10537 = vst [vmem:[#allocation5 + $0x50] ss:$-36 sps:$4 sm:$0x87] %v10533_v38   ;;  %v10534_v24 = vrot.slane %v10526_v12, 1  ;;  %v10527_v22 = vmax.f32 %v10521_v9, 0.0  ;;  %v10522_v48 = vadd.f32 %v10516_v2, %v10504_v34  ;;  %v10497_v21 = vadd.f32 %v10496_v29, %v10445_v61  ;;  %v10499_v31 = vpop.f32.mrf.mxu0 }
 0x76c   : > { %v10505_v43 = vadd.f32 %v10495_v46, %v10076_v63  ;;  %v10447_v60 = vpop.f32.mrf.mxu1  ;;  %v17249_v12 = vld [vmem:[%s23691_s9 + $0x360] ss:$8 sps:$4 sm:$0xff]   ;;  %v17257_v46 = vld [vmem:[%s23691_s9 + $0x354] ss:$8 sps:$4 sm:$0xff]  }
 0x76d   : > { %10538 = vst [vmem:[#allocation5] ss:$60 sps:$4 sm:$0x87] %v10534_v24   ;;  %v10543_v33 = vrot.slane %v10527_v22, 1  ;;  %v10528_v1 = vmax.f32 %v10522_v48, 0.0  ;;  %v10506_v7 = vadd.f32 %v10497_v21, %v10077_v20 }
 0x76e   : > { %v10523_v55 = vadd.f32 %v10512_v16, %v10505_v43  ;;  %v10448_v36 = vpop.f32.mrf.mxu1  ;;  %v17252_v48 = vld [vmem:[%s23691_s9 + $0x270] ss:$8 sps:$4 sm:$0xff]  }
 0x76f   : > { %v10544_v32 = vsel %vm3904_vm9, %v10533_v38, %v10543_v33  ;;  %10553 = vst [vmem:[#allocation5 + $0x20] sm:$0x79] %v10543_v33   ;;  %v10545_v37 = vrot.slane %v10528_v1, 1  ;;  %v10524_v0 = vadd.f32 %v10516_v2, %v10506_v7 }
 0x770   : > { %10551 = vst [vmem:[#allocation5 + $0x50] sm:$0xe0] %v10544_v32  ;;  %v10529_v41 = vmax.f32 %v10523_v55, 0.0 }
 0x771   : > { %v10546_v15 = vsel %vm3904_vm9, %v10534_v24, %v10545_v37  ;;  %10554 = vst [vmem:[#allocation5 + $0x30] sm:$0x79] %v10545_v37   ;;  %v10530_v19 = vmax.f32 %v10524_v0, 0.0  ;;  %v17260_v37 = vld [vmem:[%s23691_s9 + $0x264] ss:$8 sps:$4 sm:$0xff]  }
 0x772   : > { %10552 = vst [vmem:[#allocation5] sm:$0xe0] %v10546_v15  ;;  %v10559_v40 = vrot.slane %v10529_v41, 1  ;;  %v10607_v16 = vld [vmem:[#allocation5 + $0x28] sm:$0xfe] }
 0x773   : > { %v10560_v27 = vrot.slane %v10530_v19, 1  ;;  %v10565_v8 = vld [vmem:[#allocation5 + $0x28] sm:$0xff] }
 0x774   : > { %10563 = vst [vmem:[#allocation5 + $0x18] sm:$0x1e] %v10559_v40  ;;  %v10566_v47 = vld [vmem:[#allocation5 + $0x38] sm:$0xff]  ;;  %v11103_v42 = vld [vmem:[#allocation5 + $0x28] sm:$0xfc] }
 0x775   : > { %10564 = vst [vmem:[#allocation5 + $0x40] sm:$0x1e] %v10560_v27  ;;  %v10608_v5 = vld [vmem:[#allocation5 + $0x38] sm:$0xfe] }
 0x776   : > { %v22335_v26 = vld [vmem:[#allocation5 + $0x20] sm:$0xff]  ;;  %v11375_v54 = vld [vmem:[#allocation5 + $0x38] sm:$0xc0] }
 0x777   : > { %v22337_v30 = vld [vmem:[#allocation5 + $0x50] sm:$0xff]  ;;  %v22346_v2 = vpack.c.bf16 %v10609_v25, %v22335_v26  ;;  %v10573_v21 = vpack.c.bf16 %v22335_v26, %v22335_v26  ;;  %v11646_v36 = vld [vmem:[#allocation5 + $0x38] sm:$0x80]  ;;  %v17255_v27 = vld [vmem:[%s23691_s9 + $0x350] ss:$8 sps:$4 sm:$0xff]  }
 0x778   : > { %v22339_v28 = vld [vmem:[#allocation5 + $0x30] sm:$0xff]  ;;  %v10611_v11 = vpack.c.bf16 %v22337_v30, %v10607_v16  ;;  %v10571_v39 = vpack.c.bf16 %v22337_v30, %v10565_v8  ;;  %v11107_v63 = vpack.c.bf16 %v22337_v30, %v11103_v42  ;;  %v11942_v16 = vpack.c.bf16 %v22335_v26, %v22337_v30 }
 0x779   : > { %v22342_v17 = vld [vmem:[#allocation5] sm:$0xff]  ;;  %v10614_v58 = vpack.c.bf16 %v10610_v62, %v22339_v28  ;;  %v10574_v59 = vpack.c.bf16 %v22339_v28, %v22339_v28  ;;  %v10655_v29 = vshll.u32 %v22346_v2, 16  ;;  %v17258_v8 = vld [vmem:[%s23691_s9 + $0x260] ss:$8 sps:$4 sm:$0xff]  }
 0x77a   : > { %v10572_v50 = vpack.c.bf16 %v22342_v17, %v10566_v47  ;;  %v10612_v18 = vpack.c.bf16 %v22342_v17, %v10608_v5  ;;  %v10650_v45 = vshll.u32 %v10611_v11, 16  ;;  %v10648_v14 = vshrl.u32 %v10611_v11, 16  ;;  %v17263_v11 = vld [vmem:[%s23691_s9 + $0x344] ss:$8 sps:$4 sm:$0xff]  }
 0x77b   : > { %v10667_v4 = vshll.u32 %v10614_v58, 16  ;;  %v11105_v38 = vld [vmem:[#allocation5 + $0x18] sm:$0x3]  ;;  %v10674_v61 = vshrl.u32 %v10614_v58, 16  ;;  %v11379_v24 = vpack.c.bf16 %v22342_v17, %v11375_v54  ;;  %v10657_v60 = vrot.slane %v10655_v29, 1 }
 0x77c   : > { %11084 = vmatprep.mubr.bf16.mxu1 %v10572_v50  ;;  %v10662_v3 = vshll.u32 %v10612_v18, 16  ;;  %v10652_v13 = vrot.slane %v10650_v45, 1  ;;  %v11377_v23 = vld [vmem:[#allocation5 + $0x40] sm:$0x3f]  ;;  %v10660_v9 = vshrl.u32 %v10612_v18, 16  ;;  %v11109_v31 = vpack.c.bf16 %v11105_v38, %v22335_v26 }
 0x77d   : > { %11085 = vmatmul.mubr.bf16.vlgmr.msra.gmra.mxu1 %v10571_v39  ;;  %v10669_v57 = vrot.slane %v10667_v4, 1  ;;  %v11381_v6 = vpack.c.bf16 %v11377_v23, %v22339_v28  ;;  %v11648_v43 = vld [vmem:[#allocation5 + $0x40] sm:$0x7f]  ;;  %v11943_v55 = vpack.c.bf16 %v22339_v28, %v22342_v17  ;;  %v11147_v0 = vrot.slane %v11107_v63, 1  ;;  %v11647_v19 = vld [vmem:[#allocation5 + $0x18] sm:$0x7f] }
 0x77e   : > { %11589 = vmatpush1.bf16.msra.mxu1 %v17243_v35  ;;  %11094 = vmatprep.mubr.bf16.mxu1 %v10574_v59  ;;  %v10664_v34 = vrot.slane %v10662_v3, 1  ;;  %v10653_v20 = vor.u32 %v10652_v13, %v10648_v14  ;;  %v11106_v7 = vld [vmem:[#allocation5 + $0x40] sm:$0x3]  ;;  %v22383_v41 = vrot.slane %v11109_v31, 1  ;;  %v11650_v15 = vpack.c.bf16 %v22342_v17, %v11646_v36  ;;  %v11645_v35 = vld [vmem:[#allocation5 + $0x28] sm:$0x80] }
 0x77f   : > { %11590 = vmatprep.subr.bf16.mxu1 %v17251_v53  ;;  %v10676_v33 = vor.u32 %v10674_v61, %v10669_v57  ;;  %v22375_v1 = vrot.slane %v11381_v6, 3  ;;  %v11421_v62 = vrot.slane %v11379_v24, 3  ;;  %v11652_v25 = vpack.c.bf16 %v11648_v43, %v22339_v28  ;;  %v11104_v18 = vld [vmem:[#allocation5 + $0x38] sm:$0xfc]  ;;  %v17275_v36 = vld [vmem:[%s23691_s9 + $0x324] ss:$8 sps:$4 sm:$0xff]  }
 0x780   : > { %v10665_v22 = vor.u32 %v10664_v34, %v10660_v9  ;;  %v10658_v40 = vsel %vm3217_vm8, %v10653_v20, %v10657_v60  ;;  %v11110_v47 = vpack.c.bf16 %v11106_v7, %v22339_v28  ;;  %v22399_v5 = vsel %vm3904_vm9, %v11147_v0, %v22383_v41  ;;  %v17266_v3 = vld [vmem:[%s23691_s9 + $0x254] ss:$8 sps:$4 sm:$0xff]   ;;  %v17264_v20 = vld [vmem:[%s23691_s9 + $0x250] ss:$8 sps:$4 sm:$0xff]   ;;  %v17270_v0 = vld [vmem:[%s23691_s9 + $0x240] ss:$8 sps:$4 sm:$0xff]  }
 0x781   : > { %v11703_v58 = vshrl.u32 %v11650_v15, 16  ;;  %v11706_v50 = vshll.u32 %v11650_v15, 16  ;;  %v11711_v45 = vshrl.u32 %v11652_v25, 16  ;;  %v11714_v39 = vshll.u32 %v11652_v25, 16  ;;  %v17269_v9 = vld [vmem:[%s23691_s9 + $0x334] ss:$8 sps:$4 sm:$0xff]  }
 0x782   : > { %11591 = vmatpush1.bf16.msra.mxu1 %v17249_v12  ;;  %v10670_v32 = vsel %vm3217_vm8, %v10665_v22, %v10669_v57  ;;  %v11649_v53 = vpack.c.bf16 %v22337_v30, %v11645_v35  ;;  %v11651_v4 = vpack.c.bf16 %v11647_v19, %v22335_v26  ;;  %v11423_v59 = vsel %vm4279_vm10, %v11421_v62, %v22375_v1  ;;  %v17261_v57 = vld [vmem:[%s23691_s9 + $0x340] ss:$8 sps:$4 sm:$0xff]   ;;  %v17278_v19 = vld [vmem:[%s23691_s9 + $0x234] ss:$8 sps:$4 sm:$0xff]   ;;  %v17368_v28 = vld [vmem:[%s23691_s9 + $0x444] ss:$8 sps:$4 sm:$0xff]  }
 0x783   : > { %10873 = vmatprep.mubr.bf16.mxu0 %v10670_v32  ;;  %11592 = vmatprep.subr.bf16.mxu1 %v17257_v46  ;;  %v11108_v13 = vpack.c.bf16 %v22342_v17, %v11104_v18  ;;  %v11705_v23 = vrot.slane %v11703_v58, 3  ;;  %v11708_v42 = vrot.slane %v11706_v50, 4  ;;  %v11713_v14 = vrot.slane %v11711_v45, 3  ;;  %v17273_v15 = vld [vmem:[%s23691_s9 + $0x320] ss:$8 sps:$4 sm:$0xff]   ;;  %v22463_v50 = vld [vmem:[#allocation5 + $0x40] sm:$0xff] }
 0x784   : > { %10874 = vmatmul.mubr.bf16.vlgmr.msra.gmra.mxu0 %v10658_v40  ;;  %v11716_v29 = vrot.slane %v11714_v39, 4  ;;  %v11686_v6 = vshrl.u32 %v11649_v53, 16  ;;  %v11689_v38 = vshll.u32 %v11649_v53, 16  ;;  %v10671_v12 = vshrl.u32 %v22346_v2, 16  ;;  %v17281_v40 = vld [vmem:[%s23691_s9 + $0x314] ss:$8 sps:$4 sm:$0xff]  }
 0x785   : > { %11318 = vmatpush1.bf16.msra.mxu0 %v17252_v48  ;;  %10883 = vmatprep.mubr.bf16.mxu0 %v10676_v33  ;;  %v22419_v34 = vrot.slane %v11110_v47, 1  ;;  %v11694_v54 = vshrl.u32 %v11651_v4, 16  ;;  %v11697_v63 = vshll.u32 %v11651_v4, 16  ;;  %v11709_v46 = vor.u32 %v11708_v42, %v11705_v23  ;;  %v17267_v33 = vld [vmem:[%s23691_s9 + $0x330] ss:$8 sps:$4 sm:$0xff]  }
 0x786   : > { %11095 = vmatmul.mubr.bf16.gmra.mxu1 %v10573_v21  ;;  %11319 = vmatprep.subr.bf16.mxu0 %v17260_v37  ;;  %v22424_v61 = vor.u32 %v11716_v29, %v11713_v14  ;;  %v11688_v24 = vrot.slane %v11686_v6, 3  ;;  %v11691_v22 = vrot.slane %v11689_v38, 4  ;;  %v10673_v2 = vor.u32 %v10671_v12, %v10657_v60  ;;  %v17272_v21 = vld [vmem:[%s23691_s9 + $0x244] ss:$8 sps:$4 sm:$0xff]   ;;  %v12768_v62 = vld [vmem:[#allocation5 + $0x60] sm:$0x3f] }
 0x787   : > { %11593 = vmatpush1.bf16.msra.mxu1 %v17255_v27  ;;  %11620 = vmatprep.mubr.bf16.mxu1 %v11423_v59  ;;  %v11150_v48 = vrot.slane %v11108_v13, 1  ;;  %v11696_v31 = vrot.slane %v11694_v54, 3  ;;  %v11699_v43 = vrot.slane %v11697_v63, 4  ;;  %v12767_v25 = vld [vmem:[#allocation5 + $0x48] sm:$0x3f]  ;;  %v22461_v47 = vld [vmem:[#allocation5 + $0x20] sm:$0xff]  ;;  %v12772_v4 = vpack.c.bf16 %v12768_v62, %v22463_v50 }
 0x788   : > { %11594 = vmatprep.subr.bf16.mxu1 %v17263_v11  ;;  %v22434_v7 = vsel %vm4650_vm11, %v11709_v46, %v22424_v61  ;;  %v11692_v32 = vor.u32 %v11691_v22, %v11688_v24  ;;  %v22459_v11 = vld [vmem:[#allocation5 + $0x30] sm:$0xff]  ;;  %v12766_v58 = vld [vmem:[#allocation5] sm:$0xc0]  ;;  %v22465_v35 = vld [vmem:[#allocation5 + $0x18] sm:$0xff] }
 0x789   : > { %11320 = vmatpush1.bf16.msra.mxu0 %v17258_v8  ;;  %v11152_v60 = vsel %vm3904_vm9, %v11150_v48, %v22419_v34  ;;  %v22441_v37 = vor.u32 %v11699_v43, %v11696_v31  ;;  %v12765_v8 = vld [vmem:[#allocation5 + $0x50] sm:$0xc0]  ;;  %v17276_v18 = vld [vmem:[%s23691_s9 + $0x230] ss:$8 sps:$4 sm:$0xff]   ;;  %v12770_v39 = vpack.c.bf16 %v22459_v11, %v12766_v58  ;;  %v17282_v23 = vld [vmem:[%s23691_s9 + $0x220] ss:$8 sps:$4 sm:$0xff]  }
 0x78a   : > { %11321 = vmatprep.subr.bf16.mxu0 %v17266_v3  ;;  %v17284_v45 = vld [vmem:[%s23691_s9 + $0x224] ss:$8 sps:$4 sm:$0xff]   ;;  %v17279_v53 = vld [vmem:[%s23691_s9 + $0x310] ss:$8 sps:$4 sm:$0xff]   ;;  %v12769_v59 = vpack.c.bf16 %v22461_v47, %v12765_v8  ;;  %v12771_v3 = vpack.c.bf16 %v12767_v25, %v22465_v35  ;;  %v17290_v14 = vld [vmem:[%s23691_s9 + $0x214] ss:$8 sps:$4 sm:$0xff]  }
 0x78b   : > { %11595 = vmatpush1.bf16.msra.mxu1 %v17261_v57  ;;  %v22457_v27 = vsel %vm4650_vm11, %v11692_v32, %v22441_v37  ;;  %v17287_v13 = vld [vmem:[%s23691_s9 + $0x304] ss:$8 sps:$4 sm:$0xff]   ;;  %v12812_v42 = vrot.slane %v12770_v39, 3  ;;  %v22486_v57 = vrot.slane %v12772_v4, 3  ;;  %v17285_v38 = vld [vmem:[%s23691_s9 + $0x300] ss:$8 sps:$4 sm:$0xff]  }
 0x78c   : > { %10884 = vmatmul.mubr.bf16.gmra.mxu0 %v10673_v2  ;;  %11596 = vmatprep.subr.bf16.mxu1 %v17269_v9  ;;  %v12809_v29 = vrot.slane %v12769_v59, 3  ;;  %v22491_v6 = vrot.slane %v12771_v3, 3  ;;  %v17293_v9 = vld [vmem:[%s23691_s9 + $0x3f4] ss:$8 sps:$4 sm:$0xff]   ;;  %v17288_v63 = vld [vmem:[%s23691_s9 + $0x210] ss:$8 sps:$4 sm:$0xff]  }
 0x78d   : > { %11322 = vmatpush1.bf16.msra.mxu0 %v17264_v20  ;;  %11349 = vmatprep.mubr.bf16.mxu0 %v11152_v60  ;;  %v22498_v12 = vsel %vm4279_vm10, %v12812_v42, %v22486_v57  ;;  %v17296_v20 = vld [vmem:[%s23691_s9 + $0x204] ss:$8 sps:$4 sm:$0xff]   ;;  %v17291_v46 = vld [vmem:[%s23691_s9 + $0x3f0] ss:$8 sps:$4 sm:$0xff]   ;;  %v17294_v22 = vld [vmem:[%s23691_s9 + $0x200] ss:$8 sps:$4 sm:$0xff]  }
 0x78e   : > { %11323 = vmatprep.subr.bf16.mxu0 %v17272_v21  ;;  %v22505_v54 = vsel %vm4279_vm10, %v12809_v29, %v22491_v6  ;;  %v17299_v24 = vld [vmem:[%s23691_s9 + $0x3e4] ss:$8 sps:$4 sm:$0xff]   ;;  %v17302_v2 = vld [vmem:[%s23691_s9 + $0x2f4] ss:$8 sps:$4 sm:$0xff]   ;;  %v17297_v48 = vld [vmem:[%s23691_s9 + $0x3e0] ss:$8 sps:$4 sm:$0xff]  }
 0x78f   : > { %11597 = vmatpush1.bf16.msra.mxu1 %v17267_v33  ;;  %v17305_v21 = vld [vmem:[%s23691_s9 + $0x3d4] ss:$8 sps:$4 sm:$0xff]   ;;  %v17300_v31 = vld [vmem:[%s23691_s9 + $0x2f0] ss:$8 sps:$4 sm:$0xff]   ;;  %v17308_v43 = vld [vmem:[%s23691_s9 + $0x2e4] ss:$8 sps:$4 sm:$0xff]  }
 0x790   : > { %11598 = vmatprep.subr.bf16.mxu1 %v17275_v36  ;;  %v17303_v33 = vld [vmem:[%s23691_s9 + $0x3d0] ss:$8 sps:$4 sm:$0xff]   ;;  %v17311_v60 = vld [vmem:[%s23691_s9 + $0x3c4] ss:$8 sps:$4 sm:$0xff]   ;;  %v17306_v36 = vld [vmem:[%s23691_s9 + $0x2e0] ss:$8 sps:$4 sm:$0xff]  }
 0x791   : > { %11324 = vmatpush1.bf16.msra.mxu0 %v17270_v0  ;;  %v17314_v32 = vld [vmem:[%s23691_s9 + $0x2d4] ss:$8 sps:$4 sm:$0xff]   ;;  %v17309_v0 = vld [vmem:[%s23691_s9 + $0x3c0] ss:$8 sps:$4 sm:$0xff]   ;;  %v17315_v62 = vld [vmem:[%s23691_s9 + $0x3b0] ss:$8 sps:$4 sm:$0xff]  }
 0x792   : > { %11325 = vmatprep.subr.bf16.mxu0 %v17278_v19  ;;  %v17312_v19 = vld [vmem:[%s23691_s9 + $0x2d0] ss:$8 sps:$4 sm:$0xff]   ;;  %v17323_v25 = vld [vmem:[%s23691_s9 + $0x3a4] ss:$8 sps:$4 sm:$0xff]   ;;  %v17318_v58 = vld [vmem:[%s23691_s9 + $0x2c0] ss:$8 sps:$4 sm:$0xff]  }
 0x793   : > { %11599 = vmatpush1.bf16.msra.mxu1 %v17273_v15  ;;  %v17317_v15 = vld [vmem:[%s23691_s9 + $0x3b4] ss:$8 sps:$4 sm:$0xff]   ;;  %v17324_v39 = vld [vmem:[%s23691_s9 + $0x2b0] ss:$8 sps:$4 sm:$0xff]   ;;  %v17335_v3 = vld [vmem:[%s23691_s9 + $0x384] ss:$8 sps:$4 sm:$0xff]  }
 0x794   : > { %11600 = vmatprep.subr.bf16.mxu1 %v17281_v40  ;;  %v17320_v40 = vld [vmem:[%s23691_s9 + $0x2c4] ss:$8 sps:$4 sm:$0xff]   ;;  %v17326_v8 = vld [vmem:[%s23691_s9 + $0x2b4] ss:$8 sps:$4 sm:$0xff]   ;;  %v17327_v59 = vld [vmem:[%s23691_s9 + $0x390] ss:$8 sps:$4 sm:$0xff]  }
 0x795   : > { %11326 = vmatpush1.bf16.msra.mxu0 %v17276_v18  ;;  %v17321_v18 = vld [vmem:[%s23691_s9 + $0x3a0] ss:$8 sps:$4 sm:$0xff]   ;;  %v11376_v4 = vld [vmem:[#allocation5 + $0x18] sm:$0x3f] }
 0x796   : > { %11327 = vmatprep.subr.bf16.mxu0 %v17284_v45  ;;  %v17329_v45 = vld [vmem:[%s23691_s9 + $0x394] ss:$8 sps:$4 sm:$0xff]   ;;  %v17333_v29 = vld [vmem:[%s23691_s9 + $0x380] ss:$8 sps:$4 sm:$0xff]   ;;  %v17363_v17 = vld [vmem:[%s23691_s9 + $0x530] ss:$8 sps:$4 sm:$0xff]  }
 0x797   : > { %11601 = vmatpush1.bf16.msra.mxu1 %v17279_v53  ;;  %v17332_v53 = vld [vmem:[%s23691_s9 + $0x2a4] ss:$8 sps:$4 sm:$0xff]   ;;  %v17338_v42 = vld [vmem:[%s23691_s9 + $0x294] ss:$8 sps:$4 sm:$0xff]  }
 0x798   : > { %11602 = vmatprep.subr.bf16.mxu1 %v17287_v13  ;;  %v17330_v13 = vld [vmem:[%s23691_s9 + $0x2a0] ss:$8 sps:$4 sm:$0xff]  }
 0x799   : > { %11328 = vmatpush1.bf16.msra.mxu0 %v17282_v23  ;;  %v11380_v23 = vpack.c.bf16 %v11376_v4, %v22335_v26  ;;  %v17389_v4 = vld [vmem:[%s23691_s9 + $0x5f4] ss:$8 sps:$4 sm:$0xff]  }
 0x79a   : > { %11329 = vmatprep.subr.bf16.mxu0 %v17290_v14  ;;  %v11374_v14 = vld [vmem:[#allocation5 + $0x28] sm:$0xc0] }
 0x79b   : > { %11603 = vmatpush1.bf16.msra.mxu1 %v17285_v38  ;;  %v11378_v38 = vpack.c.bf16 %v22337_v30, %v11374_v14  ;;  %v17398_v14 = vld [vmem:[%s23691_s9 + $0x4f4] ss:$8 sps:$4 sm:$0xff]  }
 0x79c   : > { %11604 = vmatprep.subr.bf16.mxu1 %v17293_v9  ;;  %v17341_v9 = vld [vmem:[%s23691_s9 + $0x574] ss:$8 sps:$4 sm:$0xff]  }
 0x79d   : > { %11330 = vmatpush1.bf16.msra.mxu0 %v17288_v63  ;;  %v17336_v63 = vld [vmem:[%s23691_s9 + $0x290] ss:$8 sps:$4 sm:$0xff]  }
 0x79e   : > { %11331 = vmatprep.subr.bf16.mxu0 %v17296_v20  ;;  %v11419_v20 = vrot.slane %v11380_v23, 3  ;;  %v17395_v23 = vld [vmem:[%s23691_s9 + $0x5e4] ss:$8 sps:$4 sm:$0xff]  }
 0x79f   : > { %11605 = vmatpush2.bf16.msra.mxu1 %v17291_v46  ;;  %v17344_v46 = vld [vmem:[%s23691_s9 + $0x284] ss:$8 sps:$4 sm:$0xff]  }
 0x7a0   : > { %11606 = vmatprep.subr.bf16.mxu1 %v17299_v24  ;;  %v11418_v24 = vrot.slane %v11378_v38, 3  ;;  %v17401_v38 = vld [vmem:[%s23691_s9 + $0x5d4] ss:$8 sps:$4 sm:$0xff]  }
 0x7a1   : > { %11332 = vmatpush1.bf16.msra.mxu0 %v17294_v22  ;;  %v17339_v22 = vld [vmem:[%s23691_s9 + $0x570] ss:$8 sps:$4 sm:$0xff]  }
 0x7a2   : > { %11333 = vmatprep.subr.bf16.mxu0 %v17302_v2  ;;  %v17347_v2 = vld [vmem:[%s23691_s9 + $0x564] ss:$8 sps:$4 sm:$0xff]  }
 0x7a3   : > { %11607 = vmatpush2.bf16.msra.mxu1 %v17297_v48  ;;  %v11420_v48 = vsel %vm4279_vm10, %v11418_v24, %v11419_v20  ;;  %v17402_v24 = vld [vmem:[%s23691_s9 + $0x4e0] ss:$8 sps:$4 sm:$0xff]  }
 0x7a4   : > { %11608 = vmatprep.subr.bf16.mxu1 %v17305_v21  ;;  %v17342_v21 = vld [vmem:[%s23691_s9 + $0x280] ss:$8 sps:$4 sm:$0xff]  }
 0x7a5   : > { %11334 = vmatpush2.bf16.msra.mxu0 %v17300_v31  ;;  %v17350_v31 = vld [vmem:[%s23691_s9 + $0x474] ss:$8 sps:$4 sm:$0xff]  }
 0x7a6   : > { %11335 = vmatprep.subr.bf16.mxu0 %v17308_v43  ;;  %v17345_v43 = vld [vmem:[%s23691_s9 + $0x560] ss:$8 sps:$4 sm:$0xff]  }
 0x7a7   : > { %11609 = vmatpush2.bf16.msra.mxu1 %v17303_v33  ;;  %v17353_v33 = vld [vmem:[%s23691_s9 + $0x554] ss:$8 sps:$4 sm:$0xff]  }
 0x7a8   : > { %11610 = vmatprep.subr.bf16.mxu1 %v17311_v60  ;;  %v17348_v60 = vld [vmem:[%s23691_s9 + $0x470] ss:$8 sps:$4 sm:$0xff]  }
 0x7a9   : > { %11336 = vmatpush2.bf16.msra.mxu0 %v17306_v36  ;;  %v17351_v36 = vld [vmem:[%s23691_s9 + $0x550] ss:$8 sps:$4 sm:$0xff]  }
 0x7aa   : > { %11337 = vmatprep.subr.bf16.mxu0 %v17314_v32  ;;  %v17359_v32 = vld [vmem:[%s23691_s9 + $0x544] ss:$8 sps:$4 sm:$0xff]  }
 0x7ab   : > { %11611 = vmatpush2.bf16.msra.mxu1 %v17309_v0  ;;  %v17354_v0 = vld [vmem:[%s23691_s9 + $0x460] ss:$8 sps:$4 sm:$0xff]  }
 0x7ac   : > { %11612 = vmatprep.subr.bf16.mxu1 %v17317_v15  ;;  %v17362_v15 = vld [vmem:[%s23691_s9 + $0x454] ss:$8 sps:$4 sm:$0xff]  }
 0x7ad   : > { %11338 = vmatpush2.bf16.msra.mxu0 %v17312_v19  ;;  %v17360_v19 = vld [vmem:[%s23691_s9 + $0x450] ss:$8 sps:$4 sm:$0xff]  }
 0x7ae   : > { %11339 = vmatprep.subr.bf16.mxu0 %v17320_v40  ;;  %v17366_v40 = vld [vmem:[%s23691_s9 + $0x440] ss:$8 sps:$4 sm:$0xff]  }
 0x7af   : > { %11613 = vmatpush2.bf16.msra.mxu1 %v17315_v62  ;;  %v17374_v62 = vld [vmem:[%s23691_s9 + $0x434] ss:$8 sps:$4 sm:$0xff]  }
 0x7b0   : > { %11614 = vmatprep.subr.bf16.mxu1 %v17323_v25  ;;  %v17377_v25 = vld [vmem:[%s23691_s9 + $0x514] ss:$8 sps:$4 sm:$0xff]  }
 0x7b1   : > { %11340 = vmatpush2.bf16.msra.mxu0 %v17318_v58  ;;  %v17380_v58 = vld [vmem:[%s23691_s9 + $0x424] ss:$8 sps:$4 sm:$0xff]  }
 0x7b2   : > { %11341 = vmatprep.subr.bf16.mxu0 %v17326_v8  ;;  %v17375_v8 = vld [vmem:[%s23691_s9 + $0x510] ss:$8 sps:$4 sm:$0xff]  }
 0x7b3   : > { %11615 = vmatpush2.bf16.msra.mxu1 %v17321_v18  ;;  %v17383_v18 = vld [vmem:[%s23691_s9 + $0x504] ss:$8 sps:$4 sm:$0xff]  }
 0x7b4   : > { %11616 = vmatprep.subr.bf16.mxu1 %v17329_v45  ;;  %v17378_v45 = vld [vmem:[%s23691_s9 + $0x420] ss:$8 sps:$4 sm:$0xff]  }
 0x7b5   : > { %11342 = vmatpush2.bf16.msra.mxu0 %v17324_v39  ;;  %v17386_v39 = vld [vmem:[%s23691_s9 + $0x414] ss:$8 sps:$4 sm:$0xff]  }
 0x7b6   : > { %11343 = vmatprep.subr.bf16.mxu0 %v17332_v53  ;;  %v17381_v53 = vld [vmem:[%s23691_s9 + $0x500] ss:$8 sps:$4 sm:$0xff]  }
 0x7b7   : > { %11617 = vmatpush2.bf16.msra.mxu1 %v17327_v59  ;;  %v17384_v59 = vld [vmem:[%s23691_s9 + $0x410] ss:$8 sps:$4 sm:$0xff]  }
 0x7b8   : > { %11618 = vmatprep.subr.bf16.mxu1 %v17335_v3  ;;  %v17392_v3 = vld [vmem:[%s23691_s9 + $0x404] ss:$8 sps:$4 sm:$0xff]  }
 0x7b9   : > { %11344 = vmatpush2.bf16.msra.mxu0 %v17330_v13  ;;  %v17387_v13 = vld [vmem:[%s23691_s9 + $0x5f0] ss:$8 sps:$4 sm:$0xff]  }
 0x7ba   : > { %11345 = vmatprep.subr.bf16.mxu0 %v17338_v42  ;;  %v17390_v42 = vld [vmem:[%s23691_s9 + $0x400] ss:$8 sps:$4 sm:$0xff]  }
 0x7bb   : > { %11619 = vmatpush2.bf16.msra.mxu1 %v17333_v29  ;;  %v17393_v29 = vld [vmem:[%s23691_s9 + $0x5e0] ss:$8 sps:$4 sm:$0xff]  }
 0x7bc   : > { %12138 = vmatprep.subr.bf16.mxu1 %v17341_v9  ;;  %v17396_v9 = vld [vmem:[%s23691_s9 + $0x4f0] ss:$8 sps:$4 sm:$0xff]  }
 0x7bd   : > { %11346 = vmatpush2.bf16.msra.mxu0 %v17336_v63  ;;  %v17404_v63 = vld [vmem:[%s23691_s9 + $0x4e4] ss:$8 sps:$4 sm:$0xff]  }
 0x7be   : > { %11621 = vmatmul.mubr.bf16.vlgmr.msra.gmra.mxu1 %v11420_v48  ;;  %11347 = vmatprep.subr.bf16.mxu0 %v17344_v46  ;;  %v17407_v46 = vld [vmem:[%s23691_s9 + $0x5c4] ss:$8 sps:$4 sm:$0xff]   ;;  %v17413_v48 = vld [vmem:[%s23691_s9 + $0x5b4] ss:$8 sps:$4 sm:$0xff]  }
 0x7bf   : > { %11630 = vmatprep.mubr.bf16.mxu1 %v22375_v1  ;;  %12139 = vmatpush1.bf16.msra.mxu1 %v17339_v22  ;;  %v17356_v1 = vld [vmem:[%s23691_s9 + $0x464] ss:$8 sps:$4 sm:$0xff]   ;;  %v17410_v22 = vld [vmem:[%s23691_s9 + $0x4d4] ss:$8 sps:$4 sm:$0xff]  }
 0x7c0   : > { %12140 = vmatprep.subr.bf16.mxu1 %v17347_v2  ;;  %v17405_v2 = vld [vmem:[%s23691_s9 + $0x5c0] ss:$8 sps:$4 sm:$0xff]  }
 0x7c1   : > { %11348 = vmatpush2.bf16.msra.mxu0 %v17342_v21  ;;  %v17408_v21 = vld [vmem:[%s23691_s9 + $0x4d0] ss:$8 sps:$4 sm:$0xff]  }
 0x7c2   : > { %11883 = vmatprep.subr.bf16.mxu0 %v17350_v31  ;;  %v17416_v31 = vld [vmem:[%s23691_s9 + $0x4c4] ss:$8 sps:$4 sm:$0xff]  }
 0x7c3   : > { %12141 = vmatpush1.bf16.msra.mxu1 %v17345_v43  ;;  %v17411_v43 = vld [vmem:[%s23691_s9 + $0x5b0] ss:$8 sps:$4 sm:$0xff]  }
 0x7c4   : > { %11350 = vmatmul.mubr.bf16.vlgmr.msra.gmra.mxu0 %v22399_v5  ;;  %12142 = vmatprep.subr.bf16.mxu1 %v17353_v33  ;;  %v17357_v5 = vld [vmem:[%s23691_s9 + $0x540] ss:$8 sps:$4 sm:$0xff]   ;;  %v17419_v33 = vld [vmem:[%s23691_s9 + $0x5a4] ss:$8 sps:$4 sm:$0xff]  }
 0x7c5   : > { %11359 = vmatprep.mubr.bf16.mxu0 %v22419_v34  ;;  %11884 = vmatpush1.bf16.msra.mxu0 %v17348_v60  ;;  %v17365_v34 = vld [vmem:[%s23691_s9 + $0x534] ss:$8 sps:$4 sm:$0xff]   ;;  %v17414_v60 = vld [vmem:[%s23691_s9 + $0x4c0] ss:$8 sps:$4 sm:$0xff]  }
 0x7c6   : > { %11631 = vmatmul.mubr.bf16.gmra.mxu1 %v11419_v20  ;;  %11885 = vmatprep.subr.bf16.mxu0 %v17356_v1  ;;  %v17399_v20 = vld [vmem:[%s23691_s9 + $0x5d0] ss:$8 sps:$4 sm:$0xff]   ;;  %v17422_v1 = vld [vmem:[%s23691_s9 + $0x4b4] ss:$8 sps:$4 sm:$0xff]  }
 0x7c7   : > { %12143 = vmatpush1.bf16.msra.mxu1 %v17351_v36  ;;  %12170 = vmatprep.mubr.bf16.mxu1 %v11943_v55  ;;  %v17371_v55 = vld [vmem:[%s23691_s9 + $0x524] ss:$8 sps:$4 sm:$0xff]   ;;  %v17417_v36 = vld [vmem:[%s23691_s9 + $0x5a0] ss:$8 sps:$4 sm:$0xff]  }
 0x7c8   : > { %12144 = vmatprep.subr.bf16.mxu1 %v17359_v32  ;;  %v17425_v32 = vld [vmem:[%s23691_s9 + $0x594] ss:$8 sps:$4 sm:$0xff]  }
 0x7c9   : > { %11886 = vmatpush1.bf16.msra.mxu0 %v17354_v0  ;;  %v17420_v0 = vld [vmem:[%s23691_s9 + $0x4b0] ss:$8 sps:$4 sm:$0xff]  }
 0x7ca   : > { %11887 = vmatprep.subr.bf16.mxu0 %v17362_v15  ;;  %v17428_v15 = vld [vmem:[%s23691_s9 + $0x4a4] ss:$8 sps:$4 sm:$0xff]  }
 0x7cb   : > { %12145 = vmatpush1.bf16.msra.mxu1 %v17357_v5  ;;  %v17423_v5 = vld [vmem:[%s23691_s9 + $0x590] ss:$8 sps:$4 sm:$0xff]  }
 0x7cc   : > { %11360 = vmatmul.mubr.bf16.gmra.mxu0 %v22383_v41  ;;  %12146 = vmatprep.subr.bf16.mxu1 %v17365_v34  ;;  %v17369_v41 = vld [vmem:[%s23691_s9 + $0x520] ss:$8 sps:$4 sm:$0xff]   ;;  %v12473_v34 = vld [vmem:[#allocation5 + $0x60] sm:$0x1f] }
 0x7cd   : > { %11888 = vmatpush1.bf16.msra.mxu0 %v17360_v19  ;;  %11915 = vmatprep.mubr.bf16.mxu0 %v22434_v7  ;;  %v17372_v7 = vld [vmem:[%s23691_s9 + $0x430] ss:$8 sps:$4 sm:$0xff]   ;;  %v17431_v19 = vld [vmem:[%s23691_s9 + $0x584] ss:$8 sps:$4 sm:$0xff]  }
 0x7ce   : > { %11889 = vmatprep.subr.bf16.mxu0 %v17368_v28  ;;  %v17426_v28 = vld [vmem:[%s23691_s9 + $0x4a0] ss:$8 sps:$4 sm:$0xff]  }
 0x7cf   : > { %12147 = vmatpush1.bf16.msra.mxu1 %v17363_v17  ;;  %v12471_v17 = vld [vmem:[#allocation5] sm:$0xe0] }
 0x7d0   : > { %12148 = vmatprep.subr.bf16.mxu1 %v17371_v55  ;;  %v17434_v55 = vld [vmem:[%s23691_s9 + $0x494] ss:$8 sps:$4 sm:$0xff]  }
 0x7d1   : > { %11890 = vmatpush1.bf16.msra.mxu0 %v17366_v40  ;;  %v12477_v40 = vpack.c.bf16 %v12473_v34, %v22463_v50  ;;  %v17473_v34 = vld [vmem:[%s23691_s9 + $0x714] ss:$8 sps:$4 sm:$0xff]  }
 0x7d2   : > { %11891 = vmatprep.subr.bf16.mxu0 %v17374_v62  ;;  %v17429_v62 = vld [vmem:[%s23691_s9 + $0x580] ss:$8 sps:$4 sm:$0xff]  }
 0x7d3   : > { %12149 = vmatpush1.bf16.msra.mxu1 %v17369_v41  ;;  %v17437_v41 = vld [vmem:[%s23691_s9 + $0x774] ss:$8 sps:$4 sm:$0xff]  }
 0x7d4   : > { %12150 = vmatprep.subr.bf16.mxu1 %v17377_v25  ;;  %v12475_v25 = vpack.c.bf16 %v22459_v11, %v12471_v17  ;;  %v17471_v17 = vld [vmem:[%s23691_s9 + $0x710] ss:$8 sps:$4 sm:$0xff]  }
 0x7d5   : > { %11892 = vmatpush1.bf16.msra.mxu0 %v17372_v7  ;;  %v17432_v7 = vld [vmem:[%s23691_s9 + $0x490] ss:$8 sps:$4 sm:$0xff]  }
 0x7d6   : > { %11893 = vmatprep.subr.bf16.mxu0 %v17380_v58  ;;  %v17440_v58 = vld [vmem:[%s23691_s9 + $0x484] ss:$8 sps:$4 sm:$0xff]  }
 0x7d7   : > { %12151 = vmatpush1.bf16.msra.mxu1 %v17375_v8  ;;  %v12536_v8 = vshrl.u32 %v12477_v40, 16 }
 0x7d8   : > { %12152 = vmatprep.subr.bf16.mxu1 %v17383_v18  ;;  %v12539_v18 = vshll.u32 %v12477_v40, 16  ;;  %v17474_v40 = vld [vmem:[%s23691_s9 + $0x620] ss:$8 sps:$4 sm:$0xff]  }
 0x7d9   : > { %11894 = vmatpush1.bf16.msra.mxu0 %v17378_v45  ;;  %v17435_v45 = vld [vmem:[%s23691_s9 + $0x770] ss:$8 sps:$4 sm:$0xff]  }
 0x7da   : > { %11895 = vmatprep.subr.bf16.mxu0 %v17386_v39  ;;  %v17443_v39 = vld [vmem:[%s23691_s9 + $0x764] ss:$8 sps:$4 sm:$0xff]  }
 0x7db   : > { %12153 = vmatpush1.bf16.msra.mxu1 %v17381_v53  ;;  %v12528_v53 = vshrl.u32 %v12475_v25, 16 }
 0x7dc   : > { %12154 = vmatprep.subr.bf16.mxu1 %v17389_v4  ;;  %v12531_v4 = vshll.u32 %v12475_v25, 16  ;;  %v17485_v25 = vld [vmem:[%s23691_s9 + $0x7f4] ss:$8 sps:$4 sm:$0xff]  }
 0x7dd   : > { %11896 = vmatpush1.bf16.msra.mxu0 %v17384_v59  ;;  %v11945_v59 = vpack.c.bf16 %v22463_v50, %v22463_v50  ;;  %v12530_v26 = vrot.slane %v12528_v53, 2  ;;  %v17489_v53 = vld [vmem:[%s23691_s9 + $0x7e0] ss:$8 sps:$4 sm:$0xff]  }
 0x7de   : > { %11897 = vmatprep.subr.bf16.mxu0 %v17392_v3  ;;  %v17438_v3 = vld [vmem:[%s23691_s9 + $0x480] ss:$8 sps:$4 sm:$0xff]   ;;  %v12533_v30 = vrot.slane %v12531_v4, 3  ;;  %v17497_v4 = vld [vmem:[%s23691_s9 + $0x7d4] ss:$8 sps:$4 sm:$0xff]  }
 0x7df   : > { %12155 = vmatpush2.bf16.msra.mxu1 %v17387_v13  ;;  %v17446_v13 = vld [vmem:[%s23691_s9 + $0x674] ss:$8 sps:$4 sm:$0xff]  }
 0x7e0   : > { %12156 = vmatprep.subr.bf16.mxu1 %v17395_v23  ;;  %v12538_v23 = vrot.slane %v12536_v8, 2  ;;  %v17483_v8 = vld [vmem:[%s23691_s9 + $0x7f0] ss:$8 sps:$4 sm:$0xff]  }
 0x7e1   : > { %11898 = vmatpush1.bf16.msra.mxu0 %v17390_v42  ;;  %v12541_v42 = vrot.slane %v12539_v18, 3  ;;  %v17491_v18 = vld [vmem:[%s23691_s9 + $0x7e4] ss:$8 sps:$4 sm:$0xff]  }
 0x7e2   : > { %11899 = vmatprep.subr.bf16.mxu0 %v17398_v14  ;;  %v17441_v14 = vld [vmem:[%s23691_s9 + $0x760] ss:$8 sps:$4 sm:$0xff]  }
 0x7e3   : > { %12157 = vmatpush2.bf16.msra.mxu1 %v17393_v29  ;;  %v17449_v29 = vld [vmem:[%s23691_s9 + $0x754] ss:$8 sps:$4 sm:$0xff]  }
 0x7e4   : > { %12158 = vmatprep.subr.bf16.mxu1 %v17401_v38  ;;  %v12202_v38 = vld [vmem:[#allocation5 + $0x60] sm:$0xf] }
 0x7e5   : > { %11900 = vmatpush2.bf16.msra.mxu0 %v17396_v9  ;;  %v22840_v9 = vor.u32 %v12541_v42, %v12538_v23  ;;  %v17503_v23 = vld [vmem:[%s23691_s9 + $0x7c4] ss:$8 sps:$4 sm:$0xff]   ;;  %v17498_v42 = vld [vmem:[%s23691_s9 + $0x6e0] ss:$8 sps:$4 sm:$0xff]  }
 0x7e6   : > { %11901 = vmatprep.subr.bf16.mxu0 %v17404_v63  ;;  %v17452_v63 = vld [vmem:[%s23691_s9 + $0x664] ss:$8 sps:$4 sm:$0xff]  }
 0x7e7   : > { %12159 = vmatpush2.bf16.msra.mxu1 %v17399_v20  ;;  %v17447_v20 = vld [vmem:[%s23691_s9 + $0x750] ss:$8 sps:$4 sm:$0xff]  }
 0x7e8   : > { %12160 = vmatprep.subr.bf16.mxu1 %v17407_v46  ;;  %v12196_v46 = vld [vmem:[#allocation5] sm:$0xf0] }
 0x7e9   : > { %11902 = vmatpush2.bf16.msra.mxu0 %v17402_v24  ;;  %v11944_v24 = vpack.c.bf16 %v22465_v35, %v22465_v35 }
 0x7ea   : > { %11903 = vmatprep.subr.bf16.mxu0 %v17410_v22  ;;  %v12534_v22 = vor.u32 %v12533_v30, %v12530_v26  ;;  %v17509_v26 = vld [vmem:[%s23691_s9 + $0x7b4] ss:$8 sps:$4 sm:$0xff]   ;;  %v17504_v30 = vld [vmem:[%s23691_s9 + $0x6d0] ss:$8 sps:$4 sm:$0xff]  }
 0x7eb   : > { %12161 = vmatpush2.bf16.msra.mxu1 %v17405_v2  ;;  %v17455_v2 = vld [vmem:[%s23691_s9 + $0x744] ss:$8 sps:$4 sm:$0xff]  }
 0x7ec   : > { %12162 = vmatprep.subr.bf16.mxu1 %v17413_v48  ;;  %v12206_v48 = vpack.c.bf16 %v12202_v38, %v22463_v50  ;;  %v12472_v38 = vld [vmem:[#allocation5 + $0x48] sm:$0x1f] }
 0x7ed   : > { %11904 = vmatpush2.bf16.msra.mxu0 %v17408_v21  ;;  %v17450_v21 = vld [vmem:[%s23691_s9 + $0x660] ss:$8 sps:$4 sm:$0xff]  }
 0x7ee   : > { %11905 = vmatprep.subr.bf16.mxu0 %v17416_v31  ;;  %v17458_v31 = vld [vmem:[%s23691_s9 + $0x654] ss:$8 sps:$4 sm:$0xff]   ;;  %v22868_v50 = vrot.slane %v12206_v48, 2  ;;  %v17513_v48 = vld [vmem:[%s23691_s9 + $0x7a0] ss:$8 sps:$4 sm:$0xff]  }
 0x7ef   : > { %12163 = vmatpush2.bf16.msra.mxu1 %v17411_v43  ;;  %v12204_v43 = vpack.c.bf16 %v22459_v11, %v12196_v46  ;;  %v12470_v46 = vld [vmem:[#allocation5 + $0x50] sm:$0xe0] }
 0x7f0   : > { %12164 = vmatprep.subr.bf16.mxu1 %v17419_v33  ;;  %v17461_v33 = vld [vmem:[%s23691_s9 + $0x734] ss:$8 sps:$4 sm:$0xff]  }
 0x7f1   : > { %11906 = vmatpush2.bf16.msra.mxu0 %v17414_v60  ;;  %v17456_v60 = vld [vmem:[%s23691_s9 + $0x650] ss:$8 sps:$4 sm:$0xff]   ;;  %v12246_v11 = vrot.slane %v12204_v43, 2 }
 0x7f2   : > { %11907 = vmatprep.subr.bf16.mxu0 %v17422_v1  ;;  %v17464_v1 = vld [vmem:[%s23691_s9 + $0x644] ss:$8 sps:$4 sm:$0xff]  }
 0x7f3   : > { %12165 = vmatpush2.bf16.msra.mxu1 %v17417_v36  ;;  %v17459_v36 = vld [vmem:[%s23691_s9 + $0x730] ss:$8 sps:$4 sm:$0xff]  }
 0x7f4   : > { %12166 = vmatprep.subr.bf16.mxu1 %v17425_v32  ;;  %v12248_v32 = vsel %vm2786_vm6, %v12246_v11, %v22868_v50 }
 0x7f5   : > { %11908 = vmatpush2.bf16.msra.mxu0 %v17420_v0  ;;  %v17467_v0 = vld [vmem:[%s23691_s9 + $0x724] ss:$8 sps:$4 sm:$0xff]  }
 0x7f6   : > { %11909 = vmatprep.subr.bf16.mxu0 %v17428_v15  ;;  %v17462_v15 = vld [vmem:[%s23691_s9 + $0x640] ss:$8 sps:$4 sm:$0xff]  }
 0x7f7   : > { %12167 = vmatpush2.bf16.msra.mxu1 %v17423_v5  ;;  %v17470_v5 = vld [vmem:[%s23691_s9 + $0x634] ss:$8 sps:$4 sm:$0xff]  }
 0x7f8   : > { %12168 = vmatprep.subr.bf16.mxu1 %v17431_v19  ;;  %v17468_v19 = vld [vmem:[%s23691_s9 + $0x630] ss:$8 sps:$4 sm:$0xff]  }
 0x7f9   : > { %11910 = vmatpush2.bf16.msra.mxu0 %v17426_v28  ;;  %v17476_v28 = vld [vmem:[%s23691_s9 + $0x624] ss:$8 sps:$4 sm:$0xff]  }
 0x7fa   : > { %11911 = vmatprep.subr.bf16.mxu0 %v17434_v55  ;;  %v17479_v55 = vld [vmem:[%s23691_s9 + $0x704] ss:$8 sps:$4 sm:$0xff]  }
 0x7fb   : > { %12169 = vmatpush2.bf16.msra.mxu1 %v17429_v62  ;;  %v17482_v62 = vld [vmem:[%s23691_s9 + $0x614] ss:$8 sps:$4 sm:$0xff]  }
 0x7fc   : > { %12708 = vmatprep.subr.bf16.mxu1 %v17437_v41  ;;  %v17477_v41 = vld [vmem:[%s23691_s9 + $0x700] ss:$8 sps:$4 sm:$0xff]  }
 0x7fd   : > { %11912 = vmatpush2.bf16.msra.mxu0 %v17432_v7  ;;  %v17480_v7 = vld [vmem:[%s23691_s9 + $0x610] ss:$8 sps:$4 sm:$0xff]  }
 0x7fe   : > { %12171 = vmatmul.mubr.bf16.vlgmr.msra.gmra.mxu1 %v11942_v16  ;;  %11913 = vmatprep.subr.bf16.mxu0 %v17440_v58  ;;  %v17444_v16 = vld [vmem:[%s23691_s9 + $0x670] ss:$8 sps:$4 sm:$0xff]   ;;  %v17488_v58 = vld [vmem:[%s23691_s9 + $0x604] ss:$8 sps:$4 sm:$0xff]  }
 0x7ff   : > { %12180 = vmatprep.mubr.bf16.mxu1 %v11945_v59  ;;  %12709 = vmatpush1.bf16.msra.mxu1 %v17435_v45  ;;  %v17486_v45 = vld [vmem:[%s23691_s9 + $0x600] ss:$8 sps:$4 sm:$0xff]   ;;  %v17492_v59 = vld [vmem:[%s23691_s9 + $0x6f0] ss:$8 sps:$4 sm:$0xff]  }
 0x800   : > { %12710 = vmatprep.subr.bf16.mxu1 %v17443_v39  ;;  %v17494_v39 = vld [vmem:[%s23691_s9 + $0x6f4] ss:$8 sps:$4 sm:$0xff]  }
 0x801   : > { %11914 = vmatpush2.bf16.msra.mxu0 %v17438_v3  ;;  %v17500_v3 = vld [vmem:[%s23691_s9 + $0x6e4] ss:$8 sps:$4 sm:$0xff]  }
 0x802   : > { %12413 = vmatprep.subr.bf16.mxu0 %v17446_v13  ;;  %v17495_v13 = vld [vmem:[%s23691_s9 + $0x7d0] ss:$8 sps:$4 sm:$0xff]  }
 0x803   : > { %12711 = vmatpush1.bf16.msra.mxu1 %v17441_v14  ;;  %v17506_v14 = vld [vmem:[%s23691_s9 + $0x6d4] ss:$8 sps:$4 sm:$0xff]  }
 0x804   : > { %11916 = vmatmul.mubr.bf16.vlgmr.msra.gmra.mxu0 %v22457_v27  ;;  %12712 = vmatprep.subr.bf16.mxu1 %v17449_v29  ;;  %v12543_v27 = vsel %vm5788_vm12, %v12534_v22, %v22840_v9  ;;  %v17501_v29 = vld [vmem:[%s23691_s9 + $0x7c0] ss:$8 sps:$4 sm:$0xff]   ;;  %v12476_v22 = vpack.c.bf16 %v12472_v38, %v22465_v35 }
 0x805   : > { %11925 = vmatprep.mubr.bf16.mxu0 %v22424_v61  ;;  %12414 = vmatpush1.bf16.msra.mxu0 %v17444_v16  ;;  %v17453_v61 = vld [vmem:[%s23691_s9 + $0x740] ss:$8 sps:$4 sm:$0xff]   ;;  %v17512_v16 = vld [vmem:[%s23691_s9 + $0x6c4] ss:$8 sps:$4 sm:$0xff]  }
 0x806   : > { %12181 = vmatmul.mubr.bf16.gmra.mxu1 %v11944_v24  ;;  %12415 = vmatprep.subr.bf16.mxu0 %v17452_v63  ;;  %v17507_v63 = vld [vmem:[%s23691_s9 + $0x7b0] ss:$8 sps:$4 sm:$0xff]   ;;  %v17510_v24 = vld [vmem:[%s23691_s9 + $0x6c0] ss:$8 sps:$4 sm:$0xff]   ;;  %v12519_v43 = vshrl.u32 %v12476_v22, 16 }
 0x807   : > { %12713 = vmatpush1.bf16.msra.mxu1 %v17447_v20  ;;  %12740 = vmatprep.mubr.bf16.mxu1 %v12543_v27  ;;  %v17515_v20 = vld [vmem:[%s23691_s9 + $0x7a4] ss:$8 sps:$4 sm:$0xff]   ;;  %v17521_v27 = vld [vmem:[%s23691_s9 + $0x794] ss:$8 sps:$4 sm:$0xff]  }
 0x808   : > { %12714 = vmatprep.subr.bf16.mxu1 %v17455_v2  ;;  %v17518_v2 = vld [vmem:[%s23691_s9 + $0x6b4] ss:$8 sps:$4 sm:$0xff]  }
 0x809   : > { %12416 = vmatpush1.bf16.msra.mxu0 %v17450_v21  ;;  %v12474_v21 = vpack.c.bf16 %v22461_v47, %v12470_v46 }
 0x80a   : > { %12417 = vmatprep.subr.bf16.mxu0 %v17458_v31  ;;  %v17516_v31 = vld [vmem:[%s23691_s9 + $0x6b0] ss:$8 sps:$4 sm:$0xff]  }
 0x80b   : > { %12715 = vmatpush1.bf16.msra.mxu1 %v17453_v61  ;;  %v12522_v61 = vshll.u32 %v12476_v22, 16  ;;  %v12511_v11 = vshrl.u32 %v12474_v21, 16 }
 0x80c   : > { %11926 = vmatmul.mubr.bf16.gmra.mxu0 %v22441_v37  ;;  %12716 = vmatprep.subr.bf16.mxu1 %v17461_v33  ;;  %v17465_v37 = vld [vmem:[%s23691_s9 + $0x720] ss:$8 sps:$4 sm:$0xff]   ;;  %v17524_v33 = vld [vmem:[%s23691_s9 + $0x6a4] ss:$8 sps:$4 sm:$0xff]  }
 0x80d   : > { %12418 = vmatpush1.bf16.msra.mxu0 %v17456_v60  ;;  %12445 = vmatprep.mubr.bf16.mxu0 %v12248_v32  ;;  %v17519_v60 = vld [vmem:[%s23691_s9 + $0x790] ss:$8 sps:$4 sm:$0xff]   ;;  %v17522_v32 = vld [vmem:[%s23691_s9 + $0x6a0] ss:$8 sps:$4 sm:$0xff]  }
 0x80e   : > { %12419 = vmatprep.subr.bf16.mxu0 %v17464_v1  ;;  %v12514_v1 = vshll.u32 %v12474_v21, 16 }
 0x80f   : > { %12717 = vmatpush1.bf16.msra.mxu1 %v17459_v36  ;;  %v17527_v36 = vld [vmem:[%s23691_s9 + $0x784] ss:$8 sps:$4 sm:$0xff]  }
 0x810   : > { %12718 = vmatprep.subr.bf16.mxu1 %v17467_v0  ;;  %v12521_v0 = vrot.slane %v12519_v43, 2  ;;  %v17548_v43 = vld [vmem:[%s23691_s9 + $0x834] ss:$8 sps:$4 sm:$0xff]  }
 0x811   : > { %12420 = vmatpush1.bf16.msra.mxu0 %v17462_v15  ;;  %v12524_v15 = vrot.slane %v12522_v61, 3 }
 0x812   : > { %12421 = vmatprep.subr.bf16.mxu0 %v17470_v5  ;;  %v17530_v5 = vld [vmem:[%s23691_s9 + $0x694] ss:$8 sps:$4 sm:$0xff]  }
 0x813   : > { %12719 = vmatpush1.bf16.msra.mxu1 %v17465_v37  ;;  %v17525_v37 = vld [vmem:[%s23691_s9 + $0x780] ss:$8 sps:$4 sm:$0xff]  }
 0x814   : > { %12720 = vmatprep.subr.bf16.mxu1 %v17473_v34  ;;  %v12513_v34 = vrot.slane %v12511_v11, 2 }
 0x815   : > { %12422 = vmatpush1.bf16.msra.mxu0 %v17468_v19  ;;  %v12516_v19 = vrot.slane %v12514_v1, 3  ;;  %v17549_v1 = vld [vmem:[%s23691_s9 + $0x820] ss:$8 sps:$4 sm:$0xff]  }
 0x816   : > { %12423 = vmatprep.subr.bf16.mxu0 %v17476_v28  ;;  %v12201_v28 = vld [vmem:[#allocation5 + $0x48] sm:$0xf] }
 0x817   : > { %12721 = vmatpush1.bf16.msra.mxu1 %v17471_v17  ;;  %v17528_v17 = vld [vmem:[%s23691_s9 + $0x690] ss:$8 sps:$4 sm:$0xff]  }
 0x818   : > { %12722 = vmatprep.subr.bf16.mxu1 %v17479_v55  ;;  %v12525_v55 = vor.u32 %v12524_v15, %v12521_v0  ;;  %v17557_v0 = vld [vmem:[%s23691_s9 + $0x804] ss:$8 sps:$4 sm:$0xff]   ;;  %v17555_v15 = vld [vmem:[%s23691_s9 + $0x800] ss:$8 sps:$4 sm:$0xff]  }
 0x819   : > { %12424 = vmatpush1.bf16.msra.mxu0 %v17474_v40  ;;  %v17533_v40 = vld [vmem:[%s23691_s9 + $0x684] ss:$8 sps:$4 sm:$0xff]  }
 0x81a   : > { %12425 = vmatprep.subr.bf16.mxu0 %v17482_v62  ;;  %v12195_v62 = vld [vmem:[#allocation5 + $0x50] sm:$0xf0] }
 0x81b   : > { %12723 = vmatpush1.bf16.msra.mxu1 %v17477_v41  ;;  %v12517_v41 = vor.u32 %v12516_v19, %v12513_v34  ;;  %v17563_v34 = vld [vmem:[%s23691_s9 + $0x8e4] ss:$8 sps:$4 sm:$0xff]   ;;  %v17561_v19 = vld [vmem:[%s23691_s9 + $0x8e0] ss:$8 sps:$4 sm:$0xff]  }
 0x81c   : > { %12724 = vmatprep.subr.bf16.mxu1 %v17485_v25  ;;  %v12205_v25 = vpack.c.bf16 %v12201_v28, %v22465_v35  ;;  %v17566_v28 = vld [vmem:[%s23691_s9 + $0x8d4] ss:$8 sps:$4 sm:$0xff]  }
 0x81d   : > { %12426 = vmatpush1.bf16.msra.mxu0 %v17480_v7  ;;  %v12526_v7 = vsel %vm5788_vm12, %v12517_v41, %v12525_v55  ;;  %v17570_v41 = vld [vmem:[%s23691_s9 + $0x8b0] ss:$8 sps:$4 sm:$0xff]  }
 0x81e   : > { %12427 = vmatprep.subr.bf16.mxu0 %v17488_v58  ;;  %v12244_v35 = vrot.slane %v12205_v25, 2  ;;  %v17575_v25 = vld [vmem:[%s23691_s9 + $0x8a4] ss:$8 sps:$4 sm:$0xff]  }
 0x81f   : > { %12725 = vmatpush2.bf16.msra.mxu1 %v17483_v8  ;;  %v17531_v8 = vld [vmem:[%s23691_s9 + $0x680] ss:$8 sps:$4 sm:$0xff]  }
 0x820   : > { %12726 = vmatprep.subr.bf16.mxu1 %v17491_v18  ;;  %v12203_v18 = vpack.c.bf16 %v22461_v47, %v12195_v62  ;;  %v17539_v47 = vld [vmem:[%s23691_s9 + $0x864] ss:$8 sps:$4 sm:$0xff]   ;;  %v17572_v62 = vld [vmem:[%s23691_s9 + $0x8b4] ss:$8 sps:$4 sm:$0xff]  }
 0x821   : > { %12428 = vmatpush1.bf16.msra.mxu0 %v17486_v45  ;;  %v17536_v45 = vld [vmem:[%s23691_s9 + $0x874] ss:$8 sps:$4 sm:$0xff]  }
 0x822   : > { %12429 = vmatprep.subr.bf16.mxu0 %v17494_v39 }
 0x823   : > { %12727 = vmatpush2.bf16.msra.mxu1 %v17489_v53 }
 0x824   : > { %12728 = vmatprep.subr.bf16.mxu1 %v17497_v4  ;;  %v12243_v4 = vrot.slane %v12203_v18, 2  ;;  %v17581_v18 = vld [vmem:[%s23691_s9 + $0x884] ss:$8 sps:$4 sm:$0xff]  }
 0x825   : > { %12430 = vmatpush2.bf16.msra.mxu0 %v17492_v59  ;;  %v17534_v59 = vld [vmem:[%s23691_s9 + $0x870] ss:$8 sps:$4 sm:$0xff]  }
 0x826   : > { %12431 = vmatprep.subr.bf16.mxu0 %v17500_v3 }
 0x827   : > { %12729 = vmatpush2.bf16.msra.mxu1 %v17495_v13  ;;  %v12245_v13 = vsel %vm2786_vm6, %v12243_v4, %v12244_v35 }
 0x828   : > { %12730 = vmatprep.subr.bf16.mxu1 %v17503_v23 }
 0x829   : > { %12432 = vmatpush2.bf16.msra.mxu0 %v17498_v42  ;;  %v17537_v42 = vld [vmem:[%s23691_s9 + $0x860] ss:$8 sps:$4 sm:$0xff]  }
 0x82a   : > { %12433 = vmatprep.subr.bf16.mxu0 %v17506_v14 }
 0x82b   : > { %12731 = vmatpush2.bf16.msra.mxu1 %v17501_v29 }
 0x82c   : > { %12732 = vmatprep.subr.bf16.mxu1 %v17509_v26  ;;  %v17542_v26 = vld [vmem:[%s23691_s9 + $0x854] ss:$8 sps:$4 sm:$0xff]  }
 0x82d   : > { %12434 = vmatpush2.bf16.msra.mxu0 %v17504_v30 }
 0x82e   : > { %12435 = vmatprep.subr.bf16.mxu0 %v17512_v16 }
 0x82f   : > { %12733 = vmatpush2.bf16.msra.mxu1 %v17507_v63 }
 0x830   : > { %12734 = vmatprep.subr.bf16.mxu1 %v17515_v20 }
 0x831   : > { %12436 = vmatpush2.bf16.msra.mxu0 %v17510_v24  ;;  %v17545_v24 = vld [vmem:[%s23691_s9 + $0x844] ss:$8 sps:$4 sm:$0xff]  }
 0x832   : > { %12437 = vmatprep.subr.bf16.mxu0 %v17518_v2 }
 0x833   : > { %12735 = vmatpush2.bf16.msra.mxu1 %v17513_v48 }
 0x834   : > { %12736 = vmatprep.subr.bf16.mxu1 %v17521_v27  ;;  %v17543_v27 = vld [vmem:[%s23691_s9 + $0x840] ss:$8 sps:$4 sm:$0xff]  }
 0x835   : > { %12438 = vmatpush2.bf16.msra.mxu0 %v17516_v31 }
 0x836   : > { %12439 = vmatprep.subr.bf16.mxu0 %v17524_v33 }
 0x837   : > { %12737 = vmatpush2.bf16.msra.mxu1 %v17519_v60  ;;  %v17546_v60 = vld [vmem:[%s23691_s9 + $0x830] ss:$8 sps:$4 sm:$0xff]  }
 0x838   : > { %12738 = vmatprep.subr.bf16.mxu1 %v17527_v36  ;;  %v17554_v36 = vld [vmem:[%s23691_s9 + $0x814] ss:$8 sps:$4 sm:$0xff]  }
 0x839   : > { %12440 = vmatpush2.bf16.msra.mxu0 %v17522_v32  ;;  %v17552_v32 = vld [vmem:[%s23691_s9 + $0x810] ss:$8 sps:$4 sm:$0xff]  }
 0x83a   : > { %12441 = vmatprep.subr.bf16.mxu0 %v17530_v5  ;;  %v17560_v5 = vld [vmem:[%s23691_s9 + $0x8f4] ss:$8 sps:$4 sm:$0xff]  }
 0x83b   : > { %12739 = vmatpush2.bf16.msra.mxu1 %v17525_v37  ;;  %v17558_v37 = vld [vmem:[%s23691_s9 + $0x8f0] ss:$8 sps:$4 sm:$0xff]  }
 0x83d   : > { %12442 = vmatpush2.bf16.msra.mxu0 %v17528_v17  ;;  %v11086_v58 = vpop.f32.mrf.mxu1  ;;  %v17564_v17 = vld [vmem:[%s23691_s9 + $0x8d0] ss:$8 sps:$4 sm:$0xff]  }
 0x83e   : > { %12741 = vmatmul.mubr.bf16.vlgmr.msra.gmra.mxu1 %v12526_v7  ;;  %12443 = vmatprep.subr.bf16.mxu0 %v17533_v40  ;;  %v17567_v40 = vld [vmem:[%s23691_s9 + $0x8c0] ss:$8 sps:$4 sm:$0xff]  }
 0x83f   : > { %12750 = vmatprep.mubr.bf16.mxu1 %v22840_v9  ;;  %v11088_v39 = vpop.f32.mrf.mxu1  ;;  %v17573_v7 = vld [vmem:[%s23691_s9 + $0x8a0] ss:$8 sps:$4 sm:$0xff]  }
 0x841   : > { %12444 = vmatpush2.bf16.msra.mxu0 %v17531_v8  ;;  %v11090_v53 = vpop.f32.mrf.mxu1  ;;  %v17576_v8 = vld [vmem:[%s23691_s9 + $0x890] ss:$8 sps:$4 sm:$0xff]  }
 0x842   : > { %12979 = vmatprep.subr.bf16.mxu0 %v17536_v45  ;;  %v17579_v45 = vld [vmem:[%s23691_s9 + $0x880] ss:$8 sps:$4 sm:$0xff]  }
 0x843   : > { %v11092_v3 = vpop.f32.mrf.mxu1 }
 0x844   : > { %12446 = vmatmul.mubr.bf16.vlgmr.msra.gmra.mxu0 %v12245_v13  ;;  %v10875_v23 = vpop.f32.mrf.mxu0 }
 0x845   : > { %v23042_v9 = vadd.f32 %v11086_v58, %v10875_v23  ;;  %12455 = vmatprep.mubr.bf16.mxu0 %v22868_v50  ;;  %12980 = vmatpush1.bf16.msra.mxu0 %v17534_v59  ;;  %v17540_v50 = vld [vmem:[%s23691_s9 + $0x850] ss:$8 sps:$4 sm:$0xff]   ;;  %v17578_v58 = vld [vmem:[%s23691_s9 + $0x894] ss:$8 sps:$4 sm:$0xff]  }
 0x846   : > { %12751 = vmatmul.mubr.bf16.gmra.mxu1 %v12525_v55  ;;  %v11096_v14 = vpop.f32.mrf.mxu1  ;;  %v10877_v29 = vpop.f32.mrf.mxu0  ;;  %12981 = vmatprep.subr.bf16.mxu0 %v17539_v47  ;;  %v17569_v55 = vld [vmem:[%s23691_s9 + $0x8c4] ss:$8 sps:$4 sm:$0xff]  }
 0x847   : > { %v23051_v30 = vadd.f32 %v11088_v39, %v10877_v29 }
 0x848   : > { %v11098_v16 = vpop.f32.mrf.mxu1  ;;  %v10879_v38 = vpop.f32.mrf.mxu0 }
 0x849   : > { %v23053_v63 = vadd.f32 %v11090_v53, %v10879_v38  ;;  %12982 = vmatpush1.bf16.msra.mxu0 %v17537_v42 }
 0x84a   : > { %v11100_v20 = vpop.f32.mrf.mxu1  ;;  %v10881_v46 = vpop.f32.mrf.mxu0  ;;  %12983 = vmatprep.subr.bf16.mxu0 %v17542_v26 }
 0x84b   : > { %v23061_v22 = vadd.f32 %v11092_v3, %v10881_v46 }
 0x84c   : > { %v11101_v2 = vpop.f32.mrf.mxu1  ;;  %12456 = vmatmul.mubr.bf16.gmra.mxu0 %v12244_v35  ;;  %v10885_v48 = vpop.f32.mrf.mxu0 }
 0x84d   : > { %v23063_v21 = vadd.f32 %v11096_v14, %v10885_v48  ;;  %12984 = vmatpush1.bf16.msra.mxu0 %v17540_v50  ;;  %13011 = vmatprep.mubr.bf16.mxu0 %v22498_v12  ;;  %v17551_v12 = vld [vmem:[%s23691_s9 + $0x824] ss:$8 sps:$4 sm:$0xff]  }
 0x84e   : > { %v10887_v31 = vpop.f32.mrf.mxu0  ;;  %12985 = vmatprep.subr.bf16.mxu0 %v17545_v24 }
 0x84f   : > { %v23072_v61 = vadd.f32 %v11098_v16, %v10887_v31 }
 0x850   : > { %v10889_v33 = vpop.f32.mrf.mxu0 }
 0x851   : > { %12986 = vmatpush1.bf16.msra.mxu0 %v17543_v27  ;;  %v17593_v33 = vld [vmem:[%s23693_s11 + $0x164] ss:$8 sps:$4 sm:$0xff]  }
 0x852   : > { %v10890_v11 = vpop.f32.mrf.mxu0  ;;  %12987 = vmatprep.subr.bf16.mxu0 %v17548_v43  ;;  %v17587_v43 = vld [vmem:[%s23693_s11 + $0x174] ss:$8 sps:$4 sm:$0xff]  }
 0x853   : > { %v17591_v11 = vld [vmem:[%s23693_s11 + $0x160] ss:$8 sps:$4 sm:$0xff]  }
 0x855   : > { %12988 = vmatpush1.bf16.msra.mxu0 %v17546_v60  ;;  %v17588_v60 = vld [vmem:[%s23693_s11 + $0x60] ss:$8 sps:$4 sm:$0xff]  }
 0x856   : > { %12989 = vmatprep.subr.bf16.mxu0 %v17551_v12  ;;  %v17596_v12 = vld [vmem:[%s23693_s11 + $0x54] ss:$8 sps:$4 sm:$0xff]  }
 0x859   : > { %12990 = vmatpush1.bf16.msra.mxu0 %v17549_v1  ;;  %v17599_v1 = vld [vmem:[%s23693_s11 + $0x154] ss:$8 sps:$4 sm:$0xff]  }
 0x85a   : > { %12991 = vmatprep.subr.bf16.mxu0 %v17554_v36  ;;  %v17594_v36 = vld [vmem:[%s23693_s11 + $0x50] ss:$8 sps:$4 sm:$0xff]  }
 0x85d   : > { %12992 = vmatpush1.bf16.msra.mxu0 %v17552_v32  ;;  %v17597_v32 = vld [vmem:[%s23693_s11 + $0x150] ss:$8 sps:$4 sm:$0xff]  }
 0x85e   : > { %12993 = vmatprep.subr.bf16.mxu0 %v17557_v0  ;;  %v17602_v0 = vld [vmem:[%s23693_s11 + $0x44] ss:$8 sps:$4 sm:$0xff]  }
 0x861   : > { %12994 = vmatpush1.bf16.msra.mxu0 %v17555_v15  ;;  %v17605_v15 = vld [vmem:[%s23693_s11 + $0x144] ss:$8 sps:$4 sm:$0xff]  }
 0x862   : > { %12995 = vmatprep.subr.bf16.mxu0 %v17560_v5  ;;  %v17600_v5 = vld [vmem:[%s23693_s11 + $0x40] ss:$8 sps:$4 sm:$0xff]  }
 0x865   : > { %12996 = vmatpush2.bf16.msra.mxu0 %v17558_v37  ;;  %v17603_v37 = vld [vmem:[%s23693_s11 + $0x140] ss:$8 sps:$4 sm:$0xff]  }
 0x866   : > { %12997 = vmatprep.subr.bf16.mxu0 %v17563_v34  ;;  %v17608_v34 = vld [vmem:[%s23693_s11 + $0x34] ss:$8 sps:$4 sm:$0xff]  }
 0x869   : > { %12998 = vmatpush2.bf16.msra.mxu0 %v17561_v19  ;;  %v17611_v19 = vld [vmem:[%s23693_s11 + $0x134] ss:$8 sps:$4 sm:$0xff]  }
 0x86a   : > { %12999 = vmatprep.subr.bf16.mxu0 %v17566_v28  ;;  %v17606_v28 = vld [vmem:[%s23693_s11 + $0x30] ss:$8 sps:$4 sm:$0xff]  }
 0x86d   : > { %13000 = vmatpush2.bf16.msra.mxu0 %v17564_v17  ;;  %v17609_v17 = vld [vmem:[%s23693_s11 + $0x130] ss:$8 sps:$4 sm:$0xff]  }
 0x86e   : > { %13001 = vmatprep.subr.bf16.mxu0 %v17569_v55 }
 0x871   : > { %13002 = vmatpush2.bf16.msra.mxu0 %v17567_v40 }
 0x872   : > { %13003 = vmatprep.subr.bf16.mxu0 %v17572_v62 }
 0x875   : > { %13004 = vmatpush2.bf16.msra.mxu0 %v17570_v41 }
 0x876   : > { %13005 = vmatprep.subr.bf16.mxu0 %v17575_v25 }
 0x879   : > { %13006 = vmatpush2.bf16.msra.mxu0 %v17573_v7 }
 0x87a   : > { %13007 = vmatprep.subr.bf16.mxu0 %v17578_v58 }
 0x87d   : > { %13008 = vmatpush2.bf16.msra.mxu0 %v17576_v8 }
 0x87e   : > { %v11622_v39 = vpop.f32.mrf.mxu1  ;;  %13009 = vmatprep.subr.bf16.mxu0 %v17581_v18 }
 0x880   : > { %v11624_v35 = vpop.f32.mrf.mxu1 }
 0x881   : > { %13010 = vmatpush2.bf16.msra.mxu0 %v17579_v45 }
 0x882   : > { %v11626_v53 = vpop.f32.mrf.mxu1  ;;  %14016 = vmatprep.subr.bf16.mxu0 %v17587_v43  ;;  %v17632_v43 = vld [vmem:[%s23693_s11 + $0xf4] ss:$8 sps:$4 sm:$0xff]  }
 0x884   : > { %v11628_v4 = vpop.f32.mrf.mxu1  ;;  %v11351_v59 = vpop.f32.mrf.mxu0  ;;  %13012 = vmatmul.mubr.bf16.vlgmr.msra.gmra.mxu0 %v22505_v54 }
 0x885   : > { %v11368_v47 = vadd.f32 %v11351_v59, %v23042_v9  ;;  %13021 = vmatprep.mubr.bf16.mxu0 %v22486_v57 }
 0x886   : > { %v11632_v3 = vpop.f32.mrf.mxu1  ;;  %v11353_v13 = vpop.f32.mrf.mxu0 }
 0x887   : > { %v11369_v23 = vadd.f32 %v11353_v13, %v23051_v30  ;;  %v23147_v42 = vadd.f32 %v11622_v39, %v11368_v47 }
 0x888   : > { %v11634_v14 = vpop.f32.mrf.mxu1  ;;  %v11355_v29 = vpop.f32.mrf.mxu0 }
 0x889   : > { %v11370_v26 = vadd.f32 %v11355_v29, %v23053_v63  ;;  %v23150_v16 = vadd.f32 %v11624_v35, %v11369_v23  ;;  %v17612_v23 = vld [vmem:[%s23693_s11 + $0x20] ss:$8 sps:$4 sm:$0xff]  }
 0x88a   : > { %v11636_v38 = vpop.f32.mrf.mxu1  ;;  %v11357_v50 = vpop.f32.mrf.mxu0 }
 0x88b   : > { %v11371_v54 = vadd.f32 %v11357_v50, %v23061_v22  ;;  %v23153_v20 = vadd.f32 %v11626_v53, %v11370_v26  ;;  %v17582_v22 = vld [vmem:[%s23693_s11 + $0x70] ss:$8 sps:$4 sm:$0xff]  }
 0x88c   : > { %v11637_v9 = vpop.f32.mrf.mxu1  ;;  %v11361_v57 = vpop.f32.mrf.mxu0  ;;  %13022 = vmatmul.mubr.bf16.gmra.mxu0 %v22491_v6  ;;  %v17584_v6 = vld [vmem:[%s23693_s11 + $0x74] ss:$8 sps:$4 sm:$0xff]  }
 0x88d   : > { %v11372_v30 = vadd.f32 %v11361_v57, %v23063_v21  ;;  %v23157_v46 = vadd.f32 %v11628_v4, %v11371_v54  ;;  %v17585_v21 = vld [vmem:[%s23693_s11 + $0x170] ss:$8 sps:$4 sm:$0xff]   ;;  %13975 = vmatprep.subr.bf16.mxu1 %v17584_v6  ;;  %v17629_v6 = vld [vmem:[%s23693_s11 + $0x104] ss:$8 sps:$4 sm:$0xff]  }
 0x88e   : > { %v11363_v24 = vpop.f32.mrf.mxu0  ;;  %13976 = vmatpush1.bf16.msra.mxu1 %v17582_v22  ;;  %14017 = vmatpush1.bf16.msra.mxu0 %v17585_v21  ;;  %v17627_v22 = vld [vmem:[%s23693_s11 + $0x100] ss:$8 sps:$4 sm:$0xff]   ;;  %v17630_v21 = vld [vmem:[%s23693_s11 + $0xf0] ss:$8 sps:$4 sm:$0xff]  }
 0x88f   : > { %v11373_v2 = vadd.f32 %v11363_v24, %v23072_v61  ;;  %v23160_v63 = vadd.f32 %v11632_v3, %v11372_v30  ;;  %v17590_v61 = vld [vmem:[%s23693_s11 + $0x64] ss:$8 sps:$4 sm:$0xff]   ;;  %14018 = vmatprep.subr.bf16.mxu0 %v17593_v33  ;;  %v17618_v24 = vld [vmem:[%s23693_s11 + $0x10] ss:$8 sps:$4 sm:$0xff]   ;;  %v17635_v33 = vld [vmem:[%s23693_s11 + $0x1f4] ss:$8 sps:$4 sm:$0xff]  }
 0x890   : > { %v11365_v48 = vpop.f32.mrf.mxu0  ;;  %13977 = vmatprep.subr.bf16.mxu1 %v17590_v61  ;;  %v17633_v61 = vld [vmem:[%s23693_s11 + $0x1f0] ss:$8 sps:$4 sm:$0xff]  }
 0x891   : > { %v23162_v27 = vadd.f32 %v11634_v14, %v11373_v2  ;;  %v17615_v14 = vld [vmem:[%s23693_s11 + $0x120] ss:$8 sps:$4 sm:$0xff]   ;;  %v17620_v2 = vld [vmem:[%s23693_s11 + $0x14] ss:$8 sps:$4 sm:$0xff]  }
 0x892   : > { %v11366_v31 = vpop.f32.mrf.mxu0  ;;  %13978 = vmatpush1.bf16.msra.mxu1 %v17588_v60  ;;  %14019 = vmatpush1.bf16.msra.mxu0 %v17591_v11  ;;  %v17623_v48 = vld [vmem:[%s23693_s11 + $0x114] ss:$8 sps:$4 sm:$0xff]   ;;  %v17638_v60 = vld [vmem:[%s23693_s11 + $0xe4] ss:$8 sps:$4 sm:$0xff]  }
 0x893   : > { %13979 = vmatprep.subr.bf16.mxu1 %v17596_v12  ;;  %14020 = vmatprep.subr.bf16.mxu0 %v17599_v1  ;;  %v17626_v31 = vld [vmem:[%s23693_s11 + $0x4] ss:$8 sps:$4 sm:$0xff]   ;;  %v17636_v12 = vld [vmem:[%s23693_s11 + $0xe0] ss:$8 sps:$4 sm:$0xff]  }
 0x894   : > { %v17641_v11 = vld [vmem:[%s23693_s11 + $0x1e4] ss:$8 sps:$4 sm:$0xff]   ;;  %v17639_v1 = vld [vmem:[%s23693_s11 + $0x1e0] ss:$8 sps:$4 sm:$0xff]  }
 0x896   : > { %13980 = vmatpush1.bf16.msra.mxu1 %v17594_v36  ;;  %14021 = vmatpush1.bf16.msra.mxu0 %v17597_v32  ;;  %v17644_v36 = vld [vmem:[%s23693_s11 + $0xd4] ss:$8 sps:$4 sm:$0xff]  }
 0x897   : > { %13981 = vmatprep.subr.bf16.mxu1 %v17602_v0  ;;  %14022 = vmatprep.subr.bf16.mxu0 %v17605_v15  ;;  %v17647_v32 = vld [vmem:[%s23693_s11 + $0x1d4] ss:$8 sps:$4 sm:$0xff]   ;;  %v17642_v0 = vld [vmem:[%s23693_s11 + $0xd0] ss:$8 sps:$4 sm:$0xff]  }
 0x898   : > { %v17645_v15 = vld [vmem:[%s23693_s11 + $0x1d0] ss:$8 sps:$4 sm:$0xff]  }
 0x89a   : > { %13982 = vmatpush1.bf16.msra.mxu1 %v17600_v5  ;;  %14023 = vmatpush1.bf16.msra.mxu0 %v17603_v37  ;;  %v17650_v5 = vld [vmem:[%s23693_s11 + $0xc4] ss:$8 sps:$4 sm:$0xff]  }
 0x89b   : > { %13983 = vmatprep.subr.bf16.mxu1 %v17608_v34  ;;  %14024 = vmatprep.subr.bf16.mxu0 %v17611_v19  ;;  %v17653_v37 = vld [vmem:[%s23693_s11 + $0x1c4] ss:$8 sps:$4 sm:$0xff]   ;;  %v17648_v34 = vld [vmem:[%s23693_s11 + $0xc0] ss:$8 sps:$4 sm:$0xff]  }
 0x89c   : > { %v17651_v19 = vld [vmem:[%s23693_s11 + $0x1c0] ss:$8 sps:$4 sm:$0xff]  }
 0x89e   : > { %13984 = vmatpush1.bf16.msra.mxu1 %v17606_v28  ;;  %14025 = vmatpush1.bf16.msra.mxu0 %v17609_v17  ;;  %v17656_v28 = vld [vmem:[%s23693_s11 + $0xb4] ss:$8 sps:$4 sm:$0xff]  }
 0x89f   : > { %v17659_v17 = vld [vmem:[%s23693_s11 + $0x1b4] ss:$8 sps:$4 sm:$0xff]  }
 0x8be   : > { %v12172_v55 = vpop.f32.mrf.mxu1 }
 0x8c0   : > { %v12174_v40 = vpop.f32.mrf.mxu1 }
 0x8c2   : > { %v12176_v62 = vpop.f32.mrf.mxu1 }
 0x8c4   : > { %v12178_v41 = vpop.f32.mrf.mxu1  ;;  %v11917_v25 = vpop.f32.mrf.mxu0 }
 0x8c5   : > { %v11934_v7 = vadd.f32 %v11917_v25, %v23147_v42  ;;  %v17614_v42 = vld [vmem:[%s23693_s11 + $0x24] ss:$8 sps:$4 sm:$0xff]   ;;  %v17660_v25 = vld [vmem:[%s23693_s11 + $0xa0] ss:$8 sps:$4 sm:$0xff]  }
 0x8c6   : > { %v12182_v58 = vpop.f32.mrf.mxu1  ;;  %v11919_v8 = vpop.f32.mrf.mxu0  ;;  %13985 = vmatprep.subr.bf16.mxu1 %v17614_v42  ;;  %v17680_v42 = vld [vmem:[%s23693_s11 + $0x274] ss:$8 sps:$4 sm:$0xff]  }
 0x8c7   : > { %v11935_v18 = vadd.f32 %v11919_v8, %v23150_v16  ;;  %v23226_v45 = vadd.f32 %v12172_v55, %v11934_v7  ;;  %v17617_v16 = vld [vmem:[%s23693_s11 + $0x124] ss:$8 sps:$4 sm:$0xff]   ;;  %13986 = vmatpush1.bf16.msra.mxu1 %v17612_v23  ;;  %v17654_v55 = vld [vmem:[%s23693_s11 + $0xb0] ss:$8 sps:$4 sm:$0xff]   ;;  %v17663_v7 = vld [vmem:[%s23693_s11 + $0x1a0] ss:$8 sps:$4 sm:$0xff]  }
 0x8c8   : > { %v12184_v39 = vpop.f32.mrf.mxu1  ;;  %v11921_v35 = vpop.f32.mrf.mxu0  ;;  %14026 = vmatprep.subr.bf16.mxu0 %v17617_v16  ;;  %13987 = vmatprep.subr.bf16.mxu1 %v17620_v2  ;;  %v17671_v8 = vld [vmem:[%s23693_s11 + $0x194] ss:$8 sps:$4 sm:$0xff]   ;;  %v17675_v23 = vld [vmem:[%s23693_s11 + $0x180] ss:$8 sps:$4 sm:$0xff]  }
 0x8c9   : > { %v11936_v53 = vadd.f32 %v11921_v35, %v23153_v20  ;;  %v23229_v4 = vadd.f32 %v12174_v40, %v11935_v18  ;;  %14027 = vmatpush1.bf16.msra.mxu0 %v17615_v14  ;;  %v17657_v40 = vld [vmem:[%s23693_s11 + $0x1b0] ss:$8 sps:$4 sm:$0xff]   ;;  %v17674_v35 = vld [vmem:[%s23693_s11 + $0x84] ss:$8 sps:$4 sm:$0xff]  }
 0x8ca   : > { %v12186_v59 = vpop.f32.mrf.mxu1  ;;  %v11923_v47 = vpop.f32.mrf.mxu0  ;;  %14028 = vmatprep.subr.bf16.mxu0 %v17623_v48  ;;  %v17666_v18 = vld [vmem:[%s23693_s11 + $0x90] ss:$8 sps:$4 sm:$0xff]  }
 0x8cb   : > { %v11937_v3 = vadd.f32 %v11923_v47, %v23157_v46  ;;  %v23232_v13 = vadd.f32 %v12176_v62, %v11936_v53  ;;  %13988 = vmatpush1.bf16.msra.mxu1 %v17618_v24  ;;  %v17662_v62 = vld [vmem:[%s23693_s11 + $0xa4] ss:$8 sps:$4 sm:$0xff]  }
 0x8cc   : > { %v12187_v29 = vpop.f32.mrf.mxu1  ;;  %v11927_v26 = vpop.f32.mrf.mxu0  ;;  %13989 = vmatprep.subr.bf16.mxu1 %v17626_v31  ;;  %v17677_v59 = vld [vmem:[%s23693_s11 + $0x184] ss:$8 sps:$4 sm:$0xff]  }
 0x8cd   : > { %v11938_v38 = vadd.f32 %v11927_v26, %v23160_v63  ;;  %v23247_v50 = vadd.f32 %v12178_v41, %v11937_v3  ;;  %v17621_v63 = vld [vmem:[%s23693_s11 + $0x110] ss:$8 sps:$4 sm:$0xff]   ;;  %v17665_v41 = vld [vmem:[%s23693_s11 + $0x1a4] ss:$8 sps:$4 sm:$0xff]   ;;  %v17672_v3 = vld [vmem:[%s23693_s11 + $0x80] ss:$8 sps:$4 sm:$0xff]  }
 0x8ce   : > { %v11929_v54 = vpop.f32.mrf.mxu0  ;;  %14029 = vmatpush1.bf16.msra.mxu0 %v17621_v63  ;;  %v17683_v29 = vld [vmem:[%s23693_s11 + $0x374] ss:$8 sps:$4 sm:$0xff]  }
 0x8cf   : > { %v11939_v20 = vadd.f32 %v11929_v54, %v23162_v27  ;;  %v23250_v9 = vadd.f32 %v12182_v58, %v11938_v38  ;;  %v17624_v27 = vld [vmem:[%s23693_s11] ss:$8 sps:$4 sm:$0xff]   ;;  %14030 = vmatprep.subr.bf16.mxu0 %v17629_v6  ;;  %v17668_v58 = vld [vmem:[%s23693_s11 + $0x94] ss:$8 sps:$4 sm:$0xff]  }
 0x8d0   : > { %v11931_v57 = vpop.f32.mrf.mxu0  ;;  %13990 = vmatpush1.bf16.msra.mxu1 %v17624_v27 }
 0x8d1   : > { %v23252_v30 = vadd.f32 %v12184_v39, %v11939_v20  ;;  %13991 = vmatprep.subr.bf16.mxu1 %v17632_v43  ;;  %v17669_v39 = vld [vmem:[%s23693_s11 + $0x190] ss:$8 sps:$4 sm:$0xff]  }
 0x8d2   : > { %v11932_v46 = vpop.f32.mrf.mxu0  ;;  %14031 = vmatpush1.bf16.msra.mxu0 %v17627_v22 }
 0x8d3   : > { %14032 = vmatprep.subr.bf16.mxu0 %v17635_v33 }
 0x8d4   : > { %13992 = vmatpush2.bf16.msra.mxu1 %v17630_v21 }
 0x8d5   : > { %13993 = vmatprep.subr.bf16.mxu1 %v17638_v60 }
 0x8d6   : > { %14033 = vmatpush2.bf16.msra.mxu0 %v17633_v61 }
 0x8d7   : > { %14034 = vmatprep.subr.bf16.mxu0 %v17641_v11 }
 0x8d8   : > { %13994 = vmatpush2.bf16.msra.mxu1 %v17636_v12 }
 0x8d9   : > { %13995 = vmatprep.subr.bf16.mxu1 %v17644_v36 }
 0x8da   : > { %14035 = vmatpush2.bf16.msra.mxu0 %v17639_v1 }
 0x8db   : > { %14036 = vmatprep.subr.bf16.mxu0 %v17647_v32 }
 0x8dc   : > { %13996 = vmatpush2.bf16.msra.mxu1 %v17642_v0 }
 0x8dd   : > { %13997 = vmatprep.subr.bf16.mxu1 %v17650_v5 }
 0x8de   : > { %14037 = vmatpush2.bf16.msra.mxu0 %v17645_v15 }
 0x8df   : > { %14038 = vmatprep.subr.bf16.mxu0 %v17653_v37 }
 0x8e0   : > { %13998 = vmatpush2.bf16.msra.mxu1 %v17648_v34 }
 0x8e1   : > { %13999 = vmatprep.subr.bf16.mxu1 %v17656_v28 }
 0x8e2   : > { %14039 = vmatpush2.bf16.msra.mxu0 %v17651_v19 }
 0x8e3   : > { %14040 = vmatprep.subr.bf16.mxu0 %v17659_v17 }
 0x8e4   : > { %14000 = vmatpush2.bf16.msra.mxu1 %v17654_v55 }
 0x8e5   : > { %14001 = vmatprep.subr.bf16.mxu1 %v17662_v62 }
 0x8e6   : > { %14041 = vmatpush2.bf16.msra.mxu0 %v17657_v40 }
 0x8e7   : > { %14042 = vmatprep.subr.bf16.mxu0 %v17665_v41 }
 0x8e8   : > { %14002 = vmatpush2.bf16.msra.mxu1 %v17660_v25 }
 0x8e9   : > { %14003 = vmatprep.subr.bf16.mxu1 %v17668_v58 }
 0x8ea   : > { %14043 = vmatpush2.bf16.msra.mxu0 %v17663_v7 }
 0x8eb   : > { %14044 = vmatprep.subr.bf16.mxu0 %v17671_v8 }
 0x8ec   : > { %14004 = vmatpush2.bf16.msra.mxu1 %v17666_v18 }
 0x8ed   : > { %14005 = vmatprep.subr.bf16.mxu1 %v17674_v35 }
 0x8ee   : > { %14045 = vmatpush2.bf16.msra.mxu0 %v17669_v39 }
 0x8ef   : > { %14046 = vmatprep.subr.bf16.mxu0 %v17677_v59 }
 0x8f0   : > { %14006 = vmatpush2.bf16.msra.mxu1 %v17672_v3 }
 0x8f1   : > { %14057 = vmatprep.subr.bf16.mxu1 %v17680_v42 }
 0x8f2   : > { %14047 = vmatpush2.bf16.msra.mxu0 %v17675_v23 }
 0x8f3   : > { %14098 = vmatprep.subr.bf16.mxu0 %v17683_v29 }
 0x8fe   : > { %v12742_v53 = vpop.f32.mrf.mxu1 }
 0x900   : > { %v12744_v47 = vpop.f32.mrf.mxu1 }
 0x902   : > { %v12746_v14 = vpop.f32.mrf.mxu1 }
 0x904   : > { %v12748_v26 = vpop.f32.mrf.mxu1  ;;  %v12447_v16 = vpop.f32.mrf.mxu0 }
 0x905   : > { %v12464_v38 = vadd.f32 %v12447_v16, %v23226_v45 }
 0x906   : > { %v12752_v54 = vpop.f32.mrf.mxu1  ;;  %v12449_v20 = vpop.f32.mrf.mxu0 }
 0x907   : > { %v12465_v57 = vadd.f32 %v12449_v20, %v23229_v4  ;;  %v12759_v46 = vadd.f32 %v12742_v53, %v12464_v38 }
 0x908   : > { %v12754_v24 = vpop.f32.mrf.mxu1  ;;  %v12451_v2 = vpop.f32.mrf.mxu0 }
 0x909   : > { %v12466_v63 = vadd.f32 %v12451_v2, %v23232_v13  ;;  %v12760_v48 = vadd.f32 %v12744_v47, %v12465_v57  ;;  %v13036_v13 = vld [vmem:[%s23692_s10] sm:$0x3] }
 0x90a   : > { %v12756_v27 = vpop.f32.mrf.mxu1  ;;  %v12453_v31 = vpop.f32.mrf.mxu0  ;;  %v13041_v36 = vrot.slane %v13036_v13, %v18896_v52  ;;  %v13045_v0 = vrot.slane %v13036_v13, %v18899_v10  ;;  %v13169_v13 = vsub.s32 5, %v18881_v56 }
 0x90b   : > { %v12467_v22 = vadd.f32 %v12453_v31, %v23247_v50  ;;  %v12761_v6 = vadd.f32 %v12746_v14, %v12466_v63 }
 0x90c   : > { %v12757_v21 = vpop.f32.mrf.mxu1  ;;  %v12457_v45 = vpop.f32.mrf.mxu0 }
 0x90d   : > { %v12468_v43 = vadd.f32 %v12457_v45, %v23250_v9  ;;  %v12762_v61 = vadd.f32 %v12748_v26, %v12467_v22 }
 0x90e   : > { %v12459_v33 = vpop.f32.mrf.mxu0 }
 0x90f   : > { %v12469_v60 = vadd.f32 %v12459_v33, %v23252_v30  ;;  %v12763_v4 = vadd.f32 %v12752_v54, %v12468_v43 }
 0x910   : > { %v12461_v11 = vpop.f32.mrf.mxu0 }
 0x911   : > { %v12764_v12 = vadd.f32 %v12754_v24, %v12469_v60 }
 0x912   : > { %v12462_v1 = vpop.f32.mrf.mxu0 }
 0x913   : > { %v13161_v1 = vsub.s32 3, %v18881_v56 }
 0x944   : > { %v13013_v50 = vpop.f32.mrf.mxu0 }
 0x945   : > { %v13030_v32 = vadd.f32 %v13013_v50, %v12759_v46 }
 0x946   : > { %v13015_v15 = vpop.f32.mrf.mxu0 }
 0x947   : > { %v13048_v9 = vadd.f32 %v13041_v36, %v13030_v32  ;;  %v13031_v5 = vadd.f32 %v13015_v15, %v12760_v48 }
 0x948   : > { %v13017_v37 = vpop.f32.mrf.mxu0 }
 0x949   : > { %v13049_v34 = vadd.f32 %v13045_v0, %v13031_v5  ;;  %v13032_v30 = vadd.f32 %v13017_v37, %v12761_v6  ;;  %v13054_v19 = vmax.f32 %v13048_v9, 0.0 }
 0x94a   : > { %v13019_v28 = vpop.f32.mrf.mxu0 }
 0x94b   : > { %v13050_v17 = vadd.f32 %v13041_v36, %v13032_v30  ;;  %v13033_v55 = vadd.f32 %v13019_v28, %v12762_v61  ;;  %v13055_v40 = vmax.f32 %v13049_v34, 0.0  ;;  %v13065_v58 = vrot.slane %v13054_v19, 6  ;;  %v17678_v34 = vld [vmem:[%s23693_s11 + $0x270] ss:$8 sps:$4 sm:$0xff]  }
 0x94c   : > { %v13023_v62 = vpop.f32.mrf.mxu0  ;;  %v17681_v30 = vld [vmem:[%s23693_s11 + $0x370] ss:$8 sps:$4 sm:$0xff]  }
 0x94d   : > { %v13056_v41 = vmax.f32 %v13050_v17, 0.0  ;;  %v13051_v25 = vadd.f32 %v13045_v0, %v13033_v55  ;;  %v13034_v7 = vadd.f32 %v13023_v62, %v12763_v4  ;;  %v13068_v59 = vrot.slane %v13055_v40, 6  ;;  %v17689_v17 = vld [vmem:[%s23693_s11 + $0x364] ss:$8 sps:$4 sm:$0xff]   ;;  %v17684_v62 = vld [vmem:[%s23693_s11 + $0x260] ss:$8 sps:$4 sm:$0xff]  }
 0x94e   : > { %v13025_v8 = vpop.f32.mrf.mxu0 }
 0x94f   : > { %v13066_v18 = vrot.slane %v13056_v41, 6  ;;  %v13057_v39 = vmax.f32 %v13051_v25, 0.0  ;;  %v13052_v35 = vadd.f32 %v13041_v36, %v13034_v7  ;;  %v13035_v53 = vadd.f32 %v13025_v8, %v12764_v12  ;;  %v17692_v25 = vld [vmem:[%s23693_s11 + $0x254] ss:$8 sps:$4 sm:$0xff]   ;;  %v17693_v8 = vld [vmem:[%s23693_s11 + $0x350] ss:$8 sps:$4 sm:$0xff]  }
 0x950   : > { %v13027_v47 = vpop.f32.mrf.mxu0  ;;  %v13177_v36 = vsub.s32 7, %v18881_v56  ;;  %v17695_v7 = vld [vmem:[%s23693_s11 + $0x354] ss:$8 sps:$4 sm:$0xff]  }
 0x951   : > { %v13067_v3 = vsel %vm13064_vm13, %v13065_v58, %v13066_v18  ;;  %v13069_v23 = vrot.slane %v13057_v39, 6  ;;  %v13058_v42 = vmax.f32 %v13052_v35, 0.0  ;;  %v13053_v14 = vadd.f32 %v13045_v0, %v13035_v53  ;;  %v17690_v58 = vld [vmem:[%s23693_s11 + $0x250] ss:$8 sps:$4 sm:$0xff]   ;;  %v17698_v18 = vld [vmem:[%s23693_s11 + $0x244] ss:$8 sps:$4 sm:$0xff]  }
 0x952   : > { %v13073_v29 = vmax.f32 %v13054_v19, %v13067_v3  ;;  %v13028_v26 = vpop.f32.mrf.mxu0  ;;  %v17696_v35 = vld [vmem:[%s23693_s11 + $0x240] ss:$8 sps:$4 sm:$0xff]   ;;  %v17707_v47 = vld [vmem:[%s23693_s11 + $0x334] ss:$8 sps:$4 sm:$0xff]   ;;  %v17702_v3 = vld [vmem:[%s23693_s11 + $0x230] ss:$8 sps:$4 sm:$0xff]  }
 0x953   : > { %v13070_v16 = vsel %vm13064_vm13, %v13068_v59, %v13069_v23  ;;  %v13109_v38 = vrot.slane %v13058_v42, 6  ;;  %v13059_v54 = vmax.f32 %v13053_v14, 0.0  ;;  %v17699_v53 = vld [vmem:[%s23693_s11 + $0x340] ss:$8 sps:$4 sm:$0xff]   ;;  %v17704_v59 = vld [vmem:[%s23693_s11 + $0x234] ss:$8 sps:$4 sm:$0xff]  }
 0x954   : > { %v13077_v20 = vrot.slane %v13073_v29, 1  ;;  %v13074_v57 = vmax.f32 %v13055_v40, %v13070_v16  ;;  %v17705_v23 = vld [vmem:[%s23693_s11 + $0x330] ss:$8 sps:$4 sm:$0xff]   ;;  %v17710_v42 = vld [vmem:[%s23693_s11 + $0x224] ss:$8 sps:$4 sm:$0xff]  }
 0x955   : > { %v13113_v46 = vmax.f32 %v13056_v41, %v13109_v38  ;;  %v13110_v24 = vrot.slane %v13059_v54, 6  ;;  %v17687_v41 = vld [vmem:[%s23693_s11 + $0x360] ss:$8 sps:$4 sm:$0xff]   ;;  %v17713_v14 = vld [vmem:[%s23693_s11 + $0x324] ss:$8 sps:$4 sm:$0xff]  }
 0x956   : > { %v13078_v2 = vrot.slane %v13074_v57, 1  ;;  %v13081_v27 = vmax.f32 %v13073_v29, %v13077_v20  ;;  %v17708_v29 = vld [vmem:[%s23693_s11 + $0x220] ss:$8 sps:$4 sm:$0xff]   ;;  %v17716_v16 = vld [vmem:[%s23693_s11 + $0x214] ss:$8 sps:$4 sm:$0xff]  }
 0x957   : > { %v13117_v63 = vrot.slane %v13113_v46, 1  ;;  %v13114_v48 = vmax.f32 %v13057_v39, %v13110_v24  ;;  %v17701_v39 = vld [vmem:[%s23693_s11 + $0x344] ss:$8 sps:$4 sm:$0xff]   ;;  %v17711_v26 = vld [vmem:[%s23693_s11 + $0x320] ss:$8 sps:$4 sm:$0xff]  }
 0x958   : > { %v13082_v31 = vmax.f32 %v13074_v57, %v13078_v2  ;;  %v17719_v38 = vld [vmem:[%s23693_s11 + $0x314] ss:$8 sps:$4 sm:$0xff]   ;;  %v17714_v54 = vld [vmem:[%s23693_s11 + $0x210] ss:$8 sps:$4 sm:$0xff]   ;;  %v17722_v57 = vld [vmem:[%s23693_s11 + $0x204] ss:$8 sps:$4 sm:$0xff]  }
 0x959   : > { %v13118_v22 = vrot.slane %v13114_v48, 1  ;;  %v13121_v21 = vmax.f32 %v13113_v46, %v13117_v63  ;;  %v17717_v20 = vld [vmem:[%s23693_s11 + $0x310] ss:$8 sps:$4 sm:$0xff]   ;;  %v17725_v46 = vld [vmem:[%s23693_s11 + $0x304] ss:$8 sps:$4 sm:$0xff]  }
 0x95a   : > { %v13085_v6 = vcombine.low %v13081_v27, %v13082_v31  ;;  %v17720_v24 = vld [vmem:[%s23693_s11 + $0x200] ss:$8 sps:$4 sm:$0xff]   ;;  %v17728_v63 = vld [vmem:[%s23693_s11 + $0x2f4] ss:$8 sps:$4 sm:$0xff]   ;;  %v17726_v27 = vld [vmem:[%s23693_s11 + $0x2f0] ss:$8 sps:$4 sm:$0xff]  }
 0x95b   : > { %v13122_v45 = vmax.f32 %v13114_v48, %v13118_v22  ;;  %v17723_v2 = vld [vmem:[%s23693_s11 + $0x300] ss:$8 sps:$4 sm:$0xff]   ;;  %v17731_v48 = vld [vmem:[%s23693_s11 + $0x3f4] ss:$8 sps:$4 sm:$0xff]   ;;  %v17729_v31 = vld [vmem:[%s23693_s11 + $0x3f0] ss:$8 sps:$4 sm:$0xff]  }
 0x95c   : > { %v13092_v43 = vrot.slane %v13085_v6, %v18920_v51  ;;  %v17734_v22 = vld [vmem:[%s23693_s11 + $0x2e4] ss:$8 sps:$4 sm:$0xff]  }
 0x95d   : > { %v13125_v61 = vcombine.high %v13121_v21, %v13122_v45  ;;  %v17737_v6 = vld [vmem:[%s23693_s11 + $0x3e4] ss:$8 sps:$4 sm:$0xff]   ;;  %v17732_v21 = vld [vmem:[%s23693_s11 + $0x2e0] ss:$8 sps:$4 sm:$0xff]  }
 0x95e   : > { %v13099_v33 = vrot.slane %v13092_v43, %v18920_v51  ;;  %v17735_v45 = vld [vmem:[%s23693_s11 + $0x3e0] ss:$8 sps:$4 sm:$0xff]   ;;  %v17740_v43 = vld [vmem:[%s23693_s11 + $0x2d4] ss:$8 sps:$4 sm:$0xff]  }
 0x95f   : > { %v13132_v60 = vrot.slane %v13125_v61, %v18920_v51  ;;  %v17743_v61 = vld [vmem:[%s23693_s11 + $0x3d4] ss:$8 sps:$4 sm:$0xff]  }
 0x960   : > { %v13104_v4 = vcombine.high %v13099_v33, %v13099_v33  ;;  %13103 = vst.msk [vmem:[#allocation6] sm:$0x3] %vm13101_vm14, %v13099_v33  ;;  %v17738_v33 = vld [vmem:[%s23693_s11 + $0x2d0] ss:$8 sps:$4 sm:$0xff]  }
 0x961   : > { %v13139_v11 = vrot.slane %v13132_v60, %v18920_v51  ;;  %v17741_v60 = vld [vmem:[%s23693_s11 + $0x3d0] ss:$8 sps:$4 sm:$0xff]  }
 0x962   : > { %13106 = vst.msk [vmem:[#allocation6 + $0x2] sm:$0x3] %vm13101_vm14, %v13104_v4  ;;  %v17746_v4 = vld [vmem:[%s23693_s11 + $0x2c4] ss:$8 sps:$4 sm:$0xff]  }
 0x963   : > { %13141 = vst.msk [vmem:[#allocation6 + $0x4] sm:$0x3] %vm13101_vm14, %v13139_v11  ;;  %v13142_v12 = vcombine.high %v13139_v11, %v13139_v11  ;;  %v17749_v11 = vld [vmem:[%s23693_s11 + $0x3c4] ss:$8 sps:$4 sm:$0xff]  }
 0x965   : > { %13144 = vst.msk [vmem:[#allocation6 + $0x6] sm:$0x3] %vm13101_vm14, %v13142_v12  ;;  %v17744_v12 = vld [vmem:[%s23693_s11 + $0x2c0] ss:$8 sps:$4 sm:$0xff]  }
 0x96c   : > { %v23399_v49 = vld [vmem:[#allocation6] sm:$0xff] }
 0x96d   : > { %v13154_v50 = vrot.slane %v23399_v49, %v18899_v10  ;;  %v13162_v32 = vrot.slane %v23399_v49, %v13161_v1  ;;  %v13150_v51 = vrot.slane %v23399_v49, %v18896_v52  ;;  %v13158_v0 = vrot.slane %v23399_v49, %v6517_v44  ;;  %v17686_v44 = vld [vmem:[%s23693_s11 + $0x264] ss:$8 sps:$4 sm:$0xff]   ;;  %v17747_v1 = vld [vmem:[%s23693_s11 + $0x3c0] ss:$8 sps:$4 sm:$0xff]  }
 0x96e   : > { %v13170_v15 = vrot.slane %v23399_v49, %v13169_v13  ;;  %v13178_v9 = vrot.slane %v23399_v49, %v13177_v36  ;;  %v17752_v13 = vld [vmem:[%s23693_s11 + $0x2b4] ss:$8 sps:$4 sm:$0xff]  }
 0x96f   : > { %v13188_v5 = vpack.c.bf16 %v13154_v50, %v13154_v50  ;;  %v13190_v37 = vpack.c.bf16 %v13162_v32, %v13162_v32  ;;  %v13187_v19 = vpack.c.bf16 %v13150_v51, %v13150_v51  ;;  %v13189_v28 = vpack.c.bf16 %v13158_v0, %v13158_v0  ;;  %v17755_v36 = vld [vmem:[%s23693_s11 + $0x3b4] ss:$8 sps:$4 sm:$0xff]   ;;  %v17750_v50 = vld [vmem:[%s23693_s11 + $0x2b0] ss:$8 sps:$4 sm:$0xff]   ;;  %v17758_v51 = vld [vmem:[%s23693_s11 + $0x2a4] ss:$8 sps:$4 sm:$0xff]  }
 0x970   : > { %v13192_v55 = vpack.c.bf16 %v13170_v15, %v13170_v15  ;;  %v13194_v40 = vpack.c.bf16 %v13178_v9, %v13178_v9  ;;  %v17753_v32 = vld [vmem:[%s23693_s11 + $0x3b0] ss:$8 sps:$4 sm:$0xff]   ;;  %v17761_v0 = vld [vmem:[%s23693_s11 + $0x3a4] ss:$8 sps:$4 sm:$0xff]   ;;  %v17756_v15 = vld [vmem:[%s23693_s11 + $0x2a0] ss:$8 sps:$4 sm:$0xff]  }
 0x971   : > { %14007 = vmatprep.mubr.bf16.mxu1 %v13188_v5  ;;  %14048 = vmatprep.mubr.bf16.mxu0 %v13190_v37  ;;  %v17759_v9 = vld [vmem:[%s23693_s11 + $0x3a0] ss:$8 sps:$4 sm:$0xff]   ;;  %v17764_v5 = vld [vmem:[%s23693_s11 + $0x294] ss:$8 sps:$4 sm:$0xff]  }
 0x972   : > { %14008 = vmatmul.mubr.bf16.vlgmr.msra.gmra.mxu1 %v13187_v19  ;;  %14049 = vmatmul.mubr.bf16.vlgmr.msra.gmra.mxu0 %v13189_v28  ;;  %v17767_v37 = vld [vmem:[%s23693_s11 + $0x394] ss:$8 sps:$4 sm:$0xff]   ;;  %v17770_v19 = vld [vmem:[%s23693_s11 + $0x284] ss:$8 sps:$4 sm:$0xff]  }
 0x973   : > { %14058 = vmatpush1.bf16.msra.mxu1 %v17678_v34  ;;  %14099 = vmatpush1.bf16.msra.mxu0 %v17681_v30  ;;  %v17762_v34 = vld [vmem:[%s23693_s11 + $0x290] ss:$8 sps:$4 sm:$0xff]   ;;  %v17773_v28 = vld [vmem:[%s23693_s11 + $0x384] ss:$8 sps:$4 sm:$0xff]  }
 0x974   : > { %14089 = vmatprep.mubr.bf16.mxu1 %v13192_v55  ;;  %14130 = vmatprep.mubr.bf16.mxu0 %v13194_v40  ;;  %v17765_v30 = vld [vmem:[%s23693_s11 + $0x390] ss:$8 sps:$4 sm:$0xff]   ;;  %v17768_v55 = vld [vmem:[%s23693_s11 + $0x280] ss:$8 sps:$4 sm:$0xff]  }
 0x975   : > { %14059 = vmatprep.subr.bf16.mxu1 %v17686_v44  ;;  %14100 = vmatprep.subr.bf16.mxu0 %v17689_v17  ;;  %v13165_v44 = vsub.s32 4, %v18881_v56  ;;  %v13173_v17 = vsub.s32 6, %v18881_v56  ;;  %v17771_v40 = vld [vmem:[%s23693_s11 + $0x380] ss:$8 sps:$4 sm:$0xff]  }
 0x977   : > { %14060 = vmatpush1.bf16.msra.mxu1 %v17684_v62  ;;  %14101 = vmatpush1.bf16.msra.mxu0 %v17687_v41  ;;  %v13166_v62 = vrot.slane %v23399_v49, %v13165_v44  ;;  %v13174_v41 = vrot.slane %v23399_v49, %v13173_v17  ;;  %v17777_v49 = vld [vmem:[%s23695_s13 + $0x30] sm:$0xff]  }
 0x978   : > { %14061 = vmatprep.subr.bf16.mxu1 %v17692_v25  ;;  %14102 = vmatprep.subr.bf16.mxu0 %v17695_v7  ;;  %v17774_v7 = vld [vmem:[%s23695_s13 + $0x78] sm:$0xff]  }
 0x979   : > { %v13191_v25 = vpack.c.bf16 %v13166_v62, %v13166_v62  ;;  %v13193_v56 = vpack.c.bf16 %v13174_v41, %v13174_v41 }
 0x97b   : > { %14062 = vmatpush1.bf16.msra.mxu1 %v17690_v58  ;;  %14103 = vmatpush1.bf16.msra.mxu0 %v17693_v8  ;;  %v17775_v58 = vld [vmem:[%s23695_s13 + $0x38] sm:$0xff]   ;;  %v17776_v8 = vld [vmem:[%s23695_s13 + $0x70] sm:$0xff]  }
 0x97c   : > { %14063 = vmatprep.subr.bf16.mxu1 %v17698_v18  ;;  %14104 = vmatprep.subr.bf16.mxu0 %v17701_v39  ;;  %v17778_v18 = vld [vmem:[%s23695_s13 + $0x68] sm:$0xff]  }
 0x97d   : > { %v17779_v39 = vld [vmem:[%s23695_s13 + $0x28] sm:$0xff]  }
 0x97f   : > { %14064 = vmatpush1.bf16.msra.mxu1 %v17696_v35  ;;  %14105 = vmatpush1.bf16.msra.mxu0 %v17699_v53  ;;  %v17780_v35 = vld [vmem:[%s23695_s13 + $0x60] sm:$0xff]  }
 0x980   : > { %14065 = vmatprep.subr.bf16.mxu1 %v17704_v59  ;;  %14106 = vmatprep.subr.bf16.mxu0 %v17707_v47  ;;  %v17781_v53 = vld [vmem:[%s23695_s13 + $0x20] sm:$0xff]   ;;  %v17782_v59 = vld [vmem:[%s23695_s13 + $0x58] sm:$0xff]  }
 0x981   : > { %v17783_v47 = vld [vmem:[%s23695_s13 + $0x18] sm:$0xff]  }
 0x983   : > { %14066 = vmatpush1.bf16.msra.mxu1 %v17702_v3  ;;  %14107 = vmatpush1.bf16.msra.mxu0 %v17705_v23  ;;  %v17784_v3 = vld [vmem:[%s23695_s13 + $0x50] sm:$0xff]  }
 0x984   : > { %14067 = vmatprep.subr.bf16.mxu1 %v17710_v42  ;;  %14108 = vmatprep.subr.bf16.mxu0 %v17713_v14  ;;  %v17785_v23 = vld [vmem:[%s23695_s13 + $0x10] sm:$0xff]   ;;  %v17786_v42 = vld [vmem:[%s23695_s13 + $0x48] sm:$0xff]  }
 0x985   : > { %v17787_v14 = vld [vmem:[%s23695_s13 + $0x8] sm:$0xff]  }
 0x987   : > { %14068 = vmatpush1.bf16.msra.mxu1 %v17708_v29  ;;  %14109 = vmatpush1.bf16.msra.mxu0 %v17711_v26  ;;  %v17788_v29 = vld [vmem:[%s23695_s13 + $0x40] sm:$0xff]  }
 0x988   : > { %14069 = vmatprep.subr.bf16.mxu1 %v17716_v16  ;;  %14110 = vmatprep.subr.bf16.mxu0 %v17719_v38  ;;  %v17789_v26 = vld [vmem:[%s23695_s13] sm:$0xff]   ;;  %v17804_v16 = vld [vmem:[#allocation3 + $0x50] sm:$0xff] }
 0x98b   : > { %14070 = vmatpush1.bf16.msra.mxu1 %v17714_v54  ;;  %14111 = vmatpush1.bf16.msra.mxu0 %v17717_v20 }
 0x98c   : > { %14071 = vmatprep.subr.bf16.mxu1 %v17722_v57  ;;  %14112 = vmatprep.subr.bf16.mxu0 %v17725_v46 }
 0x98f   : > { %14072 = vmatpush1.bf16.msra.mxu1 %v17720_v24  ;;  %14113 = vmatpush1.bf16.msra.mxu0 %v17723_v2 }
 0x990   : > { %14073 = vmatprep.subr.bf16.mxu1 %v17728_v63  ;;  %14114 = vmatprep.subr.bf16.mxu0 %v17731_v48  ;;  %v13323_v48 = vld [vmem:[%s23694_s12] sm:$0x3] }
 0x993   : > { %14074 = vmatpush2.bf16.msra.mxu1 %v17726_v27  ;;  %14115 = vmatpush2.bf16.msra.mxu0 %v17729_v31  ;;  %v13968_v27 = vrot.slane %v13323_v48, %v18896_v52  ;;  %v13972_v31 = vrot.slane %v13323_v48, %v18899_v10  ;;  %v17790_v10 = vld [vmem:[%s23697_s15 + $0x18] sm:$0xff]  }
 0x994   : > { %14075 = vmatprep.subr.bf16.mxu1 %v17734_v22  ;;  %14116 = vmatprep.subr.bf16.mxu0 %v17737_v6 }
 0x997   : > { %14076 = vmatpush2.bf16.msra.mxu1 %v17732_v21  ;;  %14117 = vmatpush2.bf16.msra.mxu0 %v17735_v45 }
 0x998   : > { %14077 = vmatprep.subr.bf16.mxu1 %v17740_v43  ;;  %14118 = vmatprep.subr.bf16.mxu0 %v17743_v61 }
 0x99b   : > { %14078 = vmatpush2.bf16.msra.mxu1 %v17738_v33  ;;  %14119 = vmatpush2.bf16.msra.mxu0 %v17741_v60 }
 0x99c   : > { %14079 = vmatprep.subr.bf16.mxu1 %v17746_v4  ;;  %14120 = vmatprep.subr.bf16.mxu0 %v17749_v11 }
 0x99f   : > { %14080 = vmatpush2.bf16.msra.mxu1 %v17744_v12  ;;  %14121 = vmatpush2.bf16.msra.mxu0 %v17747_v1 }
 0x9a0   : > { %14081 = vmatprep.subr.bf16.mxu1 %v17752_v13  ;;  %14122 = vmatprep.subr.bf16.mxu0 %v17755_v36 }
 0x9a3   : > { %14082 = vmatpush2.bf16.msra.mxu1 %v17750_v50  ;;  %14123 = vmatpush2.bf16.msra.mxu0 %v17753_v32 }
 0x9a4   : > { %14083 = vmatprep.subr.bf16.mxu1 %v17758_v51  ;;  %14124 = vmatprep.subr.bf16.mxu0 %v17761_v0 }
 0x9a7   : > { %14084 = vmatpush2.bf16.msra.mxu1 %v17756_v15  ;;  %14125 = vmatpush2.bf16.msra.mxu0 %v17759_v9 }
 0x9a8   : > { %14085 = vmatprep.subr.bf16.mxu1 %v17764_v5  ;;  %14126 = vmatprep.subr.bf16.mxu0 %v17767_v37  ;;  %v17791_v5 = vld [vmem:[%s23697_s15 + $0x10] sm:$0xff]   ;;  %v17792_v37 = vld [vmem:[%s23697_s15 + $0x8] sm:$0xff]  }
 0x9ab   : > { %14086 = vmatpush2.bf16.msra.mxu1 %v17762_v34  ;;  %14127 = vmatpush2.bf16.msra.mxu0 %v17765_v30  ;;  %v17793_v34 = vld [vmem:[%s23697_s15] sm:$0xff]  }
 0x9ac   : > { %14087 = vmatprep.subr.bf16.mxu1 %v17770_v19  ;;  %14128 = vmatprep.subr.bf16.mxu0 %v17773_v28  ;;  %v14175_v19 = vld [vmem:[%s23696_s14] sm:$0x1] }
 0x9af   : > { %14088 = vmatpush2.bf16.msra.mxu1 %v17768_v55  ;;  %14129 = vmatpush2.bf16.msra.mxu0 %v17771_v40 }
 0x9b0   : > { %15857 = vmatprep.subr.bf16.mxu1 %v17774_v7 }
 0x9b2   : > { %14090 = vmatmul.mubr.bf16.vlgmr.msra.gmra.mxu1 %v13191_v25  ;;  %14131 = vmatmul.mubr.bf16.vlgmr.msra.gmra.mxu0 %v13193_v56  ;;  %v14322_v25 = vld [vmem:[%s23698_s16] sm:$0x1] }
 0x9b3   : > { %15858 = vmatpush3.bf16.msra.mxu1 %v17775_v58 }
 0x9b4   : > { %15859 = vmatprep.subr.bf16.mxu1 %v17776_v8 }
 0x9b7   : > { %15860 = vmatpush3.bf16.msra.mxu1 %v17777_v49 }
 0x9b8   : > { %15861 = vmatprep.subr.bf16.mxu1 %v17778_v18 }
 0x9bb   : > { %15862 = vmatpush3.bf16.msra.mxu1 %v17779_v39 }
 0x9bc   : > { %15863 = vmatprep.subr.bf16.mxu1 %v17780_v35 }
 0x9bf   : > { %15864 = vmatpush3.bf16.msra.mxu1 %v17781_v53 }
 0x9c0   : > { %15865 = vmatprep.subr.bf16.mxu1 %v17782_v59 }
 0x9c3   : > { %15866 = vmatpush3.bf16.msra.mxu1 %v17783_v47 }
 0x9c4   : > { %15867 = vmatprep.subr.bf16.mxu1 %v17784_v3 }
 0x9c7   : > { %15868 = vmatpush3.bf16.msra.mxu1 %v17785_v23 }
 0x9c8   : > { %15869 = vmatprep.subr.bf16.mxu1 %v17786_v42 }
 0x9cb   : > { %15870 = vmatpush3.bf16.msra.mxu1 %v17787_v14 }
 0x9cc   : > { %15871 = vmatprep.subr.bf16.mxu1 %v17788_v29 }
 0x9cf   : > { %15872 = vmatpush3.bf16.msra.mxu1 %v17789_v26 }
 0x9d0   : > { %15920 = vmatprep.subr.bf16.mxu1 %v17804_v16 }
 0xa32   : > { %v14009_v38 = vpop.f32.mrf.mxu1  ;;  %v14050_v54 = vpop.f32.mrf.mxu0 }
 0xa33   : > { %v14010_v22 = vadd.f32 %v14009_v38, %v13968_v27 }
 0xa34   : > { %v14011_v20 = vpop.f32.mrf.mxu1  ;;  %v14052_v57 = vpop.f32.mrf.mxu0 }
 0xa35   : > { %v14012_v6 = vadd.f32 %v14011_v20, %v13972_v31  ;;  %v14051_v21 = vadd.f32 %v14050_v54, %v14010_v22 }
 0xa36   : > { %v14013_v46 = vpop.f32.mrf.mxu1  ;;  %v14054_v24 = vpop.f32.mrf.mxu0 }
 0xa37   : > { %v14053_v61 = vadd.f32 %v14052_v57, %v14012_v6 }
 0xa38   : > { %v14014_v2 = vpop.f32.mrf.mxu1  ;;  %v14055_v63 = vpop.f32.mrf.mxu0 }
 0xa72   : > { %v14091_v45 = vpop.f32.mrf.mxu1  ;;  %v14132_v43 = vpop.f32.mrf.mxu0 }
 0xa73   : > { %v14092_v33 = vadd.f32 %v14091_v45, %v14051_v21 }
 0xa74   : > { %v14093_v60 = vpop.f32.mrf.mxu1  ;;  %v14134_v4 = vpop.f32.mrf.mxu0 }
 0xa75   : > { %v14133_v11 = vadd.f32 %v14132_v43, %v14092_v33  ;;  %v14094_v12 = vadd.f32 %v14093_v60, %v14053_v61 }
 0xa76   : > { %v14095_v1 = vpop.f32.mrf.mxu1  ;;  %v14136_v13 = vpop.f32.mrf.mxu0 }
 0xa77   : > { %v14135_v36 = vadd.f32 %v14134_v4, %v14094_v12  ;;  %v14139_v50 = vmax.f32 %v14133_v11, 0.0 }
 0xa78   : > { %v14096_v32 = vpop.f32.mrf.mxu1  ;;  %v14137_v51 = vpop.f32.mrf.mxu0 }
 0xa79   : > { %v14140_v0 = vmax.f32 %v14135_v36, 0.0  ;;  %v14141_v9 = vpack.c.bf16 %v14139_v50, %v14139_v50 }
 0xa7b   : > { %v14142_v15 = vpack.c.bf16 %v14140_v0, %v14140_v0 }
 0xa7d   : > { %14304 = vmatprep.mubr.bf16.mxu1 %v14142_v15 }
 0xa7e   : > { %14305 = vmatmul.mubr.bf16.vlgmr.msra.gmra.mxu1 %v14141_v9 }
 0xa7f   : > { %15921 = vmatpush3.bf16.msra.mxu1 %v17790_v10  ;;  %15928 = vmatprep.mubr.msk.bf16.mxu1 %vm17816_vm15, %v17804_v16 }
 0xa80   : > { %15922 = vmatprep.subr.bf16.mxu1 %v17804_v16 }
 0xa83   : > { %15923 = vmatpush3.bf16.msra.mxu1 %v17791_v5 }
 0xa84   : > { %15924 = vmatprep.subr.bf16.mxu1 %v17804_v16 }
 0xa87   : > { %15925 = vmatpush3.bf16.msra.mxu1 %v17792_v37 }
 0xa88   : > { %15926 = vmatprep.subr.bf16.mxu1 %v17804_v16 }
 0xa8b   : > { %15927 = vmatpush3.bf16.msra.mxu1 %v17793_v34 }
 0xb3e   : > { %v15873_v30 = vpop.f32.mrf.mxu1 }
 0xb40   : > { %v15874_v28 = vpop.f32.mrf.mxu1 }
 0xb41   : > { %v15875_v44 = vadd.f32 %v15874_v28, %v15873_v30 }
 0xb42   : > { %v15876_v17 = vpop.f32.mrf.mxu1 }
 0xb43   : > { %v14307_v55 = vadd.f32 %v15875_v44, %v14175_v19 }
 0xb44   : > { %v15877_v40 = vpop.f32.mrf.mxu1 }
 0xb45   : > { %v14312_v62 = vmax.f32 %v14307_v55, 0.0 }
 0xb47   : > { %v14313_v41 = vpack.c.bf16 %v14312_v62, %v14312_v62 }
 0xb49   : > { %15929 = vmatmul.mubr.msk.bf16.vlgmr.msra.gmra.mxu1 %vm550_vm1, %v14313_v41 }
 0xc09   : > { %v14384_v56 = vpop.f32.mrf.mxu1 }
 0xc0a   : > { %v14385_v7 = vadd.f32 %v14384_v56, %v14322_v25 }
 0xc0b   : > { %v15930_v58 = vpop.f32.mrf.mxu1 }
 0xc0c   : > { %v14393_v8 = vrot.slane %v14385_v7, %v18896_v52 }
 0xc0d   : > { %v14387_v49 = vpop.f32.mrf.mxu1 }
 0xc0e   : > { %14394 = vst [vmem:[%s548_s27] sm:$0xff] %v14393_v8 }
 0xc0f   : > { %v15931_v18 = vpop.f32.mrf.mxu1 }
 0xc10 PF: > { %s27_s24 = sadd.s32 1, %s17811_s24  }
 0xc11   : > { %p24_p5 = scmp.ge.s32.totalorder %s27_s24, 4  }
 0xc13   :  { %26 = sbr.rel (!%p24_p5) target bundleno = 3 (0x3), region = 134 }

</bundles_post_ra>
